<compile_context>
chip_gen: v7x
topology: tpu7x:2x2x1
jax: 0.10.0
libtpu: 0.0.40
codegen_flags: <defaults>
</compile_context>

<pallas_src>
import jax
import jax.numpy as jnp
from jax.experimental import pallas as pl
from jax.experimental.pallas import tpu as pltpu


H_GRU = 64          # nn.GRU hidden size
H_FC1 = 32          # head hidden size
ALPHA = 0.2         # LeakyReLU slope


# --------------------------------------------------------------------------
# Fused kernel: ConvLayer -> FeatureAttentionLayer -> 2-layer GRU -> MLP head
# One batch block (Bt rows) per grid step; everything stays in VMEM.
# --------------------------------------------------------------------------
def _make_fused_kernel(Bt, W, F, H, alpha):
    f32 = jnp.float32
    H3 = 3 * H

    def kernel(x_ref, wband_ref, cb_ref, a12_ref, b12_ref,
               wih0_ref, bih0_ref, whh0_ref, bhh0_ref,
               wih1_ref, bih1_ref, whh1_ref, bhh1_ref,
               fc1w_ref, fc1b_ref, fc2w_ref, fc2b_ref,
               o_ref, gi0_ref):
        # ---- Stage 1: ConvLayer as one banded, lane-dense matmul --------------------
        # x_ref is (Bt, W*F) flat (w-major, feature-minor); zero "same" padding is
        # baked into the banded weight, so no padded scratch and no lane concats.
        c = jnp.dot(x_ref[...], wband_ref[...], preferred_element_type=f32) + cb_ref[...]
        c = jnp.maximum(c, 0.0)                               # (Bt, W*F), ReLU

        # ---- Stage 2: FeatureAttentionLayer ----------------------------------------
        # The fc(window->window) layer is folded into the score weights at pack time:
        #   s1[b,i] = sum_w c[b,w,i] * a1[w]
        #   s2[b,j] = sum_w c[b,w,j] * (fcw^T a2)[w] + fcb.a2
        # Both come out of one tiny matmul on the flat conv output.
        s12 = jnp.dot(c, a12_ref[...], preferred_element_type=f32) + b12_ref[...]
        s1 = s12[:, :F]                                       # (Bt, F)
        s2 = s12[:, F:2 * F]                                  # (Bt, F)
        e = s1[:, :, None] + s2[:, None, :]                   # (Bt, F, F)
        e = jnp.where(e > 0.0, e, alpha * e)                  # LeakyReLU
        e = e - jnp.max(e, axis=-1, keepdims=True)            # softmax(dim=2)
        p = jnp.exp(e)
        att = p / jnp.sum(p, axis=-1, keepdims=True)          # (Bt, F, F)
        # (dropout on `att` is identity in eval mode)

        # a[b,t,i] = sigmoid( sum_j att[b,i,j] * c[b,t,j] )  -- tiny VPU contraction
        c3 = c.reshape(Bt, W, F)
        m = jnp.zeros((Bt, W, F), f32)
        for j in range(F):
            m = m + c3[:, :, j:j + 1] * att[:, :, j][:, None, :]
        a = jax.nn.sigmoid(m)                                 # (Bt, W, F)  GRU input

        # ---- Stage 3: hoist layer-0 input gates for ALL timesteps, TIME-MAJOR ------
        # gi0 row (t*Bt + b) = a[b,t,:] @ Wih0_fused + b_ih0   (gates r|z|n on lanes)
        a_tm = jnp.transpose(a, (1, 0, 2)).reshape(W * Bt, F)
        gi0_ref[...] = (jnp.dot(a_tm, wih0_ref[...], preferred_element_type=f32)
                        + bih0_ref[...])

        # ---- Stage 4: 2-layer GRU, fused-gate matmuls, statically unrolled ---------
        h1 = jnp.zeros((Bt, H), f32)
        h2 = jnp.zeros((Bt, H), f32)
        for t in range(W):
            gi = gi0_ref[t * Bt:(t + 1) * Bt, :]              # contiguous (Bt, 3H)
            # layer 0 (recurrent part only; input part hoisted above)
            gh = jnp.dot(h1, whh0_ref[...], preferred_element_type=f32) + bhh0_ref[...]
            rz = jax.nn.sigmoid(gi[:, :2 * H] + gh[:, :2 * H])
            r, z = rz[:, :H], rz[:, H:2 * H]
            n = jnp.tanh(gi[:, 2 * H:] + r * gh[:, 2 * H:])
            h1 = (1.0 - z) * n + z * h1
            # (inter-layer dropout is identity in eval mode)
            # layer 1
            gi1 = jnp.dot(h1, wih1_ref[...], preferred_element_type=f32) + bih1_ref[...]
            gh1 = jnp.dot(h2, whh1_ref[...], preferred_element_type=f32) + bhh1_ref[...]
            rz1 = jax.nn.sigmoid(gi1[:, :2 * H] + gh1[:, :2 * H])
            r1, z1 = rz1[:, :H], rz1[:, H:2 * H]
            n1 = jnp.tanh(gi1[:, 2 * H:] + r1 * gh1[:, 2 * H:])
            h2 = (1.0 - z1) * n1 + z1 * h2

        # ---- Stage 5: MLP head (Linear -> ReLU -> Linear -> Sigmoid) ---------------
        hz = jnp.maximum(
            jnp.dot(h2, fc1w_ref[...], preferred_element_type=f32) + fc1b_ref[...], 0.0)
        # fc2 (32 -> 1) on the VPU: broadcast-multiply + lane reduction
        logit = jnp.sum(hz * fc2w_ref[...], axis=-1, keepdims=True) + fc2b_ref[...]
        o_ref[...] = jax.nn.sigmoid(logit)                    # (Bt, 1)

    return kernel


def _choose_batch_tile(B):
    """Batch rows per grid step: multiple of 8 (sublane fill), capped at 32 to bound
    vreg pressure in the unrolled GRU, and >=2 blocks when B > 8 (v7x megacore)."""
    if B <= 8:
        return 8
    half = -(-B // 2)               # ceil(B/2)
    bt = -(-half // 8) * 8          # round up to 8
    return min(32, bt)


def supply_chain_detector(x, p, alpha=ALPHA):
    """x: (B, W, F) float32 -> (B, 1) anomaly score."""
    B, W, F = x.shape
    H = H_GRU

    Bt = _choose_batch_tile(B)
    nb = -(-B // Bt)                # cdiv
    B_pad = nb * Bt

    xf = x.reshape(B, W * F).astype(jnp.float32)
    if B_pad != B:
        xf = jnp.pad(xf, ((0, B_pad - B), (0, 0)))

    weights = [p["wband"], p["cb"], p["a12"], p["b12"],
               p["wih0_f"], p["bih0"], p["whh0_f"], p["bhh0"],
               p["wih1_f"], p["bih1"], p["whh1_f"], p["bhh1"],
               p["fc1w_t"], p["fc1b"], p["fc2w"], p["fc2b"]]
    w_specs = [pl.BlockSpec(w.shape, lambda b: (0, 0)) for w in weights]

    out = pl.pallas_call(
        _make_fused_kernel(Bt, W, F, H, alpha),
        out_shape=jax.ShapeDtypeStruct((B_pad, 1), jnp.float32),
        grid_spec=pltpu.PrefetchScalarGridSpec(
            num_scalar_prefetch=0,
            grid=(nb,),
            in_specs=[pl.BlockSpec((Bt, W * F), lambda b: (b, 0))] + w_specs,
            out_specs=pl.BlockSpec((Bt, 1), lambda b: (b, 0)),
            scratch_shapes=[
                pltpu.VMEM((W * Bt, 3 * H), jnp.float32),   # time-major hoisted L0 gates
            ],
        ),
        compiler_params=pltpu.CompilerParams(dimension_semantics=("parallel",)),
    )(xf, *weights)
    return out[:B]


# --------------------------------------------------------------------------
# Parameter packing (PyTorch-native shapes -> kernel layouts)
# --------------------------------------------------------------------------
def make_kernel_params(raw):
    f32 = jnp.float32
    F, _, K = raw["conv_w"].shape
    W = raw["fcw"].shape[0]
    H = H_GRU
    pad = (K - 1) // 2

    # Banded conv weight: out[b, w_out*F + o] = sum_{k,i} x[b, w_in*F + i] * conv_w[o,i,k]
    # with w_in = w_out + k - pad; out-of-range taps (the zero padding) are left zero.
    band = jnp.zeros((W, F, W, F), f32)
    for w_out in range(W):
        for k in range(K):
            w_in = w_out + k - pad
            if 0 <= w_in < W:
                band = band.at[w_in, :, w_out, :].set(raw["conv_w"][:, :, k].T)  # [i, o]
    wband = band.reshape(W * F, W * F)
    cb = jnp.tile(raw["conv_b"][None, :], (1, W))            # (1, W*F), index w*F+o

    # Attention score weights with the fc(window,window) layer folded in.
    a1 = raw["attn"][:W, 0]
    a2 = raw["attn"][W:, 0]
    a2_eff = raw["fcw"].T @ a2                               # (W,)
    bias2 = raw["fcb"] @ a2                                  # scalar
    eyeF = jnp.eye(F, dtype=f32)
    a12 = jnp.concatenate(
        [a1[:, None, None] * eyeF[None, :, :],
         a2_eff[:, None, None] * eyeF[None, :, :]], axis=-1).reshape(W * F, 2 * F)
    b12 = jnp.concatenate([jnp.zeros((F,), f32),
                           jnp.full((F,), bias2, f32)]).reshape(1, 2 * F)

    def fuse_w(w):      # (3H, in) -> (in, 3H), gate columns ordered (r | z | n)
        return w.T.astype(f32)

    def fuse_b(b):      # (3H,) -> (1, 3H)
        return b.reshape(1, 3 * H).astype(f32)

    return dict(
        wband=wband, cb=cb, a12=a12, b12=b12,
        wih0_f=fuse_w(raw["wih0"]), bih0=fuse_b(raw["bih0"]),
        whh0_f=fuse_w(raw["whh0"]), bhh0=fuse_b(raw["bhh0"]),
        wih1_f=fuse_w(raw["wih1"]), bih1=fuse_b(raw["bih1"]),
        whh1_f=fuse_w(raw["whh1"]), bhh1=fuse_b(raw["bhh1"]),
        fc1w_t=raw["fc1w"].T, fc1b=raw["fc1b"].reshape(1, H_FC1),
        fc2w=raw["fc2w"].reshape(1, H_FC1), fc2b=raw["fc2b"].reshape(1, 1),
    )


# --------------------------------------------------------------------------
# Pure-JAX reference (mirrors the PyTorch forward in eval mode)
# --------------------------------------------------------------------------
def reference_forward(x, raw, alpha=ALPHA):
    B, W, F = x.shape
    K = raw["conv_w"].shape[2]
    H = H_GRU
    pad = (K - 1) // 2

    xp = jnp.pad(x, ((0, 0), (pad, pad), (0, 0)))
    c = jnp.zeros((B, W, F), jnp.float32) + raw["conv_b"]
    for k in range(K):
        c = c + jnp.einsum("bwi,oi->bwo", xp[:, k:k + W, :], raw["conv_w"][:, :, k])
    c = jnp.maximum(c, 0.0)

    v = jnp.transpose(c, (0, 2, 1))                                  # (B, F, W)
    h = jnp.einsum("bfw,vw->bfv", v, raw["fcw"]) + raw["fcb"]
    a1 = raw["attn"][:W, 0]
    a2 = raw["attn"][W:, 0]
    s1 = jnp.einsum("bfw,w->bf", v, a1)
    s2 = jnp.einsum("bfw,w->bf", h, a2)
    e = s1[:, :, None] + s2[:, None, :]
    e = jnp.where(e > 0.0, e, alpha * e)
    att = jax.nn.softmax(e, axis=-1)
    a = jnp.transpose(jax.nn.sigmoid(jnp.einsum("bij,bjw->biw", att, v)), (0, 2, 1))

    def cell(x_t, hp, wih, whh, bih, bhh):
        gi = x_t @ wih.T + bih
        gh = hp @ whh.T + bhh
        r = jax.nn.sigmoid(gi[:, :H] + gh[:, :H])
        z = jax.nn.sigmoid(gi[:, H:2 * H] + gh[:, H:2 * H])
        n = jnp.tanh(gi[:, 2 * H:] + r * gh[:, 2 * H:])
        return (1.0 - z) * n + z * hp

    h1 = jnp.zeros((B, H), jnp.float32)
    h2 = jnp.zeros((B, H), jnp.float32)
    for t in range(W):
        h1 = cell(a[:, t, :], h1, raw["wih0"], raw["whh0"], raw["bih0"], raw["bhh0"])
        h2 = cell(h1, h2, raw["wih1"], raw["whh1"], raw["bih1"], raw["bhh1"])

    z1 = jnp.maximum(h2 @ raw["fc1w"].T + raw["fc1b"], 0.0)
    return jax.nn.sigmoid(z1 @ raw["fc2w"].T + raw["fc2b"])


# --------------------------------------------------------------------------
if __name__ == "__main__":
    B, W, F, K, H = 2, 16, 4, 7, H_GRU
    key = jax.random.PRNGKey(0)
    keys = jax.random.split(key, 20)
    u = lambda k, shape: jax.random.uniform(k, shape, jnp.float32, -0.1, 0.1)

    x = jax.random.normal(keys[0], (B, W, F), jnp.float32)

    raw = dict(
        conv_w=u(keys[1], (F, F, K)),          # Conv1d.weight (out, in, k)
        conv_b=u(keys[2], (F,)),
        fcw=u(keys[3], (W, W)),                # Linear(window, window).weight (out, in)
        fcb=u(keys[4], (W,)),
        attn=u(keys[5], (2 * W, 1)),           # attention parameter
        wih0=u(keys[6], (3 * H, F)), whh0=u(keys[7], (3 * H, H)),
        bih0=u(keys[8], (3 * H,)),   bhh0=u(keys[9], (3 * H,)),
        wih1=u(keys[10], (3 * H, H)), whh1=u(keys[11], (3 * H, H)),
        bih1=u(keys[12], (3 * H,)),   bhh1=u(keys[13], (3 * H,)),
        fc1w=u(keys[14], (H_FC1, H)), fc1b=u(keys[15], (H_FC1,)),
        fc2w=u(keys[16], (1, H_FC1)), fc2b=u(keys[17], (1,)),
    )
    params = make_kernel_params(raw)

    y = supply_chain_detector(x, params)
    y = jax.block_until_ready(y)
    assert y.shape == (B, 1), y.shape

    y_ref = reference_forward(x, raw)
    assert bool(jnp.all(jnp.isfinite(y)))
    assert bool(jnp.allclose(y, y_ref, atol=1e-3, rtol=1e-3)), (y, y_ref)

    print("KERNEL_OK")
</pallas_src>

<mosaic_0001>
module attributes {stable_mosaic.version = 11 : i64} {
  func.func @kernel(%arg0: i32, %arg1: memref<8x64xf32, #tpu.memory_space<vmem>>, %arg2: memref<64x64xf32, #tpu.memory_space<vmem>>, %arg3: memref<1x64xf32, #tpu.memory_space<vmem>>, %arg4: memref<64x8xf32, #tpu.memory_space<vmem>>, %arg5: memref<1x8xf32, #tpu.memory_space<vmem>>, %arg6: memref<4x192xf32, #tpu.memory_space<vmem>>, %arg7: memref<1x192xf32, #tpu.memory_space<vmem>>, %arg8: memref<64x192xf32, #tpu.memory_space<vmem>>, %arg9: memref<1x192xf32, #tpu.memory_space<vmem>>, %arg10: memref<64x192xf32, #tpu.memory_space<vmem>>, %arg11: memref<1x192xf32, #tpu.memory_space<vmem>>, %arg12: memref<64x192xf32, #tpu.memory_space<vmem>>, %arg13: memref<1x192xf32, #tpu.memory_space<vmem>>, %arg14: memref<64x32xf32, #tpu.memory_space<vmem>>, %arg15: memref<1x32xf32, #tpu.memory_space<vmem>>, %arg16: memref<1x32xf32, #tpu.memory_space<vmem>>, %arg17: memref<1x1xf32, #tpu.memory_space<vmem>>, %arg18: memref<8x1xf32, #tpu.memory_space<vmem>>, %arg19: memref<128x192xf32, #tpu.memory_space<vmem>>) attributes {dimension_semantics = [#tpu.dimension_semantics<parallel>], iteration_bounds = array<i64: 1>, scalar_prefetch = 0 : i64, scratch_operands = 1 : i64, tpu.core_type = #tpu.core_type<tc>, window_params = [{transform_indices = @transform_0, window_bounds = array<i64: 8, 64>}, {pipeline_mode = #tpu.pipeline_mode<synchronous>, transform_indices = @transform_1, window_bounds = array<i64: 64, 64>}, {pipeline_mode = #tpu.pipeline_mode<synchronous>, transform_indices = @transform_2, window_bounds = array<i64: 1, 64>}, {pipeline_mode = #tpu.pipeline_mode<synchronous>, transform_indices = @transform_3, window_bounds = array<i64: 64, 8>}, {pipeline_mode = #tpu.pipeline_mode<synchronous>, transform_indices = @transform_4, window_bounds = array<i64: 1, 8>}, {pipeline_mode = #tpu.pipeline_mode<synchronous>, transform_indices = @transform_5, window_bounds = array<i64: 4, 192>}, {pipeline_mode = #tpu.pipeline_mode<synchronous>, transform_indices = @transform_6, window_bounds = array<i64: 1, 192>}, {pipeline_mode = #tpu.pipeline_mode<synchronous>, transform_indices = @transform_7, window_bounds = array<i64: 64, 192>}, {pipeline_mode = #tpu.pipeline_mode<synchronous>, transform_indices = @transform_8, window_bounds = array<i64: 1, 192>}, {pipeline_mode = #tpu.pipeline_mode<synchronous>, transform_indices = @transform_9, window_bounds = array<i64: 64, 192>}, {pipeline_mode = #tpu.pipeline_mode<synchronous>, transform_indices = @transform_10, window_bounds = array<i64: 1, 192>}, {pipeline_mode = #tpu.pipeline_mode<synchronous>, transform_indices = @transform_11, window_bounds = array<i64: 64, 192>}, {pipeline_mode = #tpu.pipeline_mode<synchronous>, transform_indices = @transform_12, window_bounds = array<i64: 1, 192>}, {pipeline_mode = #tpu.pipeline_mode<synchronous>, transform_indices = @transform_13, window_bounds = array<i64: 64, 32>}, {pipeline_mode = #tpu.pipeline_mode<synchronous>, transform_indices = @transform_14, window_bounds = array<i64: 1, 32>}, {pipeline_mode = #tpu.pipeline_mode<synchronous>, transform_indices = @transform_15, window_bounds = array<i64: 1, 32>}, {pipeline_mode = #tpu.pipeline_mode<synchronous>, transform_indices = @transform_16, window_bounds = array<i64: 1, 1>}, {transform_indices = @transform_17, window_bounds = array<i64: 8, 1>}]} {
    %c0 = arith.constant 0 : index
    %c0_0 = arith.constant 0 : index
    %0 = vector.load %arg1[%c0, %c0_0] : memref<8x64xf32, #tpu.memory_space<vmem>>, vector<8x64xf32>
    %c0_1 = arith.constant 0 : index
    %c0_2 = arith.constant 0 : index
    %1 = vector.load %arg2[%c0_1, %c0_2] : memref<64x64xf32, #tpu.memory_space<vmem>>, vector<64x64xf32>
    %cst = arith.constant dense<0.000000e+00> : vector<8x64xf32>
    %2 = tpu.matmul %0, %1, %cst {dimension_numbers = #tpu.dot_dimension_numbers<[1], [0], [0], [1], [0, 0, 1, 1], [], []>} : vector<8x64xf32>, vector<64x64xf32>, vector<8x64xf32> -> vector<8x64xf32>
    %c0_3 = arith.constant 0 : index
    %c0_4 = arith.constant 0 : index
    %3 = vector.load %arg3[%c0_3, %c0_4] : memref<1x64xf32, #tpu.memory_space<vmem>>, vector<1x64xf32>
    %4 = vector.broadcast %3 : vector<1x64xf32> to vector<8x64xf32>
    %5 = arith.addf %2, %4 : vector<8x64xf32>
    %cst_5 = arith.constant 0.000000e+00 : f32
    %6 = vector.broadcast %cst_5 : f32 to vector<8x64xf32>
    %7 = arith.maximumf %5, %6 : vector<8x64xf32>
    %c0_6 = arith.constant 0 : index
    %c0_7 = arith.constant 0 : index
    %8 = vector.load %arg4[%c0_6, %c0_7] : memref<64x8xf32, #tpu.memory_space<vmem>>, vector<64x8xf32>
    %cst_8 = arith.constant dense<0.000000e+00> : vector<8x8xf32>
    %9 = tpu.matmul %7, %8, %cst_8 {dimension_numbers = #tpu.dot_dimension_numbers<[1], [0], [0], [1], [0, 0, 1, 1], [], []>} : vector<8x64xf32>, vector<64x8xf32>, vector<8x8xf32> -> vector<8x8xf32>
    %c0_9 = arith.constant 0 : index
    %c0_10 = arith.constant 0 : index
    %10 = vector.load %arg5[%c0_9, %c0_10] : memref<1x8xf32, #tpu.memory_space<vmem>>, vector<1x8xf32>
    %11 = vector.broadcast %10 : vector<1x8xf32> to vector<8x8xf32>
    %12 = arith.addf %9, %11 : vector<8x8xf32>
    %13 = vector.extract_strided_slice %12 {offsets = [0, 0], sizes = [8, 4], strides = [1, 1]} : vector<8x8xf32> to vector<8x4xf32>
    %14 = vector.extract_strided_slice %12 {offsets = [0, 4], sizes = [8, 4], strides = [1, 1]} : vector<8x8xf32> to vector<8x4xf32>
    %15 = vector.shape_cast %13 : vector<8x4xf32> to vector<8x4x1xf32>
    %16 = vector.shape_cast %14 : vector<8x4xf32> to vector<8x1x4xf32>
    %17 = vector.broadcast %15 : vector<8x4x1xf32> to vector<8x4x4xf32>
    %18 = vector.broadcast %16 : vector<8x1x4xf32> to vector<8x4x4xf32>
    %19 = arith.addf %17, %18 : vector<8x4x4xf32>
    %cst_11 = arith.constant 0.000000e+00 : f32
    %20 = vector.broadcast %cst_11 : f32 to vector<8x4x4xf32>
    %21 = arith.cmpf ogt, %19, %20 : vector<8x4x4xf32>
    %cst_12 = arith.constant 2.000000e-01 : f32
    %22 = vector.broadcast %cst_12 : f32 to vector<8x4x4xf32>
    %23 = arith.mulf %22, %19 : vector<8x4x4xf32>
    %24 = arith.select %21, %19, %23 : vector<8x4x4xi1>, vector<8x4x4xf32>
    %cst_13 = arith.constant dense<0xFF800000> : vector<8x4xf32>
    %25 = vector.multi_reduction <maximumf>, %24, %cst_13 [2] : vector<8x4x4xf32> to vector<8x4xf32>
    %26 = vector.shape_cast %25 : vector<8x4xf32> to vector<8x4x1xf32>
    %27 = vector.broadcast %26 : vector<8x4x1xf32> to vector<8x4x4xf32>
    %28 = arith.subf %24, %27 : vector<8x4x4xf32>
    %29 = math.exp %28 : vector<8x4x4xf32>
    %cst_14 = arith.constant dense<0.000000e+00> : vector<8x4xf32>
    %30 = vector.multi_reduction <add>, %29, %cst_14 [2] : vector<8x4x4xf32> to vector<8x4xf32>
    %31 = vector.shape_cast %30 : vector<8x4xf32> to vector<8x4x1xf32>
    %32 = vector.broadcast %31 : vector<8x4x1xf32> to vector<8x4x4xf32>
    %33 = arith.divf %29, %32 : vector<8x4x4xf32>
    %34 = vector.shape_cast %7 : vector<8x64xf32> to vector<8x16x4xf32>
    %cst_15 = arith.constant 0.000000e+00 : f32
    %35 = vector.broadcast %cst_15 : f32 to vector<8x16x4xf32>
    %36 = vector.extract_strided_slice %34 {offsets = [0, 0, 0], sizes = [8, 16, 1], strides = [1, 1, 1]} : vector<8x16x4xf32> to vector<8x16x1xf32>
    %37 = vector.extract_strided_slice %33 {offsets = [0, 0, 0], sizes = [8, 4, 1], strides = [1, 1, 1]} : vector<8x4x4xf32> to vector<8x4x1xf32>
    %38 = vector.shape_cast %37 : vector<8x4x1xf32> to vector<8x4xf32>
    %39 = vector.shape_cast %38 : vector<8x4xf32> to vector<8x1x4xf32>
    %40 = vector.broadcast %36 : vector<8x16x1xf32> to vector<8x16x4xf32>
    %41 = vector.broadcast %39 : vector<8x1x4xf32> to vector<8x16x4xf32>
    %42 = arith.mulf %40, %41 : vector<8x16x4xf32>
    %43 = arith.addf %35, %42 : vector<8x16x4xf32>
    %44 = vector.extract_strided_slice %34 {offsets = [0, 0, 1], sizes = [8, 16, 1], strides = [1, 1, 1]} : vector<8x16x4xf32> to vector<8x16x1xf32>
    %45 = vector.extract_strided_slice %33 {offsets = [0, 0, 1], sizes = [8, 4, 1], strides = [1, 1, 1]} : vector<8x4x4xf32> to vector<8x4x1xf32>
    %46 = vector.shape_cast %45 : vector<8x4x1xf32> to vector<8x4xf32>
    %47 = vector.shape_cast %46 : vector<8x4xf32> to vector<8x1x4xf32>
    %48 = vector.broadcast %44 : vector<8x16x1xf32> to vector<8x16x4xf32>
    %49 = vector.broadcast %47 : vector<8x1x4xf32> to vector<8x16x4xf32>
    %50 = arith.mulf %48, %49 : vector<8x16x4xf32>
    %51 = arith.addf %43, %50 : vector<8x16x4xf32>
    %52 = vector.extract_strided_slice %34 {offsets = [0, 0, 2], sizes = [8, 16, 1], strides = [1, 1, 1]} : vector<8x16x4xf32> to vector<8x16x1xf32>
    %53 = vector.extract_strided_slice %33 {offsets = [0, 0, 2], sizes = [8, 4, 1], strides = [1, 1, 1]} : vector<8x4x4xf32> to vector<8x4x1xf32>
    %54 = vector.shape_cast %53 : vector<8x4x1xf32> to vector<8x4xf32>
    %55 = vector.shape_cast %54 : vector<8x4xf32> to vector<8x1x4xf32>
    %56 = vector.broadcast %52 : vector<8x16x1xf32> to vector<8x16x4xf32>
    %57 = vector.broadcast %55 : vector<8x1x4xf32> to vector<8x16x4xf32>
    %58 = arith.mulf %56, %57 : vector<8x16x4xf32>
    %59 = arith.addf %51, %58 : vector<8x16x4xf32>
    %60 = vector.extract_strided_slice %34 {offsets = [0, 0, 3], sizes = [8, 16, 1], strides = [1, 1, 1]} : vector<8x16x4xf32> to vector<8x16x1xf32>
    %61 = vector.extract_strided_slice %33 {offsets = [0, 0, 3], sizes = [8, 4, 1], strides = [1, 1, 1]} : vector<8x4x4xf32> to vector<8x4x1xf32>
    %62 = vector.shape_cast %61 : vector<8x4x1xf32> to vector<8x4xf32>
    %63 = vector.shape_cast %62 : vector<8x4xf32> to vector<8x1x4xf32>
    %64 = vector.broadcast %60 : vector<8x16x1xf32> to vector<8x16x4xf32>
    %65 = vector.broadcast %63 : vector<8x1x4xf32> to vector<8x16x4xf32>
    %66 = arith.mulf %64, %65 : vector<8x16x4xf32>
    %67 = arith.addf %59, %66 : vector<8x16x4xf32>
    %68 = arith.negf %67 : vector<8x16x4xf32>
    %69 = math.exp %68 : vector<8x16x4xf32>
    %cst_16 = arith.constant 1.000000e+00 : f32
    %70 = vector.broadcast %cst_16 : f32 to vector<8x16x4xf32>
    %71 = arith.addf %70, %69 : vector<8x16x4xf32>
    %72 = arith.divf %70, %71 : vector<8x16x4xf32>
    %73 = tpu.transpose %72, [1, 0, 2] : vector<8x16x4xf32> -> vector<16x8x4xf32>
    %74 = vector.shape_cast %73 : vector<16x8x4xf32> to vector<128x4xf32>
    %c0_17 = arith.constant 0 : index
    %c0_18 = arith.constant 0 : index
    %75 = vector.load %arg6[%c0_17, %c0_18] : memref<4x192xf32, #tpu.memory_space<vmem>>, vector<4x192xf32>
    %cst_19 = arith.constant dense<0.000000e+00> : vector<128x192xf32>
    %76 = tpu.matmul %74, %75, %cst_19 {dimension_numbers = #tpu.dot_dimension_numbers<[1], [0], [0], [1], [0, 0, 1, 1], [], []>} : vector<128x4xf32>, vector<4x192xf32>, vector<128x192xf32> -> vector<128x192xf32>
    %c0_20 = arith.constant 0 : index
    %c0_21 = arith.constant 0 : index
    %77 = vector.load %arg7[%c0_20, %c0_21] : memref<1x192xf32, #tpu.memory_space<vmem>>, vector<1x192xf32>
    %78 = vector.broadcast %77 : vector<1x192xf32> to vector<128x192xf32>
    %79 = arith.addf %76, %78 : vector<128x192xf32>
    %c0_22 = arith.constant 0 : index
    %c0_23 = arith.constant 0 : index
    %80 = vector.load %arg19[%c0_22, %c0_23] : memref<128x192xf32, #tpu.memory_space<vmem>>, vector<128x192xf32>
    tpu.vector_store %arg19[%c0_22, %c0_23], %79 {strides = array<i32>} : memref<128x192xf32, #tpu.memory_space<vmem>>, vector<128x192xf32>,
    %cst_24 = arith.constant 0.000000e+00 : f32
    %81 = vector.broadcast %cst_24 : f32 to vector<8x64xf32>
    %cst_25 = arith.constant 0.000000e+00 : f32
    %82 = vector.broadcast %cst_25 : f32 to vector<8x64xf32>
    %c0_26 = arith.constant 0 : index
    %c0_27 = arith.constant 0 : index
    %83 = vector.load %arg19[%c0_26, %c0_27] : memref<128x192xf32, #tpu.memory_space<vmem>>, vector<8x192xf32>
    %c0_28 = arith.constant 0 : index
    %c0_29 = arith.constant 0 : index
    %84 = vector.load %arg8[%c0_28, %c0_29] : memref<64x192xf32, #tpu.memory_space<vmem>>, vector<64x192xf32>
    %cst_30 = arith.constant dense<0.000000e+00> : vector<8x192xf32>
    %85 = tpu.matmul %81, %84, %cst_30 {dimension_numbers = #tpu.dot_dimension_numbers<[1], [0], [0], [1], [0, 0, 1, 1], [], []>} : vector<8x64xf32>, vector<64x192xf32>, vector<8x192xf32> -> vector<8x192xf32>
    %c0_31 = arith.constant 0 : index
    %c0_32 = arith.constant 0 : index
    %86 = vector.load %arg9[%c0_31, %c0_32] : memref<1x192xf32, #tpu.memory_space<vmem>>, vector<1x192xf32>
    %87 = vector.broadcast %86 : vector<1x192xf32> to vector<8x192xf32>
    %88 = arith.addf %85, %87 : vector<8x192xf32>
    %89 = vector.extract_strided_slice %83 {offsets = [0, 0], sizes = [8, 128], strides = [1, 1]} : vector<8x192xf32> to vector<8x128xf32>
    %90 = vector.extract_strided_slice %88 {offsets = [0, 0], sizes = [8, 128], strides = [1, 1]} : vector<8x192xf32> to vector<8x128xf32>
    %91 = arith.addf %89, %90 : vector<8x128xf32>
    %92 = arith.negf %91 : vector<8x128xf32>
    %93 = math.exp %92 : vector<8x128xf32>
    %cst_33 = arith.constant 1.000000e+00 : f32
    %94 = vector.broadcast %cst_33 : f32 to vector<8x128xf32>
    %95 = arith.addf %94, %93 : vector<8x128xf32>
    %96 = arith.divf %94, %95 : vector<8x128xf32>
    %97 = vector.extract_strided_slice %96 {offsets = [0, 0], sizes = [8, 64], strides = [1, 1]} : vector<8x128xf32> to vector<8x64xf32>
    %98 = vector.extract_strided_slice %96 {offsets = [0, 64], sizes = [8, 64], strides = [1, 1]} : vector<8x128xf32> to vector<8x64xf32>
    %99 = vector.extract_strided_slice %83 {offsets = [0, 128], sizes = [8, 64], strides = [1, 1]} : vector<8x192xf32> to vector<8x64xf32>
    %100 = vector.extract_strided_slice %88 {offsets = [0, 128], sizes = [8, 64], strides = [1, 1]} : vector<8x192xf32> to vector<8x64xf32>
    %101 = arith.mulf %97, %100 : vector<8x64xf32>
    %102 = arith.addf %99, %101 : vector<8x64xf32>
    %103 = math.tanh %102 : vector<8x64xf32>
    %cst_34 = arith.constant 1.000000e+00 : f32
    %104 = vector.broadcast %cst_34 : f32 to vector<8x64xf32>
    %105 = arith.subf %104, %98 : vector<8x64xf32>
    %106 = arith.mulf %105, %103 : vector<8x64xf32>
    %107 = arith.mulf %98, %81 : vector<8x64xf32>
    %108 = arith.addf %106, %107 : vector<8x64xf32>
    %c0_35 = arith.constant 0 : index
    %c0_36 = arith.constant 0 : index
    %109 = vector.load %arg10[%c0_35, %c0_36] : memref<64x192xf32, #tpu.memory_space<vmem>>, vector<64x192xf32>
    %cst_37 = arith.constant dense<0.000000e+00> : vector<8x192xf32>
    %110 = tpu.matmul %108, %109, %cst_37 {dimension_numbers = #tpu.dot_dimension_numbers<[1], [0], [0], [1], [0, 0, 1, 1], [], []>} : vector<8x64xf32>, vector<64x192xf32>, vector<8x192xf32> -> vector<8x192xf32>
    %c0_38 = arith.constant 0 : index
    %c0_39 = arith.constant 0 : index
    %111 = vector.load %arg11[%c0_38, %c0_39] : memref<1x192xf32, #tpu.memory_space<vmem>>, vector<1x192xf32>
    %112 = vector.broadcast %111 : vector<1x192xf32> to vector<8x192xf32>
    %113 = arith.addf %110, %112 : vector<8x192xf32>
    %c0_40 = arith.constant 0 : index
    %c0_41 = arith.constant 0 : index
    %114 = vector.load %arg12[%c0_40, %c0_41] : memref<64x192xf32, #tpu.memory_space<vmem>>, vector<64x192xf32>
    %cst_42 = arith.constant dense<0.000000e+00> : vector<8x192xf32>
    %115 = tpu.matmul %82, %114, %cst_42 {dimension_numbers = #tpu.dot_dimension_numbers<[1], [0], [0], [1], [0, 0, 1, 1], [], []>} : vector<8x64xf32>, vector<64x192xf32>, vector<8x192xf32> -> vector<8x192xf32>
    %c0_43 = arith.constant 0 : index
    %c0_44 = arith.constant 0 : index
    %116 = vector.load %arg13[%c0_43, %c0_44] : memref<1x192xf32, #tpu.memory_space<vmem>>, vector<1x192xf32>
    %117 = vector.broadcast %116 : vector<1x192xf32> to vector<8x192xf32>
    %118 = arith.addf %115, %117 : vector<8x192xf32>
    %119 = vector.extract_strided_slice %113 {offsets = [0, 0], sizes = [8, 128], strides = [1, 1]} : vector<8x192xf32> to vector<8x128xf32>
    %120 = vector.extract_strided_slice %118 {offsets = [0, 0], sizes = [8, 128], strides = [1, 1]} : vector<8x192xf32> to vector<8x128xf32>
    %121 = arith.addf %119, %120 : vector<8x128xf32>
    %122 = arith.negf %121 : vector<8x128xf32>
    %123 = math.exp %122 : vector<8x128xf32>
    %cst_45 = arith.constant 1.000000e+00 : f32
    %124 = vector.broadcast %cst_45 : f32 to vector<8x128xf32>
    %125 = arith.addf %124, %123 : vector<8x128xf32>
    %126 = arith.divf %124, %125 : vector<8x128xf32>
    %127 = vector.extract_strided_slice %126 {offsets = [0, 0], sizes = [8, 64], strides = [1, 1]} : vector<8x128xf32> to vector<8x64xf32>
    %128 = vector.extract_strided_slice %126 {offsets = [0, 64], sizes = [8, 64], strides = [1, 1]} : vector<8x128xf32> to vector<8x64xf32>
    %129 = vector.extract_strided_slice %113 {offsets = [0, 128], sizes = [8, 64], strides = [1, 1]} : vector<8x192xf32> to vector<8x64xf32>
    %130 = vector.extract_strided_slice %118 {offsets = [0, 128], sizes = [8, 64], strides = [1, 1]} : vector<8x192xf32> to vector<8x64xf32>
    %131 = arith.mulf %127, %130 : vector<8x64xf32>
    %132 = arith.addf %129, %131 : vector<8x64xf32>
    %133 = math.tanh %132 : vector<8x64xf32>
    %cst_46 = arith.constant 1.000000e+00 : f32
    %134 = vector.broadcast %cst_46 : f32 to vector<8x64xf32>
    %135 = arith.subf %134, %128 : vector<8x64xf32>
    %136 = arith.mulf %135, %133 : vector<8x64xf32>
    %137 = arith.mulf %128, %82 : vector<8x64xf32>
    %138 = arith.addf %136, %137 : vector<8x64xf32>
    %c8 = arith.constant 8 : index
    %c0_47 = arith.constant 0 : index
    %139 = vector.load %arg19[%c8, %c0_47] : memref<128x192xf32, #tpu.memory_space<vmem>>, vector<8x192xf32>
    %c0_48 = arith.constant 0 : index
    %c0_49 = arith.constant 0 : index
    %140 = vector.load %arg8[%c0_48, %c0_49] : memref<64x192xf32, #tpu.memory_space<vmem>>, vector<64x192xf32>
    %cst_50 = arith.constant dense<0.000000e+00> : vector<8x192xf32>
    %141 = tpu.matmul %108, %140, %cst_50 {dimension_numbers = #tpu.dot_dimension_numbers<[1], [0], [0], [1], [0, 0, 1, 1], [], []>} : vector<8x64xf32>, vector<64x192xf32>, vector<8x192xf32> -> vector<8x192xf32>
    %c0_51 = arith.constant 0 : index
    %c0_52 = arith.constant 0 : index
    %142 = vector.load %arg9[%c0_51, %c0_52] : memref<1x192xf32, #tpu.memory_space<vmem>>, vector<1x192xf32>
    %143 = vector.broadcast %142 : vector<1x192xf32> to vector<8x192xf32>
    %144 = arith.addf %141, %143 : vector<8x192xf32>
    %145 = vector.extract_strided_slice %139 {offsets = [0, 0], sizes = [8, 128], strides = [1, 1]} : vector<8x192xf32> to vector<8x128xf32>
    %146 = vector.extract_strided_slice %144 {offsets = [0, 0], sizes = [8, 128], strides = [1, 1]} : vector<8x192xf32> to vector<8x128xf32>
    %147 = arith.addf %145, %146 : vector<8x128xf32>
    %148 = arith.negf %147 : vector<8x128xf32>
    %149 = math.exp %148 : vector<8x128xf32>
    %cst_53 = arith.constant 1.000000e+00 : f32
    %150 = vector.broadcast %cst_53 : f32 to vector<8x128xf32>
    %151 = arith.addf %150, %149 : vector<8x128xf32>
    %152 = arith.divf %150, %151 : vector<8x128xf32>
    %153 = vector.extract_strided_slice %152 {offsets = [0, 0], sizes = [8, 64], strides = [1, 1]} : vector<8x128xf32> to vector<8x64xf32>
    %154 = vector.extract_strided_slice %152 {offsets = [0, 64], sizes = [8, 64], strides = [1, 1]} : vector<8x128xf32> to vector<8x64xf32>
    %155 = vector.extract_strided_slice %139 {offsets = [0, 128], sizes = [8, 64], strides = [1, 1]} : vector<8x192xf32> to vector<8x64xf32>
    %156 = vector.extract_strided_slice %144 {offsets = [0, 128], sizes = [8, 64], strides = [1, 1]} : vector<8x192xf32> to vector<8x64xf32>
    %157 = arith.mulf %153, %156 : vector<8x64xf32>
    %158 = arith.addf %155, %157 : vector<8x64xf32>
    %159 = math.tanh %158 : vector<8x64xf32>
    %cst_54 = arith.constant 1.000000e+00 : f32
    %160 = vector.broadcast %cst_54 : f32 to vector<8x64xf32>
    %161 = arith.subf %160, %154 : vector<8x64xf32>
    %162 = arith.mulf %161, %159 : vector<8x64xf32>
    %163 = arith.mulf %154, %108 : vector<8x64xf32>
    %164 = arith.addf %162, %163 : vector<8x64xf32>
    %c0_55 = arith.constant 0 : index
    %c0_56 = arith.constant 0 : index
    %165 = vector.load %arg10[%c0_55, %c0_56] : memref<64x192xf32, #tpu.memory_space<vmem>>, vector<64x192xf32>
    %cst_57 = arith.constant dense<0.000000e+00> : vector<8x192xf32>
    %166 = tpu.matmul %164, %165, %cst_57 {dimension_numbers = #tpu.dot_dimension_numbers<[1], [0], [0], [1], [0, 0, 1, 1], [], []>} : vector<8x64xf32>, vector<64x192xf32>, vector<8x192xf32> -> vector<8x192xf32>
    %c0_58 = arith.constant 0 : index
    %c0_59 = arith.constant 0 : index
    %167 = vector.load %arg11[%c0_58, %c0_59] : memref<1x192xf32, #tpu.memory_space<vmem>>, vector<1x192xf32>
    %168 = vector.broadcast %167 : vector<1x192xf32> to vector<8x192xf32>
    %169 = arith.addf %166, %168 : vector<8x192xf32>
    %c0_60 = arith.constant 0 : index
    %c0_61 = arith.constant 0 : index
    %170 = vector.load %arg12[%c0_60, %c0_61] : memref<64x192xf32, #tpu.memory_space<vmem>>, vector<64x192xf32>
    %cst_62 = arith.constant dense<0.000000e+00> : vector<8x192xf32>
    %171 = tpu.matmul %138, %170, %cst_62 {dimension_numbers = #tpu.dot_dimension_numbers<[1], [0], [0], [1], [0, 0, 1, 1], [], []>} : vector<8x64xf32>, vector<64x192xf32>, vector<8x192xf32> -> vector<8x192xf32>
    %c0_63 = arith.constant 0 : index
    %c0_64 = arith.constant 0 : index
    %172 = vector.load %arg13[%c0_63, %c0_64] : memref<1x192xf32, #tpu.memory_space<vmem>>, vector<1x192xf32>
    %173 = vector.broadcast %172 : vector<1x192xf32> to vector<8x192xf32>
    %174 = arith.addf %171, %173 : vector<8x192xf32>
    %175 = vector.extract_strided_slice %169 {offsets = [0, 0], sizes = [8, 128], strides = [1, 1]} : vector<8x192xf32> to vector<8x128xf32>
    %176 = vector.extract_strided_slice %174 {offsets = [0, 0], sizes = [8, 128], strides = [1, 1]} : vector<8x192xf32> to vector<8x128xf32>
    %177 = arith.addf %175, %176 : vector<8x128xf32>
    %178 = arith.negf %177 : vector<8x128xf32>
    %179 = math.exp %178 : vector<8x128xf32>
    %cst_65 = arith.constant 1.000000e+00 : f32
    %180 = vector.broadcast %cst_65 : f32 to vector<8x128xf32>
    %181 = arith.addf %180, %179 : vector<8x128xf32>
    %182 = arith.divf %180, %181 : vector<8x128xf32>
    %183 = vector.extract_strided_slice %182 {offsets = [0, 0], sizes = [8, 64], strides = [1, 1]} : vector<8x128xf32> to vector<8x64xf32>
    %184 = vector.extract_strided_slice %182 {offsets = [0, 64], sizes = [8, 64], strides = [1, 1]} : vector<8x128xf32> to vector<8x64xf32>
    %185 = vector.extract_strided_slice %169 {offsets = [0, 128], sizes = [8, 64], strides = [1, 1]} : vector<8x192xf32> to vector<8x64xf32>
    %186 = vector.extract_strided_slice %174 {offsets = [0, 128], sizes = [8, 64], strides = [1, 1]} : vector<8x192xf32> to vector<8x64xf32>
    %187 = arith.mulf %183, %186 : vector<8x64xf32>
    %188 = arith.addf %185, %187 : vector<8x64xf32>
    %189 = math.tanh %188 : vector<8x64xf32>
    %cst_66 = arith.constant 1.000000e+00 : f32
    %190 = vector.broadcast %cst_66 : f32 to vector<8x64xf32>
    %191 = arith.subf %190, %184 : vector<8x64xf32>
    %192 = arith.mulf %191, %189 : vector<8x64xf32>
    %193 = arith.mulf %184, %138 : vector<8x64xf32>
    %194 = arith.addf %192, %193 : vector<8x64xf32>
    %c16 = arith.constant 16 : index
    %c0_67 = arith.constant 0 : index
    %195 = vector.load %arg19[%c16, %c0_67] : memref<128x192xf32, #tpu.memory_space<vmem>>, vector<8x192xf32>
    %c0_68 = arith.constant 0 : index
    %c0_69 = arith.constant 0 : index
    %196 = vector.load %arg8[%c0_68, %c0_69] : memref<64x192xf32, #tpu.memory_space<vmem>>, vector<64x192xf32>
    %cst_70 = arith.constant dense<0.000000e+00> : vector<8x192xf32>
    %197 = tpu.matmul %164, %196, %cst_70 {dimension_numbers = #tpu.dot_dimension_numbers<[1], [0], [0], [1], [0, 0, 1, 1], [], []>} : vector<8x64xf32>, vector<64x192xf32>, vector<8x192xf32> -> vector<8x192xf32>
    %c0_71 = arith.constant 0 : index
    %c0_72 = arith.constant 0 : index
    %198 = vector.load %arg9[%c0_71, %c0_72] : memref<1x192xf32, #tpu.memory_space<vmem>>, vector<1x192xf32>
    %199 = vector.broadcast %198 : vector<1x192xf32> to vector<8x192xf32>
    %200 = arith.addf %197, %199 : vector<8x192xf32>
    %201 = vector.extract_strided_slice %195 {offsets = [0, 0], sizes = [8, 128], strides = [1, 1]} : vector<8x192xf32> to vector<8x128xf32>
    %202 = vector.extract_strided_slice %200 {offsets = [0, 0], sizes = [8, 128], strides = [1, 1]} : vector<8x192xf32> to vector<8x128xf32>
    %203 = arith.addf %201, %202 : vector<8x128xf32>
    %204 = arith.negf %203 : vector<8x128xf32>
    %205 = math.exp %204 : vector<8x128xf32>
    %cst_73 = arith.constant 1.000000e+00 : f32
    %206 = vector.broadcast %cst_73 : f32 to vector<8x128xf32>
    %207 = arith.addf %206, %205 : vector<8x128xf32>
    %208 = arith.divf %206, %207 : vector<8x128xf32>
    %209 = vector.extract_strided_slice %208 {offsets = [0, 0], sizes = [8, 64], strides = [1, 1]} : vector<8x128xf32> to vector<8x64xf32>
    %210 = vector.extract_strided_slice %208 {offsets = [0, 64], sizes = [8, 64], strides = [1, 1]} : vector<8x128xf32> to vector<8x64xf32>
    %211 = vector.extract_strided_slice %195 {offsets = [0, 128], sizes = [8, 64], strides = [1, 1]} : vector<8x192xf32> to vector<8x64xf32>
    %212 = vector.extract_strided_slice %200 {offsets = [0, 128], sizes = [8, 64], strides = [1, 1]} : vector<8x192xf32> to vector<8x64xf32>
    %213 = arith.mulf %209, %212 : vector<8x64xf32>
    %214 = arith.addf %211, %213 : vector<8x64xf32>
    %215 = math.tanh %214 : vector<8x64xf32>
    %cst_74 = arith.constant 1.000000e+00 : f32
    %216 = vector.broadcast %cst_74 : f32 to vector<8x64xf32>
    %217 = arith.subf %216, %210 : vector<8x64xf32>
    %218 = arith.mulf %217, %215 : vector<8x64xf32>
    %219 = arith.mulf %210, %164 : vector<8x64xf32>
    %220 = arith.addf %218, %219 : vector<8x64xf32>
    %c0_75 = arith.constant 0 : index
    %c0_76 = arith.constant 0 : index
    %221 = vector.load %arg10[%c0_75, %c0_76] : memref<64x192xf32, #tpu.memory_space<vmem>>, vector<64x192xf32>
    %cst_77 = arith.constant dense<0.000000e+00> : vector<8x192xf32>
    %222 = tpu.matmul %220, %221, %cst_77 {dimension_numbers = #tpu.dot_dimension_numbers<[1], [0], [0], [1], [0, 0, 1, 1], [], []>} : vector<8x64xf32>, vector<64x192xf32>, vector<8x192xf32> -> vector<8x192xf32>
    %c0_78 = arith.constant 0 : index
    %c0_79 = arith.constant 0 : index
    %223 = vector.load %arg11[%c0_78, %c0_79] : memref<1x192xf32, #tpu.memory_space<vmem>>, vector<1x192xf32>
    %224 = vector.broadcast %223 : vector<1x192xf32> to vector<8x192xf32>
    %225 = arith.addf %222, %224 : vector<8x192xf32>
    %c0_80 = arith.constant 0 : index
    %c0_81 = arith.constant 0 : index
    %226 = vector.load %arg12[%c0_80, %c0_81] : memref<64x192xf32, #tpu.memory_space<vmem>>, vector<64x192xf32>
    %cst_82 = arith.constant dense<0.000000e+00> : vector<8x192xf32>
    %227 = tpu.matmul %194, %226, %cst_82 {dimension_numbers = #tpu.dot_dimension_numbers<[1], [0], [0], [1], [0, 0, 1, 1], [], []>} : vector<8x64xf32>, vector<64x192xf32>, vector<8x192xf32> -> vector<8x192xf32>
    %c0_83 = arith.constant 0 : index
    %c0_84 = arith.constant 0 : index
    %228 = vector.load %arg13[%c0_83, %c0_84] : memref<1x192xf32, #tpu.memory_space<vmem>>, vector<1x192xf32>
    %229 = vector.broadcast %228 : vector<1x192xf32> to vector<8x192xf32>
    %230 = arith.addf %227, %229 : vector<8x192xf32>
    %231 = vector.extract_strided_slice %225 {offsets = [0, 0], sizes = [8, 128], strides = [1, 1]} : vector<8x192xf32> to vector<8x128xf32>
    %232 = vector.extract_strided_slice %230 {offsets = [0, 0], sizes = [8, 128], strides = [1, 1]} : vector<8x192xf32> to vector<8x128xf32>
    %233 = arith.addf %231, %232 : vector<8x128xf32>
    %234 = arith.negf %233 : vector<8x128xf32>
    %235 = math.exp %234 : vector<8x128xf32>
    %cst_85 = arith.constant 1.000000e+00 : f32
    %236 = vector.broadcast %cst_85 : f32 to vector<8x128xf32>
    %237 = arith.addf %236, %235 : vector<8x128xf32>
    %238 = arith.divf %236, %237 : vector<8x128xf32>
    %239 = vector.extract_strided_slice %238 {offsets = [0, 0], sizes = [8, 64], strides = [1, 1]} : vector<8x128xf32> to vector<8x64xf32>
    %240 = vector.extract_strided_slice %238 {offsets = [0, 64], sizes = [8, 64], strides = [1, 1]} : vector<8x128xf32> to vector<8x64xf32>
    %241 = vector.extract_strided_slice %225 {offsets = [0, 128], sizes = [8, 64], strides = [1, 1]} : vector<8x192xf32> to vector<8x64xf32>
    %242 = vector.extract_strided_slice %230 {offsets = [0, 128], sizes = [8, 64], strides = [1, 1]} : vector<8x192xf32> to vector<8x64xf32>
    %243 = arith.mulf %239, %242 : vector<8x64xf32>
    %244 = arith.addf %241, %243 : vector<8x64xf32>
    %245 = math.tanh %244 : vector<8x64xf32>
    %cst_86 = arith.constant 1.000000e+00 : f32
    %246 = vector.broadcast %cst_86 : f32 to vector<8x64xf32>
    %247 = arith.subf %246, %240 : vector<8x64xf32>
    %248 = arith.mulf %247, %245 : vector<8x64xf32>
    %249 = arith.mulf %240, %194 : vector<8x64xf32>
    %250 = arith.addf %248, %249 : vector<8x64xf32>
    %c24 = arith.constant 24 : index
    %c0_87 = arith.constant 0 : index
    %251 = vector.load %arg19[%c24, %c0_87] : memref<128x192xf32, #tpu.memory_space<vmem>>, vector<8x192xf32>
    %c0_88 = arith.constant 0 : index
    %c0_89 = arith.constant 0 : index
    %252 = vector.load %arg8[%c0_88, %c0_89] : memref<64x192xf32, #tpu.memory_space<vmem>>, vector<64x192xf32>
    %cst_90 = arith.constant dense<0.000000e+00> : vector<8x192xf32>
    %253 = tpu.matmul %220, %252, %cst_90 {dimension_numbers = #tpu.dot_dimension_numbers<[1], [0], [0], [1], [0, 0, 1, 1], [], []>} : vector<8x64xf32>, vector<64x192xf32>, vector<8x192xf32> -> vector<8x192xf32>
    %c0_91 = arith.constant 0 : index
    %c0_92 = arith.constant 0 : index
    %254 = vector.load %arg9[%c0_91, %c0_92] : memref<1x192xf32, #tpu.memory_space<vmem>>, vector<1x192xf32>
    %255 = vector.broadcast %254 : vector<1x192xf32> to vector<8x192xf32>
    %256 = arith.addf %253, %255 : vector<8x192xf32>
    %257 = vector.extract_strided_slice %251 {offsets = [0, 0], sizes = [8, 128], strides = [1, 1]} : vector<8x192xf32> to vector<8x128xf32>
    %258 = vector.extract_strided_slice %256 {offsets = [0, 0], sizes = [8, 128], strides = [1, 1]} : vector<8x192xf32> to vector<8x128xf32>
    %259 = arith.addf %257, %258 : vector<8x128xf32>
    %260 = arith.negf %259 : vector<8x128xf32>
    %261 = math.exp %260 : vector<8x128xf32>
    %cst_93 = arith.constant 1.000000e+00 : f32
    %262 = vector.broadcast %cst_93 : f32 to vector<8x128xf32>
    %263 = arith.addf %262, %261 : vector<8x128xf32>
    %264 = arith.divf %262, %263 : vector<8x128xf32>
    %265 = vector.extract_strided_slice %264 {offsets = [0, 0], sizes = [8, 64], strides = [1, 1]} : vector<8x128xf32> to vector<8x64xf32>
    %266 = vector.extract_strided_slice %264 {offsets = [0, 64], sizes = [8, 64], strides = [1, 1]} : vector<8x128xf32> to vector<8x64xf32>
    %267 = vector.extract_strided_slice %251 {offsets = [0, 128], sizes = [8, 64], strides = [1, 1]} : vector<8x192xf32> to vector<8x64xf32>
    %268 = vector.extract_strided_slice %256 {offsets = [0, 128], sizes = [8, 64], strides = [1, 1]} : vector<8x192xf32> to vector<8x64xf32>
    %269 = arith.mulf %265, %268 : vector<8x64xf32>
    %270 = arith.addf %267, %269 : vector<8x64xf32>
    %271 = math.tanh %270 : vector<8x64xf32>
    %cst_94 = arith.constant 1.000000e+00 : f32
    %272 = vector.broadcast %cst_94 : f32 to vector<8x64xf32>
    %273 = arith.subf %272, %266 : vector<8x64xf32>
    %274 = arith.mulf %273, %271 : vector<8x64xf32>
    %275 = arith.mulf %266, %220 : vector<8x64xf32>
    %276 = arith.addf %274, %275 : vector<8x64xf32>
    %c0_95 = arith.constant 0 : index
    %c0_96 = arith.constant 0 : index
    %277 = vector.load %arg10[%c0_95, %c0_96] : memref<64x192xf32, #tpu.memory_space<vmem>>, vector<64x192xf32>
    %cst_97 = arith.constant dense<0.000000e+00> : vector<8x192xf32>
    %278 = tpu.matmul %276, %277, %cst_97 {dimension_numbers = #tpu.dot_dimension_numbers<[1], [0], [0], [1], [0, 0, 1, 1], [], []>} : vector<8x64xf32>, vector<64x192xf32>, vector<8x192xf32> -> vector<8x192xf32>
    %c0_98 = arith.constant 0 : index
    %c0_99 = arith.constant 0 : index
    %279 = vector.load %arg11[%c0_98, %c0_99] : memref<1x192xf32, #tpu.memory_space<vmem>>, vector<1x192xf32>
    %280 = vector.broadcast %279 : vector<1x192xf32> to vector<8x192xf32>
    %281 = arith.addf %278, %280 : vector<8x192xf32>
    %c0_100 = arith.constant 0 : index
    %c0_101 = arith.constant 0 : index
    %282 = vector.load %arg12[%c0_100, %c0_101] : memref<64x192xf32, #tpu.memory_space<vmem>>, vector<64x192xf32>
    %cst_102 = arith.constant dense<0.000000e+00> : vector<8x192xf32>
    %283 = tpu.matmul %250, %282, %cst_102 {dimension_numbers = #tpu.dot_dimension_numbers<[1], [0], [0], [1], [0, 0, 1, 1], [], []>} : vector<8x64xf32>, vector<64x192xf32>, vector<8x192xf32> -> vector<8x192xf32>
    %c0_103 = arith.constant 0 : index
    %c0_104 = arith.constant 0 : index
    %284 = vector.load %arg13[%c0_103, %c0_104] : memref<1x192xf32, #tpu.memory_space<vmem>>, vector<1x192xf32>
    %285 = vector.broadcast %284 : vector<1x192xf32> to vector<8x192xf32>
    %286 = arith.addf %283, %285 : vector<8x192xf32>
    %287 = vector.extract_strided_slice %281 {offsets = [0, 0], sizes = [8, 128], strides = [1, 1]} : vector<8x192xf32> to vector<8x128xf32>
    %288 = vector.extract_strided_slice %286 {offsets = [0, 0], sizes = [8, 128], strides = [1, 1]} : vector<8x192xf32> to vector<8x128xf32>
    %289 = arith.addf %287, %288 : vector<8x128xf32>
    %290 = arith.negf %289 : vector<8x128xf32>
    %291 = math.exp %290 : vector<8x128xf32>
    %cst_105 = arith.constant 1.000000e+00 : f32
    %292 = vector.broadcast %cst_105 : f32 to vector<8x128xf32>
    %293 = arith.addf %292, %291 : vector<8x128xf32>
    %294 = arith.divf %292, %293 : vector<8x128xf32>
    %295 = vector.extract_strided_slice %294 {offsets = [0, 0], sizes = [8, 64], strides = [1, 1]} : vector<8x128xf32> to vector<8x64xf32>
    %296 = vector.extract_strided_slice %294 {offsets = [0, 64], sizes = [8, 64], strides = [1, 1]} : vector<8x128xf32> to vector<8x64xf32>
    %297 = vector.extract_strided_slice %281 {offsets = [0, 128], sizes = [8, 64], strides = [1, 1]} : vector<8x192xf32> to vector<8x64xf32>
    %298 = vector.extract_strided_slice %286 {offsets = [0, 128], sizes = [8, 64], strides = [1, 1]} : vector<8x192xf32> to vector<8x64xf32>
    %299 = arith.mulf %295, %298 : vector<8x64xf32>
    %300 = arith.addf %297, %299 : vector<8x64xf32>
    %301 = math.tanh %300 : vector<8x64xf32>
    %cst_106 = arith.constant 1.000000e+00 : f32
    %302 = vector.broadcast %cst_106 : f32 to vector<8x64xf32>
    %303 = arith.subf %302, %296 : vector<8x64xf32>
    %304 = arith.mulf %303, %301 : vector<8x64xf32>
    %305 = arith.mulf %296, %250 : vector<8x64xf32>
    %306 = arith.addf %304, %305 : vector<8x64xf32>
    %c32 = arith.constant 32 : index
    %c0_107 = arith.constant 0 : index
    %307 = vector.load %arg19[%c32, %c0_107] : memref<128x192xf32, #tpu.memory_space<vmem>>, vector<8x192xf32>
    %c0_108 = arith.constant 0 : index
    %c0_109 = arith.constant 0 : index
    %308 = vector.load %arg8[%c0_108, %c0_109] : memref<64x192xf32, #tpu.memory_space<vmem>>, vector<64x192xf32>
    %cst_110 = arith.constant dense<0.000000e+00> : vector<8x192xf32>
    %309 = tpu.matmul %276, %308, %cst_110 {dimension_numbers = #tpu.dot_dimension_numbers<[1], [0], [0], [1], [0, 0, 1, 1], [], []>} : vector<8x64xf32>, vector<64x192xf32>, vector<8x192xf32> -> vector<8x192xf32>
    %c0_111 = arith.constant 0 : index
    %c0_112 = arith.constant 0 : index
    %310 = vector.load %arg9[%c0_111, %c0_112] : memref<1x192xf32, #tpu.memory_space<vmem>>, vector<1x192xf32>
    %311 = vector.broadcast %310 : vector<1x192xf32> to vector<8x192xf32>
    %312 = arith.addf %309, %311 : vector<8x192xf32>
    %313 = vector.extract_strided_slice %307 {offsets = [0, 0], sizes = [8, 128], strides = [1, 1]} : vector<8x192xf32> to vector<8x128xf32>
    %314 = vector.extract_strided_slice %312 {offsets = [0, 0], sizes = [8, 128], strides = [1, 1]} : vector<8x192xf32> to vector<8x128xf32>
    %315 = arith.addf %313, %314 : vector<8x128xf32>
    %316 = arith.negf %315 : vector<8x128xf32>
    %317 = math.exp %316 : vector<8x128xf32>
    %cst_113 = arith.constant 1.000000e+00 : f32
    %318 = vector.broadcast %cst_113 : f32 to vector<8x128xf32>
    %319 = arith.addf %318, %317 : vector<8x128xf32>
    %320 = arith.divf %318, %319 : vector<8x128xf32>
    %321 = vector.extract_strided_slice %320 {offsets = [0, 0], sizes = [8, 64], strides = [1, 1]} : vector<8x128xf32> to vector<8x64xf32>
    %322 = vector.extract_strided_slice %320 {offsets = [0, 64], sizes = [8, 64], strides = [1, 1]} : vector<8x128xf32> to vector<8x64xf32>
    %323 = vector.extract_strided_slice %307 {offsets = [0, 128], sizes = [8, 64], strides = [1, 1]} : vector<8x192xf32> to vector<8x64xf32>
    %324 = vector.extract_strided_slice %312 {offsets = [0, 128], sizes = [8, 64], strides = [1, 1]} : vector<8x192xf32> to vector<8x64xf32>
    %325 = arith.mulf %321, %324 : vector<8x64xf32>
    %326 = arith.addf %323, %325 : vector<8x64xf32>
    %327 = math.tanh %326 : vector<8x64xf32>
    %cst_114 = arith.constant 1.000000e+00 : f32
    %328 = vector.broadcast %cst_114 : f32 to vector<8x64xf32>
    %329 = arith.subf %328, %322 : vector<8x64xf32>
    %330 = arith.mulf %329, %327 : vector<8x64xf32>
    %331 = arith.mulf %322, %276 : vector<8x64xf32>
    %332 = arith.addf %330, %331 : vector<8x64xf32>
    %c0_115 = arith.constant 0 : index
    %c0_116 = arith.constant 0 : index
    %333 = vector.load %arg10[%c0_115, %c0_116] : memref<64x192xf32, #tpu.memory_space<vmem>>, vector<64x192xf32>
    %cst_117 = arith.constant dense<0.000000e+00> : vector<8x192xf32>
    %334 = tpu.matmul %332, %333, %cst_117 {dimension_numbers = #tpu.dot_dimension_numbers<[1], [0], [0], [1], [0, 0, 1, 1], [], []>} : vector<8x64xf32>, vector<64x192xf32>, vector<8x192xf32> -> vector<8x192xf32>
    %c0_118 = arith.constant 0 : index
    %c0_119 = arith.constant 0 : index
    %335 = vector.load %arg11[%c0_118, %c0_119] : memref<1x192xf32, #tpu.memory_space<vmem>>, vector<1x192xf32>
    %336 = vector.broadcast %335 : vector<1x192xf32> to vector<8x192xf32>
    %337 = arith.addf %334, %336 : vector<8x192xf32>
    %c0_120 = arith.constant 0 : index
    %c0_121 = arith.constant 0 : index
    %338 = vector.load %arg12[%c0_120, %c0_121] : memref<64x192xf32, #tpu.memory_space<vmem>>, vector<64x192xf32>
    %cst_122 = arith.constant dense<0.000000e+00> : vector<8x192xf32>
    %339 = tpu.matmul %306, %338, %cst_122 {dimension_numbers = #tpu.dot_dimension_numbers<[1], [0], [0], [1], [0, 0, 1, 1], [], []>} : vector<8x64xf32>, vector<64x192xf32>, vector<8x192xf32> -> vector<8x192xf32>
    %c0_123 = arith.constant 0 : index
    %c0_124 = arith.constant 0 : index
    %340 = vector.load %arg13[%c0_123, %c0_124] : memref<1x192xf32, #tpu.memory_space<vmem>>, vector<1x192xf32>
    %341 = vector.broadcast %340 : vector<1x192xf32> to vector<8x192xf32>
    %342 = arith.addf %339, %341 : vector<8x192xf32>
    %343 = vector.extract_strided_slice %337 {offsets = [0, 0], sizes = [8, 128], strides = [1, 1]} : vector<8x192xf32> to vector<8x128xf32>
    %344 = vector.extract_strided_slice %342 {offsets = [0, 0], sizes = [8, 128], strides = [1, 1]} : vector<8x192xf32> to vector<8x128xf32>
    %345 = arith.addf %343, %344 : vector<8x128xf32>
    %346 = arith.negf %345 : vector<8x128xf32>
    %347 = math.exp %346 : vector<8x128xf32>
    %cst_125 = arith.constant 1.000000e+00 : f32
    %348 = vector.broadcast %cst_125 : f32 to vector<8x128xf32>
    %349 = arith.addf %348, %347 : vector<8x128xf32>
    %350 = arith.divf %348, %349 : vector<8x128xf32>
    %351 = vector.extract_strided_slice %350 {offsets = [0, 0], sizes = [8, 64], strides = [1, 1]} : vector<8x128xf32> to vector<8x64xf32>
    %352 = vector.extract_strided_slice %350 {offsets = [0, 64], sizes = [8, 64], strides = [1, 1]} : vector<8x128xf32> to vector<8x64xf32>
    %353 = vector.extract_strided_slice %337 {offsets = [0, 128], sizes = [8, 64], strides = [1, 1]} : vector<8x192xf32> to vector<8x64xf32>
    %354 = vector.extract_strided_slice %342 {offsets = [0, 128], sizes = [8, 64], strides = [1, 1]} : vector<8x192xf32> to vector<8x64xf32>
    %355 = arith.mulf %351, %354 : vector<8x64xf32>
    %356 = arith.addf %353, %355 : vector<8x64xf32>
    %357 = math.tanh %356 : vector<8x64xf32>
    %cst_126 = arith.constant 1.000000e+00 : f32
    %358 = vector.broadcast %cst_126 : f32 to vector<8x64xf32>
    %359 = arith.subf %358, %352 : vector<8x64xf32>
    %360 = arith.mulf %359, %357 : vector<8x64xf32>
    %361 = arith.mulf %352, %306 : vector<8x64xf32>
    %362 = arith.addf %360, %361 : vector<8x64xf32>
    %c40 = arith.constant 40 : index
    %c0_127 = arith.constant 0 : index
    %363 = vector.load %arg19[%c40, %c0_127] : memref<128x192xf32, #tpu.memory_space<vmem>>, vector<8x192xf32>
    %c0_128 = arith.constant 0 : index
    %c0_129 = arith.constant 0 : index
    %364 = vector.load %arg8[%c0_128, %c0_129] : memref<64x192xf32, #tpu.memory_space<vmem>>, vector<64x192xf32>
    %cst_130 = arith.constant dense<0.000000e+00> : vector<8x192xf32>
    %365 = tpu.matmul %332, %364, %cst_130 {dimension_numbers = #tpu.dot_dimension_numbers<[1], [0], [0], [1], [0, 0, 1, 1], [], []>} : vector<8x64xf32>, vector<64x192xf32>, vector<8x192xf32> -> vector<8x192xf32>
    %c0_131 = arith.constant 0 : index
    %c0_132 = arith.constant 0 : index
    %366 = vector.load %arg9[%c0_131, %c0_132] : memref<1x192xf32, #tpu.memory_space<vmem>>, vector<1x192xf32>
    %367 = vector.broadcast %366 : vector<1x192xf32> to vector<8x192xf32>
    %368 = arith.addf %365, %367 : vector<8x192xf32>
    %369 = vector.extract_strided_slice %363 {offsets = [0, 0], sizes = [8, 128], strides = [1, 1]} : vector<8x192xf32> to vector<8x128xf32>
    %370 = vector.extract_strided_slice %368 {offsets = [0, 0], sizes = [8, 128], strides = [1, 1]} : vector<8x192xf32> to vector<8x128xf32>
    %371 = arith.addf %369, %370 : vector<8x128xf32>
    %372 = arith.negf %371 : vector<8x128xf32>
    %373 = math.exp %372 : vector<8x128xf32>
    %cst_133 = arith.constant 1.000000e+00 : f32
    %374 = vector.broadcast %cst_133 : f32 to vector<8x128xf32>
    %375 = arith.addf %374, %373 : vector<8x128xf32>
    %376 = arith.divf %374, %375 : vector<8x128xf32>
    %377 = vector.extract_strided_slice %376 {offsets = [0, 0], sizes = [8, 64], strides = [1, 1]} : vector<8x128xf32> to vector<8x64xf32>
    %378 = vector.extract_strided_slice %376 {offsets = [0, 64], sizes = [8, 64], strides = [1, 1]} : vector<8x128xf32> to vector<8x64xf32>
    %379 = vector.extract_strided_slice %363 {offsets = [0, 128], sizes = [8, 64], strides = [1, 1]} : vector<8x192xf32> to vector<8x64xf32>
    %380 = vector.extract_strided_slice %368 {offsets = [0, 128], sizes = [8, 64], strides = [1, 1]} : vector<8x192xf32> to vector<8x64xf32>
    %381 = arith.mulf %377, %380 : vector<8x64xf32>
    %382 = arith.addf %379, %381 : vector<8x64xf32>
    %383 = math.tanh %382 : vector<8x64xf32>
    %cst_134 = arith.constant 1.000000e+00 : f32
    %384 = vector.broadcast %cst_134 : f32 to vector<8x64xf32>
    %385 = arith.subf %384, %378 : vector<8x64xf32>
    %386 = arith.mulf %385, %383 : vector<8x64xf32>
    %387 = arith.mulf %378, %332 : vector<8x64xf32>
    %388 = arith.addf %386, %387 : vector<8x64xf32>
    %c0_135 = arith.constant 0 : index
    %c0_136 = arith.constant 0 : index
    %389 = vector.load %arg10[%c0_135, %c0_136] : memref<64x192xf32, #tpu.memory_space<vmem>>, vector<64x192xf32>
    %cst_137 = arith.constant dense<0.000000e+00> : vector<8x192xf32>
    %390 = tpu.matmul %388, %389, %cst_137 {dimension_numbers = #tpu.dot_dimension_numbers<[1], [0], [0], [1], [0, 0, 1, 1], [], []>} : vector<8x64xf32>, vector<64x192xf32>, vector<8x192xf32> -> vector<8x192xf32>
    %c0_138 = arith.constant 0 : index
    %c0_139 = arith.constant 0 : index
    %391 = vector.load %arg11[%c0_138, %c0_139] : memref<1x192xf32, #tpu.memory_space<vmem>>, vector<1x192xf32>
    %392 = vector.broadcast %391 : vector<1x192xf32> to vector<8x192xf32>
    %393 = arith.addf %390, %392 : vector<8x192xf32>
    %c0_140 = arith.constant 0 : index
    %c0_141 = arith.constant 0 : index
    %394 = vector.load %arg12[%c0_140, %c0_141] : memref<64x192xf32, #tpu.memory_space<vmem>>, vector<64x192xf32>
    %cst_142 = arith.constant dense<0.000000e+00> : vector<8x192xf32>
    %395 = tpu.matmul %362, %394, %cst_142 {dimension_numbers = #tpu.dot_dimension_numbers<[1], [0], [0], [1], [0, 0, 1, 1], [], []>} : vector<8x64xf32>, vector<64x192xf32>, vector<8x192xf32> -> vector<8x192xf32>
    %c0_143 = arith.constant 0 : index
    %c0_144 = arith.constant 0 : index
    %396 = vector.load %arg13[%c0_143, %c0_144] : memref<1x192xf32, #tpu.memory_space<vmem>>, vector<1x192xf32>
    %397 = vector.broadcast %396 : vector<1x192xf32> to vector<8x192xf32>
    %398 = arith.addf %395, %397 : vector<8x192xf32>
    %399 = vector.extract_strided_slice %393 {offsets = [0, 0], sizes = [8, 128], strides = [1, 1]} : vector<8x192xf32> to vector<8x128xf32>
    %400 = vector.extract_strided_slice %398 {offsets = [0, 0], sizes = [8, 128], strides = [1, 1]} : vector<8x192xf32> to vector<8x128xf32>
    %401 = arith.addf %399, %400 : vector<8x128xf32>
    %402 = arith.negf %401 : vector<8x128xf32>
    %403 = math.exp %402 : vector<8x128xf32>
    %cst_145 = arith.constant 1.000000e+00 : f32
    %404 = vector.broadcast %cst_145 : f32 to vector<8x128xf32>
    %405 = arith.addf %404, %403 : vector<8x128xf32>
    %406 = arith.divf %404, %405 : vector<8x128xf32>
    %407 = vector.extract_strided_slice %406 {offsets = [0, 0], sizes = [8, 64], strides = [1, 1]} : vector<8x128xf32> to vector<8x64xf32>
    %408 = vector.extract_strided_slice %406 {offsets = [0, 64], sizes = [8, 64], strides = [1, 1]} : vector<8x128xf32> to vector<8x64xf32>
    %409 = vector.extract_strided_slice %393 {offsets = [0, 128], sizes = [8, 64], strides = [1, 1]} : vector<8x192xf32> to vector<8x64xf32>
    %410 = vector.extract_strided_slice %398 {offsets = [0, 128], sizes = [8, 64], strides = [1, 1]} : vector<8x192xf32> to vector<8x64xf32>
    %411 = arith.mulf %407, %410 : vector<8x64xf32>
    %412 = arith.addf %409, %411 : vector<8x64xf32>
    %413 = math.tanh %412 : vector<8x64xf32>
    %cst_146 = arith.constant 1.000000e+00 : f32
    %414 = vector.broadcast %cst_146 : f32 to vector<8x64xf32>
    %415 = arith.subf %414, %408 : vector<8x64xf32>
    %416 = arith.mulf %415, %413 : vector<8x64xf32>
    %417 = arith.mulf %408, %362 : vector<8x64xf32>
    %418 = arith.addf %416, %417 : vector<8x64xf32>
    %c48 = arith.constant 48 : index
    %c0_147 = arith.constant 0 : index
    %419 = vector.load %arg19[%c48, %c0_147] : memref<128x192xf32, #tpu.memory_space<vmem>>, vector<8x192xf32>
    %c0_148 = arith.constant 0 : index
    %c0_149 = arith.constant 0 : index
    %420 = vector.load %arg8[%c0_148, %c0_149] : memref<64x192xf32, #tpu.memory_space<vmem>>, vector<64x192xf32>
    %cst_150 = arith.constant dense<0.000000e+00> : vector<8x192xf32>
    %421 = tpu.matmul %388, %420, %cst_150 {dimension_numbers = #tpu.dot_dimension_numbers<[1], [0], [0], [1], [0, 0, 1, 1], [], []>} : vector<8x64xf32>, vector<64x192xf32>, vector<8x192xf32> -> vector<8x192xf32>
    %c0_151 = arith.constant 0 : index
    %c0_152 = arith.constant 0 : index
    %422 = vector.load %arg9[%c0_151, %c0_152] : memref<1x192xf32, #tpu.memory_space<vmem>>, vector<1x192xf32>
    %423 = vector.broadcast %422 : vector<1x192xf32> to vector<8x192xf32>
    %424 = arith.addf %421, %423 : vector<8x192xf32>
    %425 = vector.extract_strided_slice %419 {offsets = [0, 0], sizes = [8, 128], strides = [1, 1]} : vector<8x192xf32> to vector<8x128xf32>
    %426 = vector.extract_strided_slice %424 {offsets = [0, 0], sizes = [8, 128], strides = [1, 1]} : vector<8x192xf32> to vector<8x128xf32>
    %427 = arith.addf %425, %426 : vector<8x128xf32>
    %428 = arith.negf %427 : vector<8x128xf32>
    %429 = math.exp %428 : vector<8x128xf32>
    %cst_153 = arith.constant 1.000000e+00 : f32
    %430 = vector.broadcast %cst_153 : f32 to vector<8x128xf32>
    %431 = arith.addf %430, %429 : vector<8x128xf32>
    %432 = arith.divf %430, %431 : vector<8x128xf32>
    %433 = vector.extract_strided_slice %432 {offsets = [0, 0], sizes = [8, 64], strides = [1, 1]} : vector<8x128xf32> to vector<8x64xf32>
    %434 = vector.extract_strided_slice %432 {offsets = [0, 64], sizes = [8, 64], strides = [1, 1]} : vector<8x128xf32> to vector<8x64xf32>
    %435 = vector.extract_strided_slice %419 {offsets = [0, 128], sizes = [8, 64], strides = [1, 1]} : vector<8x192xf32> to vector<8x64xf32>
    %436 = vector.extract_strided_slice %424 {offsets = [0, 128], sizes = [8, 64], strides = [1, 1]} : vector<8x192xf32> to vector<8x64xf32>
    %437 = arith.mulf %433, %436 : vector<8x64xf32>
    %438 = arith.addf %435, %437 : vector<8x64xf32>
    %439 = math.tanh %438 : vector<8x64xf32>
    %cst_154 = arith.constant 1.000000e+00 : f32
    %440 = vector.broadcast %cst_154 : f32 to vector<8x64xf32>
    %441 = arith.subf %440, %434 : vector<8x64xf32>
    %442 = arith.mulf %441, %439 : vector<8x64xf32>
    %443 = arith.mulf %434, %388 : vector<8x64xf32>
    %444 = arith.addf %442, %443 : vector<8x64xf32>
    %c0_155 = arith.constant 0 : index
    %c0_156 = arith.constant 0 : index
    %445 = vector.load %arg10[%c0_155, %c0_156] : memref<64x192xf32, #tpu.memory_space<vmem>>, vector<64x192xf32>
    %cst_157 = arith.constant dense<0.000000e+00> : vector<8x192xf32>
    %446 = tpu.matmul %444, %445, %cst_157 {dimension_numbers = #tpu.dot_dimension_numbers<[1], [0], [0], [1], [0, 0, 1, 1], [], []>} : vector<8x64xf32>, vector<64x192xf32>, vector<8x192xf32> -> vector<8x192xf32>
    %c0_158 = arith.constant 0 : index
    %c0_159 = arith.constant 0 : index
    %447 = vector.load %arg11[%c0_158, %c0_159] : memref<1x192xf32, #tpu.memory_space<vmem>>, vector<1x192xf32>
    %448 = vector.broadcast %447 : vector<1x192xf32> to vector<8x192xf32>
    %449 = arith.addf %446, %448 : vector<8x192xf32>
    %c0_160 = arith.constant 0 : index
    %c0_161 = arith.constant 0 : index
    %450 = vector.load %arg12[%c0_160, %c0_161] : memref<64x192xf32, #tpu.memory_space<vmem>>, vector<64x192xf32>
    %cst_162 = arith.constant dense<0.000000e+00> : vector<8x192xf32>
    %451 = tpu.matmul %418, %450, %cst_162 {dimension_numbers = #tpu.dot_dimension_numbers<[1], [0], [0], [1], [0, 0, 1, 1], [], []>} : vector<8x64xf32>, vector<64x192xf32>, vector<8x192xf32> -> vector<8x192xf32>
    %c0_163 = arith.constant 0 : index
    %c0_164 = arith.constant 0 : index
    %452 = vector.load %arg13[%c0_163, %c0_164] : memref<1x192xf32, #tpu.memory_space<vmem>>, vector<1x192xf32>
    %453 = vector.broadcast %452 : vector<1x192xf32> to vector<8x192xf32>
    %454 = arith.addf %451, %453 : vector<8x192xf32>
    %455 = vector.extract_strided_slice %449 {offsets = [0, 0], sizes = [8, 128], strides = [1, 1]} : vector<8x192xf32> to vector<8x128xf32>
    %456 = vector.extract_strided_slice %454 {offsets = [0, 0], sizes = [8, 128], strides = [1, 1]} : vector<8x192xf32> to vector<8x128xf32>
    %457 = arith.addf %455, %456 : vector<8x128xf32>
    %458 = arith.negf %457 : vector<8x128xf32>
    %459 = math.exp %458 : vector<8x128xf32>
    %cst_165 = arith.constant 1.000000e+00 : f32
    %460 = vector.broadcast %cst_165 : f32 to vector<8x128xf32>
    %461 = arith.addf %460, %459 : vector<8x128xf32>
    %462 = arith.divf %460, %461 : vector<8x128xf32>
    %463 = vector.extract_strided_slice %462 {offsets = [0, 0], sizes = [8, 64], strides = [1, 1]} : vector<8x128xf32> to vector<8x64xf32>
    %464 = vector.extract_strided_slice %462 {offsets = [0, 64], sizes = [8, 64], strides = [1, 1]} : vector<8x128xf32> to vector<8x64xf32>
    %465 = vector.extract_strided_slice %449 {offsets = [0, 128], sizes = [8, 64], strides = [1, 1]} : vector<8x192xf32> to vector<8x64xf32>
    %466 = vector.extract_strided_slice %454 {offsets = [0, 128], sizes = [8, 64], strides = [1, 1]} : vector<8x192xf32> to vector<8x64xf32>
    %467 = arith.mulf %463, %466 : vector<8x64xf32>
    %468 = arith.addf %465, %467 : vector<8x64xf32>
    %469 = math.tanh %468 : vector<8x64xf32>
    %cst_166 = arith.constant 1.000000e+00 : f32
    %470 = vector.broadcast %cst_166 : f32 to vector<8x64xf32>
    %471 = arith.subf %470, %464 : vector<8x64xf32>
    %472 = arith.mulf %471, %469 : vector<8x64xf32>
    %473 = arith.mulf %464, %418 : vector<8x64xf32>
    %474 = arith.addf %472, %473 : vector<8x64xf32>
    %c56 = arith.constant 56 : index
    %c0_167 = arith.constant 0 : index
    %475 = vector.load %arg19[%c56, %c0_167] : memref<128x192xf32, #tpu.memory_space<vmem>>, vector<8x192xf32>
    %c0_168 = arith.constant 0 : index
    %c0_169 = arith.constant 0 : index
    %476 = vector.load %arg8[%c0_168, %c0_169] : memref<64x192xf32, #tpu.memory_space<vmem>>, vector<64x192xf32>
    %cst_170 = arith.constant dense<0.000000e+00> : vector<8x192xf32>
    %477 = tpu.matmul %444, %476, %cst_170 {dimension_numbers = #tpu.dot_dimension_numbers<[1], [0], [0], [1], [0, 0, 1, 1], [], []>} : vector<8x64xf32>, vector<64x192xf32>, vector<8x192xf32> -> vector<8x192xf32>
    %c0_171 = arith.constant 0 : index
    %c0_172 = arith.constant 0 : index
    %478 = vector.load %arg9[%c0_171, %c0_172] : memref<1x192xf32, #tpu.memory_space<vmem>>, vector<1x192xf32>
    %479 = vector.broadcast %478 : vector<1x192xf32> to vector<8x192xf32>
    %480 = arith.addf %477, %479 : vector<8x192xf32>
    %481 = vector.extract_strided_slice %475 {offsets = [0, 0], sizes = [8, 128], strides = [1, 1]} : vector<8x192xf32> to vector<8x128xf32>
    %482 = vector.extract_strided_slice %480 {offsets = [0, 0], sizes = [8, 128], strides = [1, 1]} : vector<8x192xf32> to vector<8x128xf32>
    %483 = arith.addf %481, %482 : vector<8x128xf32>
    %484 = arith.negf %483 : vector<8x128xf32>
    %485 = math.exp %484 : vector<8x128xf32>
    %cst_173 = arith.constant 1.000000e+00 : f32
    %486 = vector.broadcast %cst_173 : f32 to vector<8x128xf32>
    %487 = arith.addf %486, %485 : vector<8x128xf32>
    %488 = arith.divf %486, %487 : vector<8x128xf32>
    %489 = vector.extract_strided_slice %488 {offsets = [0, 0], sizes = [8, 64], strides = [1, 1]} : vector<8x128xf32> to vector<8x64xf32>
    %490 = vector.extract_strided_slice %488 {offsets = [0, 64], sizes = [8, 64], strides = [1, 1]} : vector<8x128xf32> to vector<8x64xf32>
    %491 = vector.extract_strided_slice %475 {offsets = [0, 128], sizes = [8, 64], strides = [1, 1]} : vector<8x192xf32> to vector<8x64xf32>
    %492 = vector.extract_strided_slice %480 {offsets = [0, 128], sizes = [8, 64], strides = [1, 1]} : vector<8x192xf32> to vector<8x64xf32>
    %493 = arith.mulf %489, %492 : vector<8x64xf32>
    %494 = arith.addf %491, %493 : vector<8x64xf32>
    %495 = math.tanh %494 : vector<8x64xf32>
    %cst_174 = arith.constant 1.000000e+00 : f32
    %496 = vector.broadcast %cst_174 : f32 to vector<8x64xf32>
    %497 = arith.subf %496, %490 : vector<8x64xf32>
    %498 = arith.mulf %497, %495 : vector<8x64xf32>
    %499 = arith.mulf %490, %444 : vector<8x64xf32>
    %500 = arith.addf %498, %499 : vector<8x64xf32>
    %c0_175 = arith.constant 0 : index
    %c0_176 = arith.constant 0 : index
    %501 = vector.load %arg10[%c0_175, %c0_176] : memref<64x192xf32, #tpu.memory_space<vmem>>, vector<64x192xf32>
    %cst_177 = arith.constant dense<0.000000e+00> : vector<8x192xf32>
    %502 = tpu.matmul %500, %501, %cst_177 {dimension_numbers = #tpu.dot_dimension_numbers<[1], [0], [0], [1], [0, 0, 1, 1], [], []>} : vector<8x64xf32>, vector<64x192xf32>, vector<8x192xf32> -> vector<8x192xf32>
    %c0_178 = arith.constant 0 : index
    %c0_179 = arith.constant 0 : index
    %503 = vector.load %arg11[%c0_178, %c0_179] : memref<1x192xf32, #tpu.memory_space<vmem>>, vector<1x192xf32>
    %504 = vector.broadcast %503 : vector<1x192xf32> to vector<8x192xf32>
    %505 = arith.addf %502, %504 : vector<8x192xf32>
    %c0_180 = arith.constant 0 : index
    %c0_181 = arith.constant 0 : index
    %506 = vector.load %arg12[%c0_180, %c0_181] : memref<64x192xf32, #tpu.memory_space<vmem>>, vector<64x192xf32>
    %cst_182 = arith.constant dense<0.000000e+00> : vector<8x192xf32>
    %507 = tpu.matmul %474, %506, %cst_182 {dimension_numbers = #tpu.dot_dimension_numbers<[1], [0], [0], [1], [0, 0, 1, 1], [], []>} : vector<8x64xf32>, vector<64x192xf32>, vector<8x192xf32> -> vector<8x192xf32>
    %c0_183 = arith.constant 0 : index
    %c0_184 = arith.constant 0 : index
    %508 = vector.load %arg13[%c0_183, %c0_184] : memref<1x192xf32, #tpu.memory_space<vmem>>, vector<1x192xf32>
    %509 = vector.broadcast %508 : vector<1x192xf32> to vector<8x192xf32>
    %510 = arith.addf %507, %509 : vector<8x192xf32>
    %511 = vector.extract_strided_slice %505 {offsets = [0, 0], sizes = [8, 128], strides = [1, 1]} : vector<8x192xf32> to vector<8x128xf32>
    %512 = vector.extract_strided_slice %510 {offsets = [0, 0], sizes = [8, 128], strides = [1, 1]} : vector<8x192xf32> to vector<8x128xf32>
    %513 = arith.addf %511, %512 : vector<8x128xf32>
    %514 = arith.negf %513 : vector<8x128xf32>
    %515 = math.exp %514 : vector<8x128xf32>
    %cst_185 = arith.constant 1.000000e+00 : f32
    %516 = vector.broadcast %cst_185 : f32 to vector<8x128xf32>
    %517 = arith.addf %516, %515 : vector<8x128xf32>
    %518 = arith.divf %516, %517 : vector<8x128xf32>
    %519 = vector.extract_strided_slice %518 {offsets = [0, 0], sizes = [8, 64], strides = [1, 1]} : vector<8x128xf32> to vector<8x64xf32>
    %520 = vector.extract_strided_slice %518 {offsets = [0, 64], sizes = [8, 64], strides = [1, 1]} : vector<8x128xf32> to vector<8x64xf32>
    %521 = vector.extract_strided_slice %505 {offsets = [0, 128], sizes = [8, 64], strides = [1, 1]} : vector<8x192xf32> to vector<8x64xf32>
    %522 = vector.extract_strided_slice %510 {offsets = [0, 128], sizes = [8, 64], strides = [1, 1]} : vector<8x192xf32> to vector<8x64xf32>
    %523 = arith.mulf %519, %522 : vector<8x64xf32>
    %524 = arith.addf %521, %523 : vector<8x64xf32>
    %525 = math.tanh %524 : vector<8x64xf32>
    %cst_186 = arith.constant 1.000000e+00 : f32
    %526 = vector.broadcast %cst_186 : f32 to vector<8x64xf32>
    %527 = arith.subf %526, %520 : vector<8x64xf32>
    %528 = arith.mulf %527, %525 : vector<8x64xf32>
    %529 = arith.mulf %520, %474 : vector<8x64xf32>
    %530 = arith.addf %528, %529 : vector<8x64xf32>
    %c64 = arith.constant 64 : index
    %c0_187 = arith.constant 0 : index
    %531 = vector.load %arg19[%c64, %c0_187] : memref<128x192xf32, #tpu.memory_space<vmem>>, vector<8x192xf32>
    %c0_188 = arith.constant 0 : index
    %c0_189 = arith.constant 0 : index
    %532 = vector.load %arg8[%c0_188, %c0_189] : memref<64x192xf32, #tpu.memory_space<vmem>>, vector<64x192xf32>
    %cst_190 = arith.constant dense<0.000000e+00> : vector<8x192xf32>
    %533 = tpu.matmul %500, %532, %cst_190 {dimension_numbers = #tpu.dot_dimension_numbers<[1], [0], [0], [1], [0, 0, 1, 1], [], []>} : vector<8x64xf32>, vector<64x192xf32>, vector<8x192xf32> -> vector<8x192xf32>
    %c0_191 = arith.constant 0 : index
    %c0_192 = arith.constant 0 : index
    %534 = vector.load %arg9[%c0_191, %c0_192] : memref<1x192xf32, #tpu.memory_space<vmem>>, vector<1x192xf32>
    %535 = vector.broadcast %534 : vector<1x192xf32> to vector<8x192xf32>
    %536 = arith.addf %533, %535 : vector<8x192xf32>
    %537 = vector.extract_strided_slice %531 {offsets = [0, 0], sizes = [8, 128], strides = [1, 1]} : vector<8x192xf32> to vector<8x128xf32>
    %538 = vector.extract_strided_slice %536 {offsets = [0, 0], sizes = [8, 128], strides = [1, 1]} : vector<8x192xf32> to vector<8x128xf32>
    %539 = arith.addf %537, %538 : vector<8x128xf32>
    %540 = arith.negf %539 : vector<8x128xf32>
    %541 = math.exp %540 : vector<8x128xf32>
    %cst_193 = arith.constant 1.000000e+00 : f32
    %542 = vector.broadcast %cst_193 : f32 to vector<8x128xf32>
    %543 = arith.addf %542, %541 : vector<8x128xf32>
    %544 = arith.divf %542, %543 : vector<8x128xf32>
    %545 = vector.extract_strided_slice %544 {offsets = [0, 0], sizes = [8, 64], strides = [1, 1]} : vector<8x128xf32> to vector<8x64xf32>
    %546 = vector.extract_strided_slice %544 {offsets = [0, 64], sizes = [8, 64], strides = [1, 1]} : vector<8x128xf32> to vector<8x64xf32>
    %547 = vector.extract_strided_slice %531 {offsets = [0, 128], sizes = [8, 64], strides = [1, 1]} : vector<8x192xf32> to vector<8x64xf32>
    %548 = vector.extract_strided_slice %536 {offsets = [0, 128], sizes = [8, 64], strides = [1, 1]} : vector<8x192xf32> to vector<8x64xf32>
    %549 = arith.mulf %545, %548 : vector<8x64xf32>
    %550 = arith.addf %547, %549 : vector<8x64xf32>
    %551 = math.tanh %550 : vector<8x64xf32>
    %cst_194 = arith.constant 1.000000e+00 : f32
    %552 = vector.broadcast %cst_194 : f32 to vector<8x64xf32>
    %553 = arith.subf %552, %546 : vector<8x64xf32>
    %554 = arith.mulf %553, %551 : vector<8x64xf32>
    %555 = arith.mulf %546, %500 : vector<8x64xf32>
    %556 = arith.addf %554, %555 : vector<8x64xf32>
    %c0_195 = arith.constant 0 : index
    %c0_196 = arith.constant 0 : index
    %557 = vector.load %arg10[%c0_195, %c0_196] : memref<64x192xf32, #tpu.memory_space<vmem>>, vector<64x192xf32>
    %cst_197 = arith.constant dense<0.000000e+00> : vector<8x192xf32>
    %558 = tpu.matmul %556, %557, %cst_197 {dimension_numbers = #tpu.dot_dimension_numbers<[1], [0], [0], [1], [0, 0, 1, 1], [], []>} : vector<8x64xf32>, vector<64x192xf32>, vector<8x192xf32> -> vector<8x192xf32>
    %c0_198 = arith.constant 0 : index
    %c0_199 = arith.constant 0 : index
    %559 = vector.load %arg11[%c0_198, %c0_199] : memref<1x192xf32, #tpu.memory_space<vmem>>, vector<1x192xf32>
    %560 = vector.broadcast %559 : vector<1x192xf32> to vector<8x192xf32>
    %561 = arith.addf %558, %560 : vector<8x192xf32>
    %c0_200 = arith.constant 0 : index
    %c0_201 = arith.constant 0 : index
    %562 = vector.load %arg12[%c0_200, %c0_201] : memref<64x192xf32, #tpu.memory_space<vmem>>, vector<64x192xf32>
    %cst_202 = arith.constant dense<0.000000e+00> : vector<8x192xf32>
    %563 = tpu.matmul %530, %562, %cst_202 {dimension_numbers = #tpu.dot_dimension_numbers<[1], [0], [0], [1], [0, 0, 1, 1], [], []>} : vector<8x64xf32>, vector<64x192xf32>, vector<8x192xf32> -> vector<8x192xf32>
    %c0_203 = arith.constant 0 : index
    %c0_204 = arith.constant 0 : index
    %564 = vector.load %arg13[%c0_203, %c0_204] : memref<1x192xf32, #tpu.memory_space<vmem>>, vector<1x192xf32>
    %565 = vector.broadcast %564 : vector<1x192xf32> to vector<8x192xf32>
    %566 = arith.addf %563, %565 : vector<8x192xf32>
    %567 = vector.extract_strided_slice %561 {offsets = [0, 0], sizes = [8, 128], strides = [1, 1]} : vector<8x192xf32> to vector<8x128xf32>
    %568 = vector.extract_strided_slice %566 {offsets = [0, 0], sizes = [8, 128], strides = [1, 1]} : vector<8x192xf32> to vector<8x128xf32>
    %569 = arith.addf %567, %568 : vector<8x128xf32>
    %570 = arith.negf %569 : vector<8x128xf32>
    %571 = math.exp %570 : vector<8x128xf32>
    %cst_205 = arith.constant 1.000000e+00 : f32
    %572 = vector.broadcast %cst_205 : f32 to vector<8x128xf32>
    %573 = arith.addf %572, %571 : vector<8x128xf32>
    %574 = arith.divf %572, %573 : vector<8x128xf32>
    %575 = vector.extract_strided_slice %574 {offsets = [0, 0], sizes = [8, 64], strides = [1, 1]} : vector<8x128xf32> to vector<8x64xf32>
    %576 = vector.extract_strided_slice %574 {offsets = [0, 64], sizes = [8, 64], strides = [1, 1]} : vector<8x128xf32> to vector<8x64xf32>
    %577 = vector.extract_strided_slice %561 {offsets = [0, 128], sizes = [8, 64], strides = [1, 1]} : vector<8x192xf32> to vector<8x64xf32>
    %578 = vector.extract_strided_slice %566 {offsets = [0, 128], sizes = [8, 64], strides = [1, 1]} : vector<8x192xf32> to vector<8x64xf32>
    %579 = arith.mulf %575, %578 : vector<8x64xf32>
    %580 = arith.addf %577, %579 : vector<8x64xf32>
    %581 = math.tanh %580 : vector<8x64xf32>
    %cst_206 = arith.constant 1.000000e+00 : f32
    %582 = vector.broadcast %cst_206 : f32 to vector<8x64xf32>
    %583 = arith.subf %582, %576 : vector<8x64xf32>
    %584 = arith.mulf %583, %581 : vector<8x64xf32>
    %585 = arith.mulf %576, %530 : vector<8x64xf32>
    %586 = arith.addf %584, %585 : vector<8x64xf32>
    %c72 = arith.constant 72 : index
    %c0_207 = arith.constant 0 : index
    %587 = vector.load %arg19[%c72, %c0_207] : memref<128x192xf32, #tpu.memory_space<vmem>>, vector<8x192xf32>
    %c0_208 = arith.constant 0 : index
    %c0_209 = arith.constant 0 : index
    %588 = vector.load %arg8[%c0_208, %c0_209] : memref<64x192xf32, #tpu.memory_space<vmem>>, vector<64x192xf32>
    %cst_210 = arith.constant dense<0.000000e+00> : vector<8x192xf32>
    %589 = tpu.matmul %556, %588, %cst_210 {dimension_numbers = #tpu.dot_dimension_numbers<[1], [0], [0], [1], [0, 0, 1, 1], [], []>} : vector<8x64xf32>, vector<64x192xf32>, vector<8x192xf32> -> vector<8x192xf32>
    %c0_211 = arith.constant 0 : index
    %c0_212 = arith.constant 0 : index
    %590 = vector.load %arg9[%c0_211, %c0_212] : memref<1x192xf32, #tpu.memory_space<vmem>>, vector<1x192xf32>
    %591 = vector.broadcast %590 : vector<1x192xf32> to vector<8x192xf32>
    %592 = arith.addf %589, %591 : vector<8x192xf32>
    %593 = vector.extract_strided_slice %587 {offsets = [0, 0], sizes = [8, 128], strides = [1, 1]} : vector<8x192xf32> to vector<8x128xf32>
    %594 = vector.extract_strided_slice %592 {offsets = [0, 0], sizes = [8, 128], strides = [1, 1]} : vector<8x192xf32> to vector<8x128xf32>
    %595 = arith.addf %593, %594 : vector<8x128xf32>
    %596 = arith.negf %595 : vector<8x128xf32>
    %597 = math.exp %596 : vector<8x128xf32>
    %cst_213 = arith.constant 1.000000e+00 : f32
    %598 = vector.broadcast %cst_213 : f32 to vector<8x128xf32>
    %599 = arith.addf %598, %597 : vector<8x128xf32>
    %600 = arith.divf %598, %599 : vector<8x128xf32>
    %601 = vector.extract_strided_slice %600 {offsets = [0, 0], sizes = [8, 64], strides = [1, 1]} : vector<8x128xf32> to vector<8x64xf32>
    %602 = vector.extract_strided_slice %600 {offsets = [0, 64], sizes = [8, 64], strides = [1, 1]} : vector<8x128xf32> to vector<8x64xf32>
    %603 = vector.extract_strided_slice %587 {offsets = [0, 128], sizes = [8, 64], strides = [1, 1]} : vector<8x192xf32> to vector<8x64xf32>
    %604 = vector.extract_strided_slice %592 {offsets = [0, 128], sizes = [8, 64], strides = [1, 1]} : vector<8x192xf32> to vector<8x64xf32>
    %605 = arith.mulf %601, %604 : vector<8x64xf32>
    %606 = arith.addf %603, %605 : vector<8x64xf32>
    %607 = math.tanh %606 : vector<8x64xf32>
    %cst_214 = arith.constant 1.000000e+00 : f32
    %608 = vector.broadcast %cst_214 : f32 to vector<8x64xf32>
    %609 = arith.subf %608, %602 : vector<8x64xf32>
    %610 = arith.mulf %609, %607 : vector<8x64xf32>
    %611 = arith.mulf %602, %556 : vector<8x64xf32>
    %612 = arith.addf %610, %611 : vector<8x64xf32>
    %c0_215 = arith.constant 0 : index
    %c0_216 = arith.constant 0 : index
    %613 = vector.load %arg10[%c0_215, %c0_216] : memref<64x192xf32, #tpu.memory_space<vmem>>, vector<64x192xf32>
    %cst_217 = arith.constant dense<0.000000e+00> : vector<8x192xf32>
    %614 = tpu.matmul %612, %613, %cst_217 {dimension_numbers = #tpu.dot_dimension_numbers<[1], [0], [0], [1], [0, 0, 1, 1], [], []>} : vector<8x64xf32>, vector<64x192xf32>, vector<8x192xf32> -> vector<8x192xf32>
    %c0_218 = arith.constant 0 : index
    %c0_219 = arith.constant 0 : index
    %615 = vector.load %arg11[%c0_218, %c0_219] : memref<1x192xf32, #tpu.memory_space<vmem>>, vector<1x192xf32>
    %616 = vector.broadcast %615 : vector<1x192xf32> to vector<8x192xf32>
    %617 = arith.addf %614, %616 : vector<8x192xf32>
    %c0_220 = arith.constant 0 : index
    %c0_221 = arith.constant 0 : index
    %618 = vector.load %arg12[%c0_220, %c0_221] : memref<64x192xf32, #tpu.memory_space<vmem>>, vector<64x192xf32>
    %cst_222 = arith.constant dense<0.000000e+00> : vector<8x192xf32>
    %619 = tpu.matmul %586, %618, %cst_222 {dimension_numbers = #tpu.dot_dimension_numbers<[1], [0], [0], [1], [0, 0, 1, 1], [], []>} : vector<8x64xf32>, vector<64x192xf32>, vector<8x192xf32> -> vector<8x192xf32>
    %c0_223 = arith.constant 0 : index
    %c0_224 = arith.constant 0 : index
    %620 = vector.load %arg13[%c0_223, %c0_224] : memref<1x192xf32, #tpu.memory_space<vmem>>, vector<1x192xf32>
    %621 = vector.broadcast %620 : vector<1x192xf32> to vector<8x192xf32>
    %622 = arith.addf %619, %621 : vector<8x192xf32>
    %623 = vector.extract_strided_slice %617 {offsets = [0, 0], sizes = [8, 128], strides = [1, 1]} : vector<8x192xf32> to vector<8x128xf32>
    %624 = vector.extract_strided_slice %622 {offsets = [0, 0], sizes = [8, 128], strides = [1, 1]} : vector<8x192xf32> to vector<8x128xf32>
    %625 = arith.addf %623, %624 : vector<8x128xf32>
    %626 = arith.negf %625 : vector<8x128xf32>
    %627 = math.exp %626 : vector<8x128xf32>
    %cst_225 = arith.constant 1.000000e+00 : f32
    %628 = vector.broadcast %cst_225 : f32 to vector<8x128xf32>
    %629 = arith.addf %628, %627 : vector<8x128xf32>
    %630 = arith.divf %628, %629 : vector<8x128xf32>
    %631 = vector.extract_strided_slice %630 {offsets = [0, 0], sizes = [8, 64], strides = [1, 1]} : vector<8x128xf32> to vector<8x64xf32>
    %632 = vector.extract_strided_slice %630 {offsets = [0, 64], sizes = [8, 64], strides = [1, 1]} : vector<8x128xf32> to vector<8x64xf32>
    %633 = vector.extract_strided_slice %617 {offsets = [0, 128], sizes = [8, 64], strides = [1, 1]} : vector<8x192xf32> to vector<8x64xf32>
    %634 = vector.extract_strided_slice %622 {offsets = [0, 128], sizes = [8, 64], strides = [1, 1]} : vector<8x192xf32> to vector<8x64xf32>
    %635 = arith.mulf %631, %634 : vector<8x64xf32>
    %636 = arith.addf %633, %635 : vector<8x64xf32>
    %637 = math.tanh %636 : vector<8x64xf32>
    %cst_226 = arith.constant 1.000000e+00 : f32
    %638 = vector.broadcast %cst_226 : f32 to vector<8x64xf32>
    %639 = arith.subf %638, %632 : vector<8x64xf32>
    %640 = arith.mulf %639, %637 : vector<8x64xf32>
    %641 = arith.mulf %632, %586 : vector<8x64xf32>
    %642 = arith.addf %640, %641 : vector<8x64xf32>
    %c80 = arith.constant 80 : index
    %c0_227 = arith.constant 0 : index
    %643 = vector.load %arg19[%c80, %c0_227] : memref<128x192xf32, #tpu.memory_space<vmem>>, vector<8x192xf32>
    %c0_228 = arith.constant 0 : index
    %c0_229 = arith.constant 0 : index
    %644 = vector.load %arg8[%c0_228, %c0_229] : memref<64x192xf32, #tpu.memory_space<vmem>>, vector<64x192xf32>
    %cst_230 = arith.constant dense<0.000000e+00> : vector<8x192xf32>
    %645 = tpu.matmul %612, %644, %cst_230 {dimension_numbers = #tpu.dot_dimension_numbers<[1], [0], [0], [1], [0, 0, 1, 1], [], []>} : vector<8x64xf32>, vector<64x192xf32>, vector<8x192xf32> -> vector<8x192xf32>
    %c0_231 = arith.constant 0 : index
    %c0_232 = arith.constant 0 : index
    %646 = vector.load %arg9[%c0_231, %c0_232] : memref<1x192xf32, #tpu.memory_space<vmem>>, vector<1x192xf32>
    %647 = vector.broadcast %646 : vector<1x192xf32> to vector<8x192xf32>
    %648 = arith.addf %645, %647 : vector<8x192xf32>
    %649 = vector.extract_strided_slice %643 {offsets = [0, 0], sizes = [8, 128], strides = [1, 1]} : vector<8x192xf32> to vector<8x128xf32>
    %650 = vector.extract_strided_slice %648 {offsets = [0, 0], sizes = [8, 128], strides = [1, 1]} : vector<8x192xf32> to vector<8x128xf32>
    %651 = arith.addf %649, %650 : vector<8x128xf32>
    %652 = arith.negf %651 : vector<8x128xf32>
    %653 = math.exp %652 : vector<8x128xf32>
    %cst_233 = arith.constant 1.000000e+00 : f32
    %654 = vector.broadcast %cst_233 : f32 to vector<8x128xf32>
    %655 = arith.addf %654, %653 : vector<8x128xf32>
    %656 = arith.divf %654, %655 : vector<8x128xf32>
    %657 = vector.extract_strided_slice %656 {offsets = [0, 0], sizes = [8, 64], strides = [1, 1]} : vector<8x128xf32> to vector<8x64xf32>
    %658 = vector.extract_strided_slice %656 {offsets = [0, 64], sizes = [8, 64], strides = [1, 1]} : vector<8x128xf32> to vector<8x64xf32>
    %659 = vector.extract_strided_slice %643 {offsets = [0, 128], sizes = [8, 64], strides = [1, 1]} : vector<8x192xf32> to vector<8x64xf32>
    %660 = vector.extract_strided_slice %648 {offsets = [0, 128], sizes = [8, 64], strides = [1, 1]} : vector<8x192xf32> to vector<8x64xf32>
    %661 = arith.mulf %657, %660 : vector<8x64xf32>
    %662 = arith.addf %659, %661 : vector<8x64xf32>
    %663 = math.tanh %662 : vector<8x64xf32>
    %cst_234 = arith.constant 1.000000e+00 : f32
    %664 = vector.broadcast %cst_234 : f32 to vector<8x64xf32>
    %665 = arith.subf %664, %658 : vector<8x64xf32>
    %666 = arith.mulf %665, %663 : vector<8x64xf32>
    %667 = arith.mulf %658, %612 : vector<8x64xf32>
    %668 = arith.addf %666, %667 : vector<8x64xf32>
    %c0_235 = arith.constant 0 : index
    %c0_236 = arith.constant 0 : index
    %669 = vector.load %arg10[%c0_235, %c0_236] : memref<64x192xf32, #tpu.memory_space<vmem>>, vector<64x192xf32>
    %cst_237 = arith.constant dense<0.000000e+00> : vector<8x192xf32>
    %670 = tpu.matmul %668, %669, %cst_237 {dimension_numbers = #tpu.dot_dimension_numbers<[1], [0], [0], [1], [0, 0, 1, 1], [], []>} : vector<8x64xf32>, vector<64x192xf32>, vector<8x192xf32> -> vector<8x192xf32>
    %c0_238 = arith.constant 0 : index
    %c0_239 = arith.constant 0 : index
    %671 = vector.load %arg11[%c0_238, %c0_239] : memref<1x192xf32, #tpu.memory_space<vmem>>, vector<1x192xf32>
    %672 = vector.broadcast %671 : vector<1x192xf32> to vector<8x192xf32>
    %673 = arith.addf %670, %672 : vector<8x192xf32>
    %c0_240 = arith.constant 0 : index
    %c0_241 = arith.constant 0 : index
    %674 = vector.load %arg12[%c0_240, %c0_241] : memref<64x192xf32, #tpu.memory_space<vmem>>, vector<64x192xf32>
    %cst_242 = arith.constant dense<0.000000e+00> : vector<8x192xf32>
    %675 = tpu.matmul %642, %674, %cst_242 {dimension_numbers = #tpu.dot_dimension_numbers<[1], [0], [0], [1], [0, 0, 1, 1], [], []>} : vector<8x64xf32>, vector<64x192xf32>, vector<8x192xf32> -> vector<8x192xf32>
    %c0_243 = arith.constant 0 : index
    %c0_244 = arith.constant 0 : index
    %676 = vector.load %arg13[%c0_243, %c0_244] : memref<1x192xf32, #tpu.memory_space<vmem>>, vector<1x192xf32>
    %677 = vector.broadcast %676 : vector<1x192xf32> to vector<8x192xf32>
    %678 = arith.addf %675, %677 : vector<8x192xf32>
    %679 = vector.extract_strided_slice %673 {offsets = [0, 0], sizes = [8, 128], strides = [1, 1]} : vector<8x192xf32> to vector<8x128xf32>
    %680 = vector.extract_strided_slice %678 {offsets = [0, 0], sizes = [8, 128], strides = [1, 1]} : vector<8x192xf32> to vector<8x128xf32>
    %681 = arith.addf %679, %680 : vector<8x128xf32>
    %682 = arith.negf %681 : vector<8x128xf32>
    %683 = math.exp %682 : vector<8x128xf32>
    %cst_245 = arith.constant 1.000000e+00 : f32
    %684 = vector.broadcast %cst_245 : f32 to vector<8x128xf32>
    %685 = arith.addf %684, %683 : vector<8x128xf32>
    %686 = arith.divf %684, %685 : vector<8x128xf32>
    %687 = vector.extract_strided_slice %686 {offsets = [0, 0], sizes = [8, 64], strides = [1, 1]} : vector<8x128xf32> to vector<8x64xf32>
    %688 = vector.extract_strided_slice %686 {offsets = [0, 64], sizes = [8, 64], strides = [1, 1]} : vector<8x128xf32> to vector<8x64xf32>
    %689 = vector.extract_strided_slice %673 {offsets = [0, 128], sizes = [8, 64], strides = [1, 1]} : vector<8x192xf32> to vector<8x64xf32>
    %690 = vector.extract_strided_slice %678 {offsets = [0, 128], sizes = [8, 64], strides = [1, 1]} : vector<8x192xf32> to vector<8x64xf32>
    %691 = arith.mulf %687, %690 : vector<8x64xf32>
    %692 = arith.addf %689, %691 : vector<8x64xf32>
    %693 = math.tanh %692 : vector<8x64xf32>
    %cst_246 = arith.constant 1.000000e+00 : f32
    %694 = vector.broadcast %cst_246 : f32 to vector<8x64xf32>
    %695 = arith.subf %694, %688 : vector<8x64xf32>
    %696 = arith.mulf %695, %693 : vector<8x64xf32>
    %697 = arith.mulf %688, %642 : vector<8x64xf32>
    %698 = arith.addf %696, %697 : vector<8x64xf32>
    %c88 = arith.constant 88 : index
    %c0_247 = arith.constant 0 : index
    %699 = vector.load %arg19[%c88, %c0_247] : memref<128x192xf32, #tpu.memory_space<vmem>>, vector<8x192xf32>
    %c0_248 = arith.constant 0 : index
    %c0_249 = arith.constant 0 : index
    %700 = vector.load %arg8[%c0_248, %c0_249] : memref<64x192xf32, #tpu.memory_space<vmem>>, vector<64x192xf32>
    %cst_250 = arith.constant dense<0.000000e+00> : vector<8x192xf32>
    %701 = tpu.matmul %668, %700, %cst_250 {dimension_numbers = #tpu.dot_dimension_numbers<[1], [0], [0], [1], [0, 0, 1, 1], [], []>} : vector<8x64xf32>, vector<64x192xf32>, vector<8x192xf32> -> vector<8x192xf32>
    %c0_251 = arith.constant 0 : index
    %c0_252 = arith.constant 0 : index
    %702 = vector.load %arg9[%c0_251, %c0_252] : memref<1x192xf32, #tpu.memory_space<vmem>>, vector<1x192xf32>
    %703 = vector.broadcast %702 : vector<1x192xf32> to vector<8x192xf32>
    %704 = arith.addf %701, %703 : vector<8x192xf32>
    %705 = vector.extract_strided_slice %699 {offsets = [0, 0], sizes = [8, 128], strides = [1, 1]} : vector<8x192xf32> to vector<8x128xf32>
    %706 = vector.extract_strided_slice %704 {offsets = [0, 0], sizes = [8, 128], strides = [1, 1]} : vector<8x192xf32> to vector<8x128xf32>
    %707 = arith.addf %705, %706 : vector<8x128xf32>
    %708 = arith.negf %707 : vector<8x128xf32>
    %709 = math.exp %708 : vector<8x128xf32>
    %cst_253 = arith.constant 1.000000e+00 : f32
    %710 = vector.broadcast %cst_253 : f32 to vector<8x128xf32>
    %711 = arith.addf %710, %709 : vector<8x128xf32>
    %712 = arith.divf %710, %711 : vector<8x128xf32>
    %713 = vector.extract_strided_slice %712 {offsets = [0, 0], sizes = [8, 64], strides = [1, 1]} : vector<8x128xf32> to vector<8x64xf32>
    %714 = vector.extract_strided_slice %712 {offsets = [0, 64], sizes = [8, 64], strides = [1, 1]} : vector<8x128xf32> to vector<8x64xf32>
    %715 = vector.extract_strided_slice %699 {offsets = [0, 128], sizes = [8, 64], strides = [1, 1]} : vector<8x192xf32> to vector<8x64xf32>
    %716 = vector.extract_strided_slice %704 {offsets = [0, 128], sizes = [8, 64], strides = [1, 1]} : vector<8x192xf32> to vector<8x64xf32>
    %717 = arith.mulf %713, %716 : vector<8x64xf32>
    %718 = arith.addf %715, %717 : vector<8x64xf32>
    %719 = math.tanh %718 : vector<8x64xf32>
    %cst_254 = arith.constant 1.000000e+00 : f32
    %720 = vector.broadcast %cst_254 : f32 to vector<8x64xf32>
    %721 = arith.subf %720, %714 : vector<8x64xf32>
    %722 = arith.mulf %721, %719 : vector<8x64xf32>
    %723 = arith.mulf %714, %668 : vector<8x64xf32>
    %724 = arith.addf %722, %723 : vector<8x64xf32>
    %c0_255 = arith.constant 0 : index
    %c0_256 = arith.constant 0 : index
    %725 = vector.load %arg10[%c0_255, %c0_256] : memref<64x192xf32, #tpu.memory_space<vmem>>, vector<64x192xf32>
    %cst_257 = arith.constant dense<0.000000e+00> : vector<8x192xf32>
    %726 = tpu.matmul %724, %725, %cst_257 {dimension_numbers = #tpu.dot_dimension_numbers<[1], [0], [0], [1], [0, 0, 1, 1], [], []>} : vector<8x64xf32>, vector<64x192xf32>, vector<8x192xf32> -> vector<8x192xf32>
    %c0_258 = arith.constant 0 : index
    %c0_259 = arith.constant 0 : index
    %727 = vector.load %arg11[%c0_258, %c0_259] : memref<1x192xf32, #tpu.memory_space<vmem>>, vector<1x192xf32>
    %728 = vector.broadcast %727 : vector<1x192xf32> to vector<8x192xf32>
    %729 = arith.addf %726, %728 : vector<8x192xf32>
    %c0_260 = arith.constant 0 : index
    %c0_261 = arith.constant 0 : index
    %730 = vector.load %arg12[%c0_260, %c0_261] : memref<64x192xf32, #tpu.memory_space<vmem>>, vector<64x192xf32>
    %cst_262 = arith.constant dense<0.000000e+00> : vector<8x192xf32>
    %731 = tpu.matmul %698, %730, %cst_262 {dimension_numbers = #tpu.dot_dimension_numbers<[1], [0], [0], [1], [0, 0, 1, 1], [], []>} : vector<8x64xf32>, vector<64x192xf32>, vector<8x192xf32> -> vector<8x192xf32>
    %c0_263 = arith.constant 0 : index
    %c0_264 = arith.constant 0 : index
    %732 = vector.load %arg13[%c0_263, %c0_264] : memref<1x192xf32, #tpu.memory_space<vmem>>, vector<1x192xf32>
    %733 = vector.broadcast %732 : vector<1x192xf32> to vector<8x192xf32>
    %734 = arith.addf %731, %733 : vector<8x192xf32>
    %735 = vector.extract_strided_slice %729 {offsets = [0, 0], sizes = [8, 128], strides = [1, 1]} : vector<8x192xf32> to vector<8x128xf32>
    %736 = vector.extract_strided_slice %734 {offsets = [0, 0], sizes = [8, 128], strides = [1, 1]} : vector<8x192xf32> to vector<8x128xf32>
    %737 = arith.addf %735, %736 : vector<8x128xf32>
    %738 = arith.negf %737 : vector<8x128xf32>
    %739 = math.exp %738 : vector<8x128xf32>
    %cst_265 = arith.constant 1.000000e+00 : f32
    %740 = vector.broadcast %cst_265 : f32 to vector<8x128xf32>
    %741 = arith.addf %740, %739 : vector<8x128xf32>
    %742 = arith.divf %740, %741 : vector<8x128xf32>
    %743 = vector.extract_strided_slice %742 {offsets = [0, 0], sizes = [8, 64], strides = [1, 1]} : vector<8x128xf32> to vector<8x64xf32>
    %744 = vector.extract_strided_slice %742 {offsets = [0, 64], sizes = [8, 64], strides = [1, 1]} : vector<8x128xf32> to vector<8x64xf32>
    %745 = vector.extract_strided_slice %729 {offsets = [0, 128], sizes = [8, 64], strides = [1, 1]} : vector<8x192xf32> to vector<8x64xf32>
    %746 = vector.extract_strided_slice %734 {offsets = [0, 128], sizes = [8, 64], strides = [1, 1]} : vector<8x192xf32> to vector<8x64xf32>
    %747 = arith.mulf %743, %746 : vector<8x64xf32>
    %748 = arith.addf %745, %747 : vector<8x64xf32>
    %749 = math.tanh %748 : vector<8x64xf32>
    %cst_266 = arith.constant 1.000000e+00 : f32
    %750 = vector.broadcast %cst_266 : f32 to vector<8x64xf32>
    %751 = arith.subf %750, %744 : vector<8x64xf32>
    %752 = arith.mulf %751, %749 : vector<8x64xf32>
    %753 = arith.mulf %744, %698 : vector<8x64xf32>
    %754 = arith.addf %752, %753 : vector<8x64xf32>
    %c96 = arith.constant 96 : index
    %c0_267 = arith.constant 0 : index
    %755 = vector.load %arg19[%c96, %c0_267] : memref<128x192xf32, #tpu.memory_space<vmem>>, vector<8x192xf32>
    %c0_268 = arith.constant 0 : index
    %c0_269 = arith.constant 0 : index
    %756 = vector.load %arg8[%c0_268, %c0_269] : memref<64x192xf32, #tpu.memory_space<vmem>>, vector<64x192xf32>
    %cst_270 = arith.constant dense<0.000000e+00> : vector<8x192xf32>
    %757 = tpu.matmul %724, %756, %cst_270 {dimension_numbers = #tpu.dot_dimension_numbers<[1], [0], [0], [1], [0, 0, 1, 1], [], []>} : vector<8x64xf32>, vector<64x192xf32>, vector<8x192xf32> -> vector<8x192xf32>
    %c0_271 = arith.constant 0 : index
    %c0_272 = arith.constant 0 : index
    %758 = vector.load %arg9[%c0_271, %c0_272] : memref<1x192xf32, #tpu.memory_space<vmem>>, vector<1x192xf32>
    %759 = vector.broadcast %758 : vector<1x192xf32> to vector<8x192xf32>
    %760 = arith.addf %757, %759 : vector<8x192xf32>
    %761 = vector.extract_strided_slice %755 {offsets = [0, 0], sizes = [8, 128], strides = [1, 1]} : vector<8x192xf32> to vector<8x128xf32>
    %762 = vector.extract_strided_slice %760 {offsets = [0, 0], sizes = [8, 128], strides = [1, 1]} : vector<8x192xf32> to vector<8x128xf32>
    %763 = arith.addf %761, %762 : vector<8x128xf32>
    %764 = arith.negf %763 : vector<8x128xf32>
    %765 = math.exp %764 : vector<8x128xf32>
    %cst_273 = arith.constant 1.000000e+00 : f32
    %766 = vector.broadcast %cst_273 : f32 to vector<8x128xf32>
    %767 = arith.addf %766, %765 : vector<8x128xf32>
    %768 = arith.divf %766, %767 : vector<8x128xf32>
    %769 = vector.extract_strided_slice %768 {offsets = [0, 0], sizes = [8, 64], strides = [1, 1]} : vector<8x128xf32> to vector<8x64xf32>
    %770 = vector.extract_strided_slice %768 {offsets = [0, 64], sizes = [8, 64], strides = [1, 1]} : vector<8x128xf32> to vector<8x64xf32>
    %771 = vector.extract_strided_slice %755 {offsets = [0, 128], sizes = [8, 64], strides = [1, 1]} : vector<8x192xf32> to vector<8x64xf32>
    %772 = vector.extract_strided_slice %760 {offsets = [0, 128], sizes = [8, 64], strides = [1, 1]} : vector<8x192xf32> to vector<8x64xf32>
    %773 = arith.mulf %769, %772 : vector<8x64xf32>
    %774 = arith.addf %771, %773 : vector<8x64xf32>
    %775 = math.tanh %774 : vector<8x64xf32>
    %cst_274 = arith.constant 1.000000e+00 : f32
    %776 = vector.broadcast %cst_274 : f32 to vector<8x64xf32>
    %777 = arith.subf %776, %770 : vector<8x64xf32>
    %778 = arith.mulf %777, %775 : vector<8x64xf32>
    %779 = arith.mulf %770, %724 : vector<8x64xf32>
    %780 = arith.addf %778, %779 : vector<8x64xf32>
    %c0_275 = arith.constant 0 : index
    %c0_276 = arith.constant 0 : index
    %781 = vector.load %arg10[%c0_275, %c0_276] : memref<64x192xf32, #tpu.memory_space<vmem>>, vector<64x192xf32>
    %cst_277 = arith.constant dense<0.000000e+00> : vector<8x192xf32>
    %782 = tpu.matmul %780, %781, %cst_277 {dimension_numbers = #tpu.dot_dimension_numbers<[1], [0], [0], [1], [0, 0, 1, 1], [], []>} : vector<8x64xf32>, vector<64x192xf32>, vector<8x192xf32> -> vector<8x192xf32>
    %c0_278 = arith.constant 0 : index
    %c0_279 = arith.constant 0 : index
    %783 = vector.load %arg11[%c0_278, %c0_279] : memref<1x192xf32, #tpu.memory_space<vmem>>, vector<1x192xf32>
    %784 = vector.broadcast %783 : vector<1x192xf32> to vector<8x192xf32>
    %785 = arith.addf %782, %784 : vector<8x192xf32>
    %c0_280 = arith.constant 0 : index
    %c0_281 = arith.constant 0 : index
    %786 = vector.load %arg12[%c0_280, %c0_281] : memref<64x192xf32, #tpu.memory_space<vmem>>, vector<64x192xf32>
    %cst_282 = arith.constant dense<0.000000e+00> : vector<8x192xf32>
    %787 = tpu.matmul %754, %786, %cst_282 {dimension_numbers = #tpu.dot_dimension_numbers<[1], [0], [0], [1], [0, 0, 1, 1], [], []>} : vector<8x64xf32>, vector<64x192xf32>, vector<8x192xf32> -> vector<8x192xf32>
    %c0_283 = arith.constant 0 : index
    %c0_284 = arith.constant 0 : index
    %788 = vector.load %arg13[%c0_283, %c0_284] : memref<1x192xf32, #tpu.memory_space<vmem>>, vector<1x192xf32>
    %789 = vector.broadcast %788 : vector<1x192xf32> to vector<8x192xf32>
    %790 = arith.addf %787, %789 : vector<8x192xf32>
    %791 = vector.extract_strided_slice %785 {offsets = [0, 0], sizes = [8, 128], strides = [1, 1]} : vector<8x192xf32> to vector<8x128xf32>
    %792 = vector.extract_strided_slice %790 {offsets = [0, 0], sizes = [8, 128], strides = [1, 1]} : vector<8x192xf32> to vector<8x128xf32>
    %793 = arith.addf %791, %792 : vector<8x128xf32>
    %794 = arith.negf %793 : vector<8x128xf32>
    %795 = math.exp %794 : vector<8x128xf32>
    %cst_285 = arith.constant 1.000000e+00 : f32
    %796 = vector.broadcast %cst_285 : f32 to vector<8x128xf32>
    %797 = arith.addf %796, %795 : vector<8x128xf32>
    %798 = arith.divf %796, %797 : vector<8x128xf32>
    %799 = vector.extract_strided_slice %798 {offsets = [0, 0], sizes = [8, 64], strides = [1, 1]} : vector<8x128xf32> to vector<8x64xf32>
    %800 = vector.extract_strided_slice %798 {offsets = [0, 64], sizes = [8, 64], strides = [1, 1]} : vector<8x128xf32> to vector<8x64xf32>
    %801 = vector.extract_strided_slice %785 {offsets = [0, 128], sizes = [8, 64], strides = [1, 1]} : vector<8x192xf32> to vector<8x64xf32>
    %802 = vector.extract_strided_slice %790 {offsets = [0, 128], sizes = [8, 64], strides = [1, 1]} : vector<8x192xf32> to vector<8x64xf32>
    %803 = arith.mulf %799, %802 : vector<8x64xf32>
    %804 = arith.addf %801, %803 : vector<8x64xf32>
    %805 = math.tanh %804 : vector<8x64xf32>
    %cst_286 = arith.constant 1.000000e+00 : f32
    %806 = vector.broadcast %cst_286 : f32 to vector<8x64xf32>
    %807 = arith.subf %806, %800 : vector<8x64xf32>
    %808 = arith.mulf %807, %805 : vector<8x64xf32>
    %809 = arith.mulf %800, %754 : vector<8x64xf32>
    %810 = arith.addf %808, %809 : vector<8x64xf32>
    %c104 = arith.constant 104 : index
    %c0_287 = arith.constant 0 : index
    %811 = vector.load %arg19[%c104, %c0_287] : memref<128x192xf32, #tpu.memory_space<vmem>>, vector<8x192xf32>
    %c0_288 = arith.constant 0 : index
    %c0_289 = arith.constant 0 : index
    %812 = vector.load %arg8[%c0_288, %c0_289] : memref<64x192xf32, #tpu.memory_space<vmem>>, vector<64x192xf32>
    %cst_290 = arith.constant dense<0.000000e+00> : vector<8x192xf32>
    %813 = tpu.matmul %780, %812, %cst_290 {dimension_numbers = #tpu.dot_dimension_numbers<[1], [0], [0], [1], [0, 0, 1, 1], [], []>} : vector<8x64xf32>, vector<64x192xf32>, vector<8x192xf32> -> vector<8x192xf32>
    %c0_291 = arith.constant 0 : index
    %c0_292 = arith.constant 0 : index
    %814 = vector.load %arg9[%c0_291, %c0_292] : memref<1x192xf32, #tpu.memory_space<vmem>>, vector<1x192xf32>
    %815 = vector.broadcast %814 : vector<1x192xf32> to vector<8x192xf32>
    %816 = arith.addf %813, %815 : vector<8x192xf32>
    %817 = vector.extract_strided_slice %811 {offsets = [0, 0], sizes = [8, 128], strides = [1, 1]} : vector<8x192xf32> to vector<8x128xf32>
    %818 = vector.extract_strided_slice %816 {offsets = [0, 0], sizes = [8, 128], strides = [1, 1]} : vector<8x192xf32> to vector<8x128xf32>
    %819 = arith.addf %817, %818 : vector<8x128xf32>
    %820 = arith.negf %819 : vector<8x128xf32>
    %821 = math.exp %820 : vector<8x128xf32>
    %cst_293 = arith.constant 1.000000e+00 : f32
    %822 = vector.broadcast %cst_293 : f32 to vector<8x128xf32>
    %823 = arith.addf %822, %821 : vector<8x128xf32>
    %824 = arith.divf %822, %823 : vector<8x128xf32>
    %825 = vector.extract_strided_slice %824 {offsets = [0, 0], sizes = [8, 64], strides = [1, 1]} : vector<8x128xf32> to vector<8x64xf32>
    %826 = vector.extract_strided_slice %824 {offsets = [0, 64], sizes = [8, 64], strides = [1, 1]} : vector<8x128xf32> to vector<8x64xf32>
    %827 = vector.extract_strided_slice %811 {offsets = [0, 128], sizes = [8, 64], strides = [1, 1]} : vector<8x192xf32> to vector<8x64xf32>
    %828 = vector.extract_strided_slice %816 {offsets = [0, 128], sizes = [8, 64], strides = [1, 1]} : vector<8x192xf32> to vector<8x64xf32>
    %829 = arith.mulf %825, %828 : vector<8x64xf32>
    %830 = arith.addf %827, %829 : vector<8x64xf32>
    %831 = math.tanh %830 : vector<8x64xf32>
    %cst_294 = arith.constant 1.000000e+00 : f32
    %832 = vector.broadcast %cst_294 : f32 to vector<8x64xf32>
    %833 = arith.subf %832, %826 : vector<8x64xf32>
    %834 = arith.mulf %833, %831 : vector<8x64xf32>
    %835 = arith.mulf %826, %780 : vector<8x64xf32>
    %836 = arith.addf %834, %835 : vector<8x64xf32>
    %c0_295 = arith.constant 0 : index
    %c0_296 = arith.constant 0 : index
    %837 = vector.load %arg10[%c0_295, %c0_296] : memref<64x192xf32, #tpu.memory_space<vmem>>, vector<64x192xf32>
    %cst_297 = arith.constant dense<0.000000e+00> : vector<8x192xf32>
    %838 = tpu.matmul %836, %837, %cst_297 {dimension_numbers = #tpu.dot_dimension_numbers<[1], [0], [0], [1], [0, 0, 1, 1], [], []>} : vector<8x64xf32>, vector<64x192xf32>, vector<8x192xf32> -> vector<8x192xf32>
    %c0_298 = arith.constant 0 : index
    %c0_299 = arith.constant 0 : index
    %839 = vector.load %arg11[%c0_298, %c0_299] : memref<1x192xf32, #tpu.memory_space<vmem>>, vector<1x192xf32>
    %840 = vector.broadcast %839 : vector<1x192xf32> to vector<8x192xf32>
    %841 = arith.addf %838, %840 : vector<8x192xf32>
    %c0_300 = arith.constant 0 : index
    %c0_301 = arith.constant 0 : index
    %842 = vector.load %arg12[%c0_300, %c0_301] : memref<64x192xf32, #tpu.memory_space<vmem>>, vector<64x192xf32>
    %cst_302 = arith.constant dense<0.000000e+00> : vector<8x192xf32>
    %843 = tpu.matmul %810, %842, %cst_302 {dimension_numbers = #tpu.dot_dimension_numbers<[1], [0], [0], [1], [0, 0, 1, 1], [], []>} : vector<8x64xf32>, vector<64x192xf32>, vector<8x192xf32> -> vector<8x192xf32>
    %c0_303 = arith.constant 0 : index
    %c0_304 = arith.constant 0 : index
    %844 = vector.load %arg13[%c0_303, %c0_304] : memref<1x192xf32, #tpu.memory_space<vmem>>, vector<1x192xf32>
    %845 = vector.broadcast %844 : vector<1x192xf32> to vector<8x192xf32>
    %846 = arith.addf %843, %845 : vector<8x192xf32>
    %847 = vector.extract_strided_slice %841 {offsets = [0, 0], sizes = [8, 128], strides = [1, 1]} : vector<8x192xf32> to vector<8x128xf32>
    %848 = vector.extract_strided_slice %846 {offsets = [0, 0], sizes = [8, 128], strides = [1, 1]} : vector<8x192xf32> to vector<8x128xf32>
    %849 = arith.addf %847, %848 : vector<8x128xf32>
    %850 = arith.negf %849 : vector<8x128xf32>
    %851 = math.exp %850 : vector<8x128xf32>
    %cst_305 = arith.constant 1.000000e+00 : f32
    %852 = vector.broadcast %cst_305 : f32 to vector<8x128xf32>
    %853 = arith.addf %852, %851 : vector<8x128xf32>
    %854 = arith.divf %852, %853 : vector<8x128xf32>
    %855 = vector.extract_strided_slice %854 {offsets = [0, 0], sizes = [8, 64], strides = [1, 1]} : vector<8x128xf32> to vector<8x64xf32>
    %856 = vector.extract_strided_slice %854 {offsets = [0, 64], sizes = [8, 64], strides = [1, 1]} : vector<8x128xf32> to vector<8x64xf32>
    %857 = vector.extract_strided_slice %841 {offsets = [0, 128], sizes = [8, 64], strides = [1, 1]} : vector<8x192xf32> to vector<8x64xf32>
    %858 = vector.extract_strided_slice %846 {offsets = [0, 128], sizes = [8, 64], strides = [1, 1]} : vector<8x192xf32> to vector<8x64xf32>
    %859 = arith.mulf %855, %858 : vector<8x64xf32>
    %860 = arith.addf %857, %859 : vector<8x64xf32>
    %861 = math.tanh %860 : vector<8x64xf32>
    %cst_306 = arith.constant 1.000000e+00 : f32
    %862 = vector.broadcast %cst_306 : f32 to vector<8x64xf32>
    %863 = arith.subf %862, %856 : vector<8x64xf32>
    %864 = arith.mulf %863, %861 : vector<8x64xf32>
    %865 = arith.mulf %856, %810 : vector<8x64xf32>
    %866 = arith.addf %864, %865 : vector<8x64xf32>
    %c112 = arith.constant 112 : index
    %c0_307 = arith.constant 0 : index
    %867 = vector.load %arg19[%c112, %c0_307] : memref<128x192xf32, #tpu.memory_space<vmem>>, vector<8x192xf32>
    %c0_308 = arith.constant 0 : index
    %c0_309 = arith.constant 0 : index
    %868 = vector.load %arg8[%c0_308, %c0_309] : memref<64x192xf32, #tpu.memory_space<vmem>>, vector<64x192xf32>
    %cst_310 = arith.constant dense<0.000000e+00> : vector<8x192xf32>
    %869 = tpu.matmul %836, %868, %cst_310 {dimension_numbers = #tpu.dot_dimension_numbers<[1], [0], [0], [1], [0, 0, 1, 1], [], []>} : vector<8x64xf32>, vector<64x192xf32>, vector<8x192xf32> -> vector<8x192xf32>
    %c0_311 = arith.constant 0 : index
    %c0_312 = arith.constant 0 : index
    %870 = vector.load %arg9[%c0_311, %c0_312] : memref<1x192xf32, #tpu.memory_space<vmem>>, vector<1x192xf32>
    %871 = vector.broadcast %870 : vector<1x192xf32> to vector<8x192xf32>
    %872 = arith.addf %869, %871 : vector<8x192xf32>
    %873 = vector.extract_strided_slice %867 {offsets = [0, 0], sizes = [8, 128], strides = [1, 1]} : vector<8x192xf32> to vector<8x128xf32>
    %874 = vector.extract_strided_slice %872 {offsets = [0, 0], sizes = [8, 128], strides = [1, 1]} : vector<8x192xf32> to vector<8x128xf32>
    %875 = arith.addf %873, %874 : vector<8x128xf32>
    %876 = arith.negf %875 : vector<8x128xf32>
    %877 = math.exp %876 : vector<8x128xf32>
    %cst_313 = arith.constant 1.000000e+00 : f32
    %878 = vector.broadcast %cst_313 : f32 to vector<8x128xf32>
    %879 = arith.addf %878, %877 : vector<8x128xf32>
    %880 = arith.divf %878, %879 : vector<8x128xf32>
    %881 = vector.extract_strided_slice %880 {offsets = [0, 0], sizes = [8, 64], strides = [1, 1]} : vector<8x128xf32> to vector<8x64xf32>
    %882 = vector.extract_strided_slice %880 {offsets = [0, 64], sizes = [8, 64], strides = [1, 1]} : vector<8x128xf32> to vector<8x64xf32>
    %883 = vector.extract_strided_slice %867 {offsets = [0, 128], sizes = [8, 64], strides = [1, 1]} : vector<8x192xf32> to vector<8x64xf32>
    %884 = vector.extract_strided_slice %872 {offsets = [0, 128], sizes = [8, 64], strides = [1, 1]} : vector<8x192xf32> to vector<8x64xf32>
    %885 = arith.mulf %881, %884 : vector<8x64xf32>
    %886 = arith.addf %883, %885 : vector<8x64xf32>
    %887 = math.tanh %886 : vector<8x64xf32>
    %cst_314 = arith.constant 1.000000e+00 : f32
    %888 = vector.broadcast %cst_314 : f32 to vector<8x64xf32>
    %889 = arith.subf %888, %882 : vector<8x64xf32>
    %890 = arith.mulf %889, %887 : vector<8x64xf32>
    %891 = arith.mulf %882, %836 : vector<8x64xf32>
    %892 = arith.addf %890, %891 : vector<8x64xf32>
    %c0_315 = arith.constant 0 : index
    %c0_316 = arith.constant 0 : index
    %893 = vector.load %arg10[%c0_315, %c0_316] : memref<64x192xf32, #tpu.memory_space<vmem>>, vector<64x192xf32>
    %cst_317 = arith.constant dense<0.000000e+00> : vector<8x192xf32>
    %894 = tpu.matmul %892, %893, %cst_317 {dimension_numbers = #tpu.dot_dimension_numbers<[1], [0], [0], [1], [0, 0, 1, 1], [], []>} : vector<8x64xf32>, vector<64x192xf32>, vector<8x192xf32> -> vector<8x192xf32>
    %c0_318 = arith.constant 0 : index
    %c0_319 = arith.constant 0 : index
    %895 = vector.load %arg11[%c0_318, %c0_319] : memref<1x192xf32, #tpu.memory_space<vmem>>, vector<1x192xf32>
    %896 = vector.broadcast %895 : vector<1x192xf32> to vector<8x192xf32>
    %897 = arith.addf %894, %896 : vector<8x192xf32>
    %c0_320 = arith.constant 0 : index
    %c0_321 = arith.constant 0 : index
    %898 = vector.load %arg12[%c0_320, %c0_321] : memref<64x192xf32, #tpu.memory_space<vmem>>, vector<64x192xf32>
    %cst_322 = arith.constant dense<0.000000e+00> : vector<8x192xf32>
    %899 = tpu.matmul %866, %898, %cst_322 {dimension_numbers = #tpu.dot_dimension_numbers<[1], [0], [0], [1], [0, 0, 1, 1], [], []>} : vector<8x64xf32>, vector<64x192xf32>, vector<8x192xf32> -> vector<8x192xf32>
    %c0_323 = arith.constant 0 : index
    %c0_324 = arith.constant 0 : index
    %900 = vector.load %arg13[%c0_323, %c0_324] : memref<1x192xf32, #tpu.memory_space<vmem>>, vector<1x192xf32>
    %901 = vector.broadcast %900 : vector<1x192xf32> to vector<8x192xf32>
    %902 = arith.addf %899, %901 : vector<8x192xf32>
    %903 = vector.extract_strided_slice %897 {offsets = [0, 0], sizes = [8, 128], strides = [1, 1]} : vector<8x192xf32> to vector<8x128xf32>
    %904 = vector.extract_strided_slice %902 {offsets = [0, 0], sizes = [8, 128], strides = [1, 1]} : vector<8x192xf32> to vector<8x128xf32>
    %905 = arith.addf %903, %904 : vector<8x128xf32>
    %906 = arith.negf %905 : vector<8x128xf32>
    %907 = math.exp %906 : vector<8x128xf32>
    %cst_325 = arith.constant 1.000000e+00 : f32
    %908 = vector.broadcast %cst_325 : f32 to vector<8x128xf32>
    %909 = arith.addf %908, %907 : vector<8x128xf32>
    %910 = arith.divf %908, %909 : vector<8x128xf32>
    %911 = vector.extract_strided_slice %910 {offsets = [0, 0], sizes = [8, 64], strides = [1, 1]} : vector<8x128xf32> to vector<8x64xf32>
    %912 = vector.extract_strided_slice %910 {offsets = [0, 64], sizes = [8, 64], strides = [1, 1]} : vector<8x128xf32> to vector<8x64xf32>
    %913 = vector.extract_strided_slice %897 {offsets = [0, 128], sizes = [8, 64], strides = [1, 1]} : vector<8x192xf32> to vector<8x64xf32>
    %914 = vector.extract_strided_slice %902 {offsets = [0, 128], sizes = [8, 64], strides = [1, 1]} : vector<8x192xf32> to vector<8x64xf32>
    %915 = arith.mulf %911, %914 : vector<8x64xf32>
    %916 = arith.addf %913, %915 : vector<8x64xf32>
    %917 = math.tanh %916 : vector<8x64xf32>
    %cst_326 = arith.constant 1.000000e+00 : f32
    %918 = vector.broadcast %cst_326 : f32 to vector<8x64xf32>
    %919 = arith.subf %918, %912 : vector<8x64xf32>
    %920 = arith.mulf %919, %917 : vector<8x64xf32>
    %921 = arith.mulf %912, %866 : vector<8x64xf32>
    %922 = arith.addf %920, %921 : vector<8x64xf32>
    %c120 = arith.constant 120 : index
    %c0_327 = arith.constant 0 : index
    %923 = vector.load %arg19[%c120, %c0_327] : memref<128x192xf32, #tpu.memory_space<vmem>>, vector<8x192xf32>
    %c0_328 = arith.constant 0 : index
    %c0_329 = arith.constant 0 : index
    %924 = vector.load %arg8[%c0_328, %c0_329] : memref<64x192xf32, #tpu.memory_space<vmem>>, vector<64x192xf32>
    %cst_330 = arith.constant dense<0.000000e+00> : vector<8x192xf32>
    %925 = tpu.matmul %892, %924, %cst_330 {dimension_numbers = #tpu.dot_dimension_numbers<[1], [0], [0], [1], [0, 0, 1, 1], [], []>} : vector<8x64xf32>, vector<64x192xf32>, vector<8x192xf32> -> vector<8x192xf32>
    %c0_331 = arith.constant 0 : index
    %c0_332 = arith.constant 0 : index
    %926 = vector.load %arg9[%c0_331, %c0_332] : memref<1x192xf32, #tpu.memory_space<vmem>>, vector<1x192xf32>
    %927 = vector.broadcast %926 : vector<1x192xf32> to vector<8x192xf32>
    %928 = arith.addf %925, %927 : vector<8x192xf32>
    %929 = vector.extract_strided_slice %923 {offsets = [0, 0], sizes = [8, 128], strides = [1, 1]} : vector<8x192xf32> to vector<8x128xf32>
    %930 = vector.extract_strided_slice %928 {offsets = [0, 0], sizes = [8, 128], strides = [1, 1]} : vector<8x192xf32> to vector<8x128xf32>
    %931 = arith.addf %929, %930 : vector<8x128xf32>
    %932 = arith.negf %931 : vector<8x128xf32>
    %933 = math.exp %932 : vector<8x128xf32>
    %cst_333 = arith.constant 1.000000e+00 : f32
    %934 = vector.broadcast %cst_333 : f32 to vector<8x128xf32>
    %935 = arith.addf %934, %933 : vector<8x128xf32>
    %936 = arith.divf %934, %935 : vector<8x128xf32>
    %937 = vector.extract_strided_slice %936 {offsets = [0, 0], sizes = [8, 64], strides = [1, 1]} : vector<8x128xf32> to vector<8x64xf32>
    %938 = vector.extract_strided_slice %936 {offsets = [0, 64], sizes = [8, 64], strides = [1, 1]} : vector<8x128xf32> to vector<8x64xf32>
    %939 = vector.extract_strided_slice %923 {offsets = [0, 128], sizes = [8, 64], strides = [1, 1]} : vector<8x192xf32> to vector<8x64xf32>
    %940 = vector.extract_strided_slice %928 {offsets = [0, 128], sizes = [8, 64], strides = [1, 1]} : vector<8x192xf32> to vector<8x64xf32>
    %941 = arith.mulf %937, %940 : vector<8x64xf32>
    %942 = arith.addf %939, %941 : vector<8x64xf32>
    %943 = math.tanh %942 : vector<8x64xf32>
    %cst_334 = arith.constant 1.000000e+00 : f32
    %944 = vector.broadcast %cst_334 : f32 to vector<8x64xf32>
    %945 = arith.subf %944, %938 : vector<8x64xf32>
    %946 = arith.mulf %945, %943 : vector<8x64xf32>
    %947 = arith.mulf %938, %892 : vector<8x64xf32>
    %948 = arith.addf %946, %947 : vector<8x64xf32>
    %c0_335 = arith.constant 0 : index
    %c0_336 = arith.constant 0 : index
    %949 = vector.load %arg10[%c0_335, %c0_336] : memref<64x192xf32, #tpu.memory_space<vmem>>, vector<64x192xf32>
    %cst_337 = arith.constant dense<0.000000e+00> : vector<8x192xf32>
    %950 = tpu.matmul %948, %949, %cst_337 {dimension_numbers = #tpu.dot_dimension_numbers<[1], [0], [0], [1], [0, 0, 1, 1], [], []>} : vector<8x64xf32>, vector<64x192xf32>, vector<8x192xf32> -> vector<8x192xf32>
    %c0_338 = arith.constant 0 : index
    %c0_339 = arith.constant 0 : index
    %951 = vector.load %arg11[%c0_338, %c0_339] : memref<1x192xf32, #tpu.memory_space<vmem>>, vector<1x192xf32>
    %952 = vector.broadcast %951 : vector<1x192xf32> to vector<8x192xf32>
    %953 = arith.addf %950, %952 : vector<8x192xf32>
    %c0_340 = arith.constant 0 : index
    %c0_341 = arith.constant 0 : index
    %954 = vector.load %arg12[%c0_340, %c0_341] : memref<64x192xf32, #tpu.memory_space<vmem>>, vector<64x192xf32>
    %cst_342 = arith.constant dense<0.000000e+00> : vector<8x192xf32>
    %955 = tpu.matmul %922, %954, %cst_342 {dimension_numbers = #tpu.dot_dimension_numbers<[1], [0], [0], [1], [0, 0, 1, 1], [], []>} : vector<8x64xf32>, vector<64x192xf32>, vector<8x192xf32> -> vector<8x192xf32>
    %c0_343 = arith.constant 0 : index
    %c0_344 = arith.constant 0 : index
    %956 = vector.load %arg13[%c0_343, %c0_344] : memref<1x192xf32, #tpu.memory_space<vmem>>, vector<1x192xf32>
    %957 = vector.broadcast %956 : vector<1x192xf32> to vector<8x192xf32>
    %958 = arith.addf %955, %957 : vector<8x192xf32>
    %959 = vector.extract_strided_slice %953 {offsets = [0, 0], sizes = [8, 128], strides = [1, 1]} : vector<8x192xf32> to vector<8x128xf32>
    %960 = vector.extract_strided_slice %958 {offsets = [0, 0], sizes = [8, 128], strides = [1, 1]} : vector<8x192xf32> to vector<8x128xf32>
    %961 = arith.addf %959, %960 : vector<8x128xf32>
    %962 = arith.negf %961 : vector<8x128xf32>
    %963 = math.exp %962 : vector<8x128xf32>
    %cst_345 = arith.constant 1.000000e+00 : f32
    %964 = vector.broadcast %cst_345 : f32 to vector<8x128xf32>
    %965 = arith.addf %964, %963 : vector<8x128xf32>
    %966 = arith.divf %964, %965 : vector<8x128xf32>
    %967 = vector.extract_strided_slice %966 {offsets = [0, 0], sizes = [8, 64], strides = [1, 1]} : vector<8x128xf32> to vector<8x64xf32>
    %968 = vector.extract_strided_slice %966 {offsets = [0, 64], sizes = [8, 64], strides = [1, 1]} : vector<8x128xf32> to vector<8x64xf32>
    %969 = vector.extract_strided_slice %953 {offsets = [0, 128], sizes = [8, 64], strides = [1, 1]} : vector<8x192xf32> to vector<8x64xf32>
    %970 = vector.extract_strided_slice %958 {offsets = [0, 128], sizes = [8, 64], strides = [1, 1]} : vector<8x192xf32> to vector<8x64xf32>
    %971 = arith.mulf %967, %970 : vector<8x64xf32>
    %972 = arith.addf %969, %971 : vector<8x64xf32>
    %973 = math.tanh %972 : vector<8x64xf32>
    %cst_346 = arith.constant 1.000000e+00 : f32
    %974 = vector.broadcast %cst_346 : f32 to vector<8x64xf32>
    %975 = arith.subf %974, %968 : vector<8x64xf32>
    %976 = arith.mulf %975, %973 : vector<8x64xf32>
    %977 = arith.mulf %968, %922 : vector<8x64xf32>
    %978 = arith.addf %976, %977 : vector<8x64xf32>
    %c0_347 = arith.constant 0 : index
    %c0_348 = arith.constant 0 : index
    %979 = vector.load %arg14[%c0_347, %c0_348] : memref<64x32xf32, #tpu.memory_space<vmem>>, vector<64x32xf32>
    %cst_349 = arith.constant dense<0.000000e+00> : vector<8x32xf32>
    %980 = tpu.matmul %978, %979, %cst_349 {dimension_numbers = #tpu.dot_dimension_numbers<[1], [0], [0], [1], [0, 0, 1, 1], [], []>} : vector<8x64xf32>, vector<64x32xf32>, vector<8x32xf32> -> vector<8x32xf32>
    %c0_350 = arith.constant 0 : index
    %c0_351 = arith.constant 0 : index
    %981 = vector.load %arg15[%c0_350, %c0_351] : memref<1x32xf32, #tpu.memory_space<vmem>>, vector<1x32xf32>
    %982 = vector.broadcast %981 : vector<1x32xf32> to vector<8x32xf32>
    %983 = arith.addf %980, %982 : vector<8x32xf32>
    %cst_352 = arith.constant 0.000000e+00 : f32
    %984 = vector.broadcast %cst_352 : f32 to vector<8x32xf32>
    %985 = arith.maximumf %983, %984 : vector<8x32xf32>
    %c0_353 = arith.constant 0 : index
    %c0_354 = arith.constant 0 : index
    %986 = vector.load %arg16[%c0_353, %c0_354] : memref<1x32xf32, #tpu.memory_space<vmem>>, vector<1x32xf32>
    %987 = vector.broadcast %986 : vector<1x32xf32> to vector<8x32xf32>
    %988 = arith.mulf %985, %987 : vector<8x32xf32>
    %cst_355 = arith.constant dense<0.000000e+00> : vector<8xf32>
    %989 = vector.multi_reduction <add>, %988, %cst_355 [1] : vector<8x32xf32> to vector<8xf32>
    %990 = vector.shape_cast %989 : vector<8xf32> to vector<8x1xf32>
    %c0_356 = arith.constant 0 : index
    %c0_357 = arith.constant 0 : index
    %991 = vector.load %arg17[%c0_356, %c0_357] : memref<1x1xf32, #tpu.memory_space<vmem>>, vector<1x1xf32>
    %992 = vector.broadcast %991 : vector<1x1xf32> to vector<8x1xf32>
    %993 = arith.addf %990, %992 : vector<8x1xf32>
    %994 = arith.negf %993 : vector<8x1xf32>
    %995 = math.exp %994 : vector<8x1xf32>
    %cst_358 = arith.constant 1.000000e+00 : f32
    %996 = vector.broadcast %cst_358 : f32 to vector<8x1xf32>
    %997 = arith.addf %996, %995 : vector<8x1xf32>
    %998 = arith.divf %996, %997 : vector<8x1xf32>
    %c0_359 = arith.constant 0 : index
    %c0_360 = arith.constant 0 : index
    %999 = vector.load %arg18[%c0_359, %c0_360] : memref<8x1xf32, #tpu.memory_space<vmem>>, vector<8x1xf32>
    tpu.vector_store %arg18[%c0_359, %c0_360], %998 {strides = array<i32>} : memref<8x1xf32, #tpu.memory_space<vmem>>, vector<8x1xf32>,
    return
  }
  func.func @transform_0(%arg0: i32) -> (i32, i32) {
    %c0_i32 = arith.constant 0 : i32
    %c0_i32_0 = arith.constant 0 : i32
    return %arg0, %c0_i32 : i32, i32
  }
  func.func @transform_1(%arg0: i32) -> (i32, i32) {
    %c0_i32 = arith.constant 0 : i32
    %c0_i32_0 = arith.constant 0 : i32
    %c0_i32_1 = arith.constant 0 : i32
    return %c0_i32, %c0_i32_0 : i32, i32
  }
  func.func @transform_2(%arg0: i32) -> (i32, i32) {
    %c0_i32 = arith.constant 0 : i32
    %c0_i32_0 = arith.constant 0 : i32
    %c0_i32_1 = arith.constant 0 : i32
    return %c0_i32, %c0_i32_0 : i32, i32
  }
  func.func @transform_3(%arg0: i32) -> (i32, i32) {
    %c0_i32 = arith.constant 0 : i32
    %c0_i32_0 = arith.constant 0 : i32
    %c0_i32_1 = arith.constant 0 : i32
    return %c0_i32, %c0_i32_0 : i32, i32
  }
  func.func @transform_4(%arg0: i32) -> (i32, i32) {
    %c0_i32 = arith.constant 0 : i32
    %c0_i32_0 = arith.constant 0 : i32
    %c0_i32_1 = arith.constant 0 : i32
    return %c0_i32, %c0_i32_0 : i32, i32
  }
  func.func @transform_5(%arg0: i32) -> (i32, i32) {
    %c0_i32 = arith.constant 0 : i32
    %c0_i32_0 = arith.constant 0 : i32
    %c0_i32_1 = arith.constant 0 : i32
    return %c0_i32, %c0_i32_0 : i32, i32
  }
  func.func @transform_6(%arg0: i32) -> (i32, i32) {
    %c0_i32 = arith.constant 0 : i32
    %c0_i32_0 = arith.constant 0 : i32
    %c0_i32_1 = arith.constant 0 : i32
    return %c0_i32, %c0_i32_0 : i32, i32
  }
  func.func @transform_7(%arg0: i32) -> (i32, i32) {
    %c0_i32 = arith.constant 0 : i32
    %c0_i32_0 = arith.constant 0 : i32
    %c0_i32_1 = arith.constant 0 : i32
    return %c0_i32, %c0_i32_0 : i32, i32
  }
  func.func @transform_8(%arg0: i32) -> (i32, i32) {
    %c0_i32 = arith.constant 0 : i32
    %c0_i32_0 = arith.constant 0 : i32
    %c0_i32_1 = arith.constant 0 : i32
    return %c0_i32, %c0_i32_0 : i32, i32
  }
  func.func @transform_9(%arg0: i32) -> (i32, i32) {
    %c0_i32 = arith.constant 0 : i32
    %c0_i32_0 = arith.constant 0 : i32
    %c0_i32_1 = arith.constant 0 : i32
    return %c0_i32, %c0_i32_0 : i32, i32
  }
  func.func @transform_10(%arg0: i32) -> (i32, i32) {
    %c0_i32 = arith.constant 0 : i32
    %c0_i32_0 = arith.constant 0 : i32
    %c0_i32_1 = arith.constant 0 : i32
    return %c0_i32, %c0_i32_0 : i32, i32
  }
  func.func @transform_11(%arg0: i32) -> (i32, i32) {
    %c0_i32 = arith.constant 0 : i32
    %c0_i32_0 = arith.constant 0 : i32
    %c0_i32_1 = arith.constant 0 : i32
    return %c0_i32, %c0_i32_0 : i32, i32
  }
  func.func @transform_12(%arg0: i32) -> (i32, i32) {
    %c0_i32 = arith.constant 0 : i32
    %c0_i32_0 = arith.constant 0 : i32
    %c0_i32_1 = arith.constant 0 : i32
    return %c0_i32, %c0_i32_0 : i32, i32
  }
  func.func @transform_13(%arg0: i32) -> (i32, i32) {
    %c0_i32 = arith.constant 0 : i32
    %c0_i32_0 = arith.constant 0 : i32
    %c0_i32_1 = arith.constant 0 : i32
    return %c0_i32, %c0_i32_0 : i32, i32
  }
  func.func @transform_14(%arg0: i32) -> (i32, i32) {
    %c0_i32 = arith.constant 0 : i32
    %c0_i32_0 = arith.constant 0 : i32
    %c0_i32_1 = arith.constant 0 : i32
    return %c0_i32, %c0_i32_0 : i32, i32
  }
  func.func @transform_15(%arg0: i32) -> (i32, i32) {
    %c0_i32 = arith.constant 0 : i32
    %c0_i32_0 = arith.constant 0 : i32
    %c0_i32_1 = arith.constant 0 : i32
    return %c0_i32, %c0_i32_0 : i32, i32
  }
  func.func @transform_16(%arg0: i32) -> (i32, i32) {
    %c0_i32 = arith.constant 0 : i32
    %c0_i32_0 = arith.constant 0 : i32
    %c0_i32_1 = arith.constant 0 : i32
    return %c0_i32, %c0_i32_0 : i32, i32
  }
  func.func @transform_17(%arg0: i32) -> (i32, i32) {
    %c0_i32 = arith.constant 0 : i32
    %c0_i32_0 = arith.constant 0 : i32
    return %arg0, %c0_i32 : i32, i32
  }
}

</mosaic_0001>

<bundles_post_ra>
// kernel: tpu_custom_call.1
= control target key start
LH: loop header
LB: loop body
LE: loop exit
PB: predicated region body
PF: predicated region fallthrough
CT: control target
= control target key end

     0   :  { %s10212_s0 = inlined_call_operand.hbm [shape: f32[8,64], index: 0, kind: input, shape index: {}]   ;;  %s10213_s1 = inlined_call_operand.vmem [shape: f32[64,64], index: 1, kind: input, shape index: {}]   ;;  %s10214_s2 = inlined_call_operand.hbm [shape: f32[1,64], index: 2, kind: input, shape index: {}]   ;;  %s10215_s3 = inlined_call_operand.vmem [shape: f32[64,8], index: 3, kind: input, shape index: {}]   ;;  %s10216_s4 = inlined_call_operand.hbm [shape: f32[1,8], index: 4, kind: input, shape index: {}]   ;;  %s10217_s5 = inlined_call_operand.hbm [shape: f32[4,192], index: 5, kind: input, shape index: {}]   ;;  %s10218_s6 = inlined_call_operand.vmem [shape: f32[1,192], index: 6, kind: input, shape index: {}]   ;;  %s10219_s7 = inlined_call_operand.vmem [shape: f32[64,192], index: 7, kind: input, shape index: {}]   ;;  %s10220_s8 = inlined_call_operand.vmem [shape: f32[1,192], index: 8, kind: input, shape index: {}]   ;;  %s10221_s9 = inlined_call_operand.hbm [shape: f32[64,192], index: 9, kind: input, shape index: {}]   ;;  %s10222_s10 = inlined_call_operand.vmem [shape: f32[1,192], index: 10, kind: input, shape index: {}]   ;;  %s10223_s11 = inlined_call_operand.hbm [shape: f32[64,192], index: 11, kind: input, shape index: {}]   ;;  %s10224_s12 = inlined_call_operand.vmem [shape: f32[1,192], index: 12, kind: input, shape index: {}]   ;;  %s10225_s13 = inlined_call_operand.vmem [shape: f32[64,32], index: 13, kind: input, shape index: {}]   ;;  %s10226_s14 = inlined_call_operand.vmem [shape: f32[1,32], index: 14, kind: input, shape index: {}]   ;;  %s10227_s15 = inlined_call_operand.vmem [shape: f32[1,32], index: 15, kind: input, shape index: {}]   ;;  %s10228_s16 = inlined_call_operand.<no memory space> [shape: f32[1,1], index: 16, kind: input, shape index: {}]   ;;  %s10229_s17 = inlined_call_operand.vmem [shape: f32[8,1], index: 17, kind: output, shape index: {}]  }
   0x1   :  { %10319 = sst [smem:[#allocation56_spill]] %s10212_s0  ;;  %v22_v0 = vstv %s10228_s16 }
   0x2   :  { %10320 = sst [smem:[#allocation57_spill]] %s10213_s1  ;;  %23 = vst [vmem:[#allocation3] sm:$0x1] %v22_v0 }
   0x3   :  { %24 = vsyncpa [#allocation5], 0 }
   0x4   :  { %25 = vsyncpa [#allocation7], 0 }
   0x5   :  { %26 = vsyncpa [#allocation10], 0 }
   0x6   :  { %27 = vsyncpa [#allocation13], 0  ;;  %s8314_s26 = smov [#allocation6]   ;;  %s8315_s28 = smov [#allocation9]  }
   0x7   :  { %s46_s27 = sshll.u32 %s8314_s26, 4  ;;  %s68_s29 = sshll.u32 %s8315_s28, 4  ;;  %s47_s27 = int_to_ptr.vmem [resolvable:$true] %s46_s27  ;;  %s69_s29 = int_to_ptr.vmem [resolvable:$true] %s68_s29 }
   0x8   :  { %s8174_s18 = scalar_lea.hbm %s10214_s2, 16 }
   0x9   :  { %p8175_p0 = scmp.ne.s32.totalorder %s10214_s2, %s8174_s18  ;;  %p8178_p1 = scmp.lt.u32.totalorder %s8174_s18, %s10214_s2 }
   0xb   :  { %p8180_p2 = pnand %p8178_p1, %p8175_p0 }
   0xd   :  { %8183 = shalt.err (!%p8180_p2)
}
   0xe   :  { %s8184_s21 = scalar_lea.vmem %s47_s27, 16  ;;  %s8188_s22 = scalar_lea.vmem %s47_s27, 32 }
   0xf   :  { %p8185_p3 = scmp.ne.s32.totalorder %s47_s27, %s8184_s21  ;;  %p8189_p4 = scmp.lt.s32.totalorder %s47_s27, %s47_s27 }
  0x10   :  { %p8190_p5 = scmp.lt.s32.totalorder %s8188_s22, %s8184_s21 }
  0x12   :  { %p8191_p6 = por %p8190_p5, %p8189_p4 }
  0x14   :  { %p8192_p7 = pnand %p8191_p6, %p8185_p3 }
  0x16   :  { %8195 = shalt.err (!%p8192_p7)
}
  0x17   :  { %49 = dma.hbm_to_vmem [thread:$0]  %s10214_s2, 16, %s47_s27, [#allocation7]  }
  0x18   :  { %s8196_s28 = scalar_lea.hbm %s10217_s5, 128 }
  0x19   :  { %p8197_p8 = scmp.ne.s32.totalorder %s10217_s5, %s8196_s28  ;;  %p8200_p9 = scmp.lt.u32.totalorder %s8196_s28, %s10217_s5 }
  0x1b   :  { %p8202_p10 = pnand %p8200_p9, %p8197_p8 }
  0x1d   :  { %8205 = shalt.err (!%p8202_p10)
}
  0x1e   :  { %s8206_s1 = scalar_lea.vmem %s69_s29, 128  ;;  %p8211_p12 = scmp.lt.s32.totalorder %s69_s29, %s69_s29 }
  0x1f   :  { %p8207_p11 = scmp.ne.s32.totalorder %s69_s29, %s8206_s1  ;;  %p8212_p13 = scmp.lt.s32.totalorder %s8206_s1, %s8206_s1 }
  0x21   :  { %p8213_p0 = por %p8212_p13, %p8211_p12 }
  0x23   :  { %p8214_p1 = pnand %p8213_p0, %p8207_p11 }
  0x25   :  { %8217 = shalt.err (!%p8214_p1)
}
  0x26   :  { %71 = dma.hbm_to_vmem [thread:$0]  %s10217_s5, 128, %s69_s29, [#allocation10]  }
  0x27   :  { %s8316_s16 = smov [#allocation4]   ;;  %s8317_s21 = smov [#allocation8]  }
  0x28   :  { %s34_s20 = sshll.u32 %s8316_s16, 4  ;;  %s58_s22 = sshll.u32 %s8317_s21, 4  ;;  %s35_s20 = int_to_ptr.vmem [resolvable:$true] %s34_s20  ;;  %s59_s22 = int_to_ptr.vmem [resolvable:$true] %s58_s22 }
  0x29   :  { %s10321_s25 = sld [smem:[#allocation56_spill]] }
  0x2f   :  { %s8218_s26 = scalar_lea.hbm %s10321_s25, 128 }
  0x30   :  { %p8219_p2 = scmp.ne.s32.totalorder %s10321_s25, %s8218_s26  ;;  %p8222_p3 = scmp.lt.u32.totalorder %s8218_s26, %s10321_s25 }
  0x32   :  { %p8224_p4 = pnand %p8222_p3, %p8219_p2 }
  0x34   :  { %8227 = shalt.err (!%p8224_p4)
}
  0x35   :  { %s8228_s5 = scalar_lea.vmem %s35_s20, 128  ;;  %p8233_p6 = scmp.lt.s32.totalorder %s35_s20, %s35_s20 }
  0x36   :  { %p8229_p5 = scmp.ne.s32.totalorder %s35_s20, %s8228_s5  ;;  %p8234_p7 = scmp.lt.s32.totalorder %s8228_s5, %s8228_s5 }
  0x38   :  { %p8235_p8 = por %p8234_p7, %p8233_p6 }
  0x3a   :  { %p8236_p9 = pnand %p8235_p8, %p8229_p5 }
  0x3c   :  { %8239 = shalt.err (!%p8236_p9)
}
  0x3d   :  { %37 = dma.hbm_to_vmem [thread:$0]  %s10321_s25, 128, %s35_s20, [#allocation5]  }
  0x3e   :  { %s8240_s27 = scalar_lea.hbm %s10216_s4, 16 }
  0x3f   :  { %p8241_p10 = scmp.ne.s32.totalorder %s10216_s4, %s8240_s27  ;;  %p8244_p11 = scmp.lt.u32.totalorder %s8240_s27, %s10216_s4 }
  0x41   :  { %p8246_p12 = pnand %p8244_p11, %p8241_p10 }
  0x43   :  { %8249 = shalt.err (!%p8246_p12)
}
  0x44   :  { %s8250_s26 = scalar_lea.vmem %s59_s22, 16  ;;  %s8254_s28 = scalar_lea.vmem %s59_s22, 32 }
  0x45   :  { %p8251_p13 = scmp.ne.s32.totalorder %s59_s22, %s8250_s26  ;;  %p8255_p0 = scmp.lt.s32.totalorder %s59_s22, %s59_s22 }
  0x46   :  { %p8256_p1 = scmp.lt.s32.totalorder %s8254_s28, %s8250_s26 }
  0x48   :  { %p8257_p2 = por %p8256_p1, %p8255_p0 }
  0x4a   :  { %p8258_p3 = pnand %p8257_p2, %p8251_p13 }
  0x4c   :  { %8261 = shalt.err (!%p8258_p3)
}
  0x4d   :  { %61 = dma.hbm_to_vmem [thread:$0]  %s10216_s4, 16, %s59_s22, [#allocation7]  }
  0x4e   :  { %s8318_s0 = smov [#allocation11]   ;;  %s8262_s29 = scalar_lea.hbm %s10221_s9, 2048 }
  0x4f   :  { %s83_s30 = sshll.u32 %s8318_s0, 4  ;;  %p8263_p4 = scmp.ne.s32.totalorder %s10221_s9, %s8262_s29  ;;  %s84_s30 = int_to_ptr.vmem [resolvable:$true] %s83_s30 }
  0x50   :  { %p8266_p5 = scmp.lt.u32.totalorder %s8262_s29, %s10221_s9 }
  0x52   :  { %p8268_p6 = pnand %p8266_p5, %p8263_p4 }
  0x54   :  { %8271 = shalt.err (!%p8268_p6)
}
  0x55   :  { %s8272_s16 = scalar_lea.vmem %s84_s30, 2048  ;;  %p8277_p8 = scmp.lt.s32.totalorder %s84_s30, %s84_s30 }
  0x56   :  { %p8273_p7 = scmp.ne.s32.totalorder %s84_s30, %s8272_s16  ;;  %p8278_p9 = scmp.lt.s32.totalorder %s8272_s16, %s8272_s16 }
  0x58   :  { %p8279_p10 = por %p8278_p9, %p8277_p8 }
  0x5a   :  { %p8280_p11 = pnand %p8279_p10, %p8273_p7 }
  0x5c   :  { %8283 = shalt.err (!%p8280_p11)
}
  0x5d   :  { %s8319_s4 = smov 256   ;;  %s8320_s22 = smov 16  }
  0x5e   :  { %89 = dma.hbm_to_vmem [thread:$0]  %s10221_s9, 2048, %s84_s30, [#allocation10], %s8319_s4, %s8319_s4, %s8320_s22  }
  0x5f   :  { %s8321_s24 = smov [#allocation12]   ;;  %s8284_s25 = scalar_lea.hbm %s10223_s11, 2048 }
  0x60   :  { %s97_s26 = sshll.u32 %s8321_s24, 4  ;;  %p8285_p12 = scmp.ne.s32.totalorder %s10223_s11, %s8284_s25  ;;  %s98_s26 = int_to_ptr.vmem [resolvable:$true] %s97_s26 }
  0x61   :  { %p8288_p13 = scmp.lt.u32.totalorder %s8284_s25, %s10223_s11 }
  0x63   :  { %p8290_p0 = pnand %p8288_p13, %p8285_p12 }
  0x65   :  { %8293 = shalt.err (!%p8290_p0)
}
  0x66   :  { %s8294_s19 = scalar_lea.vmem %s98_s26, 2048  ;;  %p8299_p2 = scmp.lt.s32.totalorder %s98_s26, %s98_s26 }
  0x67   :  { %p8295_p1 = scmp.ne.s32.totalorder %s98_s26, %s8294_s19  ;;  %p8300_p3 = scmp.lt.s32.totalorder %s8294_s19, %s8294_s19 }
  0x69   :  { %p8301_p4 = por %p8300_p3, %p8299_p2 }
  0x6b   :  { %p8302_p5 = pnand %p8301_p4, %p8295_p1 }
  0x6d   :  { %8305 = shalt.err (!%p8302_p5)
}
  0x6e   :  { %103 = dma.hbm_to_vmem [thread:$0]  %s10223_s11, 2048, %s98_s26, [#allocation13], %s8319_s4, %s8319_s4, %s8320_s22  }
  0x6f   :  { %8306 = dma.done.wait [#allocation5], 128  }
  0x70   :  { %8307 = vsyncadd [#allocation5], 4294967168 }
  0x71   :  { %8308 = dma.done.wait [#allocation7], 32  }
  0x72   :  { %8309 = vsyncadd [#allocation7], 4294967264 }
  0x73   :  { %8310 = dma.done.wait [#allocation10], 2176  }
  0x74   :  { %8311 = vsyncadd [#allocation10], 4294965120 }
  0x75   :  { %8312 = dma.done.wait [#allocation13], 2048  }
  0x76   :  { %8313 = vsyncadd [#allocation13], 4294965248  ;;  %v10232_v1 = vmov 0.0|0.0   ;;  %vm8323_vm0 = vmmov 0   ;;  %v10241_v2 = vmov 0.0   ;;  %s10322_s2 = sld [smem:[#allocation57_spill]]  ;;  %v311_v33 = vlaneseq }
  0x77   :  { %7012 = vmatprep.subr.bf16.mxu0 %v10232_v1  ;;  %6971 = vmatprep.mubr.msk.f32.mxu0 %vm8323_vm0, %v10241_v2  ;;  %v223_v9 = vld [vmem:[%s10215_s3] sm:$0xff]  ;;  %v224_v10 = vld [vmem:[%s10215_s3 + $0x8] sm:$0xff]  ;;  %v225_v11 = vld [vmem:[%s10215_s3 + $0x10] sm:$0xff]  ;;  %vm148_vm1 = vcmask 523264   ;;  %v8325_v37 = vmov 1966171168  }
  0x78   :  { %7024 = vmatprep.subr.bf16.mxu1 %v10232_v1  ;;  %6990 = vmatprep.mubr.msk.f32.mxu1 %vm8323_vm0, %v10241_v2  ;;  %v7025_v14 = vpack.c.bf16 %v224_v10, %v223_v9  ;;  %v226_v15 = vld [vmem:[%s10215_s3 + $0x18] sm:$0xff]  ;;  %v227_v18 = vld [vmem:[%s10215_s3 + $0x20] sm:$0xff]  ;;  %v228_v19 = vld [vmem:[%s10215_s3 + $0x28] sm:$0xff]  ;;  %v8584_v34 = vshrl.u32 %v311_v33, 7  ;;  %v1041_v35 = vand.u32 127, %v311_v33  ;;  %v370_v38 = vunpack.c.l.s4 %v8325_v37  ;;  %s8327_s20 = smov 120  }
  0x79   :  { %v7028_v16 = vpack.c.bf16 %v226_v15, %v225_v11  ;;  %v7031_v22 = vpack.c.bf16 %v228_v19, %v227_v18  ;;  %v132_v24 = vld [vmem:[#allocation4] sm:$0xff]  ;;  %v229_v25 = vld [vmem:[%s10215_s3 + $0x30] sm:$0xff]  ;;  %v230_v26 = vld [vmem:[%s10215_s3 + $0x38] sm:$0xff]  ;;  %s8326_s3 = smov 124   ;;  %s8328_s25 = smov 116   ;;  %vm489_vm3 = vcmask 60448  }
  0x7a   :  { %7026 = vmatpush3.bf16.msra.mxu1 %v7025_v14  ;;  %v7034_v27 = vpack.c.bf16 %v230_v26, %v229_v25  ;;  %v6807_v28 = vld [vmem:[#allocation6] ss:$0 sm:$0xff]  ;;  %v8587_v36 = vsub.s32 %v1041_v35, %v8584_v34  ;;  %v371_v39 = vunpack.c.0.s8 %v370_v38  ;;  %v6809_v40 = vld [vmem:[#allocation8] ss:$0 sm:$0xff]  ;;  %v327_v41 = vsub.s32 2, %v8584_v34  ;;  %s8329_s0 = smov 108  }
  0x7b   :  { %7027 = vmatprep.subr.bf16.mxu1 %v10232_v1  ;;  %v8591_v42 = vsub.s32 0, %v8584_v34  ;;  %v334_v47 = vsub.s32 3, %v8584_v34  ;;  %v8597_v50 = vsub.s32 1, %v8584_v34  ;;  %v348_v54 = vsub.s32 5, %v8584_v34  ;;  %s8331_s18 = smov 112   ;;  %s8332_s5 = smov 100  }
  0x7c   :  { %v133_v3 = vld [vmem:[%s10322_s2] sm:$0xff]  ;;  %v134_v4 = vld [vmem:[%s10322_s2 + $0x8] sm:$0xff]  ;;  %v135_v5 = vld [vmem:[%s10322_s2 + $0x10] sm:$0xff]  ;;  %v374_v46 = vsub.s32 %v371_v39, %v8584_v34  ;;  %v341_v55 = vsub.s32 4, %v8584_v34  ;;  %s8333_s29 = smov 104   ;;  %vm570_vm11 = vcmask 27648  }
  0x7d   :  { %v7013_v6 = vpack.c.bf16 %v134_v4, %v133_v3  ;;  %v136_v7 = vld [vmem:[%s10322_s2 + $0x18] sm:$0xff]  ;;  %v137_v12 = vld [vmem:[%s10322_s2 + $0x20] sm:$0xff]  ;;  %v138_v13 = vld [vmem:[%s10322_s2 + $0x28] sm:$0xff]  ;;  %10324 = vst [vmem:[#allocation19_spill] sm:$0xff] %v8591_v42  ;;  %v362_v3 = vsub.s32 7, %v8584_v34  ;;  %v355_v4 = vsub.s32 6, %v8584_v34 }
  0x7e   :  { %v7016_v8 = vpack.c.bf16 %v136_v7, %v135_v5  ;;  %v7019_v17 = vpack.c.bf16 %v138_v13, %v137_v12  ;;  %v139_v20 = vld [vmem:[%s10322_s2 + $0x30] sm:$0xff]  ;;  %v140_v21 = vld [vmem:[%s10322_s2 + $0x38] sm:$0xff]  ;;  %7029 = vmatpush3.bf16.msra.mxu1 %v7028_v16  ;;  %10325 = vst [vmem:[#allocation20_spill] sm:$0xff] %v8597_v50  ;;  %vm2224_vm12 = vcmask 1043456   ;;  %vm2175_vm13 = vcmask 31744   ;;  %s8345_s26 = smov 88  }
  0x7f   :  { %7014 = vmatpush3.bf16.msra.mxu0 %v7013_v6  ;;  %v7022_v23 = vpack.c.bf16 %v140_v21, %v139_v20  ;;  %7030 = vmatprep.subr.bf16.mxu1 %v10232_v1  ;;  %s8346_s28 = smov 80   ;;  %vm6779_vm14 = vcmask 261120   ;;  %vm6797_vm15 = vcmask 7168  }
  0x80   :  { %7015 = vmatprep.subr.bf16.mxu0 %v10232_v1 }
  0x82   :  { %7032 = vmatpush3.bf16.msra.mxu1 %v7031_v22 }
  0x83   :  { %7017 = vmatpush3.bf16.msra.mxu0 %v7016_v8  ;;  %7033 = vmatprep.subr.bf16.mxu1 %v10232_v1  ;;  %v8330_v8 = vmov 0  }
  0x84   :  { %7018 = vmatprep.subr.bf16.mxu0 %v10232_v1  ;;  %7855 = vset.pattern.permute.xlu0 %v8330_v8 }
  0x85   :  { %7854 = vset.pattern.permute.xlu1 %v8330_v8 }
  0x86   :  { %7035 = vmatpush3.bf16.msra.mxu1 %v7034_v27 }
  0x87   :  { %7020 = vmatpush3.bf16.msra.mxu0 %v7019_v17  ;;  %v8334_v17 = vmov 1983009808  }
  0x88   :  { %7021 = vmatprep.subr.bf16.mxu0 %v10232_v1  ;;  %v659_v18 = vunpack.c.l.s4 %v8334_v17 }
  0x8a   :  { %v660_v21 = vunpack.c.0.s8 %v659_v18 }
  0x8b   :  { %7023 = vmatpush3.bf16.msra.mxu0 %v7022_v23 }
  0x8c   :  { %v8639_v27 = vsub.s32 %v660_v21, %v8584_v34 }
  0x8e   :  { %6972 = vmatmul.mubr.msk.f32.vlgmr.msra.gmra.mrb[0].mxu0 %vm148_vm1, %v132_v24  ;;  %v8335_v24 = vmov 1934713408   ;;  %10326 = vst [vmem:[#allocation21_spill] sm:$0xff] %v8639_v27 }
  0x8f   :  { %2293 = vmatprep.mubr.f32.mxu0 %v10241_v2  ;;  %v723_v25 = vunpack.c.l.s4 %v8335_v24 }
  0x91   :  { %v724_v33 = vunpack.c.0.s8 %v723_v25 }
 0x161   :  { %v218_v29 = vpop.f32.mrb[0].mxu0 }
 0x162   :  { %v219_v30 = vadd.f32 %v6807_v28, %v218_v29  ;;  %v6973_v31 = vpop.f32.mrb[1].mxu0 }
 0x164   :  { %v8579_v32 = vmax.f32 %v219_v30, 0.0 }
 0x166   :  { %10323 = vst [vmem:[#allocation18_spill] sm:$0xff] %v8579_v32  ;;  %6991 = vmatmul.mubr.msk.f32.vlgmr.msra.gmra.mrb[0].mxu1 %vm148_vm1, %v8579_v32 }
 0x167   :  { %2519 = vmatprep.mubr.f32.mxu1 %v10241_v2 }
 0x239   :  { %v307_v43 = vpop.f32.mrb[0].mxu1 }
 0x23a   :  { %v308_v44 = vadd.f32 %v6809_v40, %v307_v43  ;;  %v6992_v45 = vpop.f32.mrb[1].mxu1 }
 0x23c   :  { %v328_v48 = vrot.slane %v308_v44, %v327_v41  ;;  %v314_v49 = vrot.slane %v308_v44, %v8591_v42  ;;  %v375_v51 = vrot.slane %v308_v44, %v374_v46  ;;  %v368_v52 = vcombine.high %v308_v44, %v308_v44 }
 0x23d   :  { %v335_v53 = vrot.slane %v308_v44, %v334_v47  ;;  %v321_v56 = vrot.slane %v308_v44, %v8597_v50  ;;  %v349_v63 = vrot.slane %v308_v44, %v348_v54  ;;  %v342_v0 = vrot.slane %v308_v44, %v341_v55 }
 0x23e   :  { %330 = vbcast.lane.b32.xlu1 %v328_v48, 256  ;;  %316 = vbcast.lane.b32.xlu0 %v314_v49, 256  ;;  %v8602_v57 = vrot.slane %v375_v51, %v374_v46  ;;  %v383_v58 = vcombine.high %v375_v51, %v375_v51  ;;  %v382_v59 = vrot.slane %v368_v52, %v374_v46 }
 0x23f   :  { %v363_v6 = vrot.slane %v308_v44, %v362_v3  ;;  %v356_v7 = vrot.slane %v308_v44, %v355_v4 }
 0x240   :  { %v8604_v60 = vrot.slane %v383_v58, %v374_v46  ;;  %v384_v61 = vcombine.high %v382_v59, %v382_v59  ;;  %v8606_v62 = vrot.slane %v382_v59, %v374_v46 }
 0x242   :  { %337 = vbcast.lane.b32.xlu1 %v335_v53, 256  ;;  %323 = vbcast.lane.b32.xlu0 %v321_v56, 256  ;;  %v8610_v5 = vrot.slane %v384_v61, %v374_v46  ;;  %v8647_v46 = vsub.s32 %v724_v33, %v8584_v34 }
 0x244   :  { %10327 = vst [vmem:[#allocation22_spill] sm:$0xff] %v8647_v46 }
 0x246   :  { %351 = vbcast.lane.b32.xlu1 %v349_v63, 256  ;;  %344 = vbcast.lane.b32.xlu0 %v342_v0, 256 }
 0x24a   :  { %365 = vbcast.lane.b32.xlu1 %v363_v6, 256  ;;  %358 = vbcast.lane.b32.xlu0 %v356_v7, 256 }
 0x24e   :  { %611 = vrot.lane.b32.xlu1 %v8579_v32, %s8326_s3  ;;  %614 = vrot.lane.b32.xlu0 %v8579_v32, %s8327_s20  ;;  %s8348_s20 = smov 92  }
 0x252   :  { %617 = vrot.lane.b32.xlu1 %v8579_v32, %s8328_s25  ;;  %623 = vrot.lane.b32.xlu0 %v8579_v32, %s8329_s0  ;;  %s8349_s25 = smov 84   ;;  %s8350_s0 = smov 76  }
 0x256   :  { %620 = vrot.lane.b32.xlu1 %v8579_v32, %s8331_s18  ;;  %629 = vrot.lane.b32.xlu0 %v8579_v32, %s8332_s5  ;;  %s8351_s18 = smov 68  }
 0x25a   :  { %626 = vrot.lane.b32.xlu1 %v8579_v32, %s8333_s29 }
 0x2b0   :  { %v8622_v9 = vpop.permute.xlu1 %330  ;;  %v8624_v10 = vpop.permute.xlu0 %316 }
 0x2b4   :  { %v8626_v11 = vpop.permute.xlu1 %337  ;;  %v8628_v12 = vpop.permute.xlu0 %323 }
 0x2b8   :  { %v8630_v13 = vpop.permute.xlu1 %351  ;;  %v8632_v14 = vpop.permute.xlu0 %344 }
 0x2bc   :  { %v8634_v15 = vpop.permute.xlu1 %365  ;;  %v8636_v16 = vpop.permute.xlu0 %358 }
 0x2c0   :  { %v612_v19 = vpop.permute.xlu1 %611  ;;  %v615_v20 = vpop.permute.xlu0 %614 }
 0x2c1   :  { %v656_v28 = vcombine.low %v8579_v32, %v615_v20  ;;  %v657_v35 = vcombine.high %v8579_v32, %v615_v20 }
 0x2c3   :  { %v664_v40 = vrot.slane %v656_v28, %v8639_v27  ;;  %v671_v47 = vrot.slane %v657_v35, %v8639_v27  ;;  %v10239_v28 = vmov 1   ;;  %v415_v35 = vcombine.high %v8604_v60, %v8604_v60 }
 0x2c4   :  { %v618_v22 = vpop.permute.xlu1 %617  ;;  %v624_v23 = vpop.permute.xlu0 %623 }
 0x2c5   :  { %v672_v26 = vcombine.low %v612_v19, %v618_v22  ;;  %v673_v29 = vcombine.high %v612_v19, %v618_v22 }
 0x2c7   :  { %v680_v37 = vrot.slane %v672_v26, %v8639_v27  ;;  %v687_v41 = vrot.slane %v673_v29, %v8639_v27  ;;  %v413_v29 = vcombine.high %v8602_v57, %v8602_v57 }
 0x2c8   :  { %v621_v30 = vpop.permute.xlu1 %620  ;;  %v630_v31 = vpop.permute.xlu0 %629 }
 0x2c9   :  { %v704_v38 = vcombine.low %v624_v23, %v630_v31  ;;  %v705_v39 = vcombine.high %v624_v23, %v630_v31  ;;  %v720_v48 = vcombine.low %v664_v40, %v680_v37  ;;  %v737_v54 = vcombine.high %v671_v47, %v687_v41 }
 0x2ca   :  { %v721_v61 = vcombine.high %v664_v40, %v680_v37  ;;  %v736_v63 = vcombine.low %v671_v47, %v687_v41  ;;  %v428_v33 = vrot.slane %v413_v29, %v8591_v42  ;;  %v424_v40 = vrot.slane %v8604_v60, %v8591_v42 }
 0x2cb   :  { %v712_v49 = vrot.slane %v704_v38, %v8639_v27  ;;  %v719_v51 = vrot.slane %v705_v39, %v8639_v27  ;;  %v728_v34 = vrot.slane %v720_v48, %v8647_v46  ;;  %v751_v4 = vrot.slane %v737_v54, %v8647_v46 }
 0x2cc   :  { %v627_v43 = vpop.permute.xlu1 %626  ;;  %v744_v20 = vrot.slane %v736_v63, %v8647_v46  ;;  %v735_v21 = vrot.slane %v721_v61, %v8647_v46  ;;  %v459_v37 = vadd.f32 %v428_v33, %v8622_v9  ;;  %v432_v39 = vrot.slane %v415_v35, %v8591_v42 }
 0x2cd   :  { %v688_v44 = vcombine.low %v621_v30, %v627_v43  ;;  %v689_v45 = vcombine.high %v621_v30, %v627_v43  ;;  %v420_v30 = vrot.slane %v8602_v57, %v8591_v42  ;;  %v436_v9 = vrot.slane %v8606_v62, %v8591_v42 }
 0x2ce   :  { %v460_v41 = vadd.f32 %v432_v39, %v8626_v11  ;;  %v475_v57 = vmul.f32 0.2, %v459_v37  ;;  %vm467_vm4 = vcmp.gt.f32.partialorder %v459_v37, 0.0 }
 0x2cf   :  { %v696_v52 = vrot.slane %v688_v44, %v8639_v27  ;;  %v703_v53 = vrot.slane %v689_v45, %v8639_v27  ;;  %v457_v31 = vadd.f32 %v420_v30, %v8624_v10  ;;  %v458_v10 = vadd.f32 %v424_v40, %v8628_v12 }
 0x2d0   :  { %v440_v44 = vrot.slane %v8610_v5, %v8591_v42  ;;  %v414_v45 = vcombine.high %v8606_v62, %v8606_v62  ;;  %v8711_v47 = vsel %vm467_vm4, %v459_v37, %v475_v57  ;;  %v476_v48 = vmul.f32 0.2, %v460_v41 }
 0x2d1   :  { %v752_v55 = vcombine.low %v696_v52, %v712_v49  ;;  %v753_v56 = vcombine.high %v696_v52, %v712_v49  ;;  %v768_v58 = vcombine.low %v703_v53, %v719_v51  ;;  %v769_v59 = vcombine.high %v703_v53, %v719_v51 }
 0x2d2   :  { %v473_v38 = vmul.f32 0.2, %v457_v31  ;;  %vm465_vm2 = vcmp.gt.f32.partialorder %v457_v31, 0.0  ;;  %v462_v11 = vadd.f32 %v440_v44, %v8630_v13  ;;  %v461_v12 = vadd.f32 %v436_v9, %v8632_v14 }
 0x2d3   :  { %v760_v0 = vrot.slane %v752_v55, %v8647_v46  ;;  %v783_v3 = vrot.slane %v769_v59, %v8647_v46  ;;  %v776_v17 = vrot.slane %v768_v58, %v8647_v46  ;;  %v767_v18 = vrot.slane %v753_v56, %v8647_v46 }
 0x2d4   :  { %v8699_v43 = vsel %vm465_vm2, %v457_v31, %v473_v38  ;;  %vm468_vm5 = vcmp.gt.f32.partialorder %v460_v41, 0.0  ;;  %v474_v49 = vmul.f32 0.2, %v458_v10  ;;  %vm466_vm6 = vcmp.gt.f32.partialorder %v458_v10, 0.0 }
 0x2d5   :  { %v8658_v6 = vcombine.high %v728_v34, %v760_v0  ;;  %v8660_v7 = vcombine.low %v728_v34, %v760_v0  ;;  %v8664_v19 = vcombine.high %v751_v4, %v783_v3  ;;  %v8670_v22 = vcombine.low %v744_v20, %v776_v17 }
 0x2d6   :  { %v8672_v23 = vcombine.low %v735_v21, %v767_v18  ;;  %v8676_v24 = vcombine.low %v751_v4, %v783_v3  ;;  %v8678_v25 = vcombine.high %v735_v21, %v767_v18  ;;  %v8682_v26 = vcombine.high %v744_v20, %v776_v17 }
 0x2d7   :  { %940 = vperm.xlu0 %7855, %v8658_v6   ;;  %930 = vperm.xlu1 %7854, %v8660_v7   ;;  %v490_v60 = vsel %vm489_vm3, %v8699_v43, -inf  ;;  %v444_v51 = vrot.slane %v414_v45, %v8591_v42  ;;  %v496_v52 = vsel %vm489_vm3, %v8711_v47, -inf  ;;  %v8717_v62 = vsel %vm468_vm5, %v460_v41, %v476_v48 }
 0x2d8   :  { %v478_v53 = vmul.f32 0.2, %v462_v11  ;;  %v8720_v54 = vsel %vm466_vm6, %v458_v10, %v474_v49  ;;  %vm470_vm7 = vcmp.gt.f32.partialorder %v462_v11, 0.0  ;;  %v477_v55 = vmul.f32 0.2, %v461_v12 }
 0x2d9   :  { %v463_v13 = vadd.f32 %v444_v51, %v8636_v16  ;;  %vm469_vm8 = vcmp.gt.f32.partialorder %v461_v12, 0.0  ;;  %v499_v14 = vsel %vm489_vm3, %v8717_v62, -inf  ;;  %v493_v56 = vsel %vm489_vm3, %v8720_v54, -inf }
 0x2da   :  { %v8726_v58 = vsel %vm470_vm7, %v462_v11, %v478_v53  ;;  %v8728_v59 = vsel %vm469_vm8, %v461_v12, %v477_v55  ;;  %v416_v3 = vcombine.high %v8610_v5, %v8610_v5  ;;  %v10237_v4 = vmov 2  }
 0x2db   :  { %970 = vperm.xlu0 %7855, %v8670_v22   ;;  %950 = vperm.xlu1 %7854, %v8672_v23   ;;  %v479_v61 = vmul.f32 0.2, %v463_v13  ;;  %vm471_vm9 = vcmp.gt.f32.partialorder %v463_v13, 0.0  ;;  %v505_v16 = vsel %vm489_vm3, %v8726_v58, -inf  ;;  %v502_v63 = vsel %vm489_vm3, %v8728_v59, -inf }
 0x2dc   :  { %v448_v17 = vrot.slane %v416_v3, %v8591_v42 }
 0x2dd   :  { %v8734_v34 = vsel %vm471_vm9, %v463_v13, %v479_v61 }
 0x2de   :  { %v508_v0 = vsel %vm489_vm3, %v8734_v34, -inf  ;;  %v464_v18 = vadd.f32 %v448_v17, %v8634_v15 }
 0x2df   :  { %990 = vperm.xlu0 %7855, %v8676_v24   ;;  %960 = vperm.xlu1 %7854, %v8678_v25  }
 0x2e0   :  { %v480_v20 = vmul.f32 0.2, %v464_v18  ;;  %vm472_vm10 = vcmp.gt.f32.partialorder %v464_v18, 0.0 }
 0x2e2   :  { %v8755_v21 = vsel %vm472_vm10, %v464_v18, %v480_v20 }
 0x2e3   :  { %980 = vperm.xlu1 %7854, %v8682_v26   ;;  %7856 = vset.pattern.permute.xlu0 %v10239_v28  ;;  %v511_v5 = vsel %vm489_vm3, %v8755_v21, -inf }
 0x2fe   :  { %491 = vmax.xlane.f32.xlu0 %v490_v60 }
 0x302   :  { %497 = vmax.xlane.f32.xlu0 %v496_v52 }
 0x306   :  { %500 = vmax.xlane.f32.xlu0 %v499_v14 }
 0x307   :  { %494 = vmax.xlane.f32.xlu1 %v493_v56 }
 0x30a   :  { %506 = vmax.xlane.f32.xlu0 %v505_v16  ;;  %v10235_v16 = vmov 3  }
 0x30b   :  { %503 = vmax.xlane.f32.xlu1 %v502_v63 }
 0x30f   :  { %509 = vmax.xlane.f32.xlu1 %v508_v0 }
 0x320   :  { %1169 = vperm.xlu0 %7856, %v8660_v7   ;;  %1000 = vperm.xlu1 %7854, %v8664_v19  }
 0x324   :  { %1193 = vperm.xlu0 %7856, %v8678_v25   ;;  %7857 = vset.pattern.permute.xlu1 %v10239_v28 }
 0x325   :  { %1177 = vperm.xlu1 %7857, %v8658_v6  }
 0x328   :  { %1209 = vperm.xlu0 %7856, %v8682_v26  }
 0x329   :  { %1185 = vperm.xlu1 %7857, %v8672_v23  }
 0x32d   :  { %1201 = vperm.xlu1 %7857, %v8670_v22  }
 0x331   :  { %1217 = vperm.xlu1 %7857, %v8676_v24  }
 0x335   :  { %7859 = vset.pattern.permute.xlu1 %v10237_v4 }
 0x336   :  { %1385 = vperm.xlu1 %7859, %v8658_v6  }
 0x33a   :  { %1393 = vperm.xlu1 %7859, %v8672_v23  }
 0x33e   :  { %1409 = vperm.xlu1 %7859, %v8670_v22  }
 0x347   :  { %512 = vmax.xlane.f32.xlu0 %v511_v5 }
 0x356   :  { %v8764_v15 = vpop.permute.xlu0 %940  ;;  %v8766_v29 = vpop.permute.xlu1 %930 }
 0x35a   :  { %v8768_v30 = vpop.permute.xlu0 %970  ;;  %v8770_v31 = vpop.permute.xlu1 %950 }
 0x35d   :  { %1225 = vperm.xlu0 %7856, %v8664_v19  }
 0x35e   :  { %v8772_v33 = vpop.permute.xlu0 %990  ;;  %v8774_v35 = vpop.permute.xlu1 %960 }
 0x361   :  { %7858 = vset.pattern.permute.xlu0 %v10237_v4 }
 0x362   :  { %1377 = vperm.xlu0 %7858, %v8660_v7   ;;  %v8777_v41 = vpop.permute.xlu1 %980 }
 0x366   :  { %1401 = vperm.xlu0 %7858, %v8678_v25  }
 0x36a   :  { %1417 = vperm.xlu0 %7858, %v8682_v26  }
 0x38b   :  { %v492_v37 = vpop.xlane.xlu0 %491 }
 0x38c   :  { %v514_v38 = vsub.f32 %v8699_v43, %v492_v37 }
 0x38e   :  { %v522_v39 = vmul.f32 1.442695, %v514_v38 }
 0x38f   :  { %v498_v40 = vpop.xlane.xlu0 %497 }
 0x390   :  { %7882 = vpow2.f32 %v522_v39  ;;  %v516_v57 = vsub.f32 %v8711_v47, %v498_v40 }
 0x392   :  { %v526_v10 = vmul.f32 1.442695, %v516_v57 }
 0x393   :  { %v501_v44 = vpop.xlane.xlu0 %500 }
 0x394   :  { %7884 = vpow2.f32 %v526_v10  ;;  %v517_v9 = vsub.f32 %v8717_v62, %v501_v44  ;;  %v495_v45 = vpop.xlane.xlu1 %494 }
 0x395   :  { %v515_v60 = vsub.f32 %v8720_v54, %v495_v45 }
 0x396   :  { %v528_v11 = vmul.f32 1.442695, %v517_v9 }
 0x397   :  { %v524_v48 = vmul.f32 1.442695, %v515_v60  ;;  %v507_v12 = vpop.xlane.xlu0 %506 }
 0x398   :  { %7886 = vpow2.f32 %v528_v11  ;;  %v519_v43 = vsub.f32 %v8726_v58, %v507_v12  ;;  %v504_v49 = vpop.xlane.xlu1 %503 }
 0x399   :  { %7888 = vpow2.f32 %v524_v48  ;;  %v518_v51 = vsub.f32 %v8728_v59, %v504_v49 }
 0x39a   :  { %v8784_v52 = vpop.eup %7882  ;;  %v532_v47 = vmul.f32 1.442695, %v519_v43 }
 0x39b   :  { %v530_v53 = vmul.f32 1.442695, %v518_v51  ;;  %546 = vrot.lane.b32.xlu1 %v8784_v52, %s8326_s3 }
 0x39c   :  { %7890 = vpow2.f32 %v532_v47  ;;  %v510_v62 = vpop.xlane.xlu1 %509 }
 0x39d   :  { %7892 = vpow2.f32 %v530_v53  ;;  %v520_v13 = vsub.f32 %v8734_v34, %v510_v62  ;;  %v8339_v62 = vmov 4  }
 0x39e   :  { %v8789_v54 = vpop.eup %7884 }
 0x39f   :  { %v534_v55 = vmul.f32 1.442695, %v520_v13  ;;  %550 = vrot.lane.b32.xlu1 %v8789_v54, %s8326_s3  ;;  %v8818_v63 = vpop.permute.xlu0 %1169 }
 0x3a0   :  { %v8825_v20 = vpop.permute.xlu1 %1000 }
 0x3a1   :  { %7894 = vpow2.f32 %v534_v55 }
 0x3a2   :  { %v8793_v14 = vpop.eup %7886 }
 0x3a3   :  { %v8795_v56 = vpop.eup %7888  ;;  %552 = vrot.lane.b32.xlu1 %v8793_v14, %s8326_s3  ;;  %v8820_v34 = vpop.permute.xlu0 %1193 }
 0x3a4   :  { %548 = vrot.lane.b32.xlu0 %v8795_v56, %s8326_s3 }
 0x3a6   :  { %v8801_v58 = vpop.eup %7890 }
 0x3a7   :  { %v8803_v59 = vpop.eup %7892  ;;  %556 = vrot.lane.b32.xlu1 %v8801_v58, %s8326_s3  ;;  %v8822_v0 = vpop.permute.xlu0 %1209 }
 0x3a8   :  { %554 = vrot.lane.b32.xlu0 %v8803_v59, %s8326_s3 }
 0x3ab   :  { %v8809_v61 = vpop.eup %7894 }
 0x3ac   :  { %558 = vrot.lane.b32.xlu0 %v8809_v61, %s8326_s3 }
 0x3b0   :  { %1433 = vperm.xlu0 %7858, %v8664_v19  }
 0x3b4   :  { %7860 = vset.pattern.permute.xlu0 %v10235_v16 }
 0x3b5   :  { %1585 = vperm.xlu0 %7860, %v8660_v7   ;;  %v8831_v7 = vpop.permute.xlu1 %1177 }
 0x3b9   :  { %1609 = vperm.xlu0 %7860, %v8678_v25   ;;  %v8834_v25 = vpop.permute.xlu1 %1185 }
 0x3bd   :  { %1625 = vperm.xlu0 %7860, %v8682_v26   ;;  %v8838_v26 = vpop.permute.xlu1 %1201 }
 0x3c1   :  { %7863 = vset.pattern.permute.xlu0 %v8339_v62 }
 0x3d4   :  { %v513_v3 = vpop.xlane.xlu0 %512 }
 0x3d5   :  { %v521_v17 = vsub.f32 %v8755_v21, %v513_v3  ;;  %v8842_v21 = vpop.permute.xlu1 %1217 }
 0x3d7   :  { %v536_v18 = vmul.f32 1.442695, %v521_v17 }
 0x3d9   :  { %7896 = vpow2.f32 %v536_v18  ;;  %v8844_v37 = vpop.permute.xlu1 %1385 }
 0x3dc   :  { %v8846_v38 = vpop.permute.xlu0 %1225 }
 0x3dd   :  { %v8848_v39 = vpop.permute.xlu1 %1393 }
 0x3e1   :  { %v8850_v40 = vpop.permute.xlu0 %1377  ;;  %v8852_v57 = vpop.permute.xlu1 %1409 }
 0x3e3   :  { %v8827_v5 = vpop.eup %7896 }
 0x3e4   :  { %560 = vrot.lane.b32.xlu1 %v8827_v5, %s8326_s3  ;;  %s8347_s3 = smov 72  }
 0x3e8   :  { %1425 = vperm.xlu1 %7859, %v8676_v24  }
 0x3ec   :  { %7861 = vset.pattern.permute.xlu1 %v10235_v16 }
 0x3ed   :  { %1593 = vperm.xlu1 %7861, %v8658_v6   ;;  %v8854_v6 = vpop.permute.xlu0 %1401 }
 0x3f1   :  { %1601 = vperm.xlu1 %7861, %v8672_v23   ;;  %v8857_v44 = vpop.permute.xlu0 %1417 }
 0x3f5   :  { %1617 = vperm.xlu1 %7861, %v8670_v22  }
 0x3f9   :  { %7862 = vset.pattern.permute.xlu1 %v8339_v62 }
 0x40d   :  { %v547_v10 = vpop.permute.xlu1 %546 }
 0x40e   :  { %v571_v23 = vsel %vm570_vm11, %v547_v10, 0.0 }
 0x40f   :  { %572 = vadd.xlane.f32.xlu0 %v571_v23 }
 0x411   :  { %v551_v22 = vpop.permute.xlu1 %550 }
 0x412   :  { %v577_v9 = vsel %vm570_vm11, %v551_v22, 0.0 }
 0x413   :  { %578 = vadd.xlane.f32.xlu0 %v577_v9 }
 0x415   :  { %v553_v45 = vpop.permute.xlu1 %552 }
 0x416   :  { %v549_v60 = vpop.permute.xlu0 %548  ;;  %v580_v11 = vsel %vm570_vm11, %v553_v45, 0.0 }
 0x417   :  { %581 = vadd.xlane.f32.xlu0 %v580_v11  ;;  %v574_v48 = vsel %vm570_vm11, %v549_v60, 0.0 }
 0x419   :  { %575 = vadd.xlane.f32.xlu1 %v574_v48  ;;  %v557_v12 = vpop.permute.xlu1 %556 }
 0x41a   :  { %v555_v43 = vpop.permute.xlu0 %554  ;;  %v586_v49 = vsel %vm570_vm11, %v557_v12, 0.0 }
 0x41b   :  { %587 = vadd.xlane.f32.xlu0 %v586_v49  ;;  %v583_v51 = vsel %vm570_vm11, %v555_v43, 0.0 }
 0x41d   :  { %584 = vadd.xlane.f32.xlu1 %v583_v51 }
 0x41e   :  { %v559_v47 = vpop.permute.xlu0 %558 }
 0x41f   :  { %v589_v53 = vsel %vm570_vm11, %v559_v47, 0.0 }
 0x421   :  { %590 = vadd.xlane.f32.xlu1 %v589_v53 }
 0x42f   :  { %v8866_v3 = vpop.permute.xlu0 %1433 }
 0x434   :  { %v8868_v17 = vpop.permute.xlu0 %1585 }
 0x438   :  { %v8872_v10 = vpop.permute.xlu0 %1609 }
 0x43c   :  { %v8876_v22 = vpop.permute.xlu0 %1625 }
 0x456   :  { %v561_v13 = vpop.permute.xlu1 %560 }
 0x457   :  { %v592_v55 = vsel %vm570_vm11, %v561_v13, 0.0 }
 0x458   :  { %593 = vadd.xlane.f32.xlu0 %v592_v55 }
 0x467   :  { %v8870_v18 = vpop.permute.xlu1 %1425 }
 0x46c   :  { %v8874_v23 = vpop.permute.xlu1 %1593 }
 0x470   :  { %v8878_v9 = vpop.permute.xlu1 %1601 }
 0x474   :  { %v8880_v11 = vpop.permute.xlu1 %1617 }
 0x49c   :  { %v573_v45 = vpop.xlane.xlu0 %572 }
 0x49d   :  { %7898 = vrcp.f32 %v573_v45 }
 0x4a0   :  { %v579_v60 = vpop.xlane.xlu0 %578 }
 0x4a1   :  { %7900 = vrcp.f32 %v579_v60 }
 0x4a4   :  { %v582_v48 = vpop.xlane.xlu0 %581 }
 0x4a5   :  { %7902 = vrcp.f32 %v582_v48 }
 0x4a6   :  { %v576_v12 = vpop.xlane.xlu1 %575 }
 0x4a7   :  { %v7899_v43 = vpop.eup %7898  ;;  %7904 = vrcp.f32 %v576_v12 }
 0x4a8   :  { %v588_v49 = vpop.xlane.xlu0 %587  ;;  %v596_v51 = vmul.f32 %v7899_v43, %v8784_v52 }
 0x4a9   :  { %7906 = vrcp.f32 %v588_v49 }
 0x4aa   :  { %1017 = vperm.xlu1 %7862, %v596_v51   ;;  %v585_v47 = vpop.xlane.xlu1 %584 }
 0x4ab   :  { %v7901_v53 = vpop.eup %7900  ;;  %7908 = vrcp.f32 %v585_v47 }
 0x4ac   :  { %v600_v62 = vmul.f32 %v7901_v53, %v8789_v54  ;;  %v8340_v53 = vmov 5  }
 0x4ae   :  { %1023 = vperm.xlu1 %7862, %v600_v62   ;;  %v591_v13 = vpop.xlane.xlu1 %590 }
 0x4af   :  { %v7903_v55 = vpop.eup %7902  ;;  %7910 = vrcp.f32 %v591_v13 }
 0x4b0   :  { %v602_v45 = vmul.f32 %v7903_v55, %v8793_v14  ;;  %v2431_v55 = vld [vmem:[%s10219_s7 + $0x38] sm:$0xff] }
 0x4b1   :  { %v7905_v60 = vpop.eup %7904 }
 0x4b2   :  { %1026 = vperm.xlu1 %7862, %v602_v45   ;;  %v598_v48 = vmul.f32 %v7905_v60, %v8795_v56  ;;  %v2428_v60 = vld [vmem:[%s10219_s7 + $0x20] sm:$0xff] }
 0x4b3   :  { %v7907_v12 = vpop.eup %7906 }
 0x4b4   :  { %1020 = vperm.xlu0 %7863, %v598_v48   ;;  %v606_v52 = vmul.f32 %v7907_v12, %v8801_v58  ;;  %v8341_v58 = vmov 6  }
 0x4b5   :  { %v7909_v43 = vpop.eup %7908 }
 0x4b6   :  { %1032 = vperm.xlu1 %7862, %v606_v52   ;;  %v604_v49 = vmul.f32 %v7909_v43, %v8803_v59  ;;  %v10234_v59 = vmov 7   ;;  %v2433_v43 = vld [vmem:[%s10219_s7 + $0x48] sm:$0xff] }
 0x4b8   :  { %1029 = vperm.xlu0 %7863, %v604_v49  }
 0x4b9   :  { %v7911_v54 = vpop.eup %7910 }
 0x4ba   :  { %v608_v47 = vmul.f32 %v7911_v54, %v8809_v61  ;;  %v2427_v61 = vld [vmem:[%s10219_s7 + $0x18] sm:$0xff] }
 0x4bc   :  { %1035 = vperm.xlu0 %7863, %v608_v47  }
 0x4c0   :  { %7864 = vset.pattern.permute.xlu0 %v8340_v53 }
 0x4c1   :  { %1233 = vperm.xlu0 %7864, %v596_v51  }
 0x4c5   :  { %1242 = vperm.xlu0 %7864, %v602_v45  }
 0x4c9   :  { %1248 = vperm.xlu0 %7864, %v606_v52  }
 0x4e5   :  { %v594_v14 = vpop.xlane.xlu0 %593 }
 0x4e6   :  { %7912 = vrcp.f32 %v594_v14  ;;  %v2434_v14 = vld [vmem:[%s10219_s7 + $0x50] sm:$0xff] }
 0x4f0   :  { %v7913_v56 = vpop.eup %7912 }
 0x4f1   :  { %v610_v13 = vmul.f32 %v7913_v56, %v8827_v5 }
 0x4f3   :  { %1038 = vperm.xlu1 %7862, %v610_v13   ;;  %1254 = vperm.xlu0 %7864, %v610_v13  }
 0x4f7   :  { %7865 = vset.pattern.permute.xlu1 %v8340_v53  ;;  %7867 = vset.pattern.permute.xlu0 %v8341_v58  ;;  %v2432_v53 = vld [vmem:[%s10219_s7 + $0x40] sm:$0xff] }
 0x4f8   :  { %1236 = vperm.xlu1 %7865, %v598_v48   ;;  %1444 = vperm.xlu0 %7867, %v598_v48   ;;  %v8949_v56 = vpack.c.bf16 %v2434_v14, %v2432_v53 }
 0x4fa   :  { %10333 = vst [vmem:[#allocation28_spill] sm:$0xff] %v8949_v56 }
 0x4fc   :  { %1239 = vperm.xlu1 %7865, %v600_v62   ;;  %1453 = vperm.xlu0 %7867, %v604_v49  }
 0x500   :  { %1245 = vperm.xlu1 %7865, %v604_v49   ;;  %1459 = vperm.xlu0 %7867, %v608_v47  }
 0x504   :  { %1251 = vperm.xlu1 %7865, %v608_v47   ;;  %7869 = vset.pattern.permute.xlu0 %v10234_v59 }
 0x505   :  { %1652 = vperm.xlu0 %7869, %v598_v48   ;;  %v2430_v48 = vld [vmem:[%s10219_s7 + $0x30] sm:$0xff] }
 0x506   :  { %v8930_v12 = vpack.c.bf16 %v2430_v48, %v2428_v60 }
 0x508   :  { %7866 = vset.pattern.permute.xlu1 %v8341_v58  ;;  %10331 = vst [vmem:[#allocation26_spill] sm:$0xff] %v8930_v12  ;;  %v2439_v58 = vld [vmem:[%s10219_s7 + $0x78] sm:$0xff] }
 0x509   :  { %1441 = vperm.xlu1 %7866, %v596_v51   ;;  %1661 = vperm.xlu0 %7869, %v604_v49   ;;  %v2435_v49 = vld [vmem:[%s10219_s7 + $0x58] sm:$0xff] }
 0x50d   :  { %1447 = vperm.xlu1 %7866, %v600_v62   ;;  %1667 = vperm.xlu0 %7869, %v608_v47   ;;  %v8940_v47 = vpack.c.bf16 %v2435_v49, %v2433_v43 }
 0x50f   :  { %10332 = vst [vmem:[#allocation27_spill] sm:$0xff] %v8940_v47 }
 0x511   :  { %1450 = vperm.xlu1 %7866, %v602_v45   ;;  %7871 = vset.pattern.permute.xlu0 %v10235_v16 }
 0x512   :  { %1641 = vperm.xlu0 %7871, %v8664_v19   ;;  %v2425_v19 = vld [vmem:[%s10219_s7 + $0x8] sm:$0xff] }
 0x513   :  { %v8904_v5 = vpack.c.bf16 %v2427_v61, %v2425_v19  ;;  %v2436_v61 = vld [vmem:[%s10219_s7 + $0x60] sm:$0xff] }
 0x515   :  { %1456 = vperm.xlu1 %7866, %v606_v52   ;;  %10328 = vst [vmem:[#allocation23_spill] sm:$0xff] %v8904_v5  ;;  %7037 = vmatprep.subr.bf16.mxu1 %v8904_v5 }
 0x516   :  { %7873 = vset.pattern.permute.xlu0 %v8330_v8 }
 0x519   :  { %1462 = vperm.xlu1 %7866, %v610_v13  }
 0x51d   :  { %7868 = vset.pattern.permute.xlu1 %v10234_v59 }
 0x51e   :  { %1649 = vperm.xlu1 %7868, %v596_v51   ;;  %v2424_v51 = vld [vmem:[%s10219_s7] sm:$0xff] }
 0x522   :  { %1655 = vperm.xlu1 %7868, %v600_v62  }
 0x526   :  { %1658 = vperm.xlu1 %7868, %v602_v45  }
 0x52a   :  { %1664 = vperm.xlu1 %7868, %v606_v52   ;;  %v2160_v52 = vld [vmem:[#allocation9] sm:$0xff] }
 0x52b   :  { %v2174_v54 = vcombine.high %v2160_v52, %v2160_v52 }
 0x52d   :  { %6827 = vmatprep.subr.msk.mxu0 %vm2224_vm12, %v2174_v54 }
 0x52e   :  { %1670 = vperm.xlu1 %7868, %v610_v13   ;;  %6828 = vmatpush1.msk.msra.mxu0 %vm2224_vm12, %v2160_v52  ;;  %v2437_v13 = vld [vmem:[%s10219_s7 + $0x68] sm:$0xff] }
 0x52f   :  { %v8958_v19 = vpack.c.bf16 %v2439_v58, %v2437_v13 }
 0x531   :  { %10334 = vst [vmem:[#allocation29_spill] sm:$0xff] %v8958_v19 }
 0x532   :  { %7870 = vset.pattern.permute.xlu1 %v10235_v16 }
 0x533   :  { %1633 = vperm.xlu1 %7870, %v8676_v24   ;;  %v2426_v24 = vld [vmem:[%s10219_s7 + $0x10] sm:$0xff] }
 0x534   :  { %v8912_v62 = vpack.c.bf16 %v2426_v24, %v2424_v51  ;;  %v2438_v51 = vld [vmem:[%s10219_s7 + $0x70] sm:$0xff] }
 0x535   :  { %v8966_v24 = vpack.c.bf16 %v2438_v51, %v2436_v61 }
 0x536   :  { %10329 = vst [vmem:[#allocation24_spill] sm:$0xff] %v8912_v62  ;;  %7039 = vmatpush1.bf16.msra.mxu1 %v8912_v62 }
 0x537   :  { %7872 = vset.pattern.permute.xlu1 %v8330_v8  ;;  %v2429_v8 = vld [vmem:[%s10219_s7 + $0x28] sm:$0xff]  ;;  %10335 = vst [vmem:[#allocation30_spill] sm:$0xff] %v8966_v24 }
 0x538   :  { %v8922_v45 = vpack.c.bf16 %v2431_v55, %v2429_v8  ;;  %v1018_v8 = vpop.permute.xlu1 %1017  ;;  %v1021_v55 = vpop.permute.xlu0 %1020 }
 0x539   :  { %v8992_v5 = vrot.slane %v1021_v55, %v8587_v36 }
 0x53a   :  { %10330 = vst [vmem:[#allocation25_spill] sm:$0xff] %v8922_v45  ;;  %7041 = vmatprep.subr.bf16.mxu1 %v8922_v45 }
 0x53b   :  { %7043 = vmatpush1.bf16.msra.mxu1 %v8930_v12  ;;  %v8984_v12 = vrot.slane %v1018_v8, %v8587_v36 }
 0x53c   :  { %7045 = vmatprep.subr.bf16.mxu1 %v8940_v47  ;;  %v1024_v60 = vpop.permute.xlu1 %1023  ;;  %v1030_v48 = vpop.permute.xlu0 %1029 }
 0x53d   :  { %v8987_v45 = vrot.slane %v1024_v60, %v8587_v36  ;;  %v9007_v60 = vrot.slane %v1030_v48, %v8587_v36 }
 0x53f   :  { %7047 = vmatpush1.bf16.msra.mxu1 %v8949_v56  ;;  %10337 = vst [vmem:[#allocation32_spill] sm:$0xff] %v8987_v45  ;;  %10339 = vst [vmem:[#allocation34_spill] sm:$0xff] %v9007_v60 }
 0x540   :  { %7049 = vmatprep.subr.bf16.mxu1 %v8958_v19  ;;  %v1027_v52 = vpop.permute.xlu1 %1026  ;;  %v1036_v43 = vpop.permute.xlu0 %1035 }
 0x541   :  { %v8995_v32 = vrot.slane %v1027_v52, %v8587_v36  ;;  %v1136_v52 = vmul.f32 %v8984_v12, %v8766_v29 }
 0x543   :  { %7051 = vmatpush1.bf16.msra.mxu1 %v8966_v24  ;;  %v1142_v29 = vmul.f32 %v8995_v32, %v8774_v35  ;;  %v9048_v35 = vrot.slane %v1036_v43, %v8587_v36 }
 0x544   :  { %v1033_v49 = vpop.permute.xlu1 %1032  ;;  %v1234_v54 = vpop.permute.xlu0 %1233 }
 0x545   :  { %v8998_v50 = vrot.slane %v1033_v49, %v8587_v36  ;;  %v1140_v49 = vmul.f32 %v8987_v45, %v8770_v31 }
 0x546   :  { %2520 = vmatmul.mubr.f32.vlgmr.msra.gmra.mrb[2].mxu1 %v10241_v2 }
 0x547   :  { %2641 = vmatprep.mubr.f32.mxu1 %v10241_v2  ;;  %10338 = vst [vmem:[#allocation33_spill] sm:$0xff] %v8998_v50  ;;  %v1146_v31 = vmul.f32 %v8998_v50, %v8777_v41 }
 0x548   :  { %v1243_v13 = vpop.permute.xlu0 %1242 }
 0x549   :  { %v9004_v8 = vrot.slane %v1243_v13, %v8587_v36  ;;  %v1138_v13 = vmul.f32 %v8992_v5, %v8764_v15 }
 0x54b   :  { %v1350_v15 = vmul.f32 %v9004_v8, %v8820_v34 }
 0x54c   :  { %v1249_v61 = vpop.permute.xlu0 %1248 }
 0x54d   :  { %v9051_v41 = vrot.slane %v1249_v61, %v8587_v36 }
 0x572   :  { %v8972_v53 = vpop.permute.xlu1 %1038  ;;  %v8974_v1 = vpop.permute.xlu0 %1254 }
 0x577   :  { %v1237_v14 = vpop.permute.xlu1 %1236  ;;  %v1445_v16 = vpop.permute.xlu0 %1444 }
 0x578   :  { %v8981_v47 = vrot.slane %v1237_v14, %v8587_v36  ;;  %v9001_v14 = vrot.slane %v1234_v54, %v8587_v36  ;;  %v9019_v54 = vrot.slane %v1445_v16, %v8587_v36 }
 0x57a   :  { %10336 = vst [vmem:[#allocation31_spill] sm:$0xff] %v8981_v47  ;;  %v1346_v55 = vmul.f32 %v8981_v47, %v8831_v7  ;;  %v1344_v16 = vmul.f32 %v9001_v14, %v8818_v63  ;;  %v1554_v63 = vmul.f32 %v9019_v54, %v8844_v37 }
 0x57b   :  { %v1240_v58 = vpop.permute.xlu1 %1239  ;;  %v1454_v2 = vpop.permute.xlu0 %1453 }
 0x57c   :  { %v9012_v46 = vrot.slane %v1240_v58, %v8587_v36  ;;  %v9068_v37 = vrot.slane %v1454_v2, %v8587_v36 }
 0x57f   :  { %v1246_v51 = vpop.permute.xlu1 %1245  ;;  %v8978_v19 = vpop.permute.xlu0 %1459 }
 0x580   :  { %v9024_v48 = vrot.slane %v1246_v51, %v8587_v36  ;;  %v1362_v51 = vadd.f32 %v1346_v55, %v1138_v13  ;;  %v1360_v55 = vadd.f32 %v1344_v16, %v1136_v52  ;;  %v1366_v13 = vadd.f32 %v1350_v15, %v1142_v29 }
 0x582   :  { %10340 = vst [vmem:[#allocation35_spill] sm:$0xff] %v9024_v48 }
 0x583   :  { %v8976_v59 = vpop.permute.xlu1 %1251 }
 0x584   :  { %v1653_v42 = vpop.permute.xlu0 %1652 }
 0x585   :  { %v9027_v7 = vrot.slane %v1653_v42, %v8587_v36  ;;  %v1144_v42 = vmul.f32 %v9007_v60, %v8768_v30  ;;  %v1352_v30 = vmul.f32 %v9024_v48, %v8838_v26  ;;  %v1570_v26 = vadd.f32 %v1554_v63, %v1362_v51 }
 0x588   :  { %v1442_v4 = vpop.permute.xlu1 %1441  ;;  %v1662_v34 = vpop.permute.xlu0 %1661 }
 0x589   :  { %v9045_v45 = vrot.slane %v1442_v4, %v8587_v36  ;;  %v1762_v4 = vmul.f32 %v9027_v7, %v8874_v23  ;;  %v9074_v48 = vrot.slane %v1662_v34, %v8587_v36  ;;  %v1354_v23 = vmul.f32 %v9051_v41, %v8822_v0 }
 0x58a   :  { %v9095_v0 = vrot.slane %v8972_v53, %v8587_v36 }
 0x58b   :  { %v1778_v29 = vadd.f32 %v1762_v4, %v1570_v26  ;;  %v1370_v63 = vadd.f32 %v1354_v23, %v1146_v31  ;;  %v9133_v23 = vrot.slane %v8978_v19, %v8587_v36 }
 0x58c   :  { %v1448_v28 = vpop.permute.xlu1 %1447 }
 0x58d   :  { %v9030_v58 = vrot.slane %v1448_v28, %v8587_v36  ;;  %v1348_v28 = vmul.f32 %v9012_v46, %v8834_v25  ;;  %v6813_v34 = vmul.f32 -1.442695, %v1778_v29  ;;  %v1564_v19 = vmul.f32 %v9133_v23, %v8870_v18 }
 0x58f   :  { %v1556_v25 = vmul.f32 %v9030_v58, %v8848_v39  ;;  %v1364_v60 = vadd.f32 %v1348_v28, %v1140_v49  ;;  %v1552_v39 = vmul.f32 %v9045_v45, %v8850_v40  ;;  %v1368_v49 = vadd.f32 %v1352_v30, %v1144_v42  ;;  %v1668_v30 = vpop.permute.xlu0 %1667 }
 0x590   :  { %v1451_v24 = vpop.permute.xlu1 %1450  ;;  %v9091_v40 = vrot.slane %v8974_v1, %v8587_v36  ;;  %7914 = vpow2.f32 %v6813_v34 }
 0x591   :  { %v9056_v50 = vrot.slane %v1451_v24, %v8587_v36  ;;  %v1572_v16 = vadd.f32 %v1556_v25, %v1364_v60  ;;  %v1568_v60 = vadd.f32 %v1552_v39, %v1360_v55 }
 0x594   :  { %v1457_v56 = vpop.permute.xlu1 %1456 }
 0x595   :  { %v9083_v2 = vrot.slane %v1457_v56, %v8587_v36  ;;  %v9104_v56 = vrot.slane %v8976_v59, %v8587_v36 }
 0x597   :  { %v1562_v53 = vmul.f32 %v9083_v2, %v8857_v44 }
 0x598   :  { %v8989_v62 = vpop.permute.xlu1 %1462 }
 0x599   :  { %v9112_v28 = vrot.slane %v8989_v62, %v8587_v36  ;;  %v1356_v62 = vmul.f32 %v9104_v56, %v8842_v21 }
 0x59b   :  { %v1566_v26 = vmul.f32 %v9112_v28, %v8866_v3 }
 0x59d   :  { %v1650_v47 = vpop.permute.xlu1 %1649 }
 0x59e   :  { %v9065_v43 = vrot.slane %v1650_v47, %v8587_v36  ;;  %v1558_v47 = vmul.f32 %v9056_v50, %v8854_v6  ;;  %v1560_v6 = vmul.f32 %v9068_v37, %v8852_v57 }
 0x5a0   :  { %v1760_v15 = vmul.f32 %v9065_v43, %v8868_v17  ;;  %v1768_v17 = vmul.f32 %v9074_v48, %v8880_v11  ;;  %v1574_v42 = vadd.f32 %v1558_v47, %v1366_v13  ;;  %v1576_v59 = vadd.f32 %v1560_v6, %v1368_v49 }
 0x5a1   :  { %v1656_v61 = vpop.permute.xlu1 %1655  ;;  %v1358_v11 = vmul.f32 %v9091_v40, %v8846_v38  ;;  %v1578_v13 = vadd.f32 %v1562_v53, %v1370_v63  ;;  %v9142_v6 = vrot.slane %v1668_v30, %v8587_v36  ;;  %v7915_v63 = vpop.eup %7914 }
 0x5a2   :  { %v9071_v24 = vrot.slane %v1656_v61, %v8587_v36  ;;  %v1776_v4 = vadd.f32 %v1760_v15, %v1568_v60  ;;  %v1150_v61 = vmul.f32 %v9095_v0, %v8825_v20  ;;  %v1148_v20 = vmul.f32 %v9048_v35, %v8772_v33 }
 0x5a4   :  { %v1764_v52 = vmul.f32 %v9071_v24, %v8878_v9  ;;  %v6811_v47 = vmul.f32 -1.442695, %v1776_v4  ;;  %v1372_v3 = vadd.f32 %v1356_v62, %v1148_v20 }
 0x5a5   :  { %v1659_v51 = vpop.permute.xlu1 %1658 }
 0x5a6   :  { %v9100_v9 = vrot.slane %v1659_v51, %v8587_v36  ;;  %v1780_v1 = vadd.f32 %v1764_v52, %v1572_v16  ;;  %v1374_v52 = vadd.f32 %v1358_v11, %v1150_v61  ;;  %v1642_v16 = vpop.permute.xlu0 %1641 }
 0x5a8   :  { %v1766_v57 = vmul.f32 %v9100_v9, %v8872_v10  ;;  %v1784_v10 = vadd.f32 %v1768_v17, %v1576_v59  ;;  %v6815_v31 = vmul.f32 -1.442695, %v1780_v1  ;;  %v1582_v15 = vadd.f32 %v1566_v26, %v1374_v52 }
 0x5a9   :  { %v1665_v25 = vpop.permute.xlu1 %1664  ;;  %v1580_v1 = vadd.f32 %v1564_v19, %v1372_v3 }
 0x5aa   :  { %v1782_v44 = vadd.f32 %v1766_v57, %v1574_v42  ;;  %v9121_v55 = vrot.slane %v1665_v25, %v8587_v36 }
 0x5ac   :  { %v6817_v39 = vmul.f32 -1.442695, %v1782_v44  ;;  %v1770_v38 = vmul.f32 %v9121_v55, %v8876_v22  ;;  %v6819_v22 = vmul.f32 -1.442695, %v1784_v10 }
 0x5ad   :  { %v1671_v21 = vpop.permute.xlu1 %1670 }
 0x5ae   :  { %7916 = vpow2.f32 %v6817_v39  ;;  %v1786_v49 = vadd.f32 %v1770_v38, %v1578_v13  ;;  %v9136_v29 = vrot.slane %v1671_v21, %v8587_v36  ;;  %v1842_v36 = vadd.f32 1.0, %v7915_v63 }
 0x5af   :  { %7918 = vpow2.f32 %v6815_v31 }
 0x5b0   :  { %v6821_v51 = vmul.f32 -1.442695, %v1786_v49  ;;  %v1774_v33 = vmul.f32 %v9136_v29, %v1642_v16  ;;  %7920 = vpow2.f32 %v6811_v47 }
 0x5b2   :  { %v1790_v17 = vadd.f32 %v1774_v33, %v1582_v15  ;;  %v1634_v60 = vpop.permute.xlu1 %1633  ;;  %7922 = vpow2.f32 %v6821_v51 }
 0x5b3   :  { %v1772_v42 = vmul.f32 %v9142_v6, %v1634_v60  ;;  %7924 = vpow2.f32 %v6819_v22 }
 0x5b4   :  { %v6825_v53 = vmul.f32 -1.442695, %v1790_v17 }
 0x5b5   :  { %v1788_v57 = vadd.f32 %v1772_v42, %v1580_v1 }
 0x5b6   :  { %7926 = vpow2.f32 %v6825_v53 }
 0x5b7   :  { %v6823_v34 = vmul.f32 -1.442695, %v1788_v57  ;;  %v10341_v57 = vld [vmem:[#allocation22_spill] sm:$0xff] }
 0x5b8   :  { %v7917_v59 = vpop.eup %7916 }
 0x5b9   :  { %v7919_v4 = vpop.eup %7918  ;;  %7928 = vpow2.f32 %v6823_v34  ;;  %v1846_v18 = vadd.f32 1.0, %v7917_v59 }
 0x5ba   :  { %v7921_v25 = vpop.eup %7920  ;;  %v1844_v30 = vadd.f32 1.0, %v7919_v4 }
 0x5bb   :  { %v1840_v44 = vadd.f32 1.0, %v7921_v25  ;;  %7930 = vrcp.f32 %v1846_v18 }
 0x5bc   :  { %v7923_v11 = vpop.eup %7922  ;;  %7932 = vrcp.f32 %v1842_v36 }
 0x5bd   :  { %v7925_v61 = vpop.eup %7924  ;;  %7934 = vrcp.f32 %v1844_v30  ;;  %v1850_v10 = vadd.f32 1.0, %v7923_v11  ;;  %v10342_v11 = vmov 0.0  }
 0x5be   :  { %v1848_v31 = vadd.f32 1.0, %v7925_v61  ;;  %7936 = vrcp.f32 %v1840_v44 }
 0x5c0   :  { %v7927_v62 = vpop.eup %7926 }
 0x5c1   :  { %v1854_v13 = vadd.f32 1.0, %v7927_v62 }
 0x5c3   :  { %v7929_v26 = vpop.eup %7928  ;;  %7938 = vrcp.f32 %v1854_v13 }
 0x5c4   :  { %7940 = vrcp.f32 %v1850_v10  ;;  %v1852_v39 = vadd.f32 1.0, %v7929_v26 }
 0x5c5   :  { %7942 = vrcp.f32 %v1848_v31  ;;  %v7931_v38 = vpop.eup %7930 }
 0x5c6   :  { %7944 = vrcp.f32 %v1852_v39  ;;  %v7933_v20 = vpop.eup %7932 }
 0x5c7   :  { %v7935_v47 = vpop.eup %7934  ;;  %v1904_v21 = vcombine.low %v7933_v20, %v7931_v38  ;;  %v1905_v36 = vcombine.high %v7933_v20, %v7931_v38 }
 0x5c8   :  { %v7937_v52 = vpop.eup %7936 }
 0x5c9   :  { %v1888_v3 = vcombine.low %v7937_v52, %v7935_v47  ;;  %v1912_v15 = vrot.slane %v1904_v21, %v8639_v27  ;;  %v1889_v62 = vcombine.high %v7937_v52, %v7935_v47  ;;  %v1919_v13 = vrot.slane %v1905_v36, %v8639_v27 }
 0x5cb   :  { %v1896_v17 = vrot.slane %v1888_v3, %v8639_v27  ;;  %v1903_v38 = vrot.slane %v1889_v62, %v8639_v27 }
 0x5cd   :  { %v7939_v49 = vpop.eup %7938  ;;  %v1952_v42 = vcombine.low %v1896_v17, %v1912_v15  ;;  %v1953_v25 = vcombine.high %v1896_v17, %v1912_v15  ;;  %v1968_v21 = vcombine.low %v1903_v38, %v1919_v13 }
 0x5ce   :  { %v7941_v16 = vpop.eup %7940 }
 0x5cf   :  { %v7943_v22 = vpop.eup %7942  ;;  %v1936_v51 = vcombine.low %v7941_v16, %v7939_v49  ;;  %v1960_v63 = vrot.slane %v1952_v42, %v10341_v57  ;;  %v1937_v30 = vcombine.high %v7941_v16, %v7939_v49  ;;  %v1967_v31 = vrot.slane %v1953_v25, %v10341_v57  ;;  %v2440_v42 = vld [vmem:[%s10220_s8] sm:$0x3]  ;;  %s8344_s8 = smov 96  }
 0x5d0   :  { %v7945_v33 = vpop.eup %7944  ;;  %v1976_v49 = vrot.slane %v1968_v21, %v10341_v57 }
 0x5d1   :  { %v1920_v19 = vcombine.low %v7943_v22, %v7945_v33  ;;  %v1944_v1 = vrot.slane %v1936_v51, %v8639_v27  ;;  %v1921_v18 = vcombine.high %v7943_v22, %v7945_v33  ;;  %v1951_v26 = vrot.slane %v1937_v30, %v8639_v27 }
 0x5d2   :  { %v1969_v22 = vcombine.high %v1903_v38, %v1919_v13 }
 0x5d3   :  { %v1928_v60 = vrot.slane %v1920_v19, %v8639_v27  ;;  %v1935_v10 = vrot.slane %v1921_v18, %v8639_v27 }
 0x5d4   :  { %v1983_v33 = vrot.slane %v1969_v22, %v10341_v57 }
 0x5d5   :  { %v1984_v53 = vcombine.low %v1928_v60, %v1944_v1  ;;  %v1985_v4 = vcombine.high %v1928_v60, %v1944_v1  ;;  %v2000_v20 = vcombine.low %v1935_v10, %v1951_v26  ;;  %v2001_v16 = vcombine.high %v1935_v10, %v1951_v26 }
 0x5d7   :  { %v1992_v34 = vrot.slane %v1984_v53, %v10341_v57  ;;  %v1999_v44 = vrot.slane %v1985_v4, %v10341_v57  ;;  %v2008_v52 = vrot.slane %v2000_v20, %v10341_v57  ;;  %v2015_v51 = vrot.slane %v2001_v16, %v10341_v57  ;;  %v2161_v53 = vld [vmem:[%s10218_s6] sm:$0x3]  ;;  %v10346_v4 = vld [vmem:[#allocation20_spill] sm:$0xff]  ;;  %s8343_s6 = smov 64  }
 0x5d8   :  { %v9190_v18 = vrot.slane %v2161_v53, %v10346_v4 }
 0x5d9   :  { %v2016_v59 = vcombine.low %v1960_v63, %v1992_v34  ;;  %v2017_v61 = vcombine.high %v1960_v63, %v1992_v34  ;;  %v2018_v39 = vcombine.low %v1967_v31, %v1999_v44  ;;  %v2019_v47 = vcombine.high %v1967_v31, %v1999_v44  ;;  %v10343_v63 = vld [vmem:[#allocation19_spill] sm:$0xff] }
 0x5da   :  { %v2020_v3 = vcombine.low %v1976_v49, %v2008_v52  ;;  %v2021_v15 = vcombine.high %v1976_v49, %v2008_v52  ;;  %v2022_v19 = vcombine.low %v1983_v33, %v2015_v51  ;;  %v2023_v17 = vcombine.high %v1983_v33, %v2015_v51  ;;  %10347 = vst [vmem:[#allocation37_spill] sm:$0xff] %v9190_v18 }
 0x5db   :  { %6829 = vmatmul.mubr.msk.f32.vlgmr.msra.gmra.mrb[2].mxu0 %vm2175_vm13, %v2016_v59  ;;  %v9184_v34 = vrot.slane %v2440_v42, %v10343_v63  ;;  %v9187_v59 = vrot.slane %v2161_v53, %v10343_v63 }
 0x5dc   :  { %2299 = vmatprep.mubr.f32.mxu0 %v10342_v11 }
 0x5dd   :  { %10344 = vst [vmem:[#allocation19_spill] sm:$0xff] %v9184_v34  ;;  %10345 = vst [vmem:[#allocation36_spill] sm:$0xff] %v9187_v59 }
 0x5df   :  { %6830 = vmatmul.mubr.msk.f32.gmra.mrb[4].mxu0 %vm2175_vm13, %v2017_v61 }
 0x5e0   :  { %2305 = vmatprep.mubr.f32.mxu0 %v10342_v11 }
 0x5e3   :  { %6831 = vmatmul.mubr.msk.f32.gmra.mrb[6].mxu0 %vm2175_vm13, %v2018_v39 }
 0x5e4   :  { %2311 = vmatprep.mubr.f32.mxu0 %v10342_v11 }
 0x5e7   :  { %6832 = vmatmul.mubr.msk.f32.gmra.mrb[8].mxu0 %vm2175_vm13, %v2019_v47 }
 0x5e8   :  { %2317 = vmatprep.mubr.f32.mxu0 %v10342_v11 }
 0x5eb   :  { %6833 = vmatmul.mubr.msk.f32.gmra.mrb[10].mxu0 %vm2175_vm13, %v2020_v3 }
 0x5ec   :  { %2323 = vmatprep.mubr.f32.mxu0 %v10342_v11 }
 0x5ef   :  { %6834 = vmatmul.mubr.msk.f32.gmra.mrb[12].mxu0 %vm2175_vm13, %v2021_v15 }
 0x5f0   :  { %2329 = vmatprep.mubr.f32.mxu0 %v10342_v11 }
 0x5f3   :  { %6835 = vmatmul.mubr.msk.f32.gmra.mrb[14].mxu0 %vm2175_vm13, %v2022_v19 }
 0x5f4   :  { %2335 = vmatprep.mubr.f32.mxu0 %v10342_v11 }
 0x5f7   :  { %6836 = vmatmul.mubr.msk.f32.gmra.mrb[16].mxu0 %vm2175_vm13, %v2023_v17 }
 0x5f8   :  { %2341 = vmatprep.mubr.f32.mxu0 %v10342_v11 }
 0x619   :  { %v2521_v60 = vpop.f32.mrb[2].mxu1 }
 0x61a   :  { %v2523_v1 = vpop.f32.mrb[3].mxu1  ;;  %v2522_v25 = vadd.f32 %v2521_v60, %v9184_v34 }
 0x6ae   :  { %v2295_v36 = vpop.f32.mrb[2].mxu0 }
 0x6af   :  { %v2296_v30 = vadd.f32 %v2295_v36, %v9187_v59  ;;  %v2297_v61 = vpop.f32.mrb[3].mxu0 }
 0x6b0   :  { %v2298_v44 = vadd.f32 %v2297_v61, %v9190_v18  ;;  %v9214_v61 = vrot.slane %v2440_v42, %v10346_v4 }
 0x6b1   :  { %v2526_v62 = vadd.f32 %v2522_v25, %v2296_v30 }
 0x6b2   :  { %2391 = vst.msk [vmem:[#allocation2 + $0x8] sm:$0xff] %vm148_vm1, %v2298_v44  ;;  %v2301_v10 = vpop.f32.mrb[4].mxu0  ;;  %10349 = vst [vmem:[#allocation39_spill] sm:$0xff] %v9214_v61 }
 0x6b3   :  { %v9197_v31 = vadd.f32 %v2301_v10, %v9187_v59  ;;  %v2303_v13 = vpop.f32.mrb[5].mxu0  ;;  %v6845_v26 = vmul.f32 -1.442695, %v2526_v62 }
 0x6b4   :  { %v2304_v39 = vadd.f32 %v2303_v13, %v9190_v18 }
 0x6b5   :  { %10348 = vst [vmem:[#allocation38_spill] sm:$0xff] %v9197_v31  ;;  %7946 = vpow2.f32 %v6845_v26  ;;  %v2524_v26 = vadd.f32 %v2523_v1, %v9214_v61  ;;  %v10350_v1 = vld [vmem:[#allocation18_spill] sm:$0xff]  ;;  %v10372_v31 = vld [vmem:[#allocation27_spill] sm:$0xff] }
 0x6b6   :  { %2393 = vst.msk [vmem:[#allocation2 + $0x18] sm:$0xff] %vm148_vm1, %v2304_v39  ;;  %v2307_v38 = vpop.f32.mrb[6].mxu0 }
 0x6b7   :  { %v2308_v20 = vadd.f32 %v2307_v38, %v9187_v59  ;;  %v2309_v21 = vpop.f32.mrb[7].mxu0 }
 0x6b8   :  { %v2310_v47 = vadd.f32 %v2309_v21, %v9190_v18 }
 0x6b9   :  { %2394 = vst [vmem:[#allocation2 + $0x20] sm:$0xff] %v2308_v20 }
 0x6ba   :  { %2395 = vst.msk [vmem:[#allocation2 + $0x28] sm:$0xff] %vm148_vm1, %v2310_v47  ;;  %v2313_v52 = vpop.f32.mrb[8].mxu0  ;;  %v2423_v47 = vld [vmem:[#allocation2 + $0x8] sm:$0xff] }
 0x6bb   :  { %v2314_v49 = vadd.f32 %v2313_v52, %v9187_v59  ;;  %v2315_v3 = vpop.f32.mrb[9].mxu0 }
 0x6bc   :  { %v2316_v16 = vadd.f32 %v2315_v3, %v9190_v18  ;;  %v2545_v3 = vld [vmem:[#allocation11 + $0x8] sm:$0xff] }
 0x6bd   :  { %2396 = vst [vmem:[#allocation2 + $0x30] sm:$0xff] %v2314_v49 }
 0x6be   :  { %2397 = vst.msk [vmem:[#allocation2 + $0x38] sm:$0xff] %vm148_vm1, %v2316_v16  ;;  %v2319_v22 = vpop.f32.mrb[10].mxu0  ;;  %v2547_v16 = vld [vmem:[#allocation11 + $0x18] sm:$0xff] }
 0x6bf   :  { %v7947_v15 = vpop.eup %7946  ;;  %v2320_v51 = vadd.f32 %v2319_v22, %v9187_v59  ;;  %v2321_v33 = vpop.f32.mrb[11].mxu0  ;;  %v2544_v22 = vld [vmem:[#allocation11] sm:$0xff] }
 0x6c0   :  { %v2530_v19 = vadd.f32 1.0, %v7947_v15  ;;  %v2322_v17 = vadd.f32 %v2321_v33, %v9190_v18  ;;  %v9229_v15 = vpack.c.bf16 %v2547_v16, %v2545_v3  ;;  %v2549_v33 = vld [vmem:[#allocation11 + $0x28] sm:$0xff] }
 0x6c1   :  { %2398 = vst [vmem:[#allocation2 + $0x40] sm:$0xff] %v2320_v51  ;;  %v2546_v51 = vld [vmem:[#allocation11 + $0x10] sm:$0xff] }
 0x6c2   :  { %7948 = vrcp.f32 %v2530_v19  ;;  %2399 = vst.msk [vmem:[#allocation2 + $0x48] sm:$0xff] %vm148_vm1, %v2322_v17  ;;  %v2325_v60 = vpop.f32.mrb[12].mxu0  ;;  %10351 = vst [vmem:[#allocation18_spill] sm:$0xff] %v9229_v15  ;;  %v2551_v19 = vld [vmem:[#allocation11 + $0x38] sm:$0xff]  ;;  %v9231_v17 = vpack.c.bf16 %v2546_v51, %v2544_v22  ;;  %7053 = vmatprep.subr.bf16.mxu1 %v9229_v15  ;;  %7101 = vmatprep.subr.bf16.mxu0 %v9229_v15  ;;  %v10360_v22 = vld [vmem:[#allocation23_spill] sm:$0xff] }
 0x6c3   :  { %v2326_v53 = vadd.f32 %v2325_v60, %v9187_v59  ;;  %v2327_v25 = vpop.f32.mrb[13].mxu0  ;;  %v9233_v60 = vpack.c.bf16 %v2551_v19, %v2549_v33 }
 0x6c4   :  { %v2328_v36 = vadd.f32 %v2327_v25, %v9190_v18  ;;  %10352 = vst [vmem:[#allocation40_spill] sm:$0xff] %v9231_v17  ;;  %v2550_v25 = vld [vmem:[#allocation11 + $0x30] sm:$0xff]  ;;  %7055 = vmatpush1.bf16.msra.mxu1 %v9231_v17  ;;  %7103 = vmatpush1.bf16.msra.mxu0 %v9231_v17 }
 0x6c5   :  { %2400 = vst [vmem:[#allocation2 + $0x50] sm:$0xff] %v2326_v53  ;;  %10353 = vst [vmem:[#allocation41_spill] sm:$0xff] %v9233_v60  ;;  %v2548_v53 = vld [vmem:[#allocation11 + $0x20] sm:$0xff]  ;;  %7057 = vmatprep.subr.bf16.mxu1 %v9233_v60  ;;  %7105 = vmatprep.subr.bf16.mxu0 %v9233_v60 }
 0x6c6   :  { %2401 = vst.msk [vmem:[#allocation2 + $0x58] sm:$0xff] %vm148_vm1, %v2328_v36  ;;  %v2331_v30 = vpop.f32.mrb[14].mxu0  ;;  %v2553_v36 = vld [vmem:[#allocation11 + $0x48] sm:$0xff] }
 0x6c7   :  { %v2332_v44 = vadd.f32 %v2331_v30, %v9187_v59  ;;  %v2333_v62 = vpop.f32.mrb[15].mxu0  ;;  %v2555_v30 = vld [vmem:[#allocation11 + $0x58] sm:$0xff] }
 0x6c8   :  { %v2334_v10 = vadd.f32 %v2333_v62, %v9190_v18  ;;  %v9243_v62 = vpack.c.bf16 %v2555_v30, %v2553_v36  ;;  %v2650_v30 = vld [vmem:[#allocation12 + $0x10] sm:$0xff] }
 0x6c9   :  { %2402 = vst [vmem:[#allocation2 + $0x60] sm:$0xff] %v2332_v44  ;;  %v9238_v44 = vpack.c.bf16 %v2550_v25, %v2548_v53 }
 0x6ca   :  { %2403 = vst.msk [vmem:[#allocation2 + $0x68] sm:$0xff] %vm148_vm1, %v2334_v10  ;;  %v2337_v13 = vpop.f32.mrb[16].mxu0  ;;  %10355 = vst [vmem:[#allocation43_spill] sm:$0xff] %v9243_v62  ;;  %v2552_v10 = vld [vmem:[#allocation11 + $0x40] sm:$0xff] }
 0x6cb   :  { %v2338_v39 = vadd.f32 %v2337_v13, %v9187_v59  ;;  %v2339_v38 = vpop.f32.mrb[17].mxu0  ;;  %10354 = vst [vmem:[#allocation42_spill] sm:$0xff] %v9238_v44  ;;  %v2554_v13 = vld [vmem:[#allocation11 + $0x50] sm:$0xff]  ;;  %7059 = vmatpush1.bf16.msra.mxu1 %v9238_v44  ;;  %7107 = vmatpush1.bf16.msra.mxu0 %v9238_v44 }
 0x6cc   :  { %v9221_v20 = vpop.eup %7948  ;;  %v2340_v21 = vadd.f32 %v2339_v38, %v9190_v18  ;;  %v9247_v38 = vpack.c.bf16 %v2554_v13, %v2552_v10  ;;  %7061 = vmatprep.subr.bf16.mxu1 %v9243_v62  ;;  %7109 = vmatprep.subr.bf16.mxu0 %v9243_v62  ;;  %v2653_v10 = vld [vmem:[#allocation12 + $0x28] sm:$0xff]  ;;  %v2655_v13 = vld [vmem:[#allocation12 + $0x38] sm:$0xff] }
 0x6cd   :  { %v2533_v42 = vmul.f32 %v9221_v20, %v2524_v26  ;;  %2404 = vst [vmem:[#allocation2 + $0x70] sm:$0xff] %v2338_v39  ;;  %v2557_v26 = vld [vmem:[#allocation11 + $0x68] sm:$0xff]  ;;  %v2559_v39 = vld [vmem:[#allocation11 + $0x78] sm:$0xff]  ;;  %v2536_v51 = vsub.f32 1.0, %v9221_v20  ;;  %v2542_v19 = vmul.f32 0.0, %v9221_v20  ;;  %v2648_v20 = vld [vmem:[#allocation12] sm:$0xff] }
 0x6ce   :  { %2405 = vst.msk [vmem:[#allocation2 + $0x78] sm:$0xff] %vm148_vm1, %v2340_v21  ;;  %10356 = vst [vmem:[#allocation44_spill] sm:$0xff] %v9247_v38  ;;  %v9252_v21 = vpack.c.bf16 %v2559_v39, %v2557_v26  ;;  %v9277_v26 = vpack.c.bf16 %v2650_v30, %v2648_v20  ;;  %v2658_v20 = vld [vmem:[#allocation12 + $0x50] sm:$0xff] }
 0x6cf   :  { %v2534_v52 = vadd.f32 %v2533_v42, %v2423_v47  ;;  %v2556_v42 = vld [vmem:[#allocation11 + $0x60] sm:$0xff]  ;;  %v2558_v47 = vld [vmem:[#allocation11 + $0x70] sm:$0xff]  ;;  %7063 = vmatpush1.bf16.msra.mxu1 %v9247_v38  ;;  %7111 = vmatpush1.bf16.msra.mxu0 %v9247_v38 }
 0x6d0   :  { %10357 = vst [vmem:[#allocation45_spill] sm:$0xff] %v9252_v21  ;;  %v9256_v3 = vpack.c.bf16 %v2558_v47, %v2556_v42  ;;  %7065 = vmatprep.subr.bf16.mxu1 %v9252_v21  ;;  %7113 = vmatprep.subr.bf16.mxu0 %v9252_v21  ;;  %10362 = vst [vmem:[#allocation49_spill] sm:$0xff] %v9277_v26  ;;  %v9279_v42 = vpack.c.bf16 %v2655_v13, %v2653_v10  ;;  %v2652_v47 = vld [vmem:[#allocation12 + $0x20] sm:$0xff]  ;;  %v2661_v10 = vld [vmem:[#allocation12 + $0x68] sm:$0xff] }
 0x6d1   :  { %7950 = vtanh.f32 %v2534_v52  ;;  %v2649_v52 = vld [vmem:[#allocation12 + $0x8] sm:$0xff]  ;;  %v2663_v13 = vld [vmem:[#allocation12 + $0x78] sm:$0xff]  ;;  %v2662_v38 = vld [vmem:[#allocation12 + $0x70] sm:$0xff] }
 0x6d2   :  { %10358 = vst [vmem:[#allocation46_spill] sm:$0xff] %v9256_v3  ;;  %10363 = vst [vmem:[#allocation50_spill] sm:$0xff] %v9279_v42 }
 0x6d3   :  { %7067 = vmatpush1.bf16.msra.mxu1 %v9256_v3  ;;  %7115 = vmatpush1.bf16.msra.mxu0 %v9256_v3 }
 0x6d4   :  { %7133 = vmatprep.subr.bf16.mxu0 %v10360_v22 }
 0x6db   :  { %v7951_v49 = vpop.eup %7950 }
 0x6dc   :  { %2538 = vrot.lane.b32.xlu1 %v7951_v49, %s8343_s6  ;;  %v2651_v49 = vld [vmem:[#allocation12 + $0x18] sm:$0xff] }
 0x6dd   :  { %v9260_v16 = vpack.c.bf16 %v2651_v49, %v2649_v52  ;;  %v2654_v52 = vld [vmem:[#allocation12 + $0x30] sm:$0xff] }
 0x6df   :  { %10359 = vst [vmem:[#allocation47_spill] sm:$0xff] %v9260_v16  ;;  %7069 = vmatprep.subr.bf16.mxu1 %v9260_v16 }
 0x6e0   :  { %632 = vrot.lane.b32.xlu1 %v10350_v1, %s8344_s8 }
 0x6e4   :  { %638 = vrot.lane.b32.xlu1 %v10350_v1, %s8345_s26 }
 0x6e8   :  { %644 = vrot.lane.b32.xlu1 %v10350_v1, %s8346_s28 }
 0x6ec   :  { %650 = vrot.lane.b32.xlu1 %v10350_v1, %s8347_s3 }
 0x74e   :  { %v2539_v33 = vpop.permute.xlu1 %2538 }
 0x74f   :  { %v2541_v53 = vmul.f32 %v2539_v33, %v2536_v51  ;;  %v2657_v51 = vld [vmem:[#allocation12 + $0x48] sm:$0xff]  ;;  %v2659_v33 = vld [vmem:[#allocation12 + $0x58] sm:$0xff] }
 0x751   :  { %v9269_v25 = vadd.f32 %v2542_v19, %v2541_v53  ;;  %v9290_v19 = vpack.c.bf16 %v2659_v33, %v2657_v51  ;;  %v2656_v53 = vld [vmem:[#allocation12 + $0x40] sm:$0xff] }
 0x752   :  { %v633_v36 = vpop.permute.xlu1 %632  ;;  %v9293_v21 = vpack.c.bf16 %v2658_v20, %v2656_v53 }
 0x753   :  { %10361 = vst [vmem:[#allocation48_spill] sm:$0xff] %v9269_v25  ;;  %2573 = vrot.lane.b32.xlu0 %v9269_v25, %s8343_s6  ;;  %10365 = vst [vmem:[#allocation52_spill] sm:$0xff] %v9290_v19 }
 0x754   :  { %10366 = vst [vmem:[#allocation53_spill] sm:$0xff] %v9293_v21 }
 0x756   :  { %v639_v39 = vpop.permute.xlu1 %638 }
 0x757   :  { %635 = vrot.lane.b32.xlu0 %v10350_v1, %s8348_s20  ;;  %v792_v17 = vcombine.low %v633_v36, %v639_v39  ;;  %v793_v59 = vcombine.high %v633_v36, %v639_v39 }
 0x759   :  { %v807_v39 = vrot.slane %v793_v59, %v8639_v27 }
 0x75a   :  { %v645_v3 = vpop.permute.xlu1 %644 }
 0x75b   :  { %641 = vrot.lane.b32.xlu0 %v10350_v1, %s8349_s25 }
 0x75e   :  { %v651_v33 = vpop.permute.xlu1 %650 }
 0x75f   :  { %647 = vrot.lane.b32.xlu0 %v10350_v1, %s8350_s0  ;;  %v824_v18 = vcombine.low %v645_v3, %v651_v33  ;;  %v825_v53 = vcombine.high %v645_v3, %v651_v33  ;;  %v10369_v3 = vld [vmem:[#allocation24_spill] sm:$0xff] }
 0x761   :  { %v832_v61 = vrot.slane %v824_v18, %v8639_v27  ;;  %v839_v4 = vrot.slane %v825_v53, %v8639_v27 }
 0x763   :  { %653 = vrot.lane.b32.xlu0 %v10350_v1, %s8351_s18  ;;  %v9286_v1 = vpack.c.bf16 %v2654_v52, %v2652_v47  ;;  %v9296_v47 = vpack.c.bf16 %v2663_v13, %v2661_v10  ;;  %v2660_v52 = vld [vmem:[#allocation12 + $0x60] sm:$0xff] }
 0x764   :  { %v9299_v51 = vpack.c.bf16 %v2662_v38, %v2660_v52  ;;  %v800_v38 = vrot.slane %v792_v17, %v8639_v27  ;;  %v10370_v17 = vld [vmem:[#allocation25_spill] sm:$0xff] }
 0x765   :  { %10364 = vst [vmem:[#allocation51_spill] sm:$0xff] %v9286_v1  ;;  %10367 = vst [vmem:[#allocation54_spill] sm:$0xff] %v9296_v47 }
 0x766   :  { %10368 = vst [vmem:[#allocation55_spill] sm:$0xff] %v9299_v51 }
 0x7c5   :  { %v9281_v49 = vpop.permute.xlu0 %2573 }
 0x7c6   :  { %6846 = vmatmul.mubr.msk.f32.vlgmr.msra.gmra.mrb[4].mxu1 %vm148_vm1, %v9281_v49 }
 0x7c7   :  { %7071 = vmatpush1.bf16.msra.mxu1 %v9277_v26  ;;  %2740 = vmatprep.mubr.f32.mxu1 %v10342_v11 }
 0x7c8   :  { %7073 = vmatprep.subr.bf16.mxu1 %v9279_v42 }
 0x7c9   :  { %v636_v30 = vpop.permute.xlu0 %635 }
 0x7cb   :  { %7075 = vmatpush1.bf16.msra.mxu1 %v9286_v1 }
 0x7cc   :  { %7077 = vmatprep.subr.bf16.mxu1 %v9290_v19 }
 0x7cd   :  { %v642_v62 = vpop.permute.xlu0 %641 }
 0x7ce   :  { %v808_v44 = vcombine.low %v636_v30, %v642_v62  ;;  %v809_v20 = vcombine.high %v636_v30, %v642_v62 }
 0x7cf   :  { %7079 = vmatpush1.bf16.msra.mxu1 %v9293_v21 }
 0x7d0   :  { %7081 = vmatprep.subr.bf16.mxu1 %v9296_v47  ;;  %v816_v10 = vrot.slane %v808_v44, %v8639_v27  ;;  %v823_v44 = vrot.slane %v809_v20, %v8639_v27 }
 0x7d1   :  { %v648_v60 = vpop.permute.xlu0 %647 }
 0x7d2   :  { %v856_v62 = vcombine.low %v800_v38, %v816_v10  ;;  %v857_v53 = vcombine.high %v800_v38, %v816_v10  ;;  %v10374_v38 = vld [vmem:[#allocation29_spill] sm:$0xff] }
 0x7d3   :  { %7083 = vmatpush1.bf16.msra.mxu1 %v9299_v51 }
 0x7d4   :  { %7085 = vmatprep.subr.bf16.mxu1 %v10360_v22  ;;  %v864_v22 = vrot.slane %v856_v62, %v10341_v57 }
 0x7d5   :  { %v654_v13 = vpop.permute.xlu0 %653 }
 0x7d6   :  { %2741 = vmatmul.mubr.f32.vlgmr.msra.gmra.mrb[6].mxu1 %v10342_v11  ;;  %v840_v52 = vcombine.low %v648_v60, %v654_v13  ;;  %v841_v25 = vcombine.high %v648_v60, %v654_v13  ;;  %v10371_v13 = vld [vmem:[#allocation26_spill] sm:$0xff] }
 0x7d7   :  { %7087 = vmatpush1.bf16.msra.mxu1 %v10369_v3  ;;  %2831 = vmatprep.mubr.f32.mxu1 %v10342_v11  ;;  %v872_v3 = vcombine.low %v807_v39, %v823_v44 }
 0x7d8   :  { %v848_v30 = vrot.slane %v840_v52, %v8639_v27  ;;  %v855_v36 = vrot.slane %v841_v25, %v8639_v27  ;;  %7089 = vmatprep.subr.bf16.mxu1 %v10370_v17  ;;  %v10373_v27 = vld [vmem:[#allocation28_spill] sm:$0xff] }
 0x7d9   :  { %v880_v10 = vrot.slane %v872_v3, %v10341_v57 }
 0x7da   :  { %v888_v60 = vcombine.low %v832_v61, %v848_v30  ;;  %v889_v33 = vcombine.high %v832_v61, %v848_v30  ;;  %v904_v18 = vcombine.low %v839_v4, %v855_v36  ;;  %v905_v52 = vcombine.high %v839_v4, %v855_v36 }
 0x7db   :  { %7091 = vmatpush1.bf16.msra.mxu1 %v10371_v13  ;;  %v871_v61 = vrot.slane %v857_v53, %v10341_v57  ;;  %v873_v30 = vcombine.high %v807_v39, %v823_v44  ;;  %v10376_v39 = vmov 1   ;;  %v10379_v53 = vmov 7  }
 0x7dc   :  { %v896_v20 = vrot.slane %v888_v60, %v10341_v57  ;;  %7093 = vmatprep.subr.bf16.mxu1 %v10372_v31  ;;  %v903_v25 = vrot.slane %v889_v33, %v10341_v57  ;;  %v912_v17 = vrot.slane %v904_v18, %v10341_v57  ;;  %v919_v62 = vrot.slane %v905_v52, %v10341_v57  ;;  %v10375_v60 = vld [vmem:[#allocation30_spill] sm:$0xff] }
 0x7dd   :  { %v887_v33 = vrot.slane %v873_v30, %v10341_v57  ;;  %v10378_v18 = vmov 3  }
 0x7de   :  { %v921_v34 = vcombine.high %v864_v22, %v896_v20  ;;  %v920_v59 = vcombine.low %v864_v22, %v896_v20  ;;  %v924_v4 = vcombine.low %v880_v10, %v912_v17  ;;  %v922_v36 = vcombine.low %v871_v61, %v903_v25 }
 0x7df   :  { %7095 = vmatpush1.bf16.msra.mxu1 %v10373_v27  ;;  %v926_v22 = vcombine.low %v887_v33, %v919_v62  ;;  %v923_v3 = vcombine.high %v871_v61, %v903_v25  ;;  %v925_v44 = vcombine.high %v880_v10, %v912_v17  ;;  %v10377_v17 = vmov 2  }
 0x7e0   :  { %945 = vperm.xlu0 %7873, %v921_v34   ;;  %935 = vperm.xlu1 %7872, %v920_v59  }
 0x7e1   :  { %7097 = vmatprep.subr.bf16.mxu1 %v10374_v38 }
 0x7e3   :  { %7099 = vmatpush1.bf16.msra.mxu1 %v10375_v60 }
 0x7e4   :  { %975 = vperm.xlu0 %7873, %v924_v4   ;;  %955 = vperm.xlu1 %7872, %v922_v36  }
 0x7e5   :  { %7117 = vmatprep.subr.bf16.mxu1 %v9260_v16 }
 0x7e6   :  { %6848 = vmatmul.mubr.msk.f32.vlgmr.msra.gmra.mrb[8].mxu1 %vm148_vm1, %v9281_v49  ;;  %v927_v49 = vcombine.high %v887_v33, %v919_v62 }
 0x7e7   :  { %7119 = vmatpush1.bf16.msra.mxu1 %v9277_v26  ;;  %3001 = vmatprep.mubr.f32.mxu1 %v10342_v11 }
 0x7e8   :  { %995 = vperm.xlu0 %7873, %v926_v22   ;;  %965 = vperm.xlu1 %7872, %v923_v3  }
 0x7e9   :  { %7121 = vmatprep.subr.bf16.mxu1 %v9279_v42 }
 0x7eb   :  { %7123 = vmatpush1.bf16.msra.mxu1 %v9286_v1 }
 0x7ec   :  { %7874 = vset.pattern.permute.xlu0 %v10376_v39  ;;  %985 = vperm.xlu1 %7872, %v925_v44  }
 0x7ed   :  { %1173 = vperm.xlu0 %7874, %v920_v59   ;;  %7125 = vmatprep.subr.bf16.mxu1 %v9290_v19 }
 0x7ef   :  { %7127 = vmatpush1.bf16.msra.mxu1 %v9293_v21 }
 0x7f0   :  { %1005 = vperm.xlu1 %7872, %v927_v49   ;;  %7129 = vmatprep.subr.bf16.mxu1 %v9296_v47 }
 0x7f1   :  { %1197 = vperm.xlu0 %7874, %v923_v3  }
 0x7f3   :  { %7131 = vmatpush1.bf16.msra.mxu1 %v9299_v51 }
 0x7f4   :  { %7875 = vset.pattern.permute.xlu1 %v10376_v39  ;;  %7149 = vmatprep.subr.bf16.mxu1 %v9229_v15 }
 0x7f5   :  { %1213 = vperm.xlu0 %7874, %v925_v44   ;;  %1181 = vperm.xlu1 %7875, %v921_v34  }
 0x7f9   :  { %1229 = vperm.xlu0 %7874, %v927_v49   ;;  %1189 = vperm.xlu1 %7875, %v922_v36  }
 0x7fd   :  { %7877 = vset.pattern.permute.xlu0 %v10377_v17  ;;  %1205 = vperm.xlu1 %7875, %v924_v4  }
 0x7fe   :  { %1389 = vperm.xlu0 %7877, %v921_v34  }
 0x801   :  { %1221 = vperm.xlu1 %7875, %v926_v22  }
 0x802   :  { %1413 = vperm.xlu0 %7877, %v924_v4  }
 0x805   :  { %7876 = vset.pattern.permute.xlu1 %v10377_v17 }
 0x806   :  { %1429 = vperm.xlu0 %7877, %v926_v22   ;;  %1381 = vperm.xlu1 %7876, %v920_v59  }
 0x80a   :  { %7878 = vset.pattern.permute.xlu0 %v10378_v18  ;;  %1397 = vperm.xlu1 %7876, %v922_v36  }
 0x80b   :  { %1589 = vperm.xlu0 %7878, %v920_v59  }
 0x80e   :  { %1405 = vperm.xlu1 %7876, %v923_v3  }
 0x80f   :  { %1613 = vperm.xlu0 %7878, %v923_v3  }
 0x812   :  { %1421 = vperm.xlu1 %7876, %v925_v44  }
 0x813   :  { %1629 = vperm.xlu0 %7878, %v925_v44  }
 0x816   :  { %1437 = vperm.xlu1 %7876, %v927_v49  }
 0x817   :  { %1645 = vperm.xlu0 %7878, %v927_v49  }
 0x81a   :  { %7879 = vset.pattern.permute.xlu1 %v10378_v18 }
 0x81b   :  { %1597 = vperm.xlu1 %7879, %v921_v34   ;;  %7880 = vset.pattern.permute.xlu0 %v10379_v53 }
 0x81f   :  { %1605 = vperm.xlu1 %7879, %v922_v36  }
 0x823   :  { %1621 = vperm.xlu1 %7879, %v924_v4  }
 0x827   :  { %1637 = vperm.xlu1 %7879, %v926_v22  }
 0x85f   :  { %v946_v20 = vpop.permute.xlu0 %945  ;;  %v936_v52 = vpop.permute.xlu1 %935 }
 0x860   :  { %v1137_v27 = vmul.f32 %v8984_v12, %v936_v52  ;;  %v1139_v11 = vmul.f32 %v8992_v5, %v946_v20  ;;  %v10381_v52 = vld [vmem:[#allocation33_spill] sm:$0xff] }
 0x863   :  { %v9348_v25 = vpop.permute.xlu0 %975  ;;  %v956_v61 = vpop.permute.xlu1 %955 }
 0x867   :  { %v9350_v59 = vpop.permute.xlu0 %995  ;;  %v966_v30 = vpop.permute.xlu1 %965 }
 0x868   :  { %v1143_v16 = vmul.f32 %v8995_v32, %v966_v30 }
 0x86b   :  { %v986_v10 = vpop.permute.xlu1 %985 }
 0x86c   :  { %v1174_v62 = vpop.permute.xlu0 %1173  ;;  %v1147_v5 = vmul.f32 %v10381_v52, %v986_v10 }
 0x86d   :  { %v1345_v1 = vmul.f32 %v9001_v14, %v1174_v62 }
 0x86f   :  { %v1006_v33 = vpop.permute.xlu1 %1005  ;;  %v1361_v14 = vadd.f32 %v1345_v1, %v1137_v27 }
 0x870   :  { %v1198_v3 = vpop.permute.xlu0 %1197  ;;  %v1151_v31 = vmul.f32 %v9095_v0, %v1006_v33 }
 0x871   :  { %v1351_v19 = vmul.f32 %v9004_v8, %v1198_v3  ;;  %v10380_v8 = vld [vmem:[#allocation31_spill] sm:$0xff] }
 0x873   :  { %v1367_v57 = vadd.f32 %v1351_v19, %v1143_v16 }
 0x874   :  { %v1214_v44 = vpop.permute.xlu0 %1213  ;;  %v1182_v39 = vpop.permute.xlu1 %1181 }
 0x875   :  { %v1347_v3 = vmul.f32 %v10380_v8, %v1182_v39 }
 0x877   :  { %v1363_v27 = vadd.f32 %v1347_v3, %v1139_v11 }
 0x878   :  { %v1230_v34 = vpop.permute.xlu0 %1229  ;;  %v1190_v49 = vpop.permute.xlu1 %1189 }
 0x879   :  { %v1359_v42 = vmul.f32 %v9091_v40, %v1230_v34  ;;  %v1355_v40 = vmul.f32 %v9051_v41, %v1214_v44 }
 0x87b   :  { %v1375_v62 = vadd.f32 %v1359_v42, %v1151_v31  ;;  %v1371_v31 = vadd.f32 %v1355_v40, %v1147_v5 }
 0x87c   :  { %v1206_v17 = vpop.permute.xlu1 %1205 }
 0x87d   :  { %v1390_v36 = vpop.permute.xlu0 %1389 }
 0x880   :  { %v9352_v4 = vpop.permute.xlu1 %1221 }
 0x881   :  { %v1414_v22 = vpop.permute.xlu0 %1413 }
 0x882   :  { %v1561_v34 = vmul.f32 %v9068_v37, %v1414_v22  ;;  %v1149_v37 = vmul.f32 %v9048_v35, %v9350_v59 }
 0x885   :  { %v9354_v18 = vpop.permute.xlu0 %1429  ;;  %v1382_v53 = vpop.permute.xlu1 %1381 }
 0x886   :  { %v1553_v13 = vmul.f32 %v9045_v45, %v1382_v53  ;;  %v1565_v3 = vmul.f32 %v9133_v23, %v9354_v18 }
 0x888   :  { %v1569_v16 = vadd.f32 %v1553_v13, %v1361_v14 }
 0x889   :  { %v1398_v15 = vpop.permute.xlu1 %1397 }
 0x88a   :  { %v1590_v51 = vpop.permute.xlu0 %1589  ;;  %v1557_v13 = vmul.f32 %v9030_v58, %v1398_v15 }
 0x88b   :  { %v1761_v32 = vmul.f32 %v9065_v43, %v1590_v51  ;;  %v1349_v43 = vmul.f32 %v9012_v46, %v1190_v49 }
 0x88d   :  { %v1406_v47 = vpop.permute.xlu1 %1405  ;;  %v1777_v42 = vadd.f32 %v1761_v32, %v1569_v16 }
 0x88e   :  { %v1614_v21 = vpop.permute.xlu0 %1613  ;;  %v1559_v60 = vmul.f32 %v9056_v50, %v1406_v47  ;;  %v1555_v50 = vmul.f32 %v9019_v54, %v1390_v36 }
 0x88f   :  { %v1767_v12 = vmul.f32 %v9100_v9, %v1614_v21  ;;  %v6812_v33 = vmul.f32 -1.442695, %v1777_v42 }
 0x890   :  { %v1575_v47 = vadd.f32 %v1559_v60, %v1367_v57  ;;  %v10382_v57 = vld [vmem:[#allocation32_spill] sm:$0xff]  ;;  %v1571_v9 = vadd.f32 %v1555_v50, %v1363_v27 }
 0x891   :  { %v1422_v26 = vpop.permute.xlu1 %1421  ;;  %v1141_v51 = vmul.f32 %v10382_v57, %v956_v61  ;;  %v10384_v61 = vld [vmem:[#allocation34_spill] sm:$0xff]  ;;  %7952 = vpow2.f32 %v6812_v33 }
 0x892   :  { %v1630_v38 = vpop.permute.xlu0 %1629  ;;  %v1563_v19 = vmul.f32 %v9083_v2, %v1422_v26  ;;  %v1783_v21 = vadd.f32 %v1767_v12, %v1575_v47  ;;  %v1145_v39 = vmul.f32 %v10384_v61, %v9348_v25  ;;  %v9391_v25 = vld [vmem:[%s10222_s10] sm:$0x3]  ;;  %v10386_v33 = vld [vmem:[#allocation38_spill] sm:$0xff] }
 0x893   :  { %v1771_v2 = vmul.f32 %v9121_v55, %v1630_v38  ;;  %v1365_v46 = vadd.f32 %v1349_v43, %v1141_v51  ;;  %v9405_v59 = vrot.slane %v9391_v25, %v10343_v63 }
 0x894   :  { %v1579_v20 = vadd.f32 %v1563_v19, %v1371_v31  ;;  %v6818_v49 = vmul.f32 -1.442695, %v1783_v21 }
 0x895   :  { %v1438_v30 = vpop.permute.xlu1 %1437  ;;  %v1573_v53 = vadd.f32 %v1557_v13, %v1365_v46 }
 0x896   :  { %v1567_v0 = vmul.f32 %v9112_v28, %v1438_v30  ;;  %v1646_v45 = vpop.permute.xlu0 %1645  ;;  %v1787_v58 = vadd.f32 %v1771_v2, %v1579_v20  ;;  %7954 = vpow2.f32 %v6818_v49 }
 0x897   :  { %v1775_v41 = vmul.f32 %v9136_v29, %v1646_v45  ;;  %v10383_v29 = vld [vmem:[#allocation35_spill] sm:$0xff] }
 0x898   :  { %v1583_v1 = vadd.f32 %v1567_v0, %v1375_v62  ;;  %v1353_v26 = vmul.f32 %v10383_v29, %v1206_v17  ;;  %v1357_v17 = vmul.f32 %v9104_v56, %v9352_v4  ;;  %v9400_v56 = vld [vmem:[%s10224_s12] sm:$0x3]  ;;  %v6822_v4 = vmul.f32 -1.442695, %v1787_v58 }
 0x899   :  { %v2643_v54 = vpop.f32.mrb[4].mxu1  ;;  %v9409_v18 = vrot.slane %v9400_v56, %v10343_v63 }
 0x89a   :  { %v9376_v28 = vpop.f32.mrb[5].mxu1  ;;  %v1598_v60 = vpop.permute.xlu1 %1597  ;;  %v1791_v10 = vadd.f32 %v1775_v41, %v1583_v1  ;;  %v1369_v38 = vadd.f32 %v1353_v26, %v1145_v39  ;;  %v1373_v62 = vadd.f32 %v1357_v17, %v1149_v37  ;;  %v2644_v12 = vadd.f32 %v2643_v54, %v9405_v59  ;;  %v10388_v17 = vld [vmem:[#allocation21_spill] sm:$0xff] }
 0x89b   :  { %v1763_v11 = vmul.f32 %v9027_v7, %v1598_v60  ;;  %v7953_v52 = vpop.eup %7952 }
 0x89c   :  { %v6826_v7 = vmul.f32 -1.442695, %v1791_v10  ;;  %v1577_v22 = vadd.f32 %v1561_v34, %v1369_v38  ;;  %v1581_v32 = vadd.f32 %v1565_v3, %v1373_v62  ;;  %v1841_v31 = vadd.f32 1.0, %v7953_v52 }
 0x89d   :  { %v1779_v44 = vadd.f32 %v1763_v11, %v1571_v9  ;;  %v10385_v11 = vld [vmem:[#allocation19_spill] sm:$0xff] }
 0x89e   :  { %v1606_v36 = vpop.permute.xlu1 %1605 }
 0x89f   :  { %v6814_v15 = vmul.f32 -1.442695, %v1779_v44  ;;  %v1765_v55 = vmul.f32 %v9071_v24, %v1606_v36 }
 0x8a0   :  { %v7955_v16 = vpop.eup %7954 }
 0x8a1   :  { %v1781_v8 = vadd.f32 %v1765_v55, %v1573_v53  ;;  %7956 = vpow2.f32 %v6814_v15  ;;  %v1847_v57 = vadd.f32 1.0, %v7955_v16  ;;  %v10387_v55 = vld [vmem:[#allocation20_spill] sm:$0xff] }
 0x8a2   :  { %v1622_v24 = vpop.permute.xlu1 %1621  ;;  %7958 = vpow2.f32 %v6826_v7  ;;  %v9418_v38 = vrot.slane %v9400_v56, %v10387_v55  ;;  %v9423_v3 = vrot.slane %v9391_v25, %v10387_v55 }
 0x8a3   :  { %v6816_v14 = vmul.f32 -1.442695, %v1781_v8  ;;  %v1769_v40 = vmul.f32 %v9074_v48, %v1622_v24 }
 0x8a5   :  { %7960 = vpow2.f32 %v6816_v14  ;;  %v1785_v35 = vadd.f32 %v1769_v40, %v1577_v22 }
 0x8a6   :  { %v1638_v23 = vpop.permute.xlu1 %1637  ;;  %7962 = vpow2.f32 %v6822_v4 }
 0x8a7   :  { %v6820_v30 = vmul.f32 -1.442695, %v1785_v35  ;;  %v1773_v50 = vmul.f32 %v9142_v6, %v1638_v23  ;;  %v2646_v23 = vadd.f32 %v9376_v28, %v9423_v3  ;;  %v10390_v28 = vmov 0.0  }
 0x8a9   :  { %7964 = vpow2.f32 %v6820_v30  ;;  %v1789_v48 = vadd.f32 %v1773_v50, %v1581_v32  ;;  %v2742_v47 = vpop.f32.mrb[6].mxu1 }
 0x8aa   :  { %v2743_v0 = vadd.f32 %v2742_v47, %v9409_v18  ;;  %v2744_v45 = vpop.f32.mrb[7].mxu1  ;;  %v10389_v47 = vld [vmem:[#allocation22_spill] sm:$0xff] }
 0x8ab   :  { %v6824_v5 = vmul.f32 -1.442695, %v1789_v48  ;;  %v7957_v27 = vpop.eup %7956  ;;  %v2745_v14 = vadd.f32 %v2744_v45, %v9418_v38 }
 0x8ac   :  { %v2747_v19 = vadd.f32 %v2743_v0, %v2644_v12  ;;  %v7959_v63 = vpop.eup %7958  ;;  %v1843_v43 = vadd.f32 1.0, %v7957_v27 }
 0x8ad   :  { %7966 = vpow2.f32 %v6824_v5  ;;  %v1855_v51 = vadd.f32 1.0, %v7959_v63 }
 0x8ae   :  { %v6847_v1 = vmul.f32 -1.442695, %v2747_v19 }
 0x8af   :  { %v7961_v41 = vpop.eup %7960 }
 0x8b0   :  { %v1845_v6 = vadd.f32 1.0, %v7961_v41  ;;  %7968 = vpow2.f32 %v6847_v1  ;;  %v7963_v42 = vpop.eup %7962 }
 0x8b1   :  { %v1851_v9 = vadd.f32 1.0, %v7963_v42 }
 0x8b2   :  { %7970 = vrcp.f32 %v1845_v6 }
 0x8b3   :  { %v7965_v54 = vpop.eup %7964  ;;  %7972 = vrcp.f32 %v1841_v31 }
 0x8b4   :  { %7974 = vrcp.f32 %v1843_v43  ;;  %v1849_v21 = vadd.f32 1.0, %v7965_v54 }
 0x8b5   :  { %7976 = vrcp.f32 %v1847_v57 }
 0x8b6   :  { %7978 = vrcp.f32 %v1855_v51 }
 0x8b7   :  { %v7967_v60 = vpop.eup %7966  ;;  %7980 = vrcp.f32 %v1851_v9  ;;  %v10391_v9 = vld [vmem:[#allocation39_spill] sm:$0xff] }
 0x8b8   :  { %v1853_v13 = vadd.f32 1.0, %v7967_v60  ;;  %7982 = vrcp.f32 %v1849_v21 }
 0x8b9   :  { %v2833_v20 = vpop.f32.mrb[8].mxu1 }
 0x8ba   :  { %v7969_v2 = vpop.eup %7968  ;;  %7984 = vrcp.f32 %v1853_v13  ;;  %v2834_v29 = vadd.f32 %v2833_v20, %v10385_v11  ;;  %v2835_v26 = vpop.f32.mrb[9].mxu1 }
 0x8bb   :  { %v2751_v10 = vadd.f32 1.0, %v7969_v2  ;;  %v2836_v21 = vadd.f32 %v2835_v26, %v10391_v9  ;;  %v2766_v2 = vld [vmem:[#allocation2 + $0x18] sm:$0xff] }
 0x8bc   :  { %v7971_v46 = vpop.eup %7970  ;;  %v2838_v44 = vadd.f32 %v2834_v29, %v10386_v33 }
 0x8bd   :  { %v7973_v61 = vpop.eup %7972  ;;  %7986 = vrcp.f32 %v2751_v10 }
 0x8be   :  { %v7975_v39 = vpop.eup %7974  ;;  %v6849_v34 = vmul.f32 -1.442695, %v2838_v44  ;;  %v2024_v36 = vcombine.low %v7973_v61, %v7971_v46  ;;  %v2025_v19 = vcombine.high %v7973_v61, %v7971_v46 }
 0x8bf   :  { %v7977_v49 = vpop.eup %7976 }
 0x8c0   :  { %v7979_v53 = vpop.eup %7978  ;;  %7988 = vpow2.f32 %v6849_v34  ;;  %v2040_v58 = vcombine.low %v7975_v39, %v7977_v49  ;;  %v2032_v8 = vrot.slane %v2024_v36, %v10388_v17  ;;  %v2041_v41 = vcombine.high %v7975_v39, %v7977_v49 }
 0x8c1   :  { %v7981_v15 = vpop.eup %7980  ;;  %v2039_v6 = vrot.slane %v2025_v19, %v10388_v17 }
 0x8c2   :  { %v7983_v7 = vpop.eup %7982  ;;  %v2072_v37 = vcombine.low %v7981_v15, %v7979_v53  ;;  %v2048_v24 = vrot.slane %v2040_v58, %v10388_v17  ;;  %v2073_v27 = vcombine.high %v7981_v15, %v7979_v53  ;;  %v2055_v51 = vrot.slane %v2041_v41, %v10388_v17 }
 0x8c4   :  { %v7985_v22 = vpop.eup %7984  ;;  %v2080_v56 = vrot.slane %v2072_v37, %v10388_v17  ;;  %v2088_v35 = vcombine.low %v2032_v8, %v2048_v24  ;;  %v2089_v16 = vcombine.high %v2032_v8, %v2048_v24  ;;  %v2087_v42 = vrot.slane %v2073_v27, %v10388_v17 }
 0x8c5   :  { %v2056_v4 = vcombine.low %v7983_v7, %v7985_v22  ;;  %v2057_v5 = vcombine.high %v7983_v7, %v7985_v22  ;;  %v2104_v13 = vcombine.low %v2039_v6, %v2055_v51  ;;  %v2105_v61 = vcombine.high %v2039_v6, %v2055_v51 }
 0x8c6   :  { %v2096_v12 = vrot.slane %v2088_v35, %v10389_v47  ;;  %v2103_v43 = vrot.slane %v2089_v16, %v10389_v47 }
 0x8c7   :  { %v9427_v40 = vpop.eup %7986  ;;  %v2064_v62 = vrot.slane %v2056_v4, %v10388_v17  ;;  %v2071_v31 = vrot.slane %v2057_v5, %v10388_v17  ;;  %v2112_v33 = vrot.slane %v2104_v13, %v10389_v47  ;;  %v2119_v49 = vrot.slane %v2105_v61, %v10389_v47  ;;  %v10392_v17 = vld [vmem:[#allocation48_spill] sm:$0xff]  ;;  %v10397_v61 = vld [vmem:[#allocation26_spill] sm:$0xff] }
 0x8c8   :  { %v2754_v32 = vmul.f32 %v9427_v40, %v2745_v14  ;;  %v2757_v24 = vsub.f32 1.0, %v9427_v40  ;;  %v2763_v14 = vmul.f32 0.0, %v9427_v40 }
 0x8c9   :  { %v2120_v30 = vcombine.low %v2064_v62, %v2080_v56  ;;  %v2121_v52 = vcombine.high %v2064_v62, %v2080_v56  ;;  %v2136_v54 = vcombine.low %v2071_v31, %v2087_v42  ;;  %v2137_v44 = vcombine.high %v2071_v31, %v2087_v42 }
 0x8ca   :  { %v7989_v25 = vpop.eup %7988  ;;  %v2755_v50 = vadd.f32 %v2754_v32, %v2646_v23  ;;  %v10393_v23 = vld [vmem:[#allocation36_spill] sm:$0xff] }
 0x8cb   :  { %v2842_v48 = vadd.f32 1.0, %v7989_v25  ;;  %v2128_v0 = vrot.slane %v2120_v30, %v10389_v47  ;;  %v2135_v1 = vrot.slane %v2121_v52, %v10389_v47  ;;  %v2144_v10 = vrot.slane %v2136_v54, %v10389_v47  ;;  %v10394_v25 = vld [vmem:[#allocation37_spill] sm:$0xff] }
 0x8cc   :  { %v2151_v34 = vrot.slane %v2137_v44, %v10389_v47 }
 0x8cd   :  { %7990 = vrcp.f32 %v2842_v48  ;;  %v2152_v45 = vcombine.low %v2096_v12, %v2128_v0  ;;  %v2153_v63 = vcombine.high %v2096_v12, %v2128_v0  ;;  %v2154_v57 = vcombine.low %v2103_v43, %v2135_v1 }
 0x8ce   :  { %v2155_v29 = vcombine.high %v2103_v43, %v2135_v1  ;;  %v2156_v26 = vcombine.low %v2112_v33, %v2144_v10  ;;  %v2157_v39 = vcombine.high %v2112_v33, %v2144_v10  ;;  %v2158_v36 = vcombine.low %v2119_v49, %v2151_v34  ;;  %v10395_v33 = vld [vmem:[#allocation24_spill] sm:$0xff] }
 0x8cf   :  { %6837 = vmatmul.mubr.msk.f32.gmra.mrb[18].mxu0 %vm2175_vm13, %v2152_v45  ;;  %v2159_v58 = vcombine.high %v2119_v49, %v2151_v34  ;;  %v10399_v34 = vld [vmem:[#allocation27_spill] sm:$0xff]  ;;  %v10400_v49 = vld [vmem:[#allocation41_spill] sm:$0xff] }
 0x8d0   :  { %2347 = vmatprep.mubr.f32.mxu0 %v10390_v28 }
 0x8d3   :  { %6838 = vmatmul.mubr.msk.f32.gmra.mrb[20].mxu0 %vm2175_vm13, %v2153_v63 }
 0x8d4   :  { %2353 = vmatprep.mubr.f32.mxu0 %v10390_v28 }
 0x8d7   :  { %v7991_v60 = vpop.eup %7990  ;;  %6839 = vmatmul.mubr.msk.f32.gmra.mrb[22].mxu0 %vm2175_vm13, %v2154_v57 }
 0x8d8   :  { %v2845_v20 = vmul.f32 %v7991_v60, %v2836_v21  ;;  %2359 = vmatprep.mubr.f32.mxu0 %v10390_v28  ;;  %v2848_v55 = vsub.f32 1.0, %v7991_v60  ;;  %v2854_v8 = vmul.f32 %v7991_v60, %v10392_v17  ;;  %v10407_v17 = vld [vmem:[#allocation47_spill] sm:$0xff] }
 0x8da   :  { %v2846_v46 = vadd.f32 %v2845_v20, %v2766_v2 }
 0x8db   :  { %6840 = vmatmul.mubr.msk.f32.gmra.mrb[24].mxu0 %vm2175_vm13, %v2155_v29 }
 0x8dc   :  { %7992 = vtanh.f32 %v2846_v46  ;;  %2365 = vmatprep.mubr.f32.mxu0 %v10390_v28 }
 0x8dd   :  { %7994 = vtanh.f32 %v2755_v50 }
 0x8df   :  { %6841 = vmatmul.mubr.msk.f32.gmra.mrb[26].mxu0 %vm2175_vm13, %v2156_v26  ;;  %v10396_v26 = vld [vmem:[#allocation25_spill] sm:$0xff] }
 0x8e0   :  { %2371 = vmatprep.mubr.f32.mxu0 %v10390_v28 }
 0x8e3   :  { %6842 = vmatmul.mubr.msk.f32.gmra.mrb[28].mxu0 %vm2175_vm13, %v2157_v39  ;;  %v10398_v39 = vld [vmem:[#allocation40_spill] sm:$0xff] }
 0x8e4   :  { %2377 = vmatprep.mubr.f32.mxu0 %v10390_v28 }
 0x8e6   :  { %v7993_v53 = vpop.eup %7992 }
 0x8e7   :  { %2850 = vrot.lane.b32.xlu1 %v7993_v53, %s8343_s6  ;;  %6843 = vmatmul.mubr.msk.f32.gmra.mrb[30].mxu0 %vm2175_vm13, %v2158_v36  ;;  %v7995_v15 = vpop.eup %7994  ;;  %v10401_v36 = vld [vmem:[#allocation28_spill] sm:$0xff]  ;;  %v10402_v53 = vld [vmem:[#allocation42_spill] sm:$0xff] }
 0x8e8   :  { %2383 = vmatprep.mubr.f32.mxu0 %v10390_v28 }
 0x8eb   :  { %2759 = vrot.lane.b32.xlu1 %v7995_v15, %s8343_s6  ;;  %6844 = vmatmul.mubr.msk.f32.gmra.mrb[32].mxu0 %vm2175_vm13, %v2159_v58  ;;  %v10403_v58 = vld [vmem:[#allocation29_spill] sm:$0xff]  ;;  %v10404_v15 = vld [vmem:[#allocation43_spill] sm:$0xff] }
 0x8ec   :  { %2925 = vmatprep.mubr.f32.mxu0 %v10390_v28 }
 0x959   :  { %v2851_v7 = vpop.permute.xlu1 %2850 }
 0x95a   :  { %v2853_v37 = vmul.f32 %v2851_v7, %v2848_v55  ;;  %v10405_v55 = vld [vmem:[#allocation30_spill] sm:$0xff]  ;;  %v10406_v7 = vld [vmem:[#allocation44_spill] sm:$0xff] }
 0x95c   :  { %v9466_v22 = vadd.f32 %v2854_v8, %v2853_v37  ;;  %v10408_v8 = vld [vmem:[#allocation45_spill] sm:$0xff] }
 0x95d   :  { %v2760_v4 = vpop.permute.xlu1 %2759  ;;  %v10409_v37 = vld [vmem:[#allocation49_spill] sm:$0xff] }
 0x95e   :  { %v2762_v62 = vmul.f32 %v2760_v4, %v2757_v24  ;;  %2857 = vrot.lane.b32.xlu0 %v9466_v22, %s8343_s6  ;;  %v10410_v24 = vld [vmem:[#allocation46_spill] sm:$0xff] }
 0x95f   :  { %v10411_v4 = vld [vmem:[#allocation50_spill] sm:$0xff] }
 0x960   :  { %v9472_v56 = vadd.f32 %v2763_v14, %v2762_v62  ;;  %v10412_v14 = vld [vmem:[#allocation23_spill] sm:$0xff] }
 0x961   :  { %v10413_v62 = vld [vmem:[#allocation51_spill] sm:$0xff] }
 0x962   :  { %2933 = vrot.lane.b32.xlu0 %v9472_v56, %s8343_s6 }
 0x9a2   :  { %v2343_v35 = vpop.f32.mrb[18].mxu0 }
 0x9a3   :  { %v2344_v32 = vadd.f32 %v2343_v35, %v10393_v23  ;;  %v2345_v30 = vpop.f32.mrb[19].mxu0  ;;  %v10414_v35 = vld [vmem:[#allocation52_spill] sm:$0xff] }
 0x9a4   :  { %v2346_v50 = vadd.f32 %v2345_v30, %v10394_v25  ;;  %v10417_v30 = vld [vmem:[#allocation55_spill] sm:$0xff] }
 0x9a5   :  { %2406 = vst [vmem:[#allocation2 + $0x80] sm:$0xff] %v2344_v32  ;;  %v10416_v32 = vld [vmem:[#allocation54_spill] sm:$0xff] }
 0x9a6   :  { %2407 = vst.msk [vmem:[#allocation2 + $0x88] sm:$0xff] %vm148_vm1, %v2346_v50  ;;  %v2349_v48 = vpop.f32.mrb[20].mxu0 }
 0x9a7   :  { %v2350_v40 = vadd.f32 %v2349_v48, %v10393_v23  ;;  %v2351_v47 = vpop.f32.mrb[21].mxu0 }
 0x9a8   :  { %v2352_v12 = vadd.f32 %v2351_v47, %v10394_v25 }
 0x9a9   :  { %2408 = vst [vmem:[#allocation2 + $0x90] sm:$0xff] %v2350_v40 }
 0x9aa   :  { %2409 = vst.msk [vmem:[#allocation2 + $0x98] sm:$0xff] %vm148_vm1, %v2352_v12  ;;  %v2355_v0 = vpop.f32.mrb[22].mxu0 }
 0x9ab   :  { %v2356_v45 = vadd.f32 %v2355_v0, %v10393_v23  ;;  %v2357_v52 = vpop.f32.mrb[23].mxu0 }
 0x9ac   :  { %v2358_v5 = vadd.f32 %v2357_v52, %v10394_v25 }
 0x9ad   :  { %2410 = vst [vmem:[#allocation2 + $0xa0] sm:$0xff] %v2356_v45 }
 0x9ae   :  { %2411 = vst.msk [vmem:[#allocation2 + $0xa8] sm:$0xff] %vm148_vm1, %v2358_v5  ;;  %v2361_v16 = vpop.f32.mrb[24].mxu0 }
 0x9af   :  { %v2362_v19 = vadd.f32 %v2361_v16, %v10393_v23  ;;  %v2363_v27 = vpop.f32.mrb[25].mxu0 }
 0x9b0   :  { %v2364_v63 = vadd.f32 %v2363_v27, %v10394_v25  ;;  %v3026_v27 = vld [vmem:[#allocation2 + $0x20] sm:$0xff] }
 0x9b1   :  { %2412 = vst [vmem:[#allocation2 + $0xb0] sm:$0xff] %v2362_v19 }
 0x9b2   :  { %2413 = vst.msk [vmem:[#allocation2 + $0xb8] sm:$0xff] %vm148_vm1, %v2364_v63  ;;  %v2367_v1 = vpop.f32.mrb[26].mxu0 }
 0x9b3   :  { %v2368_v41 = vadd.f32 %v2367_v1, %v10393_v23  ;;  %v2369_v31 = vpop.f32.mrb[27].mxu0 }
 0x9b4   :  { %v2370_v43 = vadd.f32 %v2369_v31, %v10394_v25 }
 0x9b5   :  { %2414 = vst [vmem:[#allocation2 + $0xc0] sm:$0xff] %v2368_v41 }
 0x9b6   :  { %2415 = vst.msk [vmem:[#allocation2 + $0xc8] sm:$0xff] %vm148_vm1, %v2370_v43  ;;  %v2373_v6 = vpop.f32.mrb[28].mxu0 }
 0x9b7   :  { %v2374_v42 = vadd.f32 %v2373_v6, %v10393_v23  ;;  %v2375_v57 = vpop.f32.mrb[29].mxu0 }
 0x9b8   :  { %v2376_v51 = vadd.f32 %v2375_v57, %v10394_v25 }
 0x9b9   :  { %2416 = vst [vmem:[#allocation2 + $0xd0] sm:$0xff] %v2374_v42 }
 0x9ba   :  { %2417 = vst.msk [vmem:[#allocation2 + $0xd8] sm:$0xff] %vm148_vm1, %v2376_v51  ;;  %v2379_v54 = vpop.f32.mrb[30].mxu0 }
 0x9bb   :  { %v2380_v21 = vadd.f32 %v2379_v54, %v10393_v23  ;;  %v2381_v60 = vpop.f32.mrb[31].mxu0 }
 0x9bc   :  { %v2382_v13 = vadd.f32 %v2381_v60, %v10394_v25 }
 0x9bd   :  { %2418 = vst [vmem:[#allocation2 + $0xe0] sm:$0xff] %v2380_v21 }
 0x9be   :  { %2419 = vst.msk [vmem:[#allocation2 + $0xe8] sm:$0xff] %vm148_vm1, %v2382_v13  ;;  %v2385_v20 = vpop.f32.mrb[32].mxu0 }
 0x9bf   :  { %v2386_v2 = vadd.f32 %v2385_v20, %v10393_v23  ;;  %v2387_v29 = vpop.f32.mrb[33].mxu0  ;;  %v10415_v23 = vld [vmem:[#allocation53_spill] sm:$0xff] }
 0x9c0   :  { %v2388_v10 = vadd.f32 %v2387_v29, %v10394_v25  ;;  %v10418_v25 = vld [vmem:[#allocation18_spill] sm:$0xff] }
 0x9c1   :  { %2420 = vst [vmem:[#allocation2 + $0xf0] sm:$0xff] %v2386_v2  ;;  %v3027_v2 = vld [vmem:[#allocation2 + $0x28] sm:$0xff] }
 0x9c2   :  { %2421 = vst.msk [vmem:[#allocation2 + $0xf8] sm:$0xff] %vm148_vm1, %v2388_v10 }
 0x9d0   :  { %v2858_v46 = vpop.permute.xlu0 %2857 }
 0x9d1   :  { %6850 = vmatmul.mubr.msk.f32.vlgmr.msra.gmra.mrb[34].mxu0 %vm148_vm1, %v2858_v46 }
 0x9d2   :  { %7135 = vmatpush1.bf16.msra.mxu0 %v10395_v33  ;;  %3092 = vmatprep.mubr.f32.mxu0 %v10390_v28 }
 0x9d3   :  { %7137 = vmatprep.subr.bf16.mxu0 %v10396_v26 }
 0x9d4   :  { %v2934_v44 = vpop.permute.xlu0 %2933 }
 0x9d5   :  { %6851 = vmatmul.mubr.msk.f32.vlgmr.msra.gmra.mrb[10].mxu1 %vm148_vm1, %v2934_v44 }
 0x9d6   :  { %7139 = vmatpush1.bf16.msra.mxu0 %v10397_v61  ;;  %7151 = vmatpush1.bf16.msra.mxu1 %v10398_v39 }
 0x9d7   :  { %7141 = vmatprep.subr.bf16.mxu0 %v10399_v34  ;;  %7153 = vmatprep.subr.bf16.mxu1 %v10400_v49 }
 0x9d8   :  { %3186 = vmatprep.mubr.f32.mxu1 %v10390_v28 }
 0x9da   :  { %7143 = vmatpush1.bf16.msra.mxu0 %v10401_v36  ;;  %7155 = vmatpush1.bf16.msra.mxu1 %v10402_v53 }
 0x9db   :  { %7145 = vmatprep.subr.bf16.mxu0 %v10403_v58  ;;  %7157 = vmatprep.subr.bf16.mxu1 %v10404_v15 }
 0x9de   :  { %7147 = vmatpush1.bf16.msra.mxu0 %v10405_v55  ;;  %7159 = vmatpush1.bf16.msra.mxu1 %v10406_v7 }
 0x9df   :  { %7165 = vmatprep.subr.bf16.mxu0 %v10407_v17  ;;  %7161 = vmatprep.subr.bf16.mxu1 %v10408_v8 }
 0x9e1   :  { %6853 = vmatmul.mubr.msk.f32.vlgmr.msra.gmra.mrb[36].mxu0 %vm148_vm1, %v2858_v46 }
 0x9e2   :  { %7167 = vmatpush1.bf16.msra.mxu0 %v10409_v37  ;;  %7163 = vmatpush1.bf16.msra.mxu1 %v10410_v24 }
 0x9e3   :  { %7169 = vmatprep.subr.bf16.mxu0 %v10411_v4  ;;  %7181 = vmatprep.subr.bf16.mxu1 %v10412_v14 }
 0x9e4   :  { %3262 = vmatprep.mubr.f32.mxu0 %v10390_v28 }
 0x9e6   :  { %7171 = vmatpush1.bf16.msra.mxu0 %v10413_v62 }
 0x9e7   :  { %7173 = vmatprep.subr.bf16.mxu0 %v10414_v35 }
 0x9ea   :  { %7175 = vmatpush1.bf16.msra.mxu0 %v10415_v23 }
 0x9eb   :  { %7177 = vmatprep.subr.bf16.mxu0 %v10416_v32 }
 0x9ee   :  { %7179 = vmatpush1.bf16.msra.mxu0 %v10417_v30 }
 0x9ef   :  { %7197 = vmatprep.subr.bf16.mxu0 %v10418_v25 }
 0xaa4   :  { %v2927_v50 = vpop.f32.mrb[34].mxu0 }
 0xaa5   :  { %v2929_v48 = vpop.f32.mrb[35].mxu0  ;;  %v2928_v47 = vadd.f32 %v2927_v50, %v9405_v59 }
 0xaa6   :  { %v2930_v51 = vadd.f32 %v2929_v48, %v9423_v3 }
 0xaa8   :  { %v3003_v40 = vpop.f32.mrb[10].mxu1 }
 0xaa9   :  { %v3004_v12 = vadd.f32 %v3003_v40, %v9409_v18  ;;  %v3005_v0 = vpop.f32.mrb[11].mxu1 }
 0xaaa   :  { %v3006_v6 = vadd.f32 %v3005_v0, %v9418_v38 }
 0xaab   :  { %v3008_v45 = vadd.f32 %v3004_v12, %v2928_v47 }
 0xaad   :  { %v6852_v52 = vmul.f32 -1.442695, %v3008_v45 }
 0xaaf   :  { %7996 = vpow2.f32 %v6852_v52 }
 0xab4   :  { %v3094_v5 = vpop.f32.mrb[36].mxu0 }
 0xab5   :  { %v3095_v16 = vadd.f32 %v3094_v5, %v10385_v11  ;;  %v3096_v19 = vpop.f32.mrb[37].mxu0 }
 0xab6   :  { %v3097_v60 = vadd.f32 %v3096_v19, %v10391_v9 }
 0xab7   :  { %v3099_v63 = vadd.f32 %v3095_v16, %v3026_v27 }
 0xab9   :  { %v7997_v1 = vpop.eup %7996  ;;  %v6854_v41 = vmul.f32 -1.442695, %v3099_v63 }
 0xaba   :  { %v3012_v31 = vadd.f32 1.0, %v7997_v1 }
 0xabb   :  { %7998 = vpow2.f32 %v6854_v41 }
 0xabc   :  { %8000 = vrcp.f32 %v3012_v31 }
 0xac5   :  { %v7999_v43 = vpop.eup %7998 }
 0xac6   :  { %v8001_v42 = vpop.eup %8000  ;;  %v3103_v57 = vadd.f32 1.0, %v7999_v43 }
 0xac7   :  { %v3015_v54 = vmul.f32 %v8001_v42, %v3006_v6  ;;  %v3018_v12 = vsub.f32 1.0, %v8001_v42  ;;  %v3024_v45 = vmul.f32 %v8001_v42, %v9472_v56 }
 0xac8   :  { %8002 = vrcp.f32 %v3103_v57 }
 0xac9   :  { %v3016_v21 = vadd.f32 %v3015_v54, %v2930_v51  ;;  %v3287_v51 = vld [vmem:[#allocation2 + $0x30] sm:$0xff] }
 0xad2   :  { %v8003_v13 = vpop.eup %8002 }
 0xad3   :  { %v3106_v20 = vmul.f32 %v8003_v13, %v3097_v60  ;;  %v3109_v44 = vsub.f32 1.0, %v8003_v13  ;;  %v3115_v48 = vmul.f32 %v8003_v13, %v9466_v22 }
 0xad5   :  { %v3107_v29 = vadd.f32 %v3106_v20, %v3027_v2 }
 0xad7   :  { %8004 = vtanh.f32 %v3107_v29 }
 0xad8   :  { %8006 = vtanh.f32 %v3016_v21 }
 0xae1   :  { %v8005_v10 = vpop.eup %8004 }
 0xae2   :  { %3111 = vrot.lane.b32.xlu1 %v8005_v10, %s8343_s6  ;;  %v8007_v46 = vpop.eup %8006 }
 0xae6   :  { %3020 = vrot.lane.b32.xlu1 %v8007_v46, %s8343_s6 }
 0xb54   :  { %v3112_v50 = vpop.permute.xlu1 %3111 }
 0xb55   :  { %v3114_v40 = vmul.f32 %v3112_v50, %v3109_v44 }
 0xb57   :  { %v9539_v47 = vadd.f32 %v3115_v48, %v3114_v40 }
 0xb58   :  { %v3021_v0 = vpop.permute.xlu1 %3020 }
 0xb59   :  { %v3023_v52 = vmul.f32 %v3021_v0, %v3018_v12  ;;  %3118 = vrot.lane.b32.xlu0 %v9539_v47, %s8343_s6  ;;  %v3288_v0 = vld [vmem:[#allocation2 + $0x38] sm:$0xff] }
 0xb5b   :  { %v9544_v5 = vadd.f32 %v3024_v45, %v3023_v52 }
 0xb5d   :  { %3194 = vrot.lane.b32.xlu0 %v9544_v5, %s8343_s6 }
 0xbcb   :  { %v3119_v16 = vpop.permute.xlu0 %3118 }
 0xbcc   :  { %6855 = vmatmul.mubr.msk.f32.vlgmr.msra.gmra.mrb[12].mxu1 %vm148_vm1, %v3119_v16 }
 0xbcd   :  { %7183 = vmatpush1.bf16.msra.mxu1 %v10395_v33  ;;  %3353 = vmatprep.mubr.f32.mxu1 %v10390_v28 }
 0xbce   :  { %7185 = vmatprep.subr.bf16.mxu1 %v10396_v26 }
 0xbcf   :  { %v3195_v22 = vpop.permute.xlu0 %3194 }
 0xbd0   :  { %6856 = vmatmul.mubr.msk.f32.vlgmr.msra.gmra.mrb[38].mxu0 %vm148_vm1, %v3195_v22 }
 0xbd1   :  { %7187 = vmatpush1.bf16.msra.mxu1 %v10397_v61  ;;  %7199 = vmatpush1.bf16.msra.mxu0 %v10398_v39 }
 0xbd2   :  { %7189 = vmatprep.subr.bf16.mxu1 %v10399_v34  ;;  %7201 = vmatprep.subr.bf16.mxu0 %v10400_v49 }
 0xbd3   :  { %3447 = vmatprep.mubr.f32.mxu0 %v10390_v28 }
 0xbd5   :  { %7191 = vmatpush1.bf16.msra.mxu1 %v10401_v36  ;;  %7203 = vmatpush1.bf16.msra.mxu0 %v10402_v53 }
 0xbd6   :  { %7193 = vmatprep.subr.bf16.mxu1 %v10403_v58  ;;  %7205 = vmatprep.subr.bf16.mxu0 %v10404_v15 }
 0xbd9   :  { %7195 = vmatpush1.bf16.msra.mxu1 %v10405_v55  ;;  %7207 = vmatpush1.bf16.msra.mxu0 %v10406_v7 }
 0xbda   :  { %7213 = vmatprep.subr.bf16.mxu1 %v10407_v17  ;;  %7209 = vmatprep.subr.bf16.mxu0 %v10408_v8 }
 0xbdc   :  { %6858 = vmatmul.mubr.msk.f32.vlgmr.msra.gmra.mrb[14].mxu1 %vm148_vm1, %v3119_v16 }
 0xbdd   :  { %7215 = vmatpush1.bf16.msra.mxu1 %v10409_v37  ;;  %7211 = vmatpush1.bf16.msra.mxu0 %v10410_v24 }
 0xbde   :  { %7217 = vmatprep.subr.bf16.mxu1 %v10411_v4  ;;  %7229 = vmatprep.subr.bf16.mxu0 %v10412_v14 }
 0xbdf   :  { %3523 = vmatprep.mubr.f32.mxu1 %v10390_v28 }
 0xbe1   :  { %7219 = vmatpush1.bf16.msra.mxu1 %v10413_v62 }
 0xbe2   :  { %7221 = vmatprep.subr.bf16.mxu1 %v10414_v35 }
 0xbe5   :  { %7223 = vmatpush1.bf16.msra.mxu1 %v10415_v23 }
 0xbe6   :  { %7225 = vmatprep.subr.bf16.mxu1 %v10416_v32 }
 0xbe9   :  { %7227 = vmatpush1.bf16.msra.mxu1 %v10417_v30 }
 0xbea   :  { %7245 = vmatprep.subr.bf16.mxu1 %v10418_v25 }
 0xc9f   :  { %v3188_v56 = vpop.f32.mrb[12].mxu1 }
 0xca0   :  { %v3190_v19 = vpop.f32.mrb[13].mxu1  ;;  %v3189_v63 = vadd.f32 %v3188_v56, %v9405_v59 }
 0xca1   :  { %v3191_v46 = vadd.f32 %v3190_v19, %v9423_v3 }
 0xca3   :  { %v3264_v27 = vpop.f32.mrb[38].mxu0 }
 0xca4   :  { %v3265_v1 = vadd.f32 %v3264_v27, %v9409_v18  ;;  %v3266_v41 = vpop.f32.mrb[39].mxu0 }
 0xca5   :  { %v3267_v2 = vadd.f32 %v3266_v41, %v9418_v38 }
 0xca6   :  { %v3269_v31 = vadd.f32 %v3265_v1, %v3189_v63 }
 0xca8   :  { %v6857_v43 = vmul.f32 -1.442695, %v3269_v31 }
 0xcaa   :  { %8008 = vpow2.f32 %v6857_v43 }
 0xcaf   :  { %v3355_v6 = vpop.f32.mrb[14].mxu1 }
 0xcb0   :  { %v3356_v42 = vadd.f32 %v3355_v6, %v10385_v11  ;;  %v3357_v57 = vpop.f32.mrb[15].mxu1 }
 0xcb1   :  { %v3358_v48 = vadd.f32 %v3357_v57, %v10391_v9 }
 0xcb2   :  { %v3360_v54 = vadd.f32 %v3356_v42, %v3287_v51 }
 0xcb4   :  { %v8009_v21 = vpop.eup %8008  ;;  %v6859_v60 = vmul.f32 -1.442695, %v3360_v54 }
 0xcb5   :  { %v3273_v13 = vadd.f32 1.0, %v8009_v21 }
 0xcb6   :  { %8010 = vpow2.f32 %v6859_v60 }
 0xcb7   :  { %8012 = vrcp.f32 %v3273_v13 }
 0xcc0   :  { %v8011_v20 = vpop.eup %8010 }
 0xcc1   :  { %v8013_v29 = vpop.eup %8012  ;;  %v3364_v10 = vadd.f32 1.0, %v8011_v20 }
 0xcc2   :  { %v3276_v44 = vmul.f32 %v8013_v29, %v3267_v2  ;;  %v3279_v1 = vsub.f32 1.0, %v8013_v29  ;;  %v3285_v31 = vmul.f32 %v8013_v29, %v9544_v5 }
 0xcc3   :  { %8014 = vrcp.f32 %v3364_v10 }
 0xcc4   :  { %v3277_v50 = vadd.f32 %v3276_v44, %v3191_v46  ;;  %v3548_v46 = vld [vmem:[#allocation2 + $0x40] sm:$0xff] }
 0xccd   :  { %v8015_v40 = vpop.eup %8014 }
 0xcce   :  { %v3367_v12 = vmul.f32 %v8015_v40, %v3358_v48  ;;  %v3370_v22 = vsub.f32 1.0, %v8015_v40  ;;  %v3376_v19 = vmul.f32 %v8015_v40, %v9539_v47 }
 0xcd0   :  { %v3368_v45 = vadd.f32 %v3367_v12, %v3288_v0 }
 0xcd2   :  { %8016 = vtanh.f32 %v3368_v45 }
 0xcd3   :  { %8018 = vtanh.f32 %v3277_v50 }
 0xcdc   :  { %v8017_v52 = vpop.eup %8016 }
 0xcdd   :  { %3372 = vrot.lane.b32.xlu1 %v8017_v52, %s8343_s6  ;;  %v8019_v16 = vpop.eup %8018 }
 0xce1   :  { %3281 = vrot.lane.b32.xlu1 %v8019_v16, %s8343_s6 }
 0xd4f   :  { %v3373_v56 = vpop.permute.xlu1 %3372 }
 0xd50   :  { %v3375_v27 = vmul.f32 %v3373_v56, %v3370_v22 }
 0xd52   :  { %v9587_v63 = vadd.f32 %v3376_v19, %v3375_v27 }
 0xd53   :  { %v3282_v41 = vpop.permute.xlu1 %3281 }
 0xd54   :  { %v3284_v43 = vmul.f32 %v3282_v41, %v3279_v1  ;;  %3379 = vrot.lane.b32.xlu0 %v9587_v63, %s8343_s6  ;;  %v3549_v41 = vld [vmem:[#allocation2 + $0x48] sm:$0xff] }
 0xd56   :  { %v9592_v6 = vadd.f32 %v3285_v31, %v3284_v43 }
 0xd58   :  { %3455 = vrot.lane.b32.xlu0 %v9592_v6, %s8343_s6 }
 0xdc6   :  { %v3380_v42 = vpop.permute.xlu0 %3379 }
 0xdc7   :  { %6860 = vmatmul.mubr.msk.f32.vlgmr.msra.gmra.mrb[40].mxu0 %vm148_vm1, %v3380_v42 }
 0xdc8   :  { %7231 = vmatpush1.bf16.msra.mxu0 %v10395_v33  ;;  %3614 = vmatprep.mubr.f32.mxu0 %v10390_v28 }
 0xdc9   :  { %7233 = vmatprep.subr.bf16.mxu0 %v10396_v26 }
 0xdca   :  { %v3456_v47 = vpop.permute.xlu0 %3455 }
 0xdcb   :  { %6861 = vmatmul.mubr.msk.f32.vlgmr.msra.gmra.mrb[16].mxu1 %vm148_vm1, %v3456_v47 }
 0xdcc   :  { %7235 = vmatpush1.bf16.msra.mxu0 %v10397_v61  ;;  %7247 = vmatpush1.bf16.msra.mxu1 %v10398_v39 }
 0xdcd   :  { %7237 = vmatprep.subr.bf16.mxu0 %v10399_v34  ;;  %7249 = vmatprep.subr.bf16.mxu1 %v10400_v49 }
 0xdce   :  { %3708 = vmatprep.mubr.f32.mxu1 %v10390_v28 }
 0xdd0   :  { %7239 = vmatpush1.bf16.msra.mxu0 %v10401_v36  ;;  %7251 = vmatpush1.bf16.msra.mxu1 %v10402_v53 }
 0xdd1   :  { %7241 = vmatprep.subr.bf16.mxu0 %v10403_v58  ;;  %7253 = vmatprep.subr.bf16.mxu1 %v10404_v15 }
 0xdd4   :  { %7243 = vmatpush1.bf16.msra.mxu0 %v10405_v55  ;;  %7255 = vmatpush1.bf16.msra.mxu1 %v10406_v7 }
 0xdd5   :  { %7261 = vmatprep.subr.bf16.mxu0 %v10407_v17  ;;  %7257 = vmatprep.subr.bf16.mxu1 %v10408_v8 }
 0xdd7   :  { %6863 = vmatmul.mubr.msk.f32.vlgmr.msra.gmra.mrb[42].mxu0 %vm148_vm1, %v3380_v42 }
 0xdd8   :  { %7263 = vmatpush1.bf16.msra.mxu0 %v10409_v37  ;;  %7259 = vmatpush1.bf16.msra.mxu1 %v10410_v24 }
 0xdd9   :  { %7265 = vmatprep.subr.bf16.mxu0 %v10411_v4  ;;  %7277 = vmatprep.subr.bf16.mxu1 %v10412_v14 }
 0xdda   :  { %3784 = vmatprep.mubr.f32.mxu0 %v10390_v28 }
 0xddc   :  { %7267 = vmatpush1.bf16.msra.mxu0 %v10413_v62 }
 0xddd   :  { %7269 = vmatprep.subr.bf16.mxu0 %v10414_v35 }
 0xde0   :  { %7271 = vmatpush1.bf16.msra.mxu0 %v10415_v23 }
 0xde1   :  { %7273 = vmatprep.subr.bf16.mxu0 %v10416_v32 }
 0xde4   :  { %7275 = vmatpush1.bf16.msra.mxu0 %v10417_v30 }
 0xde5   :  { %7293 = vmatprep.subr.bf16.mxu0 %v10418_v25 }
 0xe9a   :  { %v3449_v5 = vpop.f32.mrb[40].mxu0 }
 0xe9b   :  { %v3451_v57 = vpop.f32.mrb[41].mxu0  ;;  %v3450_v54 = vadd.f32 %v3449_v5, %v9405_v59 }
 0xe9c   :  { %v3452_v16 = vadd.f32 %v3451_v57, %v9423_v3 }
 0xe9e   :  { %v3525_v51 = vpop.f32.mrb[16].mxu1 }
 0xe9f   :  { %v3526_v21 = vadd.f32 %v3525_v51, %v9409_v18  ;;  %v3527_v60 = vpop.f32.mrb[17].mxu1 }
 0xea0   :  { %v3528_v0 = vadd.f32 %v3527_v60, %v9418_v38 }
 0xea1   :  { %v3530_v13 = vadd.f32 %v3526_v21, %v3450_v54 }
 0xea3   :  { %v6862_v20 = vmul.f32 -1.442695, %v3530_v13 }
 0xea5   :  { %8020 = vpow2.f32 %v6862_v20 }
 0xeaa   :  { %v3616_v2 = vpop.f32.mrb[42].mxu0 }
 0xeab   :  { %v3617_v29 = vadd.f32 %v3616_v2, %v10385_v11  ;;  %v3618_v10 = vpop.f32.mrb[43].mxu0 }
 0xeac   :  { %v3619_v19 = vadd.f32 %v3618_v10, %v10391_v9 }
 0xead   :  { %v3621_v44 = vadd.f32 %v3617_v29, %v3548_v46 }
 0xeaf   :  { %v8021_v50 = vpop.eup %8020  ;;  %v6864_v48 = vmul.f32 -1.442695, %v3621_v44 }
 0xeb0   :  { %v3534_v40 = vadd.f32 1.0, %v8021_v50 }
 0xeb1   :  { %8022 = vpow2.f32 %v6864_v48 }
 0xeb2   :  { %8024 = vrcp.f32 %v3534_v40 }
 0xebb   :  { %v8023_v12 = vpop.eup %8022 }
 0xebc   :  { %v8025_v45 = vpop.eup %8024  ;;  %v3625_v52 = vadd.f32 1.0, %v8023_v12 }
 0xebd   :  { %v3537_v22 = vmul.f32 %v8025_v45, %v3528_v0  ;;  %v3540_v21 = vsub.f32 1.0, %v8025_v45  ;;  %v3546_v13 = vmul.f32 %v8025_v45, %v9592_v6 }
 0xebe   :  { %8026 = vrcp.f32 %v3625_v52 }
 0xebf   :  { %v3538_v56 = vadd.f32 %v3537_v22, %v3452_v16  ;;  %v3809_v16 = vld [vmem:[#allocation2 + $0x50] sm:$0xff] }
 0xec8   :  { %v8027_v27 = vpop.eup %8026 }
 0xec9   :  { %v3628_v1 = vmul.f32 %v8027_v27, %v3619_v19  ;;  %v3631_v47 = vsub.f32 1.0, %v8027_v27  ;;  %v3637_v57 = vmul.f32 %v8027_v27, %v9587_v63 }
 0xecb   :  { %v3629_v31 = vadd.f32 %v3628_v1, %v3549_v41 }
 0xecd   :  { %8028 = vtanh.f32 %v3629_v31 }
 0xece   :  { %8030 = vtanh.f32 %v3538_v56 }
 0xed7   :  { %v8029_v43 = vpop.eup %8028 }
 0xed8   :  { %3633 = vrot.lane.b32.xlu1 %v8029_v43, %s8343_s6  ;;  %v8031_v42 = vpop.eup %8030 }
 0xedc   :  { %3542 = vrot.lane.b32.xlu1 %v8031_v42, %s8343_s6 }
 0xf4a   :  { %v3634_v5 = vpop.permute.xlu1 %3633 }
 0xf4b   :  { %v3636_v51 = vmul.f32 %v3634_v5, %v3631_v47 }
 0xf4d   :  { %v9635_v54 = vadd.f32 %v3637_v57, %v3636_v51 }
 0xf4e   :  { %v3543_v60 = vpop.permute.xlu1 %3542 }
 0xf4f   :  { %v3545_v20 = vmul.f32 %v3543_v60, %v3540_v21  ;;  %3640 = vrot.lane.b32.xlu0 %v9635_v54, %s8343_s6  ;;  %v3810_v60 = vld [vmem:[#allocation2 + $0x58] sm:$0xff] }
 0xf51   :  { %v9640_v2 = vadd.f32 %v3546_v13, %v3545_v20 }
 0xf53   :  { %3716 = vrot.lane.b32.xlu0 %v9640_v2, %s8343_s6 }
 0xfc1   :  { %v3641_v29 = vpop.permute.xlu0 %3640 }
 0xfc2   :  { %6865 = vmatmul.mubr.msk.f32.vlgmr.msra.gmra.mrb[18].mxu1 %vm148_vm1, %v3641_v29 }
 0xfc3   :  { %7279 = vmatpush1.bf16.msra.mxu1 %v10395_v33  ;;  %3875 = vmatprep.mubr.f32.mxu1 %v10390_v28 }
 0xfc4   :  { %7281 = vmatprep.subr.bf16.mxu1 %v10396_v26 }
 0xfc5   :  { %v3717_v63 = vpop.permute.xlu0 %3716 }
 0xfc6   :  { %6866 = vmatmul.mubr.msk.f32.vlgmr.msra.gmra.mrb[44].mxu0 %vm148_vm1, %v3717_v63 }
 0xfc7   :  { %7283 = vmatpush1.bf16.msra.mxu1 %v10397_v61  ;;  %7295 = vmatpush1.bf16.msra.mxu0 %v10398_v39 }
 0xfc8   :  { %7285 = vmatprep.subr.bf16.mxu1 %v10399_v34  ;;  %7297 = vmatprep.subr.bf16.mxu0 %v10400_v49 }
 0xfc9   :  { %3969 = vmatprep.mubr.f32.mxu0 %v10390_v28 }
 0xfcb   :  { %7287 = vmatpush1.bf16.msra.mxu1 %v10401_v36  ;;  %7299 = vmatpush1.bf16.msra.mxu0 %v10402_v53 }
 0xfcc   :  { %7289 = vmatprep.subr.bf16.mxu1 %v10403_v58  ;;  %7301 = vmatprep.subr.bf16.mxu0 %v10404_v15 }
 0xfcf   :  { %7291 = vmatpush1.bf16.msra.mxu1 %v10405_v55  ;;  %7303 = vmatpush1.bf16.msra.mxu0 %v10406_v7 }
 0xfd0   :  { %7309 = vmatprep.subr.bf16.mxu1 %v10407_v17  ;;  %7305 = vmatprep.subr.bf16.mxu0 %v10408_v8 }
 0xfd2   :  { %6868 = vmatmul.mubr.msk.f32.vlgmr.msra.gmra.mrb[20].mxu1 %vm148_vm1, %v3641_v29 }
 0xfd3   :  { %7311 = vmatpush1.bf16.msra.mxu1 %v10409_v37  ;;  %7307 = vmatpush1.bf16.msra.mxu0 %v10410_v24 }
 0xfd4   :  { %7313 = vmatprep.subr.bf16.mxu1 %v10411_v4  ;;  %7325 = vmatprep.subr.bf16.mxu0 %v10412_v14 }
 0xfd5   :  { %4045 = vmatprep.mubr.f32.mxu1 %v10390_v28 }
 0xfd7   :  { %7315 = vmatpush1.bf16.msra.mxu1 %v10413_v62 }
 0xfd8   :  { %7317 = vmatprep.subr.bf16.mxu1 %v10414_v35 }
 0xfdb   :  { %7319 = vmatpush1.bf16.msra.mxu1 %v10415_v23 }
 0xfdc   :  { %7321 = vmatprep.subr.bf16.mxu1 %v10416_v32 }
 0xfdf   :  { %7323 = vmatpush1.bf16.msra.mxu1 %v10417_v30 }
 0xfe0   :  { %7341 = vmatprep.subr.bf16.mxu1 %v10418_v25 }
0x1095   :  { %v3710_v6 = vpop.f32.mrb[18].mxu1 }
0x1096   :  { %v3712_v10 = vpop.f32.mrb[19].mxu1  ;;  %v3711_v44 = vadd.f32 %v3710_v6, %v9405_v59 }
0x1097   :  { %v3713_v42 = vadd.f32 %v3712_v10, %v9423_v3 }
0x1099   :  { %v3786_v46 = vpop.f32.mrb[44].mxu0 }
0x109a   :  { %v3787_v50 = vadd.f32 %v3786_v46, %v9409_v18  ;;  %v3788_v48 = vpop.f32.mrb[45].mxu0 }
0x109b   :  { %v3789_v41 = vadd.f32 %v3788_v48, %v9418_v38 }
0x109c   :  { %v3791_v40 = vadd.f32 %v3787_v50, %v3711_v44 }
0x109e   :  { %v6867_v12 = vmul.f32 -1.442695, %v3791_v40 }
0x10a0   :  { %8032 = vpow2.f32 %v6867_v12 }
0x10a5   :  { %v3877_v0 = vpop.f32.mrb[20].mxu1 }
0x10a6   :  { %v3878_v45 = vadd.f32 %v3877_v0, %v10385_v11  ;;  %v3879_v52 = vpop.f32.mrb[21].mxu1 }
0x10a7   :  { %v3880_v57 = vadd.f32 %v3879_v52, %v10391_v9 }
0x10a8   :  { %v3882_v22 = vadd.f32 %v3878_v45, %v3809_v16 }
0x10aa   :  { %v8033_v56 = vpop.eup %8032  ;;  %v6869_v19 = vmul.f32 -1.442695, %v3882_v22 }
0x10ab   :  { %v3795_v27 = vadd.f32 1.0, %v8033_v56 }
0x10ac   :  { %8034 = vpow2.f32 %v6869_v19 }
0x10ad   :  { %8036 = vrcp.f32 %v3795_v27 }
0x10b6   :  { %v8035_v1 = vpop.eup %8034 }
0x10b7   :  { %v8037_v31 = vpop.eup %8036  ;;  %v3886_v43 = vadd.f32 1.0, %v8035_v1 }
0x10b8   :  { %v3798_v47 = vmul.f32 %v8037_v31, %v3789_v41  ;;  %v3801_v50 = vsub.f32 1.0, %v8037_v31  ;;  %v3807_v40 = vmul.f32 %v8037_v31, %v9640_v2 }
0x10b9   :  { %8038 = vrcp.f32 %v3886_v43 }
0x10ba   :  { %v3799_v5 = vadd.f32 %v3798_v47, %v3713_v42  ;;  %v4070_v42 = vld [vmem:[#allocation2 + $0x60] sm:$0xff] }
0x10c3   :  { %v8039_v51 = vpop.eup %8038 }
0x10c4   :  { %v3889_v21 = vmul.f32 %v8039_v51, %v3880_v57  ;;  %v3892_v63 = vsub.f32 1.0, %v8039_v51  ;;  %v3898_v10 = vmul.f32 %v8039_v51, %v9635_v54 }
0x10c6   :  { %v3890_v13 = vadd.f32 %v3889_v21, %v3810_v60 }
0x10c8   :  { %8040 = vtanh.f32 %v3890_v13 }
0x10c9   :  { %8042 = vtanh.f32 %v3799_v5 }
0x10d2   :  { %v8041_v20 = vpop.eup %8040 }
0x10d3   :  { %3894 = vrot.lane.b32.xlu1 %v8041_v20, %s8343_s6  ;;  %v8043_v29 = vpop.eup %8042 }
0x10d7   :  { %3803 = vrot.lane.b32.xlu1 %v8043_v29, %s8343_s6 }
0x1145   :  { %v3895_v6 = vpop.permute.xlu1 %3894 }
0x1146   :  { %v3897_v46 = vmul.f32 %v3895_v6, %v3892_v63 }
0x1148   :  { %v9683_v44 = vadd.f32 %v3898_v10, %v3897_v46 }
0x1149   :  { %v3804_v48 = vpop.permute.xlu1 %3803 }
0x114a   :  { %v3806_v12 = vmul.f32 %v3804_v48, %v3801_v50  ;;  %3901 = vrot.lane.b32.xlu0 %v9683_v44, %s8343_s6  ;;  %v4071_v48 = vld [vmem:[#allocation2 + $0x68] sm:$0xff] }
0x114c   :  { %v9688_v0 = vadd.f32 %v3807_v40, %v3806_v12 }
0x114e   :  { %3977 = vrot.lane.b32.xlu0 %v9688_v0, %s8343_s6 }
0x11bc   :  { %v3902_v45 = vpop.permute.xlu0 %3901 }
0x11bd   :  { %6870 = vmatmul.mubr.msk.f32.vlgmr.msra.gmra.mrb[46].mxu0 %vm148_vm1, %v3902_v45 }
0x11be   :  { %7327 = vmatpush1.bf16.msra.mxu0 %v10395_v33  ;;  %4136 = vmatprep.mubr.f32.mxu0 %v10390_v28 }
0x11bf   :  { %7329 = vmatprep.subr.bf16.mxu0 %v10396_v26 }
0x11c0   :  { %v3978_v54 = vpop.permute.xlu0 %3977 }
0x11c1   :  { %6871 = vmatmul.mubr.msk.f32.vlgmr.msra.gmra.mrb[22].mxu1 %vm148_vm1, %v3978_v54 }
0x11c2   :  { %7331 = vmatpush1.bf16.msra.mxu0 %v10397_v61  ;;  %7343 = vmatpush1.bf16.msra.mxu1 %v10398_v39 }
0x11c3   :  { %7333 = vmatprep.subr.bf16.mxu0 %v10399_v34  ;;  %7345 = vmatprep.subr.bf16.mxu1 %v10400_v49 }
0x11c4   :  { %4230 = vmatprep.mubr.f32.mxu1 %v10390_v28 }
0x11c6   :  { %7335 = vmatpush1.bf16.msra.mxu0 %v10401_v36  ;;  %7347 = vmatpush1.bf16.msra.mxu1 %v10402_v53 }
0x11c7   :  { %7337 = vmatprep.subr.bf16.mxu0 %v10403_v58  ;;  %7349 = vmatprep.subr.bf16.mxu1 %v10404_v15 }
0x11ca   :  { %7339 = vmatpush1.bf16.msra.mxu0 %v10405_v55  ;;  %7351 = vmatpush1.bf16.msra.mxu1 %v10406_v7 }
0x11cb   :  { %7357 = vmatprep.subr.bf16.mxu0 %v10407_v17  ;;  %7353 = vmatprep.subr.bf16.mxu1 %v10408_v8 }
0x11cd   :  { %6873 = vmatmul.mubr.msk.f32.vlgmr.msra.gmra.mrb[48].mxu0 %vm148_vm1, %v3902_v45 }
0x11ce   :  { %7359 = vmatpush1.bf16.msra.mxu0 %v10409_v37  ;;  %7355 = vmatpush1.bf16.msra.mxu1 %v10410_v24 }
0x11cf   :  { %7361 = vmatprep.subr.bf16.mxu0 %v10411_v4  ;;  %7373 = vmatprep.subr.bf16.mxu1 %v10412_v14 }
0x11d0   :  { %4306 = vmatprep.mubr.f32.mxu0 %v10390_v28 }
0x11d2   :  { %7363 = vmatpush1.bf16.msra.mxu0 %v10413_v62 }
0x11d3   :  { %7365 = vmatprep.subr.bf16.mxu0 %v10414_v35 }
0x11d6   :  { %7367 = vmatpush1.bf16.msra.mxu0 %v10415_v23 }
0x11d7   :  { %7369 = vmatprep.subr.bf16.mxu0 %v10416_v32 }
0x11da   :  { %7371 = vmatpush1.bf16.msra.mxu0 %v10417_v30 }
0x11db   :  { %7389 = vmatprep.subr.bf16.mxu0 %v10418_v25 }
0x1290   :  { %v3971_v2 = vpop.f32.mrb[46].mxu0 }
0x1291   :  { %v3973_v52 = vpop.f32.mrb[47].mxu0  ;;  %v3972_v22 = vadd.f32 %v3971_v2, %v9405_v59 }
0x1292   :  { %v3974_v29 = vadd.f32 %v3973_v52, %v9423_v3 }
0x1294   :  { %v4047_v16 = vpop.f32.mrb[22].mxu1 }
0x1295   :  { %v4048_v56 = vadd.f32 %v4047_v16, %v9409_v18  ;;  %v4049_v19 = vpop.f32.mrb[23].mxu1 }
0x1296   :  { %v4050_v60 = vadd.f32 %v4049_v19, %v9418_v38 }
0x1297   :  { %v4052_v27 = vadd.f32 %v4048_v56, %v3972_v22 }
0x1299   :  { %v6872_v1 = vmul.f32 -1.442695, %v4052_v27 }
0x129b   :  { %8044 = vpow2.f32 %v6872_v1 }
0x12a0   :  { %v4138_v41 = vpop.f32.mrb[48].mxu0 }
0x12a1   :  { %v4139_v31 = vadd.f32 %v4138_v41, %v10385_v11  ;;  %v4140_v43 = vpop.f32.mrb[49].mxu0 }
0x12a2   :  { %v4141_v10 = vadd.f32 %v4140_v43, %v10391_v9 }
0x12a3   :  { %v4143_v47 = vadd.f32 %v4139_v31, %v4070_v42 }
0x12a5   :  { %v8045_v5 = vpop.eup %8044  ;;  %v6874_v57 = vmul.f32 -1.442695, %v4143_v47 }
0x12a6   :  { %v4056_v51 = vadd.f32 1.0, %v8045_v5 }
0x12a7   :  { %8046 = vpow2.f32 %v6874_v57 }
0x12a8   :  { %8048 = vrcp.f32 %v4056_v51 }
0x12b1   :  { %v8047_v21 = vpop.eup %8046 }
0x12b2   :  { %v8049_v13 = vpop.eup %8048  ;;  %v4147_v20 = vadd.f32 1.0, %v8047_v21 }
0x12b3   :  { %v4059_v63 = vmul.f32 %v8049_v13, %v4050_v60  ;;  %v4062_v56 = vsub.f32 1.0, %v8049_v13  ;;  %v4068_v27 = vmul.f32 %v8049_v13, %v9688_v0 }
0x12b4   :  { %8050 = vrcp.f32 %v4147_v20 }
0x12b5   :  { %v4060_v6 = vadd.f32 %v4059_v63, %v3974_v29  ;;  %v4331_v29 = vld [vmem:[#allocation2 + $0x70] sm:$0xff] }
0x12be   :  { %v8051_v46 = vpop.eup %8050 }
0x12bf   :  { %v4150_v50 = vmul.f32 %v8051_v46, %v4141_v10  ;;  %v4153_v54 = vsub.f32 1.0, %v8051_v46  ;;  %v4159_v52 = vmul.f32 %v8051_v46, %v9683_v44 }
0x12c1   :  { %v4151_v40 = vadd.f32 %v4150_v50, %v4071_v48 }
0x12c3   :  { %8052 = vtanh.f32 %v4151_v40 }
0x12c4   :  { %8054 = vtanh.f32 %v4060_v6 }
0x12cd   :  { %v8053_v12 = vpop.eup %8052 }
0x12ce   :  { %4155 = vrot.lane.b32.xlu1 %v8053_v12, %s8343_s6  ;;  %v8055_v45 = vpop.eup %8054 }
0x12d2   :  { %4064 = vrot.lane.b32.xlu1 %v8055_v45, %s8343_s6 }
0x1340   :  { %v4156_v2 = vpop.permute.xlu1 %4155 }
0x1341   :  { %v4158_v16 = vmul.f32 %v4156_v2, %v4153_v54 }
0x1343   :  { %v9731_v22 = vadd.f32 %v4159_v52, %v4158_v16 }
0x1344   :  { %v4065_v19 = vpop.permute.xlu1 %4064 }
0x1345   :  { %v4067_v1 = vmul.f32 %v4065_v19, %v4062_v56  ;;  %4162 = vrot.lane.b32.xlu0 %v9731_v22, %s8343_s6  ;;  %v4332_v19 = vld [vmem:[#allocation2 + $0x78] sm:$0xff] }
0x1347   :  { %v9736_v41 = vadd.f32 %v4068_v27, %v4067_v1 }
0x1349   :  { %4238 = vrot.lane.b32.xlu0 %v9736_v41, %s8343_s6 }
0x13b7   :  { %v4163_v31 = vpop.permute.xlu0 %4162 }
0x13b8   :  { %6875 = vmatmul.mubr.msk.f32.vlgmr.msra.gmra.mrb[24].mxu1 %vm148_vm1, %v4163_v31 }
0x13b9   :  { %7375 = vmatpush1.bf16.msra.mxu1 %v10395_v33  ;;  %4397 = vmatprep.mubr.f32.mxu1 %v10390_v28 }
0x13ba   :  { %7377 = vmatprep.subr.bf16.mxu1 %v10396_v26 }
0x13bb   :  { %v4239_v44 = vpop.permute.xlu0 %4238 }
0x13bc   :  { %6876 = vmatmul.mubr.msk.f32.vlgmr.msra.gmra.mrb[50].mxu0 %vm148_vm1, %v4239_v44 }
0x13bd   :  { %7379 = vmatpush1.bf16.msra.mxu1 %v10397_v61  ;;  %7391 = vmatpush1.bf16.msra.mxu0 %v10398_v39 }
0x13be   :  { %7381 = vmatprep.subr.bf16.mxu1 %v10399_v34  ;;  %7393 = vmatprep.subr.bf16.mxu0 %v10400_v49 }
0x13bf   :  { %4491 = vmatprep.mubr.f32.mxu0 %v10390_v28 }
0x13c1   :  { %7383 = vmatpush1.bf16.msra.mxu1 %v10401_v36  ;;  %7395 = vmatpush1.bf16.msra.mxu0 %v10402_v53 }
0x13c2   :  { %7385 = vmatprep.subr.bf16.mxu1 %v10403_v58  ;;  %7397 = vmatprep.subr.bf16.mxu0 %v10404_v15 }
0x13c5   :  { %7387 = vmatpush1.bf16.msra.mxu1 %v10405_v55  ;;  %7399 = vmatpush1.bf16.msra.mxu0 %v10406_v7 }
0x13c6   :  { %7405 = vmatprep.subr.bf16.mxu1 %v10407_v17  ;;  %7401 = vmatprep.subr.bf16.mxu0 %v10408_v8 }
0x13c8   :  { %6878 = vmatmul.mubr.msk.f32.vlgmr.msra.gmra.mrb[26].mxu1 %vm148_vm1, %v4163_v31 }
0x13c9   :  { %7407 = vmatpush1.bf16.msra.mxu1 %v10409_v37  ;;  %7403 = vmatpush1.bf16.msra.mxu0 %v10410_v24 }
0x13ca   :  { %7409 = vmatprep.subr.bf16.mxu1 %v10411_v4  ;;  %7421 = vmatprep.subr.bf16.mxu0 %v10412_v14 }
0x13cb   :  { %4567 = vmatprep.mubr.f32.mxu1 %v10390_v28 }
0x13cd   :  { %7411 = vmatpush1.bf16.msra.mxu1 %v10413_v62 }
0x13ce   :  { %7413 = vmatprep.subr.bf16.mxu1 %v10414_v35 }
0x13d1   :  { %7415 = vmatpush1.bf16.msra.mxu1 %v10415_v23 }
0x13d2   :  { %7417 = vmatprep.subr.bf16.mxu1 %v10416_v32 }
0x13d5   :  { %7419 = vmatpush1.bf16.msra.mxu1 %v10417_v30 }
0x13d6   :  { %7437 = vmatprep.subr.bf16.mxu1 %v10418_v25 }
0x148b   :  { %v4232_v0 = vpop.f32.mrb[24].mxu1 }
0x148c   :  { %v4234_v43 = vpop.f32.mrb[25].mxu1  ;;  %v4233_v47 = vadd.f32 %v4232_v0, %v9405_v59 }
0x148d   :  { %v4235_v45 = vadd.f32 %v4234_v43, %v9423_v3 }
0x148f   :  { %v4308_v42 = vpop.f32.mrb[50].mxu0 }
0x1490   :  { %v4309_v5 = vadd.f32 %v4308_v42, %v9409_v18  ;;  %v4310_v57 = vpop.f32.mrb[51].mxu0 }
0x1491   :  { %v4311_v48 = vadd.f32 %v4310_v57, %v9418_v38 }
0x1492   :  { %v4313_v51 = vadd.f32 %v4309_v5, %v4233_v47 }
0x1494   :  { %v6877_v21 = vmul.f32 -1.442695, %v4313_v51 }
0x1496   :  { %8056 = vpow2.f32 %v6877_v21 }
0x149b   :  { %v4399_v60 = vpop.f32.mrb[26].mxu1 }
0x149c   :  { %v4400_v13 = vadd.f32 %v4399_v60, %v10385_v11  ;;  %v4401_v20 = vpop.f32.mrb[27].mxu1 }
0x149d   :  { %v4402_v52 = vadd.f32 %v4401_v20, %v10391_v9 }
0x149e   :  { %v4404_v63 = vadd.f32 %v4400_v13, %v4331_v29 }
0x14a0   :  { %v8057_v6 = vpop.eup %8056  ;;  %v6879_v10 = vmul.f32 -1.442695, %v4404_v63 }
0x14a1   :  { %v4317_v46 = vadd.f32 1.0, %v8057_v6 }
0x14a2   :  { %8058 = vpow2.f32 %v6879_v10 }
0x14a3   :  { %8060 = vrcp.f32 %v4317_v46 }
0x14ac   :  { %v8059_v50 = vpop.eup %8058 }
0x14ad   :  { %v8061_v40 = vpop.eup %8060  ;;  %v4408_v12 = vadd.f32 1.0, %v8059_v50 }
0x14ae   :  { %v4320_v54 = vmul.f32 %v8061_v40, %v4311_v48  ;;  %v4323_v5 = vsub.f32 1.0, %v8061_v40  ;;  %v4329_v51 = vmul.f32 %v8061_v40, %v9736_v41 }
0x14af   :  { %8062 = vrcp.f32 %v4408_v12 }
0x14b0   :  { %v4321_v2 = vadd.f32 %v4320_v54, %v4235_v45  ;;  %v4592_v45 = vld [vmem:[#allocation2 + $0x80] sm:$0xff] }
0x14b9   :  { %v8063_v16 = vpop.eup %8062 }
0x14ba   :  { %v4411_v56 = vmul.f32 %v8063_v16, %v4402_v52  ;;  %v4414_v44 = vsub.f32 1.0, %v8063_v16  ;;  %v4420_v43 = vmul.f32 %v8063_v16, %v9731_v22 }
0x14bc   :  { %v4412_v27 = vadd.f32 %v4411_v56, %v4332_v19 }
0x14be   :  { %8064 = vtanh.f32 %v4412_v27 }
0x14bf   :  { %8066 = vtanh.f32 %v4321_v2 }
0x14c8   :  { %v8065_v1 = vpop.eup %8064 }
0x14c9   :  { %4416 = vrot.lane.b32.xlu1 %v8065_v1, %s8343_s6  ;;  %v8067_v31 = vpop.eup %8066 }
0x14cd   :  { %4325 = vrot.lane.b32.xlu1 %v8067_v31, %s8343_s6 }
0x153b   :  { %v4417_v0 = vpop.permute.xlu1 %4416 }
0x153c   :  { %v4419_v42 = vmul.f32 %v4417_v0, %v4414_v44 }
0x153e   :  { %v9779_v47 = vadd.f32 %v4420_v43, %v4419_v42 }
0x153f   :  { %v4326_v57 = vpop.permute.xlu1 %4325 }
0x1540   :  { %v4328_v21 = vmul.f32 %v4326_v57, %v4323_v5  ;;  %4423 = vrot.lane.b32.xlu0 %v9779_v47, %s8343_s6  ;;  %v4593_v57 = vld [vmem:[#allocation2 + $0x88] sm:$0xff] }
0x1542   :  { %v9784_v60 = vadd.f32 %v4329_v51, %v4328_v21 }
0x1544   :  { %4499 = vrot.lane.b32.xlu0 %v9784_v60, %s8343_s6 }
0x15b2   :  { %v4424_v13 = vpop.permute.xlu0 %4423 }
0x15b3   :  { %6880 = vmatmul.mubr.msk.f32.vlgmr.msra.gmra.mrb[52].mxu0 %vm148_vm1, %v4424_v13 }
0x15b4   :  { %7423 = vmatpush1.bf16.msra.mxu0 %v10395_v33  ;;  %4658 = vmatprep.mubr.f32.mxu0 %v10390_v28 }
0x15b5   :  { %7425 = vmatprep.subr.bf16.mxu0 %v10396_v26 }
0x15b6   :  { %v4500_v22 = vpop.permute.xlu0 %4499 }
0x15b7   :  { %6881 = vmatmul.mubr.msk.f32.vlgmr.msra.gmra.mrb[28].mxu1 %vm148_vm1, %v4500_v22 }
0x15b8   :  { %7427 = vmatpush1.bf16.msra.mxu0 %v10397_v61  ;;  %7439 = vmatpush1.bf16.msra.mxu1 %v10398_v39 }
0x15b9   :  { %7429 = vmatprep.subr.bf16.mxu0 %v10399_v34  ;;  %7441 = vmatprep.subr.bf16.mxu1 %v10400_v49 }
0x15ba   :  { %4752 = vmatprep.mubr.f32.mxu1 %v10390_v28 }
0x15bc   :  { %7431 = vmatpush1.bf16.msra.mxu0 %v10401_v36  ;;  %7443 = vmatpush1.bf16.msra.mxu1 %v10402_v53 }
0x15bd   :  { %7433 = vmatprep.subr.bf16.mxu0 %v10403_v58  ;;  %7445 = vmatprep.subr.bf16.mxu1 %v10404_v15 }
0x15c0   :  { %7435 = vmatpush1.bf16.msra.mxu0 %v10405_v55  ;;  %7447 = vmatpush1.bf16.msra.mxu1 %v10406_v7 }
0x15c1   :  { %7453 = vmatprep.subr.bf16.mxu0 %v10407_v17  ;;  %7449 = vmatprep.subr.bf16.mxu1 %v10408_v8 }
0x15c3   :  { %6883 = vmatmul.mubr.msk.f32.vlgmr.msra.gmra.mrb[54].mxu0 %vm148_vm1, %v4424_v13 }
0x15c4   :  { %7455 = vmatpush1.bf16.msra.mxu0 %v10409_v37  ;;  %7451 = vmatpush1.bf16.msra.mxu1 %v10410_v24 }
0x15c5   :  { %7457 = vmatprep.subr.bf16.mxu0 %v10411_v4  ;;  %7469 = vmatprep.subr.bf16.mxu1 %v10412_v14 }
0x15c6   :  { %4828 = vmatprep.mubr.f32.mxu0 %v10390_v28 }
0x15c8   :  { %7459 = vmatpush1.bf16.msra.mxu0 %v10413_v62 }
0x15c9   :  { %7461 = vmatprep.subr.bf16.mxu0 %v10414_v35 }
0x15cc   :  { %7463 = vmatpush1.bf16.msra.mxu0 %v10415_v23 }
0x15cd   :  { %7465 = vmatprep.subr.bf16.mxu0 %v10416_v32 }
0x15d0   :  { %7467 = vmatpush1.bf16.msra.mxu0 %v10417_v30 }
0x15d1   :  { %7485 = vmatprep.subr.bf16.mxu0 %v10418_v25 }
0x1686   :  { %v4493_v41 = vpop.f32.mrb[52].mxu0 }
0x1687   :  { %v4495_v20 = vpop.f32.mrb[53].mxu0  ;;  %v4494_v63 = vadd.f32 %v4493_v41, %v9405_v59 }
0x1688   :  { %v4496_v31 = vadd.f32 %v4495_v20, %v9423_v3 }
0x168a   :  { %v4569_v29 = vpop.f32.mrb[28].mxu1 }
0x168b   :  { %v4570_v6 = vadd.f32 %v4569_v29, %v9409_v18  ;;  %v4571_v10 = vpop.f32.mrb[29].mxu1 }
0x168c   :  { %v4572_v19 = vadd.f32 %v4571_v10, %v9418_v38 }
0x168d   :  { %v4574_v46 = vadd.f32 %v4570_v6, %v4494_v63 }
0x168f   :  { %v6882_v50 = vmul.f32 -1.442695, %v4574_v46 }
0x1691   :  { %8068 = vpow2.f32 %v6882_v50 }
0x1696   :  { %v4660_v48 = vpop.f32.mrb[54].mxu0 }
0x1697   :  { %v4661_v40 = vadd.f32 %v4660_v48, %v10385_v11  ;;  %v4662_v12 = vpop.f32.mrb[55].mxu0 }
0x1698   :  { %v4663_v43 = vadd.f32 %v4662_v12, %v10391_v9 }
0x1699   :  { %v4665_v54 = vadd.f32 %v4661_v40, %v4592_v45 }
0x169b   :  { %v8069_v2 = vpop.eup %8068  ;;  %v6884_v52 = vmul.f32 -1.442695, %v4665_v54 }
0x169c   :  { %v4578_v16 = vadd.f32 1.0, %v8069_v2 }
0x169d   :  { %8070 = vpow2.f32 %v6884_v52 }
0x169e   :  { %8072 = vrcp.f32 %v4578_v16 }
0x16a7   :  { %v8071_v56 = vpop.eup %8070 }
0x16a8   :  { %v8073_v27 = vpop.eup %8072  ;;  %v4669_v1 = vadd.f32 1.0, %v8071_v56 }
0x16a9   :  { %v4581_v44 = vmul.f32 %v8073_v27, %v4572_v19  ;;  %v4584_v6 = vsub.f32 1.0, %v8073_v27  ;;  %v4590_v46 = vmul.f32 %v8073_v27, %v9784_v60 }
0x16aa   :  { %8074 = vrcp.f32 %v4669_v1 }
0x16ab   :  { %v4582_v0 = vadd.f32 %v4581_v44, %v4496_v31  ;;  %v4853_v31 = vld [vmem:[#allocation2 + $0x90] sm:$0xff] }
0x16b4   :  { %v8075_v42 = vpop.eup %8074 }
0x16b5   :  { %v4672_v5 = vmul.f32 %v8075_v42, %v4663_v43  ;;  %v4675_v22 = vsub.f32 1.0, %v8075_v42  ;;  %v4681_v20 = vmul.f32 %v8075_v42, %v9779_v47 }
0x16b7   :  { %v4673_v51 = vadd.f32 %v4672_v5, %v4593_v57 }
0x16b9   :  { %8076 = vtanh.f32 %v4673_v51 }
0x16ba   :  { %8078 = vtanh.f32 %v4582_v0 }
0x16c3   :  { %v8077_v21 = vpop.eup %8076 }
0x16c4   :  { %4677 = vrot.lane.b32.xlu1 %v8077_v21, %s8343_s6  ;;  %v8079_v13 = vpop.eup %8078 }
0x16c8   :  { %4586 = vrot.lane.b32.xlu1 %v8079_v13, %s8343_s6 }
0x1736   :  { %v4678_v41 = vpop.permute.xlu1 %4677 }
0x1737   :  { %v4680_v29 = vmul.f32 %v4678_v41, %v4675_v22 }
0x1739   :  { %v9827_v63 = vadd.f32 %v4681_v20, %v4680_v29 }
0x173a   :  { %v4587_v10 = vpop.permute.xlu1 %4586 }
0x173b   :  { %v4589_v50 = vmul.f32 %v4587_v10, %v4584_v6  ;;  %4684 = vrot.lane.b32.xlu0 %v9827_v63, %s8343_s6  ;;  %v4854_v10 = vld [vmem:[#allocation2 + $0x98] sm:$0xff] }
0x173d   :  { %v9832_v48 = vadd.f32 %v4590_v46, %v4589_v50 }
0x173f   :  { %4760 = vrot.lane.b32.xlu0 %v9832_v48, %s8343_s6 }
0x17ad   :  { %v4685_v40 = vpop.permute.xlu0 %4684 }
0x17ae   :  { %6885 = vmatmul.mubr.msk.f32.vlgmr.msra.gmra.mrb[30].mxu1 %vm148_vm1, %v4685_v40 }
0x17af   :  { %7471 = vmatpush1.bf16.msra.mxu1 %v10395_v33  ;;  %4919 = vmatprep.mubr.f32.mxu1 %v10390_v28 }
0x17b0   :  { %7473 = vmatprep.subr.bf16.mxu1 %v10396_v26 }
0x17b1   :  { %v4761_v47 = vpop.permute.xlu0 %4760 }
0x17b2   :  { %6886 = vmatmul.mubr.msk.f32.vlgmr.msra.gmra.mrb[56].mxu0 %vm148_vm1, %v4761_v47 }
0x17b3   :  { %7475 = vmatpush1.bf16.msra.mxu1 %v10397_v61  ;;  %7487 = vmatpush1.bf16.msra.mxu0 %v10398_v39 }
0x17b4   :  { %7477 = vmatprep.subr.bf16.mxu1 %v10399_v34  ;;  %7489 = vmatprep.subr.bf16.mxu0 %v10400_v49 }
0x17b5   :  { %5013 = vmatprep.mubr.f32.mxu0 %v10390_v28 }
0x17b7   :  { %7479 = vmatpush1.bf16.msra.mxu1 %v10401_v36  ;;  %7491 = vmatpush1.bf16.msra.mxu0 %v10402_v53 }
0x17b8   :  { %7481 = vmatprep.subr.bf16.mxu1 %v10403_v58  ;;  %7493 = vmatprep.subr.bf16.mxu0 %v10404_v15 }
0x17bb   :  { %7483 = vmatpush1.bf16.msra.mxu1 %v10405_v55  ;;  %7495 = vmatpush1.bf16.msra.mxu0 %v10406_v7 }
0x17bc   :  { %7501 = vmatprep.subr.bf16.mxu1 %v10407_v17  ;;  %7497 = vmatprep.subr.bf16.mxu0 %v10408_v8 }
0x17be   :  { %6888 = vmatmul.mubr.msk.f32.vlgmr.msra.gmra.mrb[32].mxu1 %vm148_vm1, %v4685_v40 }
0x17bf   :  { %7503 = vmatpush1.bf16.msra.mxu1 %v10409_v37  ;;  %7499 = vmatpush1.bf16.msra.mxu0 %v10410_v24 }
0x17c0   :  { %7505 = vmatprep.subr.bf16.mxu1 %v10411_v4  ;;  %7517 = vmatprep.subr.bf16.mxu0 %v10412_v14 }
0x17c1   :  { %5089 = vmatprep.mubr.f32.mxu1 %v10390_v28 }
0x17c3   :  { %7507 = vmatpush1.bf16.msra.mxu1 %v10413_v62 }
0x17c4   :  { %7509 = vmatprep.subr.bf16.mxu1 %v10414_v35 }
0x17c7   :  { %7511 = vmatpush1.bf16.msra.mxu1 %v10415_v23 }
0x17c8   :  { %7513 = vmatprep.subr.bf16.mxu1 %v10416_v32 }
0x17cb   :  { %7515 = vmatpush1.bf16.msra.mxu1 %v10417_v30 }
0x17cc   :  { %7533 = vmatprep.subr.bf16.mxu1 %v10418_v25 }
0x1881   :  { %v4754_v60 = vpop.f32.mrb[30].mxu1 }
0x1882   :  { %v4756_v12 = vpop.f32.mrb[31].mxu1  ;;  %v4755_v54 = vadd.f32 %v4754_v60, %v9405_v59 }
0x1883   :  { %v4757_v13 = vadd.f32 %v4756_v12, %v9423_v3 }
0x1885   :  { %v4830_v45 = vpop.f32.mrb[56].mxu0 }
0x1886   :  { %v4831_v2 = vadd.f32 %v4830_v45, %v9409_v18  ;;  %v4832_v52 = vpop.f32.mrb[57].mxu0 }
0x1887   :  { %v4833_v57 = vadd.f32 %v4832_v52, %v9418_v38 }
0x1888   :  { %v4835_v16 = vadd.f32 %v4831_v2, %v4755_v54 }
0x188a   :  { %v6887_v56 = vmul.f32 -1.442695, %v4835_v16 }
0x188c   :  { %8080 = vpow2.f32 %v6887_v56 }
0x1891   :  { %v4921_v19 = vpop.f32.mrb[32].mxu1 }
0x1892   :  { %v4922_v27 = vadd.f32 %v4921_v19, %v10385_v11  ;;  %v4923_v1 = vpop.f32.mrb[33].mxu1 }
0x1893   :  { %v4924_v20 = vadd.f32 %v4923_v1, %v10391_v9 }
0x1894   :  { %v4926_v44 = vadd.f32 %v4922_v27, %v4853_v31 }
0x1896   :  { %v8081_v0 = vpop.eup %8080  ;;  %v6889_v43 = vmul.f32 -1.442695, %v4926_v44 }
0x1897   :  { %v4839_v42 = vadd.f32 1.0, %v8081_v0 }
0x1898   :  { %8082 = vpow2.f32 %v6889_v43 }
0x1899   :  { %8084 = vrcp.f32 %v4839_v42 }
0x18a2   :  { %v8083_v5 = vpop.eup %8082 }
0x18a3   :  { %v8085_v51 = vpop.eup %8084  ;;  %v4930_v21 = vadd.f32 1.0, %v8083_v5 }
0x18a4   :  { %v4842_v22 = vmul.f32 %v8085_v51, %v4833_v57  ;;  %v4845_v2 = vsub.f32 1.0, %v8085_v51  ;;  %v4851_v16 = vmul.f32 %v8085_v51, %v9832_v48 }
0x18a5   :  { %8086 = vrcp.f32 %v4930_v21 }
0x18a6   :  { %v4843_v41 = vadd.f32 %v4842_v22, %v4757_v13  ;;  %v5114_v13 = vld [vmem:[#allocation2 + $0xa0] sm:$0xff] }
0x18af   :  { %v8087_v29 = vpop.eup %8086 }
0x18b0   :  { %v4933_v6 = vmul.f32 %v8087_v29, %v4924_v20  ;;  %v4936_v47 = vsub.f32 1.0, %v8087_v29  ;;  %v4942_v12 = vmul.f32 %v8087_v29, %v9827_v63 }
0x18b2   :  { %v4934_v46 = vadd.f32 %v4933_v6, %v4854_v10 }
0x18b4   :  { %8088 = vtanh.f32 %v4934_v46 }
0x18b5   :  { %8090 = vtanh.f32 %v4843_v41 }
0x18be   :  { %v8089_v50 = vpop.eup %8088 }
0x18bf   :  { %4938 = vrot.lane.b32.xlu1 %v8089_v50, %s8343_s6  ;;  %v8091_v40 = vpop.eup %8090 }
0x18c3   :  { %4847 = vrot.lane.b32.xlu1 %v8091_v40, %s8343_s6 }
0x1931   :  { %v4939_v60 = vpop.permute.xlu1 %4938 }
0x1932   :  { %v4941_v45 = vmul.f32 %v4939_v60, %v4936_v47 }
0x1934   :  { %v9875_v54 = vadd.f32 %v4942_v12, %v4941_v45 }
0x1935   :  { %v4848_v52 = vpop.permute.xlu1 %4847 }
0x1936   :  { %v4850_v56 = vmul.f32 %v4848_v52, %v4845_v2  ;;  %4945 = vrot.lane.b32.xlu0 %v9875_v54, %s8343_s6  ;;  %v5115_v52 = vld [vmem:[#allocation2 + $0xa8] sm:$0xff] }
0x1938   :  { %v9880_v19 = vadd.f32 %v4851_v16, %v4850_v56 }
0x193a   :  { %5021 = vrot.lane.b32.xlu0 %v9880_v19, %s8343_s6 }
0x19a8   :  { %v4946_v27 = vpop.permute.xlu0 %4945 }
0x19a9   :  { %6890 = vmatmul.mubr.msk.f32.vlgmr.msra.gmra.mrb[58].mxu0 %vm148_vm1, %v4946_v27 }
0x19aa   :  { %7519 = vmatpush1.bf16.msra.mxu0 %v10395_v33  ;;  %5180 = vmatprep.mubr.f32.mxu0 %v10390_v28 }
0x19ab   :  { %7521 = vmatprep.subr.bf16.mxu0 %v10396_v26 }
0x19ac   :  { %v5022_v63 = vpop.permute.xlu0 %5021 }
0x19ad   :  { %6891 = vmatmul.mubr.msk.f32.vlgmr.msra.gmra.mrb[34].mxu1 %vm148_vm1, %v5022_v63 }
0x19ae   :  { %7523 = vmatpush1.bf16.msra.mxu0 %v10397_v61  ;;  %7535 = vmatpush1.bf16.msra.mxu1 %v10398_v39 }
0x19af   :  { %7525 = vmatprep.subr.bf16.mxu0 %v10399_v34  ;;  %7537 = vmatprep.subr.bf16.mxu1 %v10400_v49 }
0x19b0   :  { %5274 = vmatprep.mubr.f32.mxu1 %v10390_v28 }
0x19b2   :  { %7527 = vmatpush1.bf16.msra.mxu0 %v10401_v36  ;;  %7539 = vmatpush1.bf16.msra.mxu1 %v10402_v53 }
0x19b3   :  { %7529 = vmatprep.subr.bf16.mxu0 %v10403_v58  ;;  %7541 = vmatprep.subr.bf16.mxu1 %v10404_v15 }
0x19b6   :  { %7531 = vmatpush1.bf16.msra.mxu0 %v10405_v55  ;;  %7543 = vmatpush1.bf16.msra.mxu1 %v10406_v7 }
0x19b7   :  { %7549 = vmatprep.subr.bf16.mxu0 %v10407_v17  ;;  %7545 = vmatprep.subr.bf16.mxu1 %v10408_v8 }
0x19b9   :  { %6893 = vmatmul.mubr.msk.f32.vlgmr.msra.gmra.mrb[60].mxu0 %vm148_vm1, %v4946_v27 }
0x19ba   :  { %7551 = vmatpush1.bf16.msra.mxu0 %v10409_v37  ;;  %7547 = vmatpush1.bf16.msra.mxu1 %v10410_v24 }
0x19bb   :  { %7553 = vmatprep.subr.bf16.mxu0 %v10411_v4  ;;  %7565 = vmatprep.subr.bf16.mxu1 %v10412_v14 }
0x19bc   :  { %5350 = vmatprep.mubr.f32.mxu0 %v10390_v28 }
0x19be   :  { %7555 = vmatpush1.bf16.msra.mxu0 %v10413_v62 }
0x19bf   :  { %7557 = vmatprep.subr.bf16.mxu0 %v10414_v35 }
0x19c2   :  { %7559 = vmatpush1.bf16.msra.mxu0 %v10415_v23 }
0x19c3   :  { %7561 = vmatprep.subr.bf16.mxu0 %v10416_v32 }
0x19c6   :  { %7563 = vmatpush1.bf16.msra.mxu0 %v10417_v30 }
0x19c7   :  { %7581 = vmatprep.subr.bf16.mxu0 %v10418_v25 }
0x1a7c   :  { %v5015_v48 = vpop.f32.mrb[58].mxu0 }
0x1a7d   :  { %v5017_v1 = vpop.f32.mrb[59].mxu0  ;;  %v5016_v44 = vadd.f32 %v5015_v48, %v9405_v59 }
0x1a7e   :  { %v5018_v40 = vadd.f32 %v5017_v1, %v9423_v3 }
0x1a80   :  { %v5091_v31 = vpop.f32.mrb[34].mxu1 }
0x1a81   :  { %v5092_v0 = vadd.f32 %v5091_v31, %v9409_v18  ;;  %v5093_v43 = vpop.f32.mrb[35].mxu1 }
0x1a82   :  { %v5094_v10 = vadd.f32 %v5093_v43, %v9418_v38 }
0x1a83   :  { %v5096_v42 = vadd.f32 %v5092_v0, %v5016_v44 }
0x1a85   :  { %v6892_v5 = vmul.f32 -1.442695, %v5096_v42 }
0x1a87   :  { %8092 = vpow2.f32 %v6892_v5 }
0x1a8c   :  { %v5182_v57 = vpop.f32.mrb[60].mxu0 }
0x1a8d   :  { %v5183_v51 = vadd.f32 %v5182_v57, %v10385_v11  ;;  %v5184_v21 = vpop.f32.mrb[61].mxu0 }
0x1a8e   :  { %v5185_v12 = vadd.f32 %v5184_v21, %v10391_v9 }
0x1a8f   :  { %v5187_v22 = vadd.f32 %v5183_v51, %v5114_v13 }
0x1a91   :  { %v8093_v41 = vpop.eup %8092  ;;  %v6894_v20 = vmul.f32 -1.442695, %v5187_v22 }
0x1a92   :  { %v5100_v29 = vadd.f32 1.0, %v8093_v41 }
0x1a93   :  { %8094 = vpow2.f32 %v6894_v20 }
0x1a94   :  { %8096 = vrcp.f32 %v5100_v29 }
0x1a9d   :  { %v8095_v6 = vpop.eup %8094 }
0x1a9e   :  { %v8097_v46 = vpop.eup %8096  ;;  %v5191_v50 = vadd.f32 1.0, %v8095_v6 }
0x1a9f   :  { %v5103_v47 = vmul.f32 %v8097_v46, %v5094_v10  ;;  %v5106_v0 = vsub.f32 1.0, %v8097_v46  ;;  %v5112_v42 = vmul.f32 %v8097_v46, %v9880_v19 }
0x1aa0   :  { %8098 = vrcp.f32 %v5191_v50 }
0x1aa1   :  { %v5104_v60 = vadd.f32 %v5103_v47, %v5018_v40  ;;  %v5375_v40 = vld [vmem:[#allocation2 + $0xb0] sm:$0xff] }
0x1aaa   :  { %v8099_v45 = vpop.eup %8098 }
0x1aab   :  { %v5194_v2 = vmul.f32 %v8099_v45, %v5185_v12  ;;  %v5197_v63 = vsub.f32 1.0, %v8099_v45  ;;  %v5203_v1 = vmul.f32 %v8099_v45, %v9875_v54 }
0x1aad   :  { %v5195_v16 = vadd.f32 %v5194_v2, %v5115_v52 }
0x1aaf   :  { %8100 = vtanh.f32 %v5195_v16 }
0x1ab0   :  { %8102 = vtanh.f32 %v5104_v60 }
0x1ab9   :  { %v8101_v56 = vpop.eup %8100 }
0x1aba   :  { %5199 = vrot.lane.b32.xlu1 %v8101_v56, %s8343_s6  ;;  %v8103_v27 = vpop.eup %8102 }
0x1abe   :  { %5108 = vrot.lane.b32.xlu1 %v8103_v27, %s8343_s6 }
0x1b2c   :  { %v5200_v48 = vpop.permute.xlu1 %5199 }
0x1b2d   :  { %v5202_v31 = vmul.f32 %v5200_v48, %v5197_v63 }
0x1b2f   :  { %v9923_v44 = vadd.f32 %v5203_v1, %v5202_v31 }
0x1b30   :  { %v5109_v43 = vpop.permute.xlu1 %5108 }
0x1b31   :  { %v5111_v5 = vmul.f32 %v5109_v43, %v5106_v0  ;;  %5206 = vrot.lane.b32.xlu0 %v9923_v44, %s8343_s6  ;;  %v5376_v43 = vld [vmem:[#allocation2 + $0xb8] sm:$0xff] }
0x1b33   :  { %v9928_v57 = vadd.f32 %v5112_v42, %v5111_v5 }
0x1b35   :  { %5282 = vrot.lane.b32.xlu0 %v9928_v57, %s8343_s6 }
0x1ba3   :  { %v5207_v51 = vpop.permute.xlu0 %5206 }
0x1ba4   :  { %6895 = vmatmul.mubr.msk.f32.vlgmr.msra.gmra.mrb[36].mxu1 %vm148_vm1, %v5207_v51 }
0x1ba5   :  { %7567 = vmatpush1.bf16.msra.mxu1 %v10395_v33  ;;  %5441 = vmatprep.mubr.f32.mxu1 %v10390_v28 }
0x1ba6   :  { %7569 = vmatprep.subr.bf16.mxu1 %v10396_v26 }
0x1ba7   :  { %v5283_v54 = vpop.permute.xlu0 %5282 }
0x1ba8   :  { %6896 = vmatmul.mubr.msk.f32.vlgmr.msra.gmra.mrb[62].mxu0 %vm148_vm1, %v5283_v54 }
0x1ba9   :  { %7571 = vmatpush1.bf16.msra.mxu1 %v10397_v61  ;;  %7583 = vmatpush1.bf16.msra.mxu0 %v10398_v39 }
0x1baa   :  { %7573 = vmatprep.subr.bf16.mxu1 %v10399_v34  ;;  %7585 = vmatprep.subr.bf16.mxu0 %v10400_v49 }
0x1bab   :  { %5535 = vmatprep.mubr.f32.mxu0 %v10390_v28 }
0x1bad   :  { %7575 = vmatpush1.bf16.msra.mxu1 %v10401_v36  ;;  %7587 = vmatpush1.bf16.msra.mxu0 %v10402_v53 }
0x1bae   :  { %7577 = vmatprep.subr.bf16.mxu1 %v10403_v58  ;;  %7589 = vmatprep.subr.bf16.mxu0 %v10404_v15 }
0x1bb1   :  { %7579 = vmatpush1.bf16.msra.mxu1 %v10405_v55  ;;  %7591 = vmatpush1.bf16.msra.mxu0 %v10406_v7 }
0x1bb2   :  { %7597 = vmatprep.subr.bf16.mxu1 %v10407_v17  ;;  %7593 = vmatprep.subr.bf16.mxu0 %v10408_v8 }
0x1bb4   :  { %6898 = vmatmul.mubr.msk.f32.vlgmr.msra.gmra.mrb[38].mxu1 %vm148_vm1, %v5207_v51 }
0x1bb5   :  { %7599 = vmatpush1.bf16.msra.mxu1 %v10409_v37  ;;  %5611 = vmatprep.mubr.f32.mxu1 %v10390_v28 }
0x1bb6   :  { %7601 = vmatprep.subr.bf16.mxu1 %v10411_v4  ;;  %7595 = vmatpush1.bf16.msra.mxu0 %v10410_v24 }
0x1bb7   :  { %7613 = vmatprep.subr.bf16.mxu0 %v10412_v14 }
0x1bb9   :  { %7603 = vmatpush1.bf16.msra.mxu1 %v10413_v62 }
0x1bba   :  { %7605 = vmatprep.subr.bf16.mxu1 %v10414_v35 }
0x1bbd   :  { %7607 = vmatpush1.bf16.msra.mxu1 %v10415_v23 }
0x1bbe   :  { %7609 = vmatprep.subr.bf16.mxu1 %v10416_v32 }
0x1bc1   :  { %7611 = vmatpush1.bf16.msra.mxu1 %v10417_v30 }
0x1bc2   :  { %7629 = vmatprep.subr.bf16.mxu1 %v10418_v25 }
0x1c77   :  { %v5276_v19 = vpop.f32.mrb[36].mxu1 }
0x1c78   :  { %v5278_v21 = vpop.f32.mrb[37].mxu1  ;;  %v5277_v22 = vadd.f32 %v5276_v19, %v9405_v59 }
0x1c79   :  { %v5279_v27 = vadd.f32 %v5278_v21, %v9423_v3 }
0x1c7b   :  { %v5352_v13 = vpop.f32.mrb[62].mxu0 }
0x1c7c   :  { %v5353_v41 = vadd.f32 %v5352_v13, %v9409_v18  ;;  %v5354_v20 = vpop.f32.mrb[63].mxu0 }
0x1c7d   :  { %v5355_v52 = vadd.f32 %v5354_v20, %v9418_v38 }
0x1c7e   :  { %v5357_v29 = vadd.f32 %v5353_v41, %v5277_v22 }
0x1c80   :  { %v6897_v6 = vmul.f32 -1.442695, %v5357_v29 }
0x1c82   :  { %8104 = vpow2.f32 %v6897_v6 }
0x1c87   :  { %v5443_v10 = vpop.f32.mrb[38].mxu1 }
0x1c88   :  { %v5444_v46 = vadd.f32 %v5443_v10, %v10385_v11  ;;  %v5445_v50 = vpop.f32.mrb[39].mxu1 }
0x1c89   :  { %v5446_v1 = vadd.f32 %v5445_v50, %v10391_v9 }
0x1c8a   :  { %v5448_v47 = vadd.f32 %v5444_v46, %v5375_v40 }
0x1c8c   :  { %v8105_v60 = vpop.eup %8104  ;;  %v6899_v12 = vmul.f32 -1.442695, %v5448_v47 }
0x1c8d   :  { %v5361_v45 = vadd.f32 1.0, %v8105_v60 }
0x1c8e   :  { %8106 = vpow2.f32 %v6899_v12 }
0x1c8f   :  { %8108 = vrcp.f32 %v5361_v45 }
0x1c98   :  { %v8107_v2 = vpop.eup %8106 }
0x1c99   :  { %v8109_v16 = vpop.eup %8108  ;;  %v5452_v56 = vadd.f32 1.0, %v8107_v2 }
0x1c9a   :  { %v5364_v63 = vmul.f32 %v8109_v16, %v5355_v52  ;;  %v5367_v54 = vsub.f32 1.0, %v8109_v16  ;;  %v5373_v21 = vmul.f32 %v8109_v16, %v9928_v57 }
0x1c9b   :  { %8110 = vrcp.f32 %v5452_v56 }
0x1c9c   :  { %v5365_v48 = vadd.f32 %v5364_v63, %v5279_v27 }
0x1c9e   :  { %8112 = vtanh.f32 %v5365_v48  ;;  %v5636_v48 = vld [vmem:[#allocation2 + $0xc0] sm:$0xff] }
0x1ca5   :  { %v8111_v31 = vpop.eup %8110 }
0x1ca6   :  { %v5455_v0 = vmul.f32 %v8111_v31, %v5446_v1  ;;  %v5458_v41 = vsub.f32 1.0, %v8111_v31  ;;  %v5464_v29 = vmul.f32 %v8111_v31, %v9923_v44 }
0x1ca8   :  { %v8113_v42 = vpop.eup %8112  ;;  %v5456_v5 = vadd.f32 %v5455_v0, %v5376_v43 }
0x1ca9   :  { %5369 = vrot.lane.b32.xlu0 %v8113_v42, %s8343_s6 }
0x1caa   :  { %8114 = vtanh.f32 %v5456_v5 }
0x1cb4   :  { %v8115_v51 = vpop.eup %8114 }
0x1cb5   :  { %5460 = vrot.lane.b32.xlu1 %v8115_v51, %s8343_s6 }
0x1d1b   :  { %v5370_v19 = vpop.permute.xlu0 %5369 }
0x1d1c   :  { %v5372_v13 = vmul.f32 %v5370_v19, %v5367_v54 }
0x1d1e   :  { %v9971_v22 = vadd.f32 %v5373_v21, %v5372_v13 }
0x1d20   :  { %5543 = vrot.lane.b32.xlu0 %v9971_v22, %s8343_s6 }
0x1d27   :  { %v5461_v20 = vpop.permute.xlu1 %5460 }
0x1d28   :  { %v5463_v6 = vmul.f32 %v5461_v20, %v5458_v41 }
0x1d2a   :  { %v9976_v10 = vadd.f32 %v5464_v29, %v5463_v6  ;;  %v5637_v29 = vld [vmem:[#allocation2 + $0xc8] sm:$0xff] }
0x1d2c   :  { %5467 = vrot.lane.b32.xlu1 %v9976_v10, %s8343_s6 }
0x1d92   :  { %v5544_v46 = vpop.permute.xlu0 %5543 }
0x1d93   :  { %6901 = vmatmul.mubr.msk.f32.vlgmr.msra.gmra.mrb[40].mxu1 %vm148_vm1, %v5544_v46 }
0x1d94   :  { %7631 = vmatpush1.bf16.msra.mxu1 %v10398_v39  ;;  %5796 = vmatprep.mubr.f32.mxu1 %v10390_v28 }
0x1d95   :  { %7633 = vmatprep.subr.bf16.mxu1 %v10400_v49 }
0x1d98   :  { %7635 = vmatpush1.bf16.msra.mxu1 %v10402_v53 }
0x1d99   :  { %7637 = vmatprep.subr.bf16.mxu1 %v10404_v15 }
0x1d9c   :  { %7639 = vmatpush1.bf16.msra.mxu1 %v10406_v7 }
0x1d9d   :  { %7641 = vmatprep.subr.bf16.mxu1 %v10408_v8 }
0x1d9e   :  { %v5468_v44 = vpop.permute.xlu1 %5467 }
0x1d9f   :  { %6900 = vmatmul.mubr.msk.f32.vlgmr.msra.gmra.mrb[64].mxu0 %vm148_vm1, %v5468_v44 }
0x1da0   :  { %7615 = vmatpush1.bf16.msra.mxu0 %v10395_v33  ;;  %5702 = vmatprep.mubr.f32.mxu0 %v10390_v28 }
0x1da1   :  { %7617 = vmatprep.subr.bf16.mxu0 %v10396_v26  ;;  %7643 = vmatpush1.bf16.msra.mxu1 %v10410_v24 }
0x1da2   :  { %7661 = vmatprep.subr.bf16.mxu1 %v10412_v14 }
0x1da4   :  { %7619 = vmatpush1.bf16.msra.mxu0 %v10397_v61 }
0x1da5   :  { %7621 = vmatprep.subr.bf16.mxu0 %v10399_v34 }
0x1da8   :  { %7623 = vmatpush1.bf16.msra.mxu0 %v10401_v36 }
0x1da9   :  { %7625 = vmatprep.subr.bf16.mxu0 %v10403_v58 }
0x1dac   :  { %7627 = vmatpush1.bf16.msra.mxu0 %v10405_v55 }
0x1dad   :  { %7645 = vmatprep.subr.bf16.mxu0 %v10407_v17 }
0x1daf   :  { %6903 = vmatmul.mubr.msk.f32.vlgmr.msra.gmra.mrb[66].mxu0 %vm148_vm1, %v5468_v44 }
0x1db0   :  { %7647 = vmatpush1.bf16.msra.mxu0 %v10409_v37  ;;  %5872 = vmatprep.mubr.f32.mxu0 %v10390_v28 }
0x1db1   :  { %7649 = vmatprep.subr.bf16.mxu0 %v10411_v4 }
0x1db4   :  { %7651 = vmatpush1.bf16.msra.mxu0 %v10413_v62 }
0x1db5   :  { %7653 = vmatprep.subr.bf16.mxu0 %v10414_v35 }
0x1db8   :  { %7655 = vmatpush1.bf16.msra.mxu0 %v10415_v23 }
0x1db9   :  { %7657 = vmatprep.subr.bf16.mxu0 %v10416_v32 }
0x1dbc   :  { %7659 = vmatpush1.bf16.msra.mxu0 %v10417_v30 }
0x1dbd   :  { %7677 = vmatprep.subr.bf16.mxu0 %v10418_v25 }
0x1e66   :  { %v5613_v57 = vpop.f32.mrb[40].mxu1 }
0x1e67   :  { %v5615_v50 = vpop.f32.mrb[41].mxu1  ;;  %v5614_v47 = vadd.f32 %v5613_v57, %v9409_v18 }
0x1e68   :  { %v5616_v0 = vadd.f32 %v5615_v50, %v9418_v38 }
0x1e72   :  { %v5537_v40 = vpop.f32.mrb[64].mxu0 }
0x1e73   :  { %v5538_v60 = vadd.f32 %v5537_v40, %v9405_v59  ;;  %v5539_v12 = vpop.f32.mrb[65].mxu0 }
0x1e74   :  { %v5540_v42 = vadd.f32 %v5539_v12, %v9423_v3 }
0x1e75   :  { %v5618_v45 = vadd.f32 %v5614_v47, %v5538_v60 }
0x1e77   :  { %v6902_v2 = vmul.f32 -1.442695, %v5618_v45 }
0x1e79   :  { %8116 = vpow2.f32 %v6902_v2 }
0x1e82   :  { %v5704_v52 = vpop.f32.mrb[66].mxu0 }
0x1e83   :  { %v8117_v16 = vpop.eup %8116  ;;  %v5705_v56 = vadd.f32 %v5704_v52, %v10385_v11  ;;  %v5706_v27 = vpop.f32.mrb[67].mxu0 }
0x1e84   :  { %v5622_v63 = vadd.f32 1.0, %v8117_v16  ;;  %v5707_v13 = vadd.f32 %v5706_v27, %v10391_v9 }
0x1e85   :  { %v5709_v1 = vadd.f32 %v5705_v56, %v5636_v48 }
0x1e86   :  { %8118 = vrcp.f32 %v5622_v63 }
0x1e87   :  { %v6904_v31 = vmul.f32 -1.442695, %v5709_v1 }
0x1e89   :  { %8120 = vpow2.f32 %v6904_v31 }
0x1e90   :  { %v8119_v43 = vpop.eup %8118 }
0x1e91   :  { %v5625_v5 = vmul.f32 %v8119_v43, %v5616_v0  ;;  %v5628_v44 = vsub.f32 1.0, %v8119_v43  ;;  %v5634_v50 = vmul.f32 %v8119_v43, %v9971_v22 }
0x1e93   :  { %v8121_v51 = vpop.eup %8120  ;;  %v5626_v54 = vadd.f32 %v5625_v5, %v5540_v42 }
0x1e94   :  { %v5713_v19 = vadd.f32 1.0, %v8121_v51 }
0x1e95   :  { %8122 = vtanh.f32 %v5626_v54 }
0x1e96   :  { %8124 = vrcp.f32 %v5713_v19  ;;  %v5897_v19 = vld [vmem:[#allocation2 + $0xd0] sm:$0xff] }
0x1e9f   :  { %v8123_v21 = vpop.eup %8122 }
0x1ea0   :  { %v8125_v41 = vpop.eup %8124  ;;  %5630 = vrot.lane.b32.xlu0 %v8123_v21, %s8343_s6 }
0x1ea1   :  { %v5716_v20 = vmul.f32 %v8125_v41, %v5707_v13  ;;  %v5719_v60 = vsub.f32 1.0, %v8125_v41  ;;  %v5725_v45 = vmul.f32 %v8125_v41, %v9976_v10 }
0x1ea3   :  { %v5717_v6 = vadd.f32 %v5716_v20, %v5637_v29 }
0x1ea5   :  { %8126 = vtanh.f32 %v5717_v6 }
0x1eaf   :  { %v8127_v46 = vpop.eup %8126 }
0x1eb0   :  { %5721 = vrot.lane.b32.xlu1 %v8127_v46, %s8343_s6 }
0x1f12   :  { %v5631_v57 = vpop.permute.xlu0 %5630 }
0x1f13   :  { %v5633_v40 = vmul.f32 %v5631_v57, %v5628_v44 }
0x1f15   :  { %v10019_v47 = vadd.f32 %v5634_v50, %v5633_v40 }
0x1f17   :  { %5804 = vrot.lane.b32.xlu0 %v10019_v47, %s8343_s6 }
0x1f22   :  { %v5722_v12 = vpop.permute.xlu1 %5721 }
0x1f23   :  { %v5724_v2 = vmul.f32 %v5722_v12, %v5719_v60 }
0x1f25   :  { %v10024_v52 = vadd.f32 %v5725_v45, %v5724_v2  ;;  %v5898_v45 = vld [vmem:[#allocation2 + $0xd8] sm:$0xff] }
0x1f27   :  { %5728 = vrot.lane.b32.xlu1 %v10024_v52, %s8343_s6 }
0x1f89   :  { %v5805_v16 = vpop.permute.xlu0 %5804 }
0x1f8a   :  { %6906 = vmatmul.mubr.msk.f32.vlgmr.msra.gmra.mrb[68].mxu0 %vm148_vm1, %v5805_v16 }
0x1f8b   :  { %7679 = vmatpush1.bf16.msra.mxu0 %v10398_v39  ;;  %6057 = vmatprep.mubr.f32.mxu0 %v10390_v28 }
0x1f8c   :  { %7681 = vmatprep.subr.bf16.mxu0 %v10400_v49 }
0x1f8f   :  { %7683 = vmatpush1.bf16.msra.mxu0 %v10402_v53 }
0x1f90   :  { %7685 = vmatprep.subr.bf16.mxu0 %v10404_v15 }
0x1f93   :  { %7687 = vmatpush1.bf16.msra.mxu0 %v10406_v7 }
0x1f94   :  { %7689 = vmatprep.subr.bf16.mxu0 %v10408_v8 }
0x1f97   :  { %7691 = vmatpush1.bf16.msra.mxu0 %v10410_v24 }
0x1f98   :  { %7709 = vmatprep.subr.bf16.mxu0 %v10412_v14 }
0x1f99   :  { %v5729_v22 = vpop.permute.xlu1 %5728 }
0x1f9a   :  { %6905 = vmatmul.mubr.msk.f32.vlgmr.msra.gmra.mrb[42].mxu1 %vm148_vm1, %v5729_v22 }
0x1f9b   :  { %7663 = vmatpush1.bf16.msra.mxu1 %v10395_v33  ;;  %5963 = vmatprep.mubr.f32.mxu1 %v10390_v28 }
0x1f9c   :  { %7665 = vmatprep.subr.bf16.mxu1 %v10396_v26 }
0x1f9f   :  { %7667 = vmatpush1.bf16.msra.mxu1 %v10397_v61 }
0x1fa0   :  { %7669 = vmatprep.subr.bf16.mxu1 %v10399_v34 }
0x1fa3   :  { %7671 = vmatpush1.bf16.msra.mxu1 %v10401_v36 }
0x1fa4   :  { %7673 = vmatprep.subr.bf16.mxu1 %v10403_v58 }
0x1fa7   :  { %7675 = vmatpush1.bf16.msra.mxu1 %v10405_v55 }
0x1fa8   :  { %7693 = vmatprep.subr.bf16.mxu1 %v10407_v17 }
0x1faa   :  { %6908 = vmatmul.mubr.msk.f32.vlgmr.msra.gmra.mrb[44].mxu1 %vm148_vm1, %v5729_v22 }
0x1fab   :  { %7695 = vmatpush1.bf16.msra.mxu1 %v10409_v37  ;;  %6133 = vmatprep.mubr.f32.mxu1 %v10390_v28 }
0x1fac   :  { %7697 = vmatprep.subr.bf16.mxu1 %v10411_v4 }
0x1faf   :  { %7699 = vmatpush1.bf16.msra.mxu1 %v10413_v62 }
0x1fb0   :  { %7701 = vmatprep.subr.bf16.mxu1 %v10414_v35 }
0x1fb3   :  { %7703 = vmatpush1.bf16.msra.mxu1 %v10415_v23 }
0x1fb4   :  { %7705 = vmatprep.subr.bf16.mxu1 %v10416_v32 }
0x1fb7   :  { %7707 = vmatpush1.bf16.msra.mxu1 %v10417_v30 }
0x1fb8   :  { %7725 = vmatprep.subr.bf16.mxu1 %v10418_v25 }
0x205d   :  { %v5874_v10 = vpop.f32.mrb[68].mxu0 }
0x205e   :  { %v5876_v56 = vpop.f32.mrb[69].mxu0  ;;  %v5875_v63 = vadd.f32 %v5874_v10, %v9409_v18 }
0x205f   :  { %v5877_v41 = vadd.f32 %v5876_v56, %v9418_v38 }
0x206d   :  { %v5798_v27 = vpop.f32.mrb[42].mxu1 }
0x206e   :  { %v5799_v48 = vadd.f32 %v5798_v27, %v9405_v59  ;;  %v5800_v1 = vpop.f32.mrb[43].mxu1 }
0x206f   :  { %v5801_v29 = vadd.f32 %v5800_v1, %v9423_v3 }
0x2070   :  { %v5879_v31 = vadd.f32 %v5875_v63, %v5799_v48 }
0x2072   :  { %v6907_v0 = vmul.f32 -1.442695, %v5879_v31 }
0x2074   :  { %8128 = vpow2.f32 %v6907_v0 }
0x207d   :  { %v5965_v43 = vpop.f32.mrb[44].mxu1 }
0x207e   :  { %v8129_v42 = vpop.eup %8128  ;;  %v5966_v5 = vadd.f32 %v5965_v43, %v10385_v11  ;;  %v5967_v51 = vpop.f32.mrb[45].mxu1 }
0x207f   :  { %v5883_v54 = vadd.f32 1.0, %v8129_v42  ;;  %v5968_v40 = vadd.f32 %v5967_v51, %v10391_v9 }
0x2080   :  { %v5970_v21 = vadd.f32 %v5966_v5, %v5897_v19 }
0x2081   :  { %8130 = vrcp.f32 %v5883_v54 }
0x2082   :  { %v6909_v13 = vmul.f32 -1.442695, %v5970_v21 }
0x2084   :  { %8132 = vpow2.f32 %v6909_v13 }
0x208b   :  { %v8131_v20 = vpop.eup %8130 }
0x208c   :  { %v5886_v6 = vmul.f32 %v8131_v20, %v5877_v41  ;;  %v5889_v22 = vsub.f32 1.0, %v8131_v20  ;;  %v5895_v56 = vmul.f32 %v8131_v20, %v10019_v47 }
0x208e   :  { %v8133_v46 = vpop.eup %8132  ;;  %v5887_v44 = vadd.f32 %v5886_v6, %v5801_v29 }
0x208f   :  { %v5974_v57 = vadd.f32 1.0, %v8133_v46 }
0x2090   :  { %8134 = vtanh.f32 %v5887_v44  ;;  %v6158_v44 = vld [vmem:[#allocation2 + $0xe0] sm:$0xff] }
0x2091   :  { %8136 = vrcp.f32 %v5974_v57 }
0x209a   :  { %v8135_v50 = vpop.eup %8134 }
0x209b   :  { %v8137_v60 = vpop.eup %8136  ;;  %5891 = vrot.lane.b32.xlu0 %v8135_v50, %s8343_s6 }
0x209c   :  { %v5977_v12 = vmul.f32 %v8137_v60, %v5968_v40  ;;  %v5980_v48 = vsub.f32 1.0, %v8137_v60  ;;  %v5986_v31 = vmul.f32 %v8137_v60, %v10024_v52 }
0x209e   :  { %v5978_v2 = vadd.f32 %v5977_v12, %v5898_v45 }
0x20a0   :  { %8138 = vtanh.f32 %v5978_v2 }
0x20aa   :  { %v8139_v16 = vpop.eup %8138 }
0x20ab   :  { %5982 = vrot.lane.b32.xlu1 %v8139_v16, %s8343_s6 }
0x210d   :  { %v5892_v10 = vpop.permute.xlu0 %5891 }
0x210e   :  { %v5894_v27 = vmul.f32 %v5892_v10, %v5889_v22 }
0x2110   :  { %v10067_v63 = vadd.f32 %v5895_v56, %v5894_v27 }
0x2112   :  { %6065 = vrot.lane.b32.xlu0 %v10067_v63, %s8343_s6 }
0x211d   :  { %v5983_v1 = vpop.permute.xlu1 %5982 }
0x211e   :  { %v5985_v0 = vmul.f32 %v5983_v1, %v5980_v48  ;;  %v6159_v48 = vld [vmem:[#allocation2 + $0xe8] sm:$0xff] }
0x2120   :  { %v10072_v43 = vadd.f32 %v5986_v31, %v5985_v0 }
0x2122   :  { %5989 = vrot.lane.b32.xlu1 %v10072_v43, %s8343_s6 }
0x2184   :  { %v6066_v42 = vpop.permute.xlu0 %6065 }
0x2185   :  { %6911 = vmatmul.mubr.msk.f32.vlgmr.msra.gmra.mrb[46].mxu1 %vm148_vm1, %v6066_v42 }
0x2186   :  { %7727 = vmatpush1.bf16.msra.mxu1 %v10398_v39  ;;  %6318 = vmatprep.mubr.f32.mxu1 %v10390_v28 }
0x2187   :  { %7729 = vmatprep.subr.bf16.mxu1 %v10400_v49 }
0x218a   :  { %7731 = vmatpush1.bf16.msra.mxu1 %v10402_v53 }
0x218b   :  { %7733 = vmatprep.subr.bf16.mxu1 %v10404_v15 }
0x218e   :  { %7735 = vmatpush1.bf16.msra.mxu1 %v10406_v7 }
0x218f   :  { %7737 = vmatprep.subr.bf16.mxu1 %v10408_v8 }
0x2192   :  { %7739 = vmatpush1.bf16.msra.mxu1 %v10410_v24 }
0x2193   :  { %7757 = vmatprep.subr.bf16.mxu1 %v10412_v14 }
0x2194   :  { %v5990_v47 = vpop.permute.xlu1 %5989 }
0x2195   :  { %6910 = vmatmul.mubr.msk.f32.vlgmr.msra.gmra.mrb[70].mxu0 %vm148_vm1, %v5990_v47 }
0x2196   :  { %7711 = vmatpush1.bf16.msra.mxu0 %v10395_v33  ;;  %6224 = vmatprep.mubr.f32.mxu0 %v10390_v28 }
0x2197   :  { %7713 = vmatprep.subr.bf16.mxu0 %v10396_v26 }
0x219a   :  { %7715 = vmatpush1.bf16.msra.mxu0 %v10397_v61 }
0x219b   :  { %7717 = vmatprep.subr.bf16.mxu0 %v10399_v34 }
0x219e   :  { %7719 = vmatpush1.bf16.msra.mxu0 %v10401_v36 }
0x219f   :  { %7721 = vmatprep.subr.bf16.mxu0 %v10403_v58 }
0x21a2   :  { %7723 = vmatpush1.bf16.msra.mxu0 %v10405_v55 }
0x21a3   :  { %7741 = vmatprep.subr.bf16.mxu0 %v10407_v17 }
0x21a5   :  { %6913 = vmatmul.mubr.msk.f32.vlgmr.msra.gmra.mrb[72].mxu0 %vm148_vm1, %v5990_v47 }
0x21a6   :  { %7743 = vmatpush1.bf16.msra.mxu0 %v10409_v37  ;;  %6394 = vmatprep.mubr.f32.mxu0 %v10390_v28 }
0x21a7   :  { %7745 = vmatprep.subr.bf16.mxu0 %v10411_v4 }
0x21aa   :  { %7747 = vmatpush1.bf16.msra.mxu0 %v10413_v62 }
0x21ab   :  { %7749 = vmatprep.subr.bf16.mxu0 %v10414_v35 }
0x21ae   :  { %7751 = vmatpush1.bf16.msra.mxu0 %v10415_v23 }
0x21af   :  { %7753 = vmatprep.subr.bf16.mxu0 %v10416_v32 }
0x21b2   :  { %7755 = vmatpush1.bf16.msra.mxu0 %v10417_v30 }
0x21b3   :  { %7773 = vmatprep.subr.bf16.mxu0 %v10418_v25 }
0x2258   :  { %v6135_v14 = vpop.f32.mrb[46].mxu1 }
0x2259   :  { %v6137_v52 = vpop.f32.mrb[47].mxu1  ;;  %v6136_v51 = vadd.f32 %v6135_v14, %v9409_v18 }
0x225a   :  { %v6138_v50 = vadd.f32 %v6137_v52, %v9418_v38 }
0x2268   :  { %v6059_v5 = vpop.f32.mrb[70].mxu0 }
0x2269   :  { %v6060_v54 = vadd.f32 %v6059_v5, %v9405_v59  ;;  %v6061_v19 = vpop.f32.mrb[71].mxu0 }
0x226a   :  { %v6062_v60 = vadd.f32 %v6061_v19, %v9423_v3 }
0x226b   :  { %v6140_v21 = vadd.f32 %v6136_v51, %v6060_v54 }
0x226d   :  { %v6912_v13 = vmul.f32 -1.442695, %v6140_v21 }
0x226f   :  { %8140 = vpow2.f32 %v6912_v13 }
0x2278   :  { %v6226_v41 = vpop.f32.mrb[72].mxu0 }
0x2279   :  { %v8141_v20 = vpop.eup %8140  ;;  %v6227_v29 = vadd.f32 %v6226_v41, %v10385_v11  ;;  %v6228_v6 = vpop.f32.mrb[73].mxu0 }
0x227a   :  { %v6144_v46 = vadd.f32 1.0, %v8141_v20  ;;  %v6229_v10 = vadd.f32 %v6228_v6, %v10391_v9 }
0x227b   :  { %v6231_v57 = vadd.f32 %v6227_v29, %v6158_v44 }
0x227c   :  { %8142 = vrcp.f32 %v6144_v46  ;;  %v6420_v46 = vld [vmem:[#allocation2 + $0xf8] sm:$0xff] }
0x227d   :  { %v6914_v25 = vmul.f32 -1.442695, %v6231_v57 }
0x227f   :  { %8144 = vpow2.f32 %v6914_v25 }
0x2286   :  { %v8143_v40 = vpop.eup %8142 }
0x2287   :  { %v6147_v12 = vmul.f32 %v8143_v40, %v6138_v50  ;;  %v6150_v0 = vsub.f32 1.0, %v8143_v40  ;;  %v6156_v47 = vmul.f32 %v8143_v40, %v10067_v63  ;;  %v10419_v63 = vmov 0.0|0.0  }
0x2289   :  { %v8145_v45 = vpop.eup %8144  ;;  %v6148_v2 = vadd.f32 %v6147_v12, %v6062_v60 }
0x228a   :  { %v6235_v16 = vadd.f32 1.0, %v8145_v45 }
0x228b   :  { %8146 = vtanh.f32 %v6148_v2 }
0x228c   :  { %8148 = vrcp.f32 %v6235_v16 }
0x2295   :  { %v8147_v22 = vpop.eup %8146 }
0x2296   :  { %v8149_v56 = vpop.eup %8148  ;;  %6152 = vrot.lane.b32.xlu0 %v8147_v22, %s8343_s6 }
0x2297   :  { %v6238_v27 = vmul.f32 %v8149_v56, %v6229_v10  ;;  %v6241_v5 = vsub.f32 1.0, %v8149_v56  ;;  %v6247_v54 = vmul.f32 %v8149_v56, %v10072_v43 }
0x2299   :  { %v6239_v1 = vadd.f32 %v6238_v27, %v6159_v48 }
0x229b   :  { %8150 = vtanh.f32 %v6239_v1 }
0x22a5   :  { %v8151_v31 = vpop.eup %8150 }
0x22a6   :  { %6243 = vrot.lane.b32.xlu1 %v8151_v31, %s8343_s6 }
0x2308   :  { %v6153_v42 = vpop.permute.xlu0 %6152 }
0x2309   :  { %v6155_v14 = vmul.f32 %v6153_v42, %v6150_v0 }
0x230b   :  { %v10115_v52 = vadd.f32 %v6156_v47, %v6155_v14 }
0x230d   :  { %6326 = vrot.lane.b32.xlu0 %v10115_v52, %s8343_s6 }
0x2318   :  { %v6244_v51 = vpop.permute.xlu1 %6243 }
0x2319   :  { %v6246_v19 = vmul.f32 %v6244_v51, %v6241_v5 }
0x231b   :  { %v10120_v21 = vadd.f32 %v6247_v54, %v6246_v19 }
0x231d   :  { %6250 = vrot.lane.b32.xlu1 %v10120_v21, %s8343_s6 }
0x237f   :  { %v6327_v13 = vpop.permute.xlu0 %6326 }
0x2380   :  { %6916 = vmatmul.mubr.msk.f32.vlgmr.msra.gmra.mrb[74].mxu0 %vm148_vm1, %v6327_v13  ;;  %v6682_v13 = vld [vmem:[%s10225_s13 + $0x10] sm:$0xff] }
0x2381   :  { %7775 = vmatpush1.bf16.msra.mxu0 %v10398_v39  ;;  %6579 = vmatprep.mubr.f32.mxu0 %v10390_v28 }
0x2382   :  { %7777 = vmatprep.subr.bf16.mxu0 %v10400_v49 }
0x2385   :  { %7779 = vmatpush1.bf16.msra.mxu0 %v10402_v53 }
0x2386   :  { %7781 = vmatprep.subr.bf16.mxu0 %v10404_v15 }
0x2389   :  { %7783 = vmatpush1.bf16.msra.mxu0 %v10406_v7 }
0x238a   :  { %7785 = vmatprep.subr.bf16.mxu0 %v10408_v8  ;;  %v6419_v8 = vld [vmem:[#allocation2 + $0xf0] sm:$0xff] }
0x238d   :  { %7787 = vmatpush1.bf16.msra.mxu0 %v10410_v24 }
0x238e   :  { %7804 = vmatprep.subr.bf16.mxu0 %v10419_v63 }
0x238f   :  { %v6251_v43 = vpop.permute.xlu1 %6250 }
0x2390   :  { %6915 = vmatmul.mubr.msk.f32.vlgmr.msra.gmra.mrb[48].mxu1 %vm148_vm1, %v6251_v43 }
0x2391   :  { %7759 = vmatpush1.bf16.msra.mxu1 %v10395_v33  ;;  %6485 = vmatprep.mubr.f32.mxu1 %v10390_v28 }
0x2392   :  { %7761 = vmatprep.subr.bf16.mxu1 %v10396_v26 }
0x2395   :  { %7763 = vmatpush1.bf16.msra.mxu1 %v10397_v61 }
0x2396   :  { %7765 = vmatprep.subr.bf16.mxu1 %v10399_v34 }
0x2399   :  { %7767 = vmatpush1.bf16.msra.mxu1 %v10401_v36 }
0x239a   :  { %7769 = vmatprep.subr.bf16.mxu1 %v10403_v58 }
0x239d   :  { %7771 = vmatpush1.bf16.msra.mxu1 %v10405_v55 }
0x239e   :  { %7789 = vmatprep.subr.bf16.mxu1 %v10407_v17 }
0x23a0   :  { %6918 = vmatmul.mubr.msk.f32.vlgmr.msra.gmra.mrb[50].mxu1 %vm148_vm1, %v6251_v43 }
0x23a1   :  { %7791 = vmatpush1.bf16.msra.mxu1 %v10409_v37  ;;  %6655 = vmatprep.mubr.f32.mxu1 %v10390_v28 }
0x23a2   :  { %7793 = vmatprep.subr.bf16.mxu1 %v10411_v4 }
0x23a5   :  { %7795 = vmatpush1.bf16.msra.mxu1 %v10413_v62 }
0x23a6   :  { %7797 = vmatprep.subr.bf16.mxu1 %v10414_v35 }
0x23a9   :  { %7799 = vmatpush1.bf16.msra.mxu1 %v10415_v23 }
0x23aa   :  { %7801 = vmatprep.subr.bf16.mxu1 %v10416_v32 }
0x23ad   :  { %7803 = vmatpush1.bf16.msra.mxu1 %v10417_v30 }
0x2453   :  { %v6396_v33 = vpop.f32.mrb[74].mxu0 }
0x2454   :  { %v6398_v26 = vpop.f32.mrb[75].mxu0  ;;  %v6397_v39 = vadd.f32 %v6396_v33, %v9409_v18  ;;  %v6684_v33 = vld [vmem:[%s10225_s13 + $0x20] sm:$0xff] }
0x2455   :  { %v6399_v4 = vadd.f32 %v6398_v26, %v9418_v38  ;;  %v6685_v26 = vld [vmem:[%s10225_s13 + $0x28] sm:$0xff] }
0x2463   :  { %v6320_v61 = vpop.f32.mrb[48].mxu1 }
0x2464   :  { %v6321_v34 = vadd.f32 %v6320_v61, %v9405_v59  ;;  %v6322_v49 = vpop.f32.mrb[49].mxu1  ;;  %v7811_v61 = vpack.c.bf16 %v6685_v26, %v6684_v33 }
0x2465   :  { %v6323_v35 = vadd.f32 %v6322_v49, %v9423_v3  ;;  %v6687_v49 = vld [vmem:[%s10225_s13 + $0x38] sm:$0xff] }
0x2466   :  { %v6401_v36 = vadd.f32 %v6397_v39, %v6321_v34  ;;  %v6686_v34 = vld [vmem:[%s10225_s13 + $0x30] sm:$0xff] }
0x2468   :  { %v6917_v53 = vmul.f32 -1.442695, %v6401_v36  ;;  %v7814_v36 = vpack.c.bf16 %v6687_v49, %v6686_v34 }
0x246a   :  { %8152 = vpow2.f32 %v6917_v53 }
0x2473   :  { %v6487_v58 = vpop.f32.mrb[50].mxu1 }
0x2474   :  { %v8153_v15 = vpop.eup %8152  ;;  %v6488_v55 = vadd.f32 %v6487_v58, %v10385_v11  ;;  %v6489_v7 = vpop.f32.mrb[51].mxu1 }
0x2475   :  { %v6405_v17 = vadd.f32 1.0, %v8153_v15  ;;  %v6490_v11 = vadd.f32 %v6489_v7, %v10391_v9 }
0x2476   :  { %v6492_v37 = vadd.f32 %v6488_v55, %v6419_v8  ;;  %v6923_v8 = vld [vmem:[%s10226_s14] ss:$0 sm:$0xff] }
0x2477   :  { %8154 = vrcp.f32 %v6405_v17 }
0x2478   :  { %v6919_v24 = vmul.f32 -1.442695, %v6492_v37 }
0x247a   :  { %8156 = vpow2.f32 %v6919_v24 }
0x2481   :  { %v8155_v62 = vpop.eup %8154 }
0x2482   :  { %v6408_v23 = vmul.f32 %v8155_v62, %v6399_v4  ;;  %v6411_v25 = vsub.f32 1.0, %v8155_v62  ;;  %v6417_v40 = vmul.f32 %v8155_v62, %v10115_v52 }
0x2484   :  { %v8157_v32 = vpop.eup %8156  ;;  %v6409_v30 = vadd.f32 %v6408_v23, %v6323_v35 }
0x2485   :  { %v6496_v41 = vadd.f32 1.0, %v8157_v32  ;;  %v6926_v32 = vld [vmem:[#allocation3] ss:$0 sm:$0xff] }
0x2486   :  { %8158 = vtanh.f32 %v6409_v30 }
0x2487   :  { %8160 = vrcp.f32 %v6496_v41 }
0x2490   :  { %v8159_v20 = vpop.eup %8158 }
0x2491   :  { %v8161_v29 = vpop.eup %8160  ;;  %6413 = vrot.lane.b32.xlu1 %v8159_v20, %s8343_s6 }
0x2492   :  { %v6499_v6 = vmul.f32 %v8161_v29, %v6490_v11  ;;  %v6502_v45 = vsub.f32 1.0, %v8161_v29  ;;  %v6508_v2 = vmul.f32 %v8161_v29, %v10120_v21 }
0x2494   :  { %v6500_v44 = vadd.f32 %v6499_v6, %v6420_v46 }
0x2496   :  { %8162 = vtanh.f32 %v6500_v44 }
0x24a0   :  { %v8163_v57 = vpop.eup %8162 }
0x24a1   :  { %6504 = vrot.lane.b32.xlu0 %v8163_v57, %s8343_s6 }
0x2503   :  { %v6414_v50 = vpop.permute.xlu1 %6413 }
0x2504   :  { %v6416_v60 = vmul.f32 %v6414_v50, %v6411_v25 }
0x2506   :  { %v6418_v12 = vadd.f32 %v6417_v40, %v6416_v60 }
0x2508   :  { %6587 = vrot.lane.b32.xlu0 %v6418_v12, %s8343_s6 }
0x2513   :  { %v6505_v9 = vpop.permute.xlu0 %6504 }
0x2514   :  { %v6507_v16 = vmul.f32 %v6505_v9, %v6502_v45 }
0x2516   :  { %v6509_v22 = vadd.f32 %v6508_v2, %v6507_v16 }
0x2518   :  { %6511 = vrot.lane.b32.xlu1 %v6509_v22, %s8343_s6 }
0x257a   :  { %v6588_v10 = vpop.permute.xlu0 %6587 }
0x257b   :  { %6921 = vmatmul.mubr.msk.f32.vlgmr.msra.gmra.mrb[52].mxu1 %vm148_vm1, %v6588_v10 }
0x258a   :  { %v6512_v56 = vpop.permute.xlu1 %6511 }
0x258b   :  { %6920 = vmatmul.mubr.msk.f32.vlgmr.msra.gmra.mrb[76].mxu0 %vm148_vm1, %v6512_v56 }
0x258c   :  { %7009 = vmatprep.mubr.msk.f32.mxu0 %vm8323_vm0, %v10390_v28 }
0x264e   :  { %v6657_v27 = vpop.f32.mrb[52].mxu1 }
0x264f   :  { %v6659_v48 = vpop.f32.mrb[53].mxu1  ;;  %v6658_v31 = vadd.f32 %v6657_v27, %v9409_v18  ;;  %v6680_v18 = vld [vmem:[%s10225_s13] sm:$0xff] }
0x2650   :  { %v6660_v51 = vadd.f32 %v6659_v48, %v9418_v38  ;;  %v6683_v38 = vld [vmem:[%s10225_s13 + $0x18] sm:$0xff] }
0x265e   :  { %v6581_v1 = vpop.f32.mrb[76].mxu0 }
0x265f   :  { %v6582_v0 = vadd.f32 %v6581_v1, %v9405_v59  ;;  %v6583_v42 = vpop.f32.mrb[77].mxu0  ;;  %v6681_v59 = vld [vmem:[%s10225_s13 + $0x8] sm:$0xff] }
0x2660   :  { %v6584_v19 = vadd.f32 %v6583_v42, %v9423_v3  ;;  %v7805_v43 = vpack.c.bf16 %v6681_v59, %v6680_v18  ;;  %v7808_v3 = vpack.c.bf16 %v6683_v38, %v6682_v13 }
0x2661   :  { %v6662_v47 = vadd.f32 %v6658_v31, %v6582_v0 }
0x2662   :  { %7806 = vmatpush3.bf16.msra.mxu0 %v7805_v43 }
0x2663   :  { %v6922_v14 = vmul.f32 -1.442695, %v6662_v47  ;;  %7807 = vmatprep.subr.bf16.mxu0 %v10419_v63 }
0x2665   :  { %8164 = vpow2.f32 %v6922_v14 }
0x2666   :  { %7809 = vmatpush3.bf16.msra.mxu0 %v7808_v3 }
0x2667   :  { %7810 = vmatprep.subr.bf16.mxu0 %v10419_v63 }
0x266a   :  { %7812 = vmatpush3.bf16.msra.mxu0 %v7811_v61 }
0x266b   :  { %7813 = vmatprep.subr.bf16.mxu0 %v10419_v63  ;;  %v6925_v63 = vld [vmem:[%s10227_s15] ss:$0 sm:$0xff] }
0x266e   :  { %7815 = vmatpush3.bf16.msra.mxu0 %v7814_v36 }
0x266f   :  { %v8165_v52 = vpop.eup %8164 }
0x2670   :  { %v6666_v5 = vadd.f32 1.0, %v8165_v52 }
0x2672   :  { %8166 = vrcp.f32 %v6666_v5 }
0x267c   :  { %v8167_v54 = vpop.eup %8166 }
0x267d   :  { %v6669_v28 = vmul.f32 %v8167_v54, %v6660_v51  ;;  %v6672_v53 = vsub.f32 1.0, %v8167_v54  ;;  %v6678_v15 = vmul.f32 %v8167_v54, %v6418_v12 }
0x267f   :  { %v6670_v21 = vadd.f32 %v6669_v28, %v6584_v19 }
0x2681   :  { %8168 = vtanh.f32 %v6670_v21 }
0x268b   :  { %v8169_v39 = vpop.eup %8168 }
0x268c   :  { %6674 = vrot.lane.b32.xlu1 %v8169_v39, %s8343_s6 }
0x26fe   :  { %v6675_v58 = vpop.permute.xlu1 %6674 }
0x26ff   :  { %v6677_v55 = vmul.f32 %v6675_v58, %v6672_v53 }
0x2701   :  { %v6679_v7 = vadd.f32 %v6678_v15, %v6677_v55 }
0x2703   :  { %6696 = vrot.lane.b32.xlu0 %v6679_v7, %s8343_s6 }
0x2775   :  { %v6697_v17 = vpop.permute.xlu0 %6696 }
0x2776   :  { %7010 = vmatmul.mubr.msk.f32.vlgmr.msra.gmra.mrb[78].mxu0 %vm148_vm1, %v6697_v17 }
0x2849   :  { %v6766_v37 = vpop.f32.mrb[78].mxu0 }
0x284a   :  { %v6767_v24 = vadd.f32 %v6923_v8, %v6766_v37  ;;  %v7011_v4 = vpop.f32.mrb[79].mxu0 }
0x284c   :  { %v6770_v62 = vmax.f32 %v6767_v24, 0.0 }
0x284e   :  { %v6778_v35 = vmul.f32 %v6925_v63, %v6770_v62 }
0x2850   :  { %v6780_v23 = vsel %vm6779_vm14, %v6778_v35, 0.0 }
0x2851   :  { %6781 = vadd.xlane.f32.xlu1 %v6780_v23 }
0x28de   :  { %v6782_v30 = vpop.xlane.xlu1 %6781 }
0x28df   :  { %v6790_v41 = vadd.f32 %v6926_v32, %v6782_v30 }
0x28e1   :  { %v6927_v20 = vmul.f32 -1.442695, %v6790_v41 }
0x28e3   :  { %8170 = vpow2.f32 %v6927_v20 }
0x28ed   :  { %v8171_v11 = vpop.eup %8170 }
0x28ee   :  { %v6794_v29 = vadd.f32 1.0, %v8171_v11 }
0x28f0   :  { %8172 = vrcp.f32 %v6794_v29 }
0x28fa   :  { %v8173_v6 = vpop.eup %8172 }
0x28fb   :  { %6798 = vst.msk [vmem:[%s10229_s17] sm:$0xff] %vm6797_vm15, %v8173_v6 }
0x28fc   :  { %6803 = vsyncpa [#allocation5], 1 }
0x28fd   :  { %6804 = vsyncpa [#allocation7], 1 }
0x28fe   :  { %6805 = vsyncpa [#allocation10], 1 }
0x28ff   :  { %6806 = vsyncpa [#allocation13], 1 }

</bundles_post_ra>
